<compile_context>
chip_gen: v5e
topology: v5e:2x2
jax: 0.10.0
libtpu: 0.0.40
codegen_flags: <defaults>
</compile_context>

<pallas_src>
import numpy as np

import jax
import jax.numpy as jnp
from jax.experimental import pallas as pl
from jax.experimental.pallas import tpu as pltpu


# Architecture constants implied by the PyTorch module: fc1 = Linear(64*9, 64)
# forces a 3x3 conv3 output, hence a 12x12 input.
H = W = 12
C_IN = 4
C_MID = 64
N_ACT = 4
K = 3                       # conv kernel size
KK = K * K                  # 9 taps
P1 = H * W                  # 144 spatial positions after conv1
H2 = W2 = H // 2            # 6
S2 = H2 * W2                # 36 positions after conv2
S2P = 40                    # conv2 positions padded to a multiple of 8
H3 = W3 = H // 4            # 3
S3 = H3 * W3                # 9 positions after conv3

TILE_B = 8                  # samples per grid step (multiple of 8)


# ----------------------------------------------------------------------------
# Fused forward kernel: conv1 -> conv2 -> conv3 -> fc1 -> fc2, all in VMEM.
# ----------------------------------------------------------------------------
def _qnet_kernel(col1_ref, g2_ref, g3_ref,
                 w1_ref, w2_ref, w3_ref, fc1_ref, fc2_ref,
                 b1_ref, b2_ref, b3_ref, fc1b_ref, fc2b_ref,
                 out_ref):
    f32, bf16 = jnp.float32, jnp.bfloat16

    g2 = g2_ref[...]          # (360, 144)  bf16, 9 taps stacked along rows
    g3 = g3_ref[...]          # (648, 320)  bf16, block-diag over the tile
    w1 = w1_ref[...]          # (36, 64)    bf16
    w2 = w2_ref[...]          # (576, 64)   bf16, rows = tap*64 + cin
    w3 = w3_ref[...]          # (576, 64)   bf16
    fc1 = fc1_ref[...]        # (576, 64)   bf16, rows = s*64 + c (NCHW fold)
    fc2 = fc2_ref[...]        # (64, 4)     bf16

    # ---- conv1 (stride 1): host im2col -> ONE batched dot, M = TILE_B*144.
    a1 = jnp.dot(col1_ref[...], w1, preferred_element_type=f32)
    a1 = jnp.maximum(a1 + b1_ref[...], 0.0).astype(bf16)          # (1152, 64)

    # ---- conv2 (stride 2): per-sample gather dot (all 9 taps at once),
    #      lane-concat taps -> (40, 576), stack samples, ONE channel-mix dot.
    rows = []
    for b in range(TILE_B):
        a1_b = a1[b * P1:(b + 1) * P1, :]                         # (144, 64)
        pb = jnp.dot(g2, a1_b, preferred_element_type=f32)        # (360, 64)
        rows.append(jnp.concatenate(
            [pb[t * S2P:(t + 1) * S2P, :] for t in range(KK)], axis=1))
    patches2 = jnp.concatenate(rows, axis=0).astype(bf16)         # (320, 576)
    a2 = jnp.dot(patches2, w2, preferred_element_type=f32)
    a2 = jnp.maximum(a2 + b2_ref[...], 0.0).astype(bf16)          # (320, 64)

    # ---- conv3 (stride 2): ONE block-diagonal gather dot for the whole tile
    #      (rows ordered tap-major, then spatial, then sample), lane-concat
    #      taps, ONE channel-mix dot.
    p3 = jnp.dot(g3, a2, preferred_element_type=f32)              # (648, 64)
    blk = S3 * TILE_B                                             # 72
    patches3 = jnp.concatenate(
        [p3[t * blk:(t + 1) * blk, :] for t in range(KK)], axis=1
    ).astype(bf16)                                                # (72, 576)
    a3 = jnp.dot(patches3, w3, preferred_element_type=f32)
    a3 = jnp.maximum(a3 + b3_ref[...], 0.0)                       # (72, 64) rows = s*8 + b

    # ---- fc1: flatten = lane-concat of the 9 aligned (TILE_B, 64) spatial
    #      blocks; PyTorch's channel-major flatten is folded into fc1 packing.
    a3f = jnp.concatenate(
        [a3[s * TILE_B:(s + 1) * TILE_B, :] for s in range(S3)], axis=1
    ).astype(bf16)                                                # (8, 576)
    h = jnp.dot(a3f, fc1, preferred_element_type=f32)
    h = jnp.maximum(h + fc1b_ref[...], 0.0).astype(bf16)          # (8, 64)

    # ---- fc2
    out = jnp.dot(h, fc2, preferred_element_type=f32) + fc2b_ref[...]
    out_ref[...] = out.astype(out_ref.dtype)                      # (8, 4)


# ----------------------------------------------------------------------------
# Host-side glue (tiny) and one-time weight / gather-matrix packing.
# ----------------------------------------------------------------------------
def _im2col_conv1(x_nchw):
    """(N,4,12,12) NCHW -> (N*144, 36) patches, column order (kh, kw, cin)."""
    n = x_nchw.shape[0]
    x = jnp.transpose(x_nchw, (0, 2, 3, 1))                       # NHWC
    xp = jnp.pad(x, ((0, 0), (1, 1), (1, 1), (0, 0)))
    taps = [xp[:, i:i + H, j:j + W, :] for i in range(K) for j in range(K)]
    col = jnp.stack(taps, axis=3)                                 # (N,12,12,9,4)
    return col.reshape(n * P1, KK * C_IN)


def _gather_conv2_np():
    """(9*40, 144) 0/1: row = tap*40 + (ho*6+wo) -> input (2ho+i-1)*12+(2wo+j-1)."""
    g = np.zeros((KK * S2P, P1), np.float32)
    for i in range(K):
        for j in range(K):
            t = i * K + j
            for ho in range(H2):
                for wo in range(W2):
                    hi, wi = 2 * ho + i - 1, 2 * wo + j - 1
                    if 0 <= hi < H and 0 <= wi < W:
                        g[t * S2P + ho * W2 + wo, hi * W + wi] = 1.0
    return g


def _gather_conv3_np(tile_b):
    """(9*9*tile_b, tile_b*40) 0/1, block-diagonal over samples.

    Row = tap*(9*tile_b) + (ho*3+wo)*tile_b + b; column = b*40 + hi*6 + wi.
    The 4 padded conv2 rows per sample (36..39) are never referenced.
    """
    g = np.zeros((KK * S3 * tile_b, tile_b * S2P), np.float32)
    for i in range(K):
        for j in range(K):
            t = i * K + j
            for ho in range(H3):
                for wo in range(W3):
                    o = ho * W3 + wo
                    hi, wi = 2 * ho + i - 1, 2 * wo + j - 1
                    if 0 <= hi < H2 and 0 <= wi < W2:
                        for b in range(tile_b):
                            g[t * (S3 * tile_b) + o * tile_b + b,
                              b * S2P + hi * W2 + wi] = 1.0
    return g


def pack_params(params):
    """One-time repack of PyTorch-layout params into matmul-ready operands."""
    bf16 = jnp.bfloat16

    def conv_taps_flat(w):      # (Cout, Cin, 3, 3) -> (9*Cin, Cout), row = t*Cin+ci
        co, ci, kh, kw = w.shape
        return jnp.transpose(w, (2, 3, 1, 0)).reshape(kh * kw * ci, co)

    # fold NCHW channel-major flatten: fc1p[s*64 + c, o] = fc1_w[o, c*9 + s]
    fc1p = jnp.transpose(params["fc1_w"].reshape(C_MID, C_MID, S3),
                         (2, 1, 0)).reshape(S3 * C_MID, C_MID)

    return {
        "g2": jnp.asarray(_gather_conv2_np()).astype(bf16),
        "g3": jnp.asarray(_gather_conv3_np(TILE_B)).astype(bf16),
        "w1": jnp.transpose(params["conv1_w"], (2, 3, 1, 0)).reshape(
            KK * C_IN, C_MID).astype(bf16),
        "w2": conv_taps_flat(params["conv2_w"]).astype(bf16),
        "w3": conv_taps_flat(params["conv3_w"]).astype(bf16),
        "fc1": fc1p.astype(bf16),
        "fc2": params["fc2_w"].T.astype(bf16),
        "b1": params["conv1_b"].reshape(1, C_MID).astype(jnp.float32),
        "b2": params["conv2_b"].reshape(1, C_MID).astype(jnp.float32),
        "b3": params["conv3_b"].reshape(1, C_MID).astype(jnp.float32),
        "fc1b": params["fc1_b"].reshape(1, C_MID).astype(jnp.float32),
        "fc2b": params["fc2_b"].reshape(1, N_ACT).astype(jnp.float32),
    }


def qnetwork_forward(packed, x_nchw):
    n = x_nchw.shape[0]
    assert x_nchw.shape[1:] == (C_IN, H, W), x_nchw.shape
    npad = ((n + TILE_B - 1) // TILE_B) * TILE_B
    xp = jnp.pad(x_nchw.astype(jnp.float32),
                 ((0, npad - n), (0, 0), (0, 0), (0, 0)))
    col1 = _im2col_conv1(xp).astype(jnp.bfloat16)        # (npad*144, 36)

    steps = npad // TILE_B
    macs_step = (TILE_B * P1 * (KK * C_IN) * C_MID             # conv1
                 + TILE_B * (KK * S2P) * P1 * C_MID            # conv2 gathers
                 + (TILE_B * S2P) * (KK * C_MID) * C_MID       # conv2 mix
                 + (KK * S3 * TILE_B) * (TILE_B * S2P) * C_MID # conv3 gather
                 + (S3 * TILE_B) * (KK * C_MID) * C_MID        # conv3 mix
                 + TILE_B * (S3 * C_MID) * C_MID               # fc1
                 + TILE_B * C_MID * N_ACT)                     # fc2
    bytes_accessed = (col1.size * col1.dtype.itemsize + npad * N_ACT * 4
                      + sum(int(np.prod(v.shape)) * v.dtype.itemsize
                            for v in packed.values()))

    out = pl.pallas_call(
        _qnet_kernel,
        out_shape=jax.ShapeDtypeStruct((npad, N_ACT), jnp.float32),
        grid=(steps,),
        in_specs=[
            pl.BlockSpec((TILE_B * P1, KK * C_IN), lambda i: (i, 0)),       # col1
            pl.BlockSpec((KK * S2P, P1), lambda i: (0, 0)),                 # g2
            pl.BlockSpec((KK * S3 * TILE_B, TILE_B * S2P), lambda i: (0, 0)),  # g3
            pl.BlockSpec((KK * C_IN, C_MID), lambda i: (0, 0)),             # w1
            pl.BlockSpec((KK * C_MID, C_MID), lambda i: (0, 0)),            # w2
            pl.BlockSpec((KK * C_MID, C_MID), lambda i: (0, 0)),            # w3
            pl.BlockSpec((S3 * C_MID, C_MID), lambda i: (0, 0)),            # fc1
            pl.BlockSpec((C_MID, N_ACT), lambda i: (0, 0)),                 # fc2
            pl.BlockSpec((1, C_MID), lambda i: (0, 0)),                     # b1
            pl.BlockSpec((1, C_MID), lambda i: (0, 0)),                     # b2
            pl.BlockSpec((1, C_MID), lambda i: (0, 0)),                     # b3
            pl.BlockSpec((1, C_MID), lambda i: (0, 0)),                     # fc1b
            pl.BlockSpec((1, N_ACT), lambda i: (0, 0)),                     # fc2b
        ],
        out_specs=pl.BlockSpec((TILE_B, N_ACT), lambda i: (i, 0)),
        compiler_params=pltpu.CompilerParams(
            dimension_semantics=("parallel",)),
        cost_estimate=pl.CostEstimate(flops=2 * steps * macs_step,
                                      transcendentals=0,
                                      bytes_accessed=bytes_accessed),
    )(col1, packed["g2"], packed["g3"],
      packed["w1"], packed["w2"], packed["w3"], packed["fc1"], packed["fc2"],
      packed["b1"], packed["b2"], packed["b3"], packed["fc1b"], packed["fc2b"])
    return out[:n]


# ----------------------------------------------------------------------------
# Raw (PyTorch-layout) params + pure-JAX reference of the nn.Module.
# ----------------------------------------------------------------------------
def init_params(key):
    ks = jax.random.split(key, 10)

    def u(k, shape, fan_in):
        bound = 1.0 / jnp.sqrt(jnp.float32(fan_in))
        return jax.random.uniform(k, shape, jnp.float32, -bound, bound)

    p = {}
    p["conv1_w"] = u(ks[0], (64, 4, 3, 3), 4 * 9)
    p["conv1_b"] = u(ks[1], (64,), 4 * 9)
    p["conv2_w"] = u(ks[2], (64, 64, 3, 3), 64 * 9)
    p["conv2_b"] = u(ks[3], (64,), 64 * 9)
    p["conv3_w"] = u(ks[4], (64, 64, 3, 3), 64 * 9)
    p["conv3_b"] = u(ks[5], (64,), 64 * 9)
    p["fc1_w"] = u(ks[6], (64, 576), 576)   # PyTorch Linear: (out, in)
    p["fc1_b"] = u(ks[7], (64,), 576)
    p["fc2_w"] = u(ks[8], (4, 64), 64)
    p["fc2_b"] = u(ks[9], (4,), 64)
    return p


def reference_forward(params, x):
    hp = jax.lax.Precision.HIGHEST
    dn = ("NCHW", "OIHW", "NCHW")

    def conv(x, w, b, stride):
        y = jax.lax.conv_general_dilated(
            x, w, (stride, stride), ((1, 1), (1, 1)),
            dimension_numbers=dn, precision=hp)
        return jax.nn.relu(y + b[None, :, None, None])

    y = conv(x, params["conv1_w"], params["conv1_b"], 1)
    y = conv(y, params["conv2_w"], params["conv2_b"], 2)
    y = conv(y, params["conv3_w"], params["conv3_b"], 2)
    y = y.reshape(y.shape[0], -1)                        # channel-major flatten
    y = jax.nn.relu(jnp.dot(y, params["fc1_w"].T, precision=hp)
                    + params["fc1_b"])
    return jnp.dot(y, params["fc2_w"].T, precision=hp) + params["fc2_b"]


if __name__ == "__main__":
    key = jax.random.PRNGKey(0)
    kx, kp = jax.random.split(key)
    # spatial=12 so two stride-2 convs give 3x3 -> 64*9 features for fc1
    x = jax.random.normal(kx, (2, C_IN, H, W), dtype=jnp.float32)
    params = init_params(kp)
    packed = pack_params(params)   # one-time weight repack (outside hot path)

    fwd = jax.jit(qnetwork_forward)
    out = jax.block_until_ready(fwd(packed, x))

    assert out.shape == (2, N_ACT), out.shape
    assert bool(jnp.all(jnp.isfinite(out)))

    # Numerical check against a pure-JAX reference of the PyTorch module.
    # Kernel uses bf16 MXU operands with f32 accumulation; tolerance reflects
    # that (expected max error ~3e-3 through 5 layers).
    ref = reference_forward(params, x)
    assert bool(jnp.allclose(out, ref, rtol=2e-2, atol=2e-2)), (
        float(jnp.max(jnp.abs(out - ref))))
    print("KERNEL_OK")
</pallas_src>

<mosaic_0001>
module attributes {stable_mosaic.version = 11 : i64} {
  func.func @_qnet_kernel(%arg0: i32, %arg1: memref<1152x36xbf16, #tpu.memory_space<vmem>>, %arg2: memref<360x144xbf16, #tpu.memory_space<vmem>>, %arg3: memref<648x320xbf16, #tpu.memory_space<vmem>>, %arg4: memref<36x64xbf16, #tpu.memory_space<vmem>>, %arg5: memref<576x64xbf16, #tpu.memory_space<vmem>>, %arg6: memref<576x64xbf16, #tpu.memory_space<vmem>>, %arg7: memref<576x64xbf16, #tpu.memory_space<vmem>>, %arg8: memref<64x4xbf16, #tpu.memory_space<vmem>>, %arg9: memref<1x64xf32, #tpu.memory_space<vmem>>, %arg10: memref<1x64xf32, #tpu.memory_space<vmem>>, %arg11: memref<1x64xf32, #tpu.memory_space<vmem>>, %arg12: memref<1x64xf32, #tpu.memory_space<vmem>>, %arg13: memref<1x4xf32, #tpu.memory_space<vmem>>, %arg14: memref<8x4xf32, #tpu.memory_space<vmem>>) attributes {dimension_semantics = [#tpu.dimension_semantics<parallel>], iteration_bounds = array<i64: 1>, scalar_prefetch = 0 : i64, scratch_operands = 0 : i64, tpu.core_type = #tpu.core_type<tc>, window_params = [{transform_indices = @transform_0, window_bounds = array<i64: 1152, 36>}, {pipeline_mode = #tpu.pipeline_mode<synchronous>, transform_indices = @transform_1, window_bounds = array<i64: 360, 144>}, {pipeline_mode = #tpu.pipeline_mode<synchronous>, transform_indices = @transform_2, window_bounds = array<i64: 648, 320>}, {pipeline_mode = #tpu.pipeline_mode<synchronous>, transform_indices = @transform_3, window_bounds = array<i64: 36, 64>}, {pipeline_mode = #tpu.pipeline_mode<synchronous>, transform_indices = @transform_4, window_bounds = array<i64: 576, 64>}, {pipeline_mode = #tpu.pipeline_mode<synchronous>, transform_indices = @transform_5, window_bounds = array<i64: 576, 64>}, {pipeline_mode = #tpu.pipeline_mode<synchronous>, transform_indices = @transform_6, window_bounds = array<i64: 576, 64>}, {pipeline_mode = #tpu.pipeline_mode<synchronous>, transform_indices = @transform_7, window_bounds = array<i64: 64, 4>}, {pipeline_mode = #tpu.pipeline_mode<synchronous>, transform_indices = @transform_8, window_bounds = array<i64: 1, 64>}, {pipeline_mode = #tpu.pipeline_mode<synchronous>, transform_indices = @transform_9, window_bounds = array<i64: 1, 64>}, {pipeline_mode = #tpu.pipeline_mode<synchronous>, transform_indices = @transform_10, window_bounds = array<i64: 1, 64>}, {pipeline_mode = #tpu.pipeline_mode<synchronous>, transform_indices = @transform_11, window_bounds = array<i64: 1, 64>}, {pipeline_mode = #tpu.pipeline_mode<synchronous>, transform_indices = @transform_12, window_bounds = array<i64: 1, 4>}, {transform_indices = @transform_13, window_bounds = array<i64: 8, 4>}]} {
    %c0 = arith.constant 0 : index
    %c0_0 = arith.constant 0 : index
    %0 = vector.load %arg2[%c0, %c0_0] : memref<360x144xbf16, #tpu.memory_space<vmem>>, vector<360x144xbf16>
    %c0_1 = arith.constant 0 : index
    %c0_2 = arith.constant 0 : index
    %1 = vector.load %arg3[%c0_1, %c0_2] : memref<648x320xbf16, #tpu.memory_space<vmem>>, vector<648x320xbf16>
    %c0_3 = arith.constant 0 : index
    %c0_4 = arith.constant 0 : index
    %2 = vector.load %arg4[%c0_3, %c0_4] : memref<36x64xbf16, #tpu.memory_space<vmem>>, vector<36x64xbf16>
    %c0_5 = arith.constant 0 : index
    %c0_6 = arith.constant 0 : index
    %3 = vector.load %arg5[%c0_5, %c0_6] : memref<576x64xbf16, #tpu.memory_space<vmem>>, vector<576x64xbf16>
    %c0_7 = arith.constant 0 : index
    %c0_8 = arith.constant 0 : index
    %4 = vector.load %arg6[%c0_7, %c0_8] : memref<576x64xbf16, #tpu.memory_space<vmem>>, vector<576x64xbf16>
    %c0_9 = arith.constant 0 : index
    %c0_10 = arith.constant 0 : index
    %5 = vector.load %arg7[%c0_9, %c0_10] : memref<576x64xbf16, #tpu.memory_space<vmem>>, vector<576x64xbf16>
    %c0_11 = arith.constant 0 : index
    %c0_12 = arith.constant 0 : index
    %6 = vector.load %arg8[%c0_11, %c0_12] : memref<64x4xbf16, #tpu.memory_space<vmem>>, vector<64x4xbf16>
    %c0_13 = arith.constant 0 : index
    %c0_14 = arith.constant 0 : index
    %7 = vector.load %arg1[%c0_13, %c0_14] : memref<1152x36xbf16, #tpu.memory_space<vmem>>, vector<1152x36xbf16>
    %cst = arith.constant dense<0.000000e+00> : vector<1152x64xf32>
    %8 = tpu.matmul %7, %2, %cst {dimension_numbers = #tpu.dot_dimension_numbers<[1], [0], [0], [1], [0, 0, 1, 1], [], []>} : vector<1152x36xbf16>, vector<36x64xbf16>, vector<1152x64xf32> -> vector<1152x64xf32>
    %c0_15 = arith.constant 0 : index
    %c0_16 = arith.constant 0 : index
    %9 = vector.load %arg9[%c0_15, %c0_16] : memref<1x64xf32, #tpu.memory_space<vmem>>, vector<1x64xf32>
    %10 = vector.broadcast %9 : vector<1x64xf32> to vector<1152x64xf32>
    %11 = arith.addf %8, %10 : vector<1152x64xf32>
    %cst_17 = arith.constant 0.000000e+00 : f32
    %12 = vector.broadcast %cst_17 : f32 to vector<1152x64xf32>
    %13 = arith.maximumf %11, %12 : vector<1152x64xf32>
    %14 = arith.truncf %13 : vector<1152x64xf32> to vector<1152x64xbf16>
    %15 = vector.extract_strided_slice %14 {offsets = [0, 0], sizes = [144, 64], strides = [1, 1]} : vector<1152x64xbf16> to vector<144x64xbf16>
    %cst_18 = arith.constant dense<0.000000e+00> : vector<360x64xf32>
    %16 = tpu.matmul %0, %15, %cst_18 {dimension_numbers = #tpu.dot_dimension_numbers<[1], [0], [0], [1], [0, 0, 1, 1], [], []>} : vector<360x144xbf16>, vector<144x64xbf16>, vector<360x64xf32> -> vector<360x64xf32>
    %17 = vector.extract_strided_slice %16 {offsets = [0, 0], sizes = [40, 64], strides = [1, 1]} : vector<360x64xf32> to vector<40x64xf32>
    %18 = vector.extract_strided_slice %16 {offsets = [40, 0], sizes = [40, 64], strides = [1, 1]} : vector<360x64xf32> to vector<40x64xf32>
    %19 = vector.extract_strided_slice %16 {offsets = [80, 0], sizes = [40, 64], strides = [1, 1]} : vector<360x64xf32> to vector<40x64xf32>
    %20 = vector.extract_strided_slice %16 {offsets = [120, 0], sizes = [40, 64], strides = [1, 1]} : vector<360x64xf32> to vector<40x64xf32>
    %21 = vector.extract_strided_slice %16 {offsets = [160, 0], sizes = [40, 64], strides = [1, 1]} : vector<360x64xf32> to vector<40x64xf32>
    %22 = vector.extract_strided_slice %16 {offsets = [200, 0], sizes = [40, 64], strides = [1, 1]} : vector<360x64xf32> to vector<40x64xf32>
    %23 = vector.extract_strided_slice %16 {offsets = [240, 0], sizes = [40, 64], strides = [1, 1]} : vector<360x64xf32> to vector<40x64xf32>
    %24 = vector.extract_strided_slice %16 {offsets = [280, 0], sizes = [40, 64], strides = [1, 1]} : vector<360x64xf32> to vector<40x64xf32>
    %25 = vector.extract_strided_slice %16 {offsets = [320, 0], sizes = [40, 64], strides = [1, 1]} : vector<360x64xf32> to vector<40x64xf32>
    %26 = tpu.concatenate %17, %18, %19, %20, %21, %22, %23, %24, %25 in 1 : vector<40x64xf32>, vector<40x64xf32>, vector<40x64xf32>, vector<40x64xf32>, vector<40x64xf32>, vector<40x64xf32>, vector<40x64xf32>, vector<40x64xf32>, vector<40x64xf32> -> vector<40x576xf32>
    %27 = vector.extract_strided_slice %14 {offsets = [144, 0], sizes = [144, 64], strides = [1, 1]} : vector<1152x64xbf16> to vector<144x64xbf16>
    %cst_19 = arith.constant dense<0.000000e+00> : vector<360x64xf32>
    %28 = tpu.matmul %0, %27, %cst_19 {dimension_numbers = #tpu.dot_dimension_numbers<[1], [0], [0], [1], [0, 0, 1, 1], [], []>} : vector<360x144xbf16>, vector<144x64xbf16>, vector<360x64xf32> -> vector<360x64xf32>
    %29 = vector.extract_strided_slice %28 {offsets = [0, 0], sizes = [40, 64], strides = [1, 1]} : vector<360x64xf32> to vector<40x64xf32>
    %30 = vector.extract_strided_slice %28 {offsets = [40, 0], sizes = [40, 64], strides = [1, 1]} : vector<360x64xf32> to vector<40x64xf32>
    %31 = vector.extract_strided_slice %28 {offsets = [80, 0], sizes = [40, 64], strides = [1, 1]} : vector<360x64xf32> to vector<40x64xf32>
    %32 = vector.extract_strided_slice %28 {offsets = [120, 0], sizes = [40, 64], strides = [1, 1]} : vector<360x64xf32> to vector<40x64xf32>
    %33 = vector.extract_strided_slice %28 {offsets = [160, 0], sizes = [40, 64], strides = [1, 1]} : vector<360x64xf32> to vector<40x64xf32>
    %34 = vector.extract_strided_slice %28 {offsets = [200, 0], sizes = [40, 64], strides = [1, 1]} : vector<360x64xf32> to vector<40x64xf32>
    %35 = vector.extract_strided_slice %28 {offsets = [240, 0], sizes = [40, 64], strides = [1, 1]} : vector<360x64xf32> to vector<40x64xf32>
    %36 = vector.extract_strided_slice %28 {offsets = [280, 0], sizes = [40, 64], strides = [1, 1]} : vector<360x64xf32> to vector<40x64xf32>
    %37 = vector.extract_strided_slice %28 {offsets = [320, 0], sizes = [40, 64], strides = [1, 1]} : vector<360x64xf32> to vector<40x64xf32>
    %38 = tpu.concatenate %29, %30, %31, %32, %33, %34, %35, %36, %37 in 1 : vector<40x64xf32>, vector<40x64xf32>, vector<40x64xf32>, vector<40x64xf32>, vector<40x64xf32>, vector<40x64xf32>, vector<40x64xf32>, vector<40x64xf32>, vector<40x64xf32> -> vector<40x576xf32>
    %39 = vector.extract_strided_slice %14 {offsets = [288, 0], sizes = [144, 64], strides = [1, 1]} : vector<1152x64xbf16> to vector<144x64xbf16>
    %cst_20 = arith.constant dense<0.000000e+00> : vector<360x64xf32>
    %40 = tpu.matmul %0, %39, %cst_20 {dimension_numbers = #tpu.dot_dimension_numbers<[1], [0], [0], [1], [0, 0, 1, 1], [], []>} : vector<360x144xbf16>, vector<144x64xbf16>, vector<360x64xf32> -> vector<360x64xf32>
    %41 = vector.extract_strided_slice %40 {offsets = [0, 0], sizes = [40, 64], strides = [1, 1]} : vector<360x64xf32> to vector<40x64xf32>
    %42 = vector.extract_strided_slice %40 {offsets = [40, 0], sizes = [40, 64], strides = [1, 1]} : vector<360x64xf32> to vector<40x64xf32>
    %43 = vector.extract_strided_slice %40 {offsets = [80, 0], sizes = [40, 64], strides = [1, 1]} : vector<360x64xf32> to vector<40x64xf32>
    %44 = vector.extract_strided_slice %40 {offsets = [120, 0], sizes = [40, 64], strides = [1, 1]} : vector<360x64xf32> to vector<40x64xf32>
    %45 = vector.extract_strided_slice %40 {offsets = [160, 0], sizes = [40, 64], strides = [1, 1]} : vector<360x64xf32> to vector<40x64xf32>
    %46 = vector.extract_strided_slice %40 {offsets = [200, 0], sizes = [40, 64], strides = [1, 1]} : vector<360x64xf32> to vector<40x64xf32>
    %47 = vector.extract_strided_slice %40 {offsets = [240, 0], sizes = [40, 64], strides = [1, 1]} : vector<360x64xf32> to vector<40x64xf32>
    %48 = vector.extract_strided_slice %40 {offsets = [280, 0], sizes = [40, 64], strides = [1, 1]} : vector<360x64xf32> to vector<40x64xf32>
    %49 = vector.extract_strided_slice %40 {offsets = [320, 0], sizes = [40, 64], strides = [1, 1]} : vector<360x64xf32> to vector<40x64xf32>
    %50 = tpu.concatenate %41, %42, %43, %44, %45, %46, %47, %48, %49 in 1 : vector<40x64xf32>, vector<40x64xf32>, vector<40x64xf32>, vector<40x64xf32>, vector<40x64xf32>, vector<40x64xf32>, vector<40x64xf32>, vector<40x64xf32>, vector<40x64xf32> -> vector<40x576xf32>
    %51 = vector.extract_strided_slice %14 {offsets = [432, 0], sizes = [144, 64], strides = [1, 1]} : vector<1152x64xbf16> to vector<144x64xbf16>
    %cst_21 = arith.constant dense<0.000000e+00> : vector<360x64xf32>
    %52 = tpu.matmul %0, %51, %cst_21 {dimension_numbers = #tpu.dot_dimension_numbers<[1], [0], [0], [1], [0, 0, 1, 1], [], []>} : vector<360x144xbf16>, vector<144x64xbf16>, vector<360x64xf32> -> vector<360x64xf32>
    %53 = vector.extract_strided_slice %52 {offsets = [0, 0], sizes = [40, 64], strides = [1, 1]} : vector<360x64xf32> to vector<40x64xf32>
    %54 = vector.extract_strided_slice %52 {offsets = [40, 0], sizes = [40, 64], strides = [1, 1]} : vector<360x64xf32> to vector<40x64xf32>
    %55 = vector.extract_strided_slice %52 {offsets = [80, 0], sizes = [40, 64], strides = [1, 1]} : vector<360x64xf32> to vector<40x64xf32>
    %56 = vector.extract_strided_slice %52 {offsets = [120, 0], sizes = [40, 64], strides = [1, 1]} : vector<360x64xf32> to vector<40x64xf32>
    %57 = vector.extract_strided_slice %52 {offsets = [160, 0], sizes = [40, 64], strides = [1, 1]} : vector<360x64xf32> to vector<40x64xf32>
    %58 = vector.extract_strided_slice %52 {offsets = [200, 0], sizes = [40, 64], strides = [1, 1]} : vector<360x64xf32> to vector<40x64xf32>
    %59 = vector.extract_strided_slice %52 {offsets = [240, 0], sizes = [40, 64], strides = [1, 1]} : vector<360x64xf32> to vector<40x64xf32>
    %60 = vector.extract_strided_slice %52 {offsets = [280, 0], sizes = [40, 64], strides = [1, 1]} : vector<360x64xf32> to vector<40x64xf32>
    %61 = vector.extract_strided_slice %52 {offsets = [320, 0], sizes = [40, 64], strides = [1, 1]} : vector<360x64xf32> to vector<40x64xf32>
    %62 = tpu.concatenate %53, %54, %55, %56, %57, %58, %59, %60, %61 in 1 : vector<40x64xf32>, vector<40x64xf32>, vector<40x64xf32>, vector<40x64xf32>, vector<40x64xf32>, vector<40x64xf32>, vector<40x64xf32>, vector<40x64xf32>, vector<40x64xf32> -> vector<40x576xf32>
    %63 = vector.extract_strided_slice %14 {offsets = [576, 0], sizes = [144, 64], strides = [1, 1]} : vector<1152x64xbf16> to vector<144x64xbf16>
    %cst_22 = arith.constant dense<0.000000e+00> : vector<360x64xf32>
    %64 = tpu.matmul %0, %63, %cst_22 {dimension_numbers = #tpu.dot_dimension_numbers<[1], [0], [0], [1], [0, 0, 1, 1], [], []>} : vector<360x144xbf16>, vector<144x64xbf16>, vector<360x64xf32> -> vector<360x64xf32>
    %65 = vector.extract_strided_slice %64 {offsets = [0, 0], sizes = [40, 64], strides = [1, 1]} : vector<360x64xf32> to vector<40x64xf32>
    %66 = vector.extract_strided_slice %64 {offsets = [40, 0], sizes = [40, 64], strides = [1, 1]} : vector<360x64xf32> to vector<40x64xf32>
    %67 = vector.extract_strided_slice %64 {offsets = [80, 0], sizes = [40, 64], strides = [1, 1]} : vector<360x64xf32> to vector<40x64xf32>
    %68 = vector.extract_strided_slice %64 {offsets = [120, 0], sizes = [40, 64], strides = [1, 1]} : vector<360x64xf32> to vector<40x64xf32>
    %69 = vector.extract_strided_slice %64 {offsets = [160, 0], sizes = [40, 64], strides = [1, 1]} : vector<360x64xf32> to vector<40x64xf32>
    %70 = vector.extract_strided_slice %64 {offsets = [200, 0], sizes = [40, 64], strides = [1, 1]} : vector<360x64xf32> to vector<40x64xf32>
    %71 = vector.extract_strided_slice %64 {offsets = [240, 0], sizes = [40, 64], strides = [1, 1]} : vector<360x64xf32> to vector<40x64xf32>
    %72 = vector.extract_strided_slice %64 {offsets = [280, 0], sizes = [40, 64], strides = [1, 1]} : vector<360x64xf32> to vector<40x64xf32>
    %73 = vector.extract_strided_slice %64 {offsets = [320, 0], sizes = [40, 64], strides = [1, 1]} : vector<360x64xf32> to vector<40x64xf32>
    %74 = tpu.concatenate %65, %66, %67, %68, %69, %70, %71, %72, %73 in 1 : vector<40x64xf32>, vector<40x64xf32>, vector<40x64xf32>, vector<40x64xf32>, vector<40x64xf32>, vector<40x64xf32>, vector<40x64xf32>, vector<40x64xf32>, vector<40x64xf32> -> vector<40x576xf32>
    %75 = vector.extract_strided_slice %14 {offsets = [720, 0], sizes = [144, 64], strides = [1, 1]} : vector<1152x64xbf16> to vector<144x64xbf16>
    %cst_23 = arith.constant dense<0.000000e+00> : vector<360x64xf32>
    %76 = tpu.matmul %0, %75, %cst_23 {dimension_numbers = #tpu.dot_dimension_numbers<[1], [0], [0], [1], [0, 0, 1, 1], [], []>} : vector<360x144xbf16>, vector<144x64xbf16>, vector<360x64xf32> -> vector<360x64xf32>
    %77 = vector.extract_strided_slice %76 {offsets = [0, 0], sizes = [40, 64], strides = [1, 1]} : vector<360x64xf32> to vector<40x64xf32>
    %78 = vector.extract_strided_slice %76 {offsets = [40, 0], sizes = [40, 64], strides = [1, 1]} : vector<360x64xf32> to vector<40x64xf32>
    %79 = vector.extract_strided_slice %76 {offsets = [80, 0], sizes = [40, 64], strides = [1, 1]} : vector<360x64xf32> to vector<40x64xf32>
    %80 = vector.extract_strided_slice %76 {offsets = [120, 0], sizes = [40, 64], strides = [1, 1]} : vector<360x64xf32> to vector<40x64xf32>
    %81 = vector.extract_strided_slice %76 {offsets = [160, 0], sizes = [40, 64], strides = [1, 1]} : vector<360x64xf32> to vector<40x64xf32>
    %82 = vector.extract_strided_slice %76 {offsets = [200, 0], sizes = [40, 64], strides = [1, 1]} : vector<360x64xf32> to vector<40x64xf32>
    %83 = vector.extract_strided_slice %76 {offsets = [240, 0], sizes = [40, 64], strides = [1, 1]} : vector<360x64xf32> to vector<40x64xf32>
    %84 = vector.extract_strided_slice %76 {offsets = [280, 0], sizes = [40, 64], strides = [1, 1]} : vector<360x64xf32> to vector<40x64xf32>
    %85 = vector.extract_strided_slice %76 {offsets = [320, 0], sizes = [40, 64], strides = [1, 1]} : vector<360x64xf32> to vector<40x64xf32>
    %86 = tpu.concatenate %77, %78, %79, %80, %81, %82, %83, %84, %85 in 1 : vector<40x64xf32>, vector<40x64xf32>, vector<40x64xf32>, vector<40x64xf32>, vector<40x64xf32>, vector<40x64xf32>, vector<40x64xf32>, vector<40x64xf32>, vector<40x64xf32> -> vector<40x576xf32>
    %87 = vector.extract_strided_slice %14 {offsets = [864, 0], sizes = [144, 64], strides = [1, 1]} : vector<1152x64xbf16> to vector<144x64xbf16>
    %cst_24 = arith.constant dense<0.000000e+00> : vector<360x64xf32>
    %88 = tpu.matmul %0, %87, %cst_24 {dimension_numbers = #tpu.dot_dimension_numbers<[1], [0], [0], [1], [0, 0, 1, 1], [], []>} : vector<360x144xbf16>, vector<144x64xbf16>, vector<360x64xf32> -> vector<360x64xf32>
    %89 = vector.extract_strided_slice %88 {offsets = [0, 0], sizes = [40, 64], strides = [1, 1]} : vector<360x64xf32> to vector<40x64xf32>
    %90 = vector.extract_strided_slice %88 {offsets = [40, 0], sizes = [40, 64], strides = [1, 1]} : vector<360x64xf32> to vector<40x64xf32>
    %91 = vector.extract_strided_slice %88 {offsets = [80, 0], sizes = [40, 64], strides = [1, 1]} : vector<360x64xf32> to vector<40x64xf32>
    %92 = vector.extract_strided_slice %88 {offsets = [120, 0], sizes = [40, 64], strides = [1, 1]} : vector<360x64xf32> to vector<40x64xf32>
    %93 = vector.extract_strided_slice %88 {offsets = [160, 0], sizes = [40, 64], strides = [1, 1]} : vector<360x64xf32> to vector<40x64xf32>
    %94 = vector.extract_strided_slice %88 {offsets = [200, 0], sizes = [40, 64], strides = [1, 1]} : vector<360x64xf32> to vector<40x64xf32>
    %95 = vector.extract_strided_slice %88 {offsets = [240, 0], sizes = [40, 64], strides = [1, 1]} : vector<360x64xf32> to vector<40x64xf32>
    %96 = vector.extract_strided_slice %88 {offsets = [280, 0], sizes = [40, 64], strides = [1, 1]} : vector<360x64xf32> to vector<40x64xf32>
    %97 = vector.extract_strided_slice %88 {offsets = [320, 0], sizes = [40, 64], strides = [1, 1]} : vector<360x64xf32> to vector<40x64xf32>
    %98 = tpu.concatenate %89, %90, %91, %92, %93, %94, %95, %96, %97 in 1 : vector<40x64xf32>, vector<40x64xf32>, vector<40x64xf32>, vector<40x64xf32>, vector<40x64xf32>, vector<40x64xf32>, vector<40x64xf32>, vector<40x64xf32>, vector<40x64xf32> -> vector<40x576xf32>
    %99 = vector.extract_strided_slice %14 {offsets = [1008, 0], sizes = [144, 64], strides = [1, 1]} : vector<1152x64xbf16> to vector<144x64xbf16>
    %cst_25 = arith.constant dense<0.000000e+00> : vector<360x64xf32>
    %100 = tpu.matmul %0, %99, %cst_25 {dimension_numbers = #tpu.dot_dimension_numbers<[1], [0], [0], [1], [0, 0, 1, 1], [], []>} : vector<360x144xbf16>, vector<144x64xbf16>, vector<360x64xf32> -> vector<360x64xf32>
    %101 = vector.extract_strided_slice %100 {offsets = [0, 0], sizes = [40, 64], strides = [1, 1]} : vector<360x64xf32> to vector<40x64xf32>
    %102 = vector.extract_strided_slice %100 {offsets = [40, 0], sizes = [40, 64], strides = [1, 1]} : vector<360x64xf32> to vector<40x64xf32>
    %103 = vector.extract_strided_slice %100 {offsets = [80, 0], sizes = [40, 64], strides = [1, 1]} : vector<360x64xf32> to vector<40x64xf32>
    %104 = vector.extract_strided_slice %100 {offsets = [120, 0], sizes = [40, 64], strides = [1, 1]} : vector<360x64xf32> to vector<40x64xf32>
    %105 = vector.extract_strided_slice %100 {offsets = [160, 0], sizes = [40, 64], strides = [1, 1]} : vector<360x64xf32> to vector<40x64xf32>
    %106 = vector.extract_strided_slice %100 {offsets = [200, 0], sizes = [40, 64], strides = [1, 1]} : vector<360x64xf32> to vector<40x64xf32>
    %107 = vector.extract_strided_slice %100 {offsets = [240, 0], sizes = [40, 64], strides = [1, 1]} : vector<360x64xf32> to vector<40x64xf32>
    %108 = vector.extract_strided_slice %100 {offsets = [280, 0], sizes = [40, 64], strides = [1, 1]} : vector<360x64xf32> to vector<40x64xf32>
    %109 = vector.extract_strided_slice %100 {offsets = [320, 0], sizes = [40, 64], strides = [1, 1]} : vector<360x64xf32> to vector<40x64xf32>
    %110 = tpu.concatenate %101, %102, %103, %104, %105, %106, %107, %108, %109 in 1 : vector<40x64xf32>, vector<40x64xf32>, vector<40x64xf32>, vector<40x64xf32>, vector<40x64xf32>, vector<40x64xf32>, vector<40x64xf32>, vector<40x64xf32>, vector<40x64xf32> -> vector<40x576xf32>
    %111 = tpu.concatenate %26, %38, %50, %62, %74, %86, %98, %110 in 0 : vector<40x576xf32>, vector<40x576xf32>, vector<40x576xf32>, vector<40x576xf32>, vector<40x576xf32>, vector<40x576xf32>, vector<40x576xf32>, vector<40x576xf32> -> vector<320x576xf32>
    %112 = arith.truncf %111 : vector<320x576xf32> to vector<320x576xbf16>
    %cst_26 = arith.constant dense<0.000000e+00> : vector<320x64xf32>
    %113 = tpu.matmul %112, %3, %cst_26 {dimension_numbers = #tpu.dot_dimension_numbers<[1], [0], [0], [1], [0, 0, 1, 1], [], []>} : vector<320x576xbf16>, vector<576x64xbf16>, vector<320x64xf32> -> vector<320x64xf32>
    %c0_27 = arith.constant 0 : index
    %c0_28 = arith.constant 0 : index
    %114 = vector.load %arg10[%c0_27, %c0_28] : memref<1x64xf32, #tpu.memory_space<vmem>>, vector<1x64xf32>
    %115 = vector.broadcast %114 : vector<1x64xf32> to vector<320x64xf32>
    %116 = arith.addf %113, %115 : vector<320x64xf32>
    %cst_29 = arith.constant 0.000000e+00 : f32
    %117 = vector.broadcast %cst_29 : f32 to vector<320x64xf32>
    %118 = arith.maximumf %116, %117 : vector<320x64xf32>
    %119 = arith.truncf %118 : vector<320x64xf32> to vector<320x64xbf16>
    %cst_30 = arith.constant dense<0.000000e+00> : vector<648x64xf32>
    %120 = tpu.matmul %1, %119, %cst_30 {dimension_numbers = #tpu.dot_dimension_numbers<[1], [0], [0], [1], [0, 0, 1, 1], [], []>} : vector<648x320xbf16>, vector<320x64xbf16>, vector<648x64xf32> -> vector<648x64xf32>
    %121 = vector.extract_strided_slice %120 {offsets = [0, 0], sizes = [72, 64], strides = [1, 1]} : vector<648x64xf32> to vector<72x64xf32>
    %122 = vector.extract_strided_slice %120 {offsets = [72, 0], sizes = [72, 64], strides = [1, 1]} : vector<648x64xf32> to vector<72x64xf32>
    %123 = vector.extract_strided_slice %120 {offsets = [144, 0], sizes = [72, 64], strides = [1, 1]} : vector<648x64xf32> to vector<72x64xf32>
    %124 = vector.extract_strided_slice %120 {offsets = [216, 0], sizes = [72, 64], strides = [1, 1]} : vector<648x64xf32> to vector<72x64xf32>
    %125 = vector.extract_strided_slice %120 {offsets = [288, 0], sizes = [72, 64], strides = [1, 1]} : vector<648x64xf32> to vector<72x64xf32>
    %126 = vector.extract_strided_slice %120 {offsets = [360, 0], sizes = [72, 64], strides = [1, 1]} : vector<648x64xf32> to vector<72x64xf32>
    %127 = vector.extract_strided_slice %120 {offsets = [432, 0], sizes = [72, 64], strides = [1, 1]} : vector<648x64xf32> to vector<72x64xf32>
    %128 = vector.extract_strided_slice %120 {offsets = [504, 0], sizes = [72, 64], strides = [1, 1]} : vector<648x64xf32> to vector<72x64xf32>
    %129 = vector.extract_strided_slice %120 {offsets = [576, 0], sizes = [72, 64], strides = [1, 1]} : vector<648x64xf32> to vector<72x64xf32>
    %130 = tpu.concatenate %121, %122, %123, %124, %125, %126, %127, %128, %129 in 1 : vector<72x64xf32>, vector<72x64xf32>, vector<72x64xf32>, vector<72x64xf32>, vector<72x64xf32>, vector<72x64xf32>, vector<72x64xf32>, vector<72x64xf32>, vector<72x64xf32> -> vector<72x576xf32>
    %131 = arith.truncf %130 : vector<72x576xf32> to vector<72x576xbf16>
    %cst_31 = arith.constant dense<0.000000e+00> : vector<72x64xf32>
    %132 = tpu.matmul %131, %4, %cst_31 {dimension_numbers = #tpu.dot_dimension_numbers<[1], [0], [0], [1], [0, 0, 1, 1], [], []>} : vector<72x576xbf16>, vector<576x64xbf16>, vector<72x64xf32> -> vector<72x64xf32>
    %c0_32 = arith.constant 0 : index
    %c0_33 = arith.constant 0 : index
    %133 = vector.load %arg11[%c0_32, %c0_33] : memref<1x64xf32, #tpu.memory_space<vmem>>, vector<1x64xf32>
    %134 = vector.broadcast %133 : vector<1x64xf32> to vector<72x64xf32>
    %135 = arith.addf %132, %134 : vector<72x64xf32>
    %cst_34 = arith.constant 0.000000e+00 : f32
    %136 = vector.broadcast %cst_34 : f32 to vector<72x64xf32>
    %137 = arith.maximumf %135, %136 : vector<72x64xf32>
    %138 = vector.extract_strided_slice %137 {offsets = [0, 0], sizes = [8, 64], strides = [1, 1]} : vector<72x64xf32> to vector<8x64xf32>
    %139 = vector.extract_strided_slice %137 {offsets = [8, 0], sizes = [8, 64], strides = [1, 1]} : vector<72x64xf32> to vector<8x64xf32>
    %140 = vector.extract_strided_slice %137 {offsets = [16, 0], sizes = [8, 64], strides = [1, 1]} : vector<72x64xf32> to vector<8x64xf32>
    %141 = vector.extract_strided_slice %137 {offsets = [24, 0], sizes = [8, 64], strides = [1, 1]} : vector<72x64xf32> to vector<8x64xf32>
    %142 = vector.extract_strided_slice %137 {offsets = [32, 0], sizes = [8, 64], strides = [1, 1]} : vector<72x64xf32> to vector<8x64xf32>
    %143 = vector.extract_strided_slice %137 {offsets = [40, 0], sizes = [8, 64], strides = [1, 1]} : vector<72x64xf32> to vector<8x64xf32>
    %144 = vector.extract_strided_slice %137 {offsets = [48, 0], sizes = [8, 64], strides = [1, 1]} : vector<72x64xf32> to vector<8x64xf32>
    %145 = vector.extract_strided_slice %137 {offsets = [56, 0], sizes = [8, 64], strides = [1, 1]} : vector<72x64xf32> to vector<8x64xf32>
    %146 = vector.extract_strided_slice %137 {offsets = [64, 0], sizes = [8, 64], strides = [1, 1]} : vector<72x64xf32> to vector<8x64xf32>
    %147 = tpu.concatenate %138, %139, %140, %141, %142, %143, %144, %145, %146 in 1 : vector<8x64xf32>, vector<8x64xf32>, vector<8x64xf32>, vector<8x64xf32>, vector<8x64xf32>, vector<8x64xf32>, vector<8x64xf32>, vector<8x64xf32>, vector<8x64xf32> -> vector<8x576xf32>
    %148 = arith.truncf %147 : vector<8x576xf32> to vector<8x576xbf16>
    %cst_35 = arith.constant dense<0.000000e+00> : vector<8x64xf32>
    %149 = tpu.matmul %148, %5, %cst_35 {dimension_numbers = #tpu.dot_dimension_numbers<[1], [0], [0], [1], [0, 0, 1, 1], [], []>} : vector<8x576xbf16>, vector<576x64xbf16>, vector<8x64xf32> -> vector<8x64xf32>
    %c0_36 = arith.constant 0 : index
    %c0_37 = arith.constant 0 : index
    %150 = vector.load %arg12[%c0_36, %c0_37] : memref<1x64xf32, #tpu.memory_space<vmem>>, vector<1x64xf32>
    %151 = vector.broadcast %150 : vector<1x64xf32> to vector<8x64xf32>
    %152 = arith.addf %149, %151 : vector<8x64xf32>
    %cst_38 = arith.constant 0.000000e+00 : f32
    %153 = vector.broadcast %cst_38 : f32 to vector<8x64xf32>
    %154 = arith.maximumf %152, %153 : vector<8x64xf32>
    %155 = arith.truncf %154 : vector<8x64xf32> to vector<8x64xbf16>
    %cst_39 = arith.constant dense<0.000000e+00> : vector<8x4xf32>
    %156 = tpu.matmul %155, %6, %cst_39 {dimension_numbers = #tpu.dot_dimension_numbers<[1], [0], [0], [1], [0, 0, 1, 1], [], []>} : vector<8x64xbf16>, vector<64x4xbf16>, vector<8x4xf32> -> vector<8x4xf32>
    %c0_40 = arith.constant 0 : index
    %c0_41 = arith.constant 0 : index
    %157 = vector.load %arg13[%c0_40, %c0_41] : memref<1x4xf32, #tpu.memory_space<vmem>>, vector<1x4xf32>
    %158 = vector.broadcast %157 : vector<1x4xf32> to vector<8x4xf32>
    %159 = arith.addf %156, %158 : vector<8x4xf32>
    %c0_42 = arith.constant 0 : index
    %c0_43 = arith.constant 0 : index
    %160 = vector.load %arg14[%c0_42, %c0_43] : memref<8x4xf32, #tpu.memory_space<vmem>>, vector<8x4xf32>
    tpu.vector_store %arg14[%c0_42, %c0_43], %159 {strides = array<i32>} : memref<8x4xf32, #tpu.memory_space<vmem>>, vector<8x4xf32>,
    return
  }
  func.func @transform_0(%arg0: i32) -> (i32, i32) {
    %c0_i32 = arith.constant 0 : i32
    %c0_i32_0 = arith.constant 0 : i32
    return %arg0, %c0_i32 : i32, i32
  }
  func.func @transform_1(%arg0: i32) -> (i32, i32) {
    %c0_i32 = arith.constant 0 : i32
    %c0_i32_0 = arith.constant 0 : i32
    %c0_i32_1 = arith.constant 0 : i32
    return %c0_i32, %c0_i32_0 : i32, i32
  }
  func.func @transform_2(%arg0: i32) -> (i32, i32) {
    %c0_i32 = arith.constant 0 : i32
    %c0_i32_0 = arith.constant 0 : i32
    %c0_i32_1 = arith.constant 0 : i32
    return %c0_i32, %c0_i32_0 : i32, i32
  }
  func.func @transform_3(%arg0: i32) -> (i32, i32) {
    %c0_i32 = arith.constant 0 : i32
    %c0_i32_0 = arith.constant 0 : i32
    %c0_i32_1 = arith.constant 0 : i32
    return %c0_i32, %c0_i32_0 : i32, i32
  }
  func.func @transform_4(%arg0: i32) -> (i32, i32) {
    %c0_i32 = arith.constant 0 : i32
    %c0_i32_0 = arith.constant 0 : i32
    %c0_i32_1 = arith.constant 0 : i32
    return %c0_i32, %c0_i32_0 : i32, i32
  }
  func.func @transform_5(%arg0: i32) -> (i32, i32) {
    %c0_i32 = arith.constant 0 : i32
    %c0_i32_0 = arith.constant 0 : i32
    %c0_i32_1 = arith.constant 0 : i32
    return %c0_i32, %c0_i32_0 : i32, i32
  }
  func.func @transform_6(%arg0: i32) -> (i32, i32) {
    %c0_i32 = arith.constant 0 : i32
    %c0_i32_0 = arith.constant 0 : i32
    %c0_i32_1 = arith.constant 0 : i32
    return %c0_i32, %c0_i32_0 : i32, i32
  }
  func.func @transform_7(%arg0: i32) -> (i32, i32) {
    %c0_i32 = arith.constant 0 : i32
    %c0_i32_0 = arith.constant 0 : i32
    %c0_i32_1 = arith.constant 0 : i32
    return %c0_i32, %c0_i32_0 : i32, i32
  }
  func.func @transform_8(%arg0: i32) -> (i32, i32) {
    %c0_i32 = arith.constant 0 : i32
    %c0_i32_0 = arith.constant 0 : i32
    %c0_i32_1 = arith.constant 0 : i32
    return %c0_i32, %c0_i32_0 : i32, i32
  }
  func.func @transform_9(%arg0: i32) -> (i32, i32) {
    %c0_i32 = arith.constant 0 : i32
    %c0_i32_0 = arith.constant 0 : i32
    %c0_i32_1 = arith.constant 0 : i32
    return %c0_i32, %c0_i32_0 : i32, i32
  }
  func.func @transform_10(%arg0: i32) -> (i32, i32) {
    %c0_i32 = arith.constant 0 : i32
    %c0_i32_0 = arith.constant 0 : i32
    %c0_i32_1 = arith.constant 0 : i32
    return %c0_i32, %c0_i32_0 : i32, i32
  }
  func.func @transform_11(%arg0: i32) -> (i32, i32) {
    %c0_i32 = arith.constant 0 : i32
    %c0_i32_0 = arith.constant 0 : i32
    %c0_i32_1 = arith.constant 0 : i32
    return %c0_i32, %c0_i32_0 : i32, i32
  }
  func.func @transform_12(%arg0: i32) -> (i32, i32) {
    %c0_i32 = arith.constant 0 : i32
    %c0_i32_0 = arith.constant 0 : i32
    %c0_i32_1 = arith.constant 0 : i32
    return %c0_i32, %c0_i32_0 : i32, i32
  }
  func.func @transform_13(%arg0: i32) -> (i32, i32) {
    %c0_i32 = arith.constant 0 : i32
    %c0_i32_0 = arith.constant 0 : i32
    return %arg0, %c0_i32 : i32, i32
  }
}

</mosaic_0001>

<bundles_post_ra>
// kernel: qnetwork_forward.1
= control target key start
LH: loop header
LB: loop body
LE: loop exit
PB: predicated region body
PF: predicated region fallthrough
CT: control target
= control target key end

     0   :  { %vm1221_vm0 = vcmask 1041408   ;;  %vm1004_vm1 = vcmask 293888   ;;  %vm2140_vm2 = vcmask 130048   ;;  %vm2536_vm3 = vcmask 523264   ;;  %s17746_s3 = inlined_call_operand.vmem [shape: bf16[36,64], index: 3, kind: input, shape index: {}]   ;;  %s17747_s8 = inlined_call_operand.vmem [shape: f32[1,64], index: 8, kind: input, shape index: {}]   ;;  %s17748_s0 = inlined_call_operand.vmem [shape: bf16[1152,36], index: 0, kind: input, shape index: {}]   ;;  %s17749_s1 = inlined_call_operand.vmem [shape: bf16[360,144], index: 1, kind: input, shape index: {}]   ;;  %s17750_s4 = inlined_call_operand.vmem [shape: bf16[576,64], index: 4, kind: input, shape index: {}]   ;;  %s17751_s9 = inlined_call_operand.vmem [shape: f32[1,64], index: 9, kind: input, shape index: {}]   ;;  %s17752_s2 = inlined_call_operand.vmem [shape: bf16[648,320], index: 2, kind: input, shape index: {}]   ;;  %s17753_s5 = inlined_call_operand.vmem [shape: bf16[576,64], index: 5, kind: input, shape index: {}]   ;;  %s17754_s10 = inlined_call_operand.vmem [shape: f32[1,64], index: 10, kind: input, shape index: {}]   ;;  %s17755_s6 = inlined_call_operand.vmem [shape: bf16[576,64], index: 6, kind: input, shape index: {}]   ;;  %s17756_s11 = inlined_call_operand.vmem [shape: f32[1,64], index: 11, kind: input, shape index: {}]   ;;  %s17757_s12 = inlined_call_operand.vmem [shape: f32[1,4], index: 12, kind: input, shape index: {}]   ;;  %s17758_s7 = inlined_call_operand.vmem [shape: bf16[64,4], index: 7, kind: input, shape index: {}]   ;;  %s17759_s13 = inlined_call_operand.vmem [shape: f32[8,4], index: 13, kind: output, shape index: {}]  }
   0x1   :  { %v256_v0 = vld [vmem:[%s17746_s3 + $0x10] sm:$0x3]  ;;  %v10582_v4 = vld [vmem:[%s17746_s3 + $0x8] sm:$0xff]  ;;  %v10581_v5 = vld [vmem:[%s17746_s3] sm:$0xff]  ;;  %s11273_s3 = smov 64   ;;  %vm8687_vm4 = vcmask 31744  }
   0x2   :  { %v998_v1 = vunpack.c.l.b16 %v256_v0  ;;  %v10695_v6 = vld [vmem:[%s17748_s0] sm:$0xff]  ;;  %v10696_v7 = vld [vmem:[%s17748_s0 + $0x8] sm:$0xff]  ;;  %v10697_v8 = vld [vmem:[%s17748_s0 + $0x10] sm:$0xff] }
   0x3   :  { %v10698_v9 = vld [vmem:[%s17748_s0 + $0x18] sm:$0xff]  ;;  %v10699_v10 = vld [vmem:[%s17748_s0 + $0x20] sm:$0xff]  ;;  %v10700_v11 = vld [vmem:[%s17748_s0 + $0x28] sm:$0xff] }
   0x4   :  { %v1001_v2 = vpack.c.b16 %v998_v1, %v998_v1  ;;  %v10701_v12 = vld [vmem:[%s17748_s0 + $0x30] sm:$0xff]  ;;  %v10702_v13 = vld [vmem:[%s17748_s0 + $0x38] sm:$0xff]  ;;  %v11388_v14 = vld [vmem:[%s17747_s8] ss:$0 sm:$0xff] }
   0x5   :  { %v10703_v15 = vld [vmem:[%s17748_s0 + $0x40] sm:$0xff]  ;;  %v10704_v26 = vld [vmem:[%s17748_s0 + $0x48] sm:$0xff]  ;;  %v10705_v38 = vld [vmem:[%s17748_s0 + $0x50] sm:$0xff] }
   0x6   :  { %v1223_v3 = vsel %vm1221_vm0, %v1001_v2, 0  ;;  %v10706_v50 = vld [vmem:[%s17748_s0 + $0x58] sm:$0xff]  ;;  %v10707_v62 = vld [vmem:[%s17748_s0 + $0x60] sm:$0xff]  ;;  %v10708_v2 = vld [vmem:[%s17748_s0 + $0x68] sm:$0xff] }
   0x7   :  { %1230 = vmatpush.bf16.msra.mxu0 %v1223_v3 }
   0xb   :  { %1231 = vmatpush.bf16.msra.mxu0 %v10582_v4 }
   0xf   :  { %1232 = vmatpush.bf16.msra.mxu0 %v10581_v5  ;;  %v10709_v5 = vld [vmem:[%s17748_s0 + $0x70] sm:$0xff] }
  0x12   :  { %8989 = vmatmul.msk.bf16.vlgmr.msra.gmra.mxu0 %vm1004_vm1, %v10695_v6 }
  0x22   :  { %8990 = vmatmul.msk.bf16.gmra.mxu0 %vm1004_vm1, %v10696_v7 }
  0x32   :  { %8991 = vmatmul.msk.bf16.gmra.mxu0 %vm1004_vm1, %v10697_v8  ;;  %v10710_v8 = vld [vmem:[%s17748_s0 + $0x78] sm:$0xff] }
  0x42   :  { %8992 = vmatmul.msk.bf16.gmra.mxu0 %vm1004_vm1, %v10698_v9 }
  0x52   :  { %8993 = vmatmul.msk.bf16.gmra.mxu0 %vm1004_vm1, %v10699_v10 }
  0x62   :  { %8994 = vmatmul.msk.bf16.gmra.mxu0 %vm1004_vm1, %v10700_v11 }
  0x72   :  { %8995 = vmatmul.msk.bf16.gmra.mxu0 %vm1004_vm1, %v10701_v12 }
  0x82   :  { %8996 = vmatmul.msk.bf16.gmra.mxu0 %vm1004_vm1, %v10702_v13 }
  0x8f   :  { %v1234_v16 = vpop.f32.mrf.mxu0 }
  0x90   :  { %v1235_v17 = vadd.f32 %v11388_v14, %v1234_v16 }
  0x92   :  { %8997 = vmatmul.msk.bf16.gmra.mxu0 %vm1004_vm1, %v10703_v15  ;;  %v1594_v18 = vmax.f32 %v1235_v17, 0.0 }
  0x94   :  { %v1738_v21 = vpack.c.bf16 %v1594_v18, %v1594_v18 }
  0x96   :  { %v2104_v24 = vunpack.c.l.b16 %v1738_v21 }
  0x97   :  { %v1236_v19 = vpop.f32.mrf.mxu0 }
  0x98   :  { %v1237_v20 = vadd.f32 %v11388_v14, %v1236_v19 }
  0x9a   :  { %v1595_v22 = vmax.f32 %v1237_v20, 0.0 }
  0x9c   :  { %v1739_v23 = vpack.c.bf16 %v1595_v22, %v1595_v22 }
  0x9e   :  { %v2105_v25 = vunpack.c.l.b16 %v1739_v23 }
  0x9f   :  { %v1239_v27 = vpop.f32.mrf.mxu0 }
  0xa0   :  { %v11399_v28 = vpack.c.b16 %v2105_v25, %v2104_v24  ;;  %v1240_v29 = vadd.f32 %v11388_v14, %v1239_v27 }
  0xa2   :  { %8998 = vmatmul.msk.bf16.gmra.mxu0 %vm1004_vm1, %v10704_v26  ;;  %v1596_v30 = vmax.f32 %v1240_v29, 0.0 }
  0xa4   :  { %v1740_v33 = vpack.c.bf16 %v1596_v30, %v1596_v30 }
  0xa6   :  { %v2106_v36 = vunpack.c.l.b16 %v1740_v33  ;;  %v10711_v33 = vld [vmem:[%s17748_s0 + $0x80] sm:$0xff] }
  0xa7   :  { %v1241_v31 = vpop.f32.mrf.mxu0 }
  0xa8   :  { %v1242_v32 = vadd.f32 %v11388_v14, %v1241_v31 }
  0xaa   :  { %v1597_v34 = vmax.f32 %v1242_v32, 0.0 }
  0xac   :  { %v1741_v35 = vpack.c.bf16 %v1597_v34, %v1597_v34 }
  0xae   :  { %v2107_v37 = vunpack.c.l.b16 %v1741_v35 }
  0xaf   :  { %v1244_v39 = vpop.f32.mrf.mxu0 }
  0xb0   :  { %v11407_v40 = vpack.c.b16 %v2107_v37, %v2106_v36  ;;  %v1245_v41 = vadd.f32 %v11388_v14, %v1244_v39 }
  0xb2   :  { %8999 = vmatmul.msk.bf16.gmra.mxu0 %vm1004_vm1, %v10705_v38  ;;  %v1598_v42 = vmax.f32 %v1245_v41, 0.0 }
  0xb4   :  { %v1742_v45 = vpack.c.bf16 %v1598_v42, %v1598_v42 }
  0xb6   :  { %v2108_v48 = vunpack.c.l.b16 %v1742_v45 }
  0xb7   :  { %v1246_v43 = vpop.f32.mrf.mxu0 }
  0xb8   :  { %v1247_v44 = vadd.f32 %v11388_v14, %v1246_v43 }
  0xba   :  { %v1599_v46 = vmax.f32 %v1247_v44, 0.0 }
  0xbc   :  { %v1743_v47 = vpack.c.bf16 %v1599_v46, %v1599_v46 }
  0xbe   :  { %v2109_v49 = vunpack.c.l.b16 %v1743_v47 }
  0xbf   :  { %v1249_v51 = vpop.f32.mrf.mxu0 }
  0xc0   :  { %v11415_v52 = vpack.c.b16 %v2109_v49, %v2108_v48  ;;  %v1250_v53 = vadd.f32 %v11388_v14, %v1249_v51 }
  0xc2   :  { %9000 = vmatmul.msk.bf16.gmra.mxu0 %vm1004_vm1, %v10706_v50  ;;  %v1600_v54 = vmax.f32 %v1250_v53, 0.0 }
  0xc4   :  { %v1744_v57 = vpack.c.bf16 %v1600_v54, %v1600_v54 }
  0xc6   :  { %v2110_v60 = vunpack.c.l.b16 %v1744_v57 }
  0xc7   :  { %v1251_v55 = vpop.f32.mrf.mxu0 }
  0xc8   :  { %v1252_v56 = vadd.f32 %v11388_v14, %v1251_v55 }
  0xca   :  { %v1601_v58 = vmax.f32 %v1252_v56, 0.0 }
  0xcc   :  { %v1745_v59 = vpack.c.bf16 %v1601_v58, %v1601_v58 }
  0xce   :  { %v2111_v61 = vunpack.c.l.b16 %v1745_v59 }
  0xcf   :  { %v1254_v63 = vpop.f32.mrf.mxu0 }
  0xd0   :  { %v11423_v0 = vpack.c.b16 %v2111_v61, %v2110_v60  ;;  %v1255_v27 = vadd.f32 %v11388_v14, %v1254_v63  ;;  %v10712_v60 = vld [vmem:[%s17748_s0 + $0x88] sm:$0xff] }
  0xd2   :  { %9001 = vmatmul.msk.bf16.gmra.mxu0 %vm1004_vm1, %v10707_v62  ;;  %v1602_v39 = vmax.f32 %v1255_v27, 0.0  ;;  %v10420_v27 = vld [vmem:[%s17749_s1 + $0x14] sm:$0xf0] }
  0xd4   :  { %v1746_v47 = vpack.c.bf16 %v1602_v39, %v1602_v39 }
  0xd6   :  { %v2112_v55 = vunpack.c.l.b16 %v1746_v47  ;;  %v10422_v47 = vld [vmem:[%s17749_s1 + $0x24] sm:$0xf0] }
  0xd7   :  { %v1256_v1 = vpop.f32.mrf.mxu0 }
  0xd8   :  { %v1257_v23 = vadd.f32 %v11388_v14, %v1256_v1  ;;  %v10417_v1 = vld [vmem:[%s17749_s1 + $0x4] sm:$0xf] }
  0xda   :  { %v1603_v35 = vmax.f32 %v1257_v23, 0.0 }
  0xdc   :  { %v1747_v44 = vpack.c.bf16 %v1603_v35, %v1603_v35  ;;  %v10421_v35 = vld [vmem:[%s17749_s1 + $0x24] sm:$0xf] }
  0xde   :  { %v2113_v51 = vunpack.c.l.b16 %v1747_v44 }
  0xdf   :  { %v1259_v3 = vpop.f32.mrf.mxu0 }
  0xe0   :  { %v1260_v19 = vadd.f32 %v11388_v14, %v1259_v3  ;;  %v2126_v58 = vpack.c.b16 %v2113_v51, %v2112_v55  ;;  %v10423_v55 = vld [vmem:[%s17749_s1 + $0x34] sm:$0xf] }
  0xe2   :  { %9002 = vmatmul.msk.bf16.gmra.mxu0 %vm1004_vm1, %v10708_v2  ;;  %v1604_v29 = vmax.f32 %v1260_v19, 0.0  ;;  %v9065_v2 = vld [vmem:[%s17749_s1 + $0x8] sm:$0xf0] }
  0xe4   :  { %v1748_v41 = vpack.c.bf16 %v1604_v29, %v1604_v29 }
  0xe6   :  { %v2114_v48 = vunpack.c.l.b16 %v1748_v41 }
  0xe7   :  { %v1261_v4 = vpop.f32.mrf.mxu0 }
  0xe8   :  { %v1262_v16 = vadd.f32 %v11388_v14, %v1261_v4 }
  0xea   :  { %v1605_v24 = vmax.f32 %v1262_v16, 0.0  ;;  %v10713_v16 = vld [vmem:[%s17748_s0 + $0x90] sm:$0xff] }
  0xec   :  { %v1749_v36 = vpack.c.bf16 %v1605_v24, %v1605_v24 }
  0xee   :  { %v2115_v45 = vunpack.c.l.b16 %v1749_v36  ;;  %v9081_v36 = vld [vmem:[%s17749_s1 + $0x28] sm:$0xf0] }
  0xef   :  { %v1264_v6 = vpop.f32.mrf.mxu0  ;;  %v11525_v39 = vor.u32 %v10421_v35, %v9081_v36  ;;  %v10429_v35 = vld [vmem:[%s17749_s1 + $0x64] sm:$0xf]  ;;  %v9113_v36 = vld [vmem:[%s17749_s1 + $0x68] sm:$0xf0] }
  0xf0   :  { %v1265_v12 = vadd.f32 %v11388_v14, %v1264_v6  ;;  %v2127_v54 = vpack.c.b16 %v2115_v45, %v2114_v48 }
  0xf1   :  { %18023 = vst [vmem:[#allocation6_spill] sm:$0xff] %v11525_v39 }
  0xf2   :  { %9003 = vmatmul.msk.bf16.gmra.mxu0 %vm1004_vm1, %v10709_v5  ;;  %v1606_v20 = vmax.f32 %v1265_v12, 0.0  ;;  %v11464_v5 = vor.u32 %v10417_v1, %v9065_v2  ;;  %v9087_v2 = vld [vmem:[%s17749_s1 + $0x30] sm:$0xf] }
  0xf4   :  { %v1750_v30 = vpack.c.bf16 %v1606_v20, %v1606_v20  ;;  %18019 = vst [vmem:[#allocation2_spill] sm:$0xff] %v11464_v5 }
  0xf6   :  { %v2116_v42 = vunpack.c.l.b16 %v1750_v30 }
  0xf7   :  { %v1266_v7 = vpop.f32.mrf.mxu0 }
  0xf8   :  { %v1267_v11 = vadd.f32 %v11388_v14, %v1266_v7 }
  0xfa   :  { %v1607_v17 = vmax.f32 %v1267_v11, 0.0  ;;  %v10418_v11 = vld [vmem:[%s17749_s1 + $0x4] sm:$0xf0] }
  0xfc   :  { %v1751_v25 = vpack.c.bf16 %v1607_v17, %v1607_v17 }
  0xfe   :  { %v2117_v37 = vunpack.c.l.b16 %v1751_v25 }
  0xff   :  { %v1269_v9 = vpop.f32.mrf.mxu0 }
 0x100   :  { %v1270_v10 = vadd.f32 %v11388_v14, %v1269_v9  ;;  %v2128_v46 = vpack.c.b16 %v2117_v37, %v2116_v42 }
 0x102   :  { %9004 = vmatmul.msk.bf16.gmra.mxu0 %vm1004_vm1, %v10710_v8  ;;  %v1608_v13 = vmax.f32 %v1270_v10, 0.0 }
 0x104   :  { %v1752_v21 = vpack.c.bf16 %v1608_v13, %v1608_v13 }
 0x106   :  { %v2118_v31 = vunpack.c.l.b16 %v1752_v21 }
 0x107   :  { %v1271_v15 = vpop.f32.mrf.mxu0 }
 0x108   :  { %v1272_v18 = vadd.f32 %v11388_v14, %v1271_v15 }
 0x10a   :  { %v1609_v22 = vmax.f32 %v1272_v18, 0.0  ;;  %v10419_v18 = vld [vmem:[%s17749_s1 + $0x14] sm:$0xf] }
 0x10c   :  { %v1753_v26 = vpack.c.bf16 %v1609_v22, %v1609_v22 }
 0x10e   :  { %v2119_v32 = vunpack.c.l.b16 %v1753_v26  ;;  %v9071_v26 = vld [vmem:[%s17749_s1 + $0x10] sm:$0xf] }
 0x10f   :  { %v1274_v34 = vpop.f32.mrf.mxu0  ;;  %v11509_v30 = vor.u32 %v10420_v27, %v9071_v26  ;;  %v10460_v26 = vld [vmem:[%s17749_s1 + $0x154] sm:$0xf0] }
 0x110   :  { %v2129_v38 = vpack.c.b16 %v2119_v32, %v2118_v31  ;;  %v1275_v43 = vadd.f32 %v11388_v14, %v1274_v34 }
 0x111   :  { %18022 = vst [vmem:[#allocation5_spill] sm:$0xff] %v11509_v30 }
 0x112   :  { %9005 = vmatmul.msk.bf16.gmra.mxu0 %vm1004_vm1, %v10711_v33  ;;  %2210 = vmatpush.bf16.msra.mxu1 %v2129_v38  ;;  %v1610_v49 = vmax.f32 %v1275_v43, 0.0  ;;  %v10714_v33 = vld [vmem:[%s17748_s0 + $0x98] sm:$0xff] }
 0x113   :  { %10767 = vmatpush.bf16.msra.mxu3 %v2129_v38 }
 0x114   :  { %v1754_v56 = vpack.c.bf16 %v1610_v49, %v1610_v49 }
 0x116   :  { %2211 = vmatpush.bf16.msra.mxu1 %v2128_v46  ;;  %v2120_v61 = vunpack.c.l.b16 %v1754_v56  ;;  %v9089_v56 = vld [vmem:[%s17749_s1 + $0x38] sm:$0xf0] }
 0x117   :  { %10768 = vmatpush.bf16.msra.mxu3 %v2128_v46  ;;  %v1276_v50 = vpop.f32.mrf.mxu0  ;;  %v9079_v46 = vld [vmem:[%s17749_s1 + $0x20] sm:$0xf] }
 0x118   :  { %v1277_v53 = vadd.f32 %v11388_v14, %v1276_v50  ;;  %v11536_v49 = vor.u32 %v10422_v47, %v9079_v46  ;;  %v10430_v46 = vld [vmem:[%s17749_s1 + $0x64] sm:$0xf0] }
 0x11a   :  { %v1611_v57 = vmax.f32 %v1277_v53, 0.0  ;;  %2212 = vmatpush.bf16.msra.mxu1 %v2127_v54  ;;  %18024 = vst [vmem:[#allocation7_spill] sm:$0xff] %v11536_v49  ;;  %v10715_v53 = vld [vmem:[%s17748_s0 + $0xa0] sm:$0xff] }
 0x11b   :  { %10769 = vmatpush.bf16.msra.mxu3 %v2127_v54 }
 0x11c   :  { %v1755_v59 = vpack.c.bf16 %v1611_v57, %v1611_v57 }
 0x11e   :  { %2213 = vmatpush.bf16.msra.mxu1 %v2126_v58  ;;  %v2121_v62 = vunpack.c.l.b16 %v1755_v59  ;;  %v11552_v59 = vor.u32 %v10423_v55, %v9089_v56 }
 0x11f   :  { %10770 = vmatpush.bf16.msra.mxu3 %v2126_v58  ;;  %v1279_v63 = vpop.f32.mrf.mxu0 }
 0x120   :  { %v2130_v3 = vpack.c.b16 %v2121_v62, %v2120_v61  ;;  %v1280_v4 = vadd.f32 %v11388_v14, %v1279_v63  ;;  %18025 = vst [vmem:[#allocation8_spill] sm:$0xff] %v11552_v59 }
 0x122   :  { %9006 = vmatmul.msk.bf16.gmra.mxu0 %vm1004_vm1, %v10712_v60  ;;  %2214 = vmatpush.bf16.msra.mxu1 %v11423_v0  ;;  %v1612_v6 = vmax.f32 %v1280_v4, 0.0 }
 0x123   :  { %10771 = vmatpush.bf16.msra.mxu3 %v11423_v0  ;;  %2340 = vmatpush.bf16.msra.mxu2 %v2130_v3  ;;  %v9063_v0 = vld [vmem:[%s17749_s1] sm:$0xf]  ;;  %v10424_v3 = vld [vmem:[%s17749_s1 + $0x34] sm:$0xf0] }
 0x124   :  { %v1756_v9 = vpack.c.bf16 %v1612_v6, %v1612_v6  ;;  %v11480_v13 = vor.u32 %v10418_v11, %v9063_v0  ;;  %v11563_v6 = vor.u32 %v10424_v3, %v9087_v2  ;;  %v10425_v0 = vld [vmem:[%s17749_s1 + $0x44] sm:$0xf]  ;;  %v9097_v11 = vld [vmem:[%s17749_s1 + $0x48] sm:$0xf0] }
 0x126   :  { %9237 = vmatmul.msk.bf16.vlgmr.msra.gmra.mxu2 %vm2140_vm2, %v11464_v5  ;;  %2215 = vmatpush.bf16.msra.mxu1 %v11415_v52  ;;  %18020 = vst [vmem:[#allocation3_spill] sm:$0xff] %v11480_v13 }
 0x127   :  { %10772 = vmatpush.bf16.msra.mxu3 %v11415_v52  ;;  %v1281_v7 = vpop.f32.mrf.mxu0  ;;  %v2575_v52 = vunpack.c.l.b16 %v1756_v9  ;;  %18026 = vst [vmem:[#allocation9_spill] sm:$0xff] %v11563_v6  ;;  %v10716_v9 = vld [vmem:[%s17748_s0 + $0xa8] sm:$0xff] }
 0x128   :  { %v1282_v8 = vadd.f32 %v11388_v14, %v1281_v7 }
 0x12a   :  { %v1613_v10 = vmax.f32 %v1282_v8, 0.0  ;;  %2216 = vmatpush.bf16.msra.mxu1 %v11407_v40 }
 0x12b   :  { %10773 = vmatpush.bf16.msra.mxu3 %v11407_v40  ;;  %v9073_v40 = vld [vmem:[%s17749_s1 + $0x18] sm:$0xf0] }
 0x12c   :  { %v1757_v12 = vpack.c.bf16 %v1613_v10, %v1613_v10  ;;  %v11498_v21 = vor.u32 %v10419_v18, %v9073_v40  ;;  %v10717_v40 = vld [vmem:[%s17748_s0 + $0xb0] sm:$0xff] }
 0x12e   :  { %v2576_v15 = vunpack.c.l.b16 %v1757_v12  ;;  %2217 = vmatpush.bf16.msra.mxu1 %v11399_v28  ;;  %18021 = vst [vmem:[#allocation4_spill] sm:$0xff] %v11498_v21 }
 0x12f   :  { %10774 = vmatpush.bf16.msra.mxu3 %v11399_v28  ;;  %v1284_v17 = vpop.f32.mrf.mxu0 }
 0x130   :  { %v11493_v19 = vpack.c.b16 %v2576_v15, %v2575_v52  ;;  %v1285_v20 = vadd.f32 %v11388_v14, %v1284_v17  ;;  %v11580_v52 = vor.u32 %v10425_v0, %v9097_v11  ;;  %v10426_v17 = vld [vmem:[%s17749_s1 + $0x44] sm:$0xf0] }
 0x131   :  { %2218 = vmatmul.bf16.vlgmr.msra.gmra.mxu1 %v11480_v13 }
 0x132   :  { %9007 = vmatmul.msk.bf16.gmra.mxu0 %vm1004_vm1, %v10713_v16  ;;  %v1614_v28 = vmax.f32 %v1285_v20, 0.0  ;;  %18027 = vst [vmem:[#allocation10_spill] sm:$0xff] %v11580_v52  ;;  %v9095_v16 = vld [vmem:[%s17749_s1 + $0x40] sm:$0xf] }
 0x133   :  { %v11590_v18 = vor.u32 %v10426_v17, %v9095_v16 }
 0x134   :  { %v1758_v24 = vpack.c.bf16 %v1614_v28, %v1614_v28  ;;  %v10427_v28 = vld [vmem:[%s17749_s1 + $0x54] sm:$0xf] }
 0x135   :  { %18028 = vst [vmem:[#allocation11_spill] sm:$0xff] %v11590_v18 }
 0x136   :  { %9238 = vmatmul.msk.bf16.gmra.mxu2 %vm2140_vm2, %v11498_v21  ;;  %v2577_v31 = vunpack.c.l.b16 %v1758_v24 }
 0x137   :  { %v1286_v22 = vpop.f32.mrf.mxu0 }
 0x138   :  { %v1287_v23 = vadd.f32 %v11388_v14, %v1286_v22  ;;  %v9105_v22 = vld [vmem:[%s17749_s1 + $0x58] sm:$0xf0] }
 0x13a   :  { %v1615_v25 = vmax.f32 %v1287_v23, 0.0  ;;  %v11603_v23 = vor.u32 %v10427_v28, %v9105_v22 }
 0x13c   :  { %v1759_v29 = vpack.c.bf16 %v1615_v25, %v1615_v25  ;;  %18029 = vst [vmem:[#allocation12_spill] sm:$0xff] %v11603_v23  ;;  %v9231_v25 = vld [vmem:[%s17749_s1 + $0x150] sm:$0xf] }
 0x13d   :  { %v11613_v27 = vor.u32 %v10460_v26, %v9231_v25  ;;  %v10720_v26 = vld [vmem:[%s17748_s0 + $0xc8] sm:$0xff] }
 0x13e   :  { %v2578_v32 = vunpack.c.l.b16 %v1759_v29  ;;  %v9103_v29 = vld [vmem:[%s17749_s1 + $0x50] sm:$0xf] }
 0x13f   :  { %v1289_v34 = vpop.f32.mrf.mxu0  ;;  %18030 = vst [vmem:[#allocation13_spill] sm:$0xff] %v11613_v27  ;;  %2323 = vmatmul.bf16.vlgmr.msra.gmra.mxu3 %v11613_v27 }
 0x140   :  { %v11520_v37 = vpack.c.b16 %v2578_v32, %v2577_v31  ;;  %v1290_v38 = vadd.f32 %v11388_v14, %v1289_v34  ;;  %v10428_v31 = vld [vmem:[%s17749_s1 + $0x54] sm:$0xf0] }
 0x141   :  { %2223 = vmatmul.bf16.gmra.mxu1 %v11509_v30  ;;  %v11622_v32 = vor.u32 %v10428_v31, %v9103_v29 }
 0x142   :  { %9008 = vmatmul.msk.bf16.gmra.mxu0 %vm1004_vm1, %v10714_v33  ;;  %v1616_v41 = vmax.f32 %v1290_v38, 0.0  ;;  %v10718_v33 = vld [vmem:[%s17748_s0 + $0xb8] sm:$0xff]  ;;  %v11635_v38 = vor.u32 %v10429_v35, %v9113_v36 }
 0x143   :  { %18031 = vst [vmem:[#allocation14_spill] sm:$0xff] %v11622_v32 }
 0x144   :  { %v1760_v44 = vpack.c.bf16 %v1616_v41, %v1616_v41  ;;  %18032 = vst [vmem:[#allocation15_spill] sm:$0xff] %v11635_v38  ;;  %v11640_v41 = vld [vmem:[%s17749_s1 + $0x160] sm:$0xff] }
 0x146   :  { %9239 = vmatmul.msk.bf16.gmra.mxu2 %vm2140_vm2, %v11525_v39  ;;  %v2579_v50 = vunpack.c.l.b16 %v1760_v44 }
 0x147   :  { %v1291_v42 = vpop.f32.mrf.mxu0 }
 0x148   :  { %v1292_v43 = vadd.f32 %v11388_v14, %v1291_v42  ;;  %v2015_v42 = vunpack.c.l.b16 %v11640_v41 }
 0x14a   :  { %v1617_v45 = vmax.f32 %v1292_v43, 0.0  ;;  %v11645_v44 = vpack.c.b16 %v2015_v42, %v2015_v42 }
 0x14c   :  { %v1761_v48 = vpack.c.bf16 %v1617_v45, %v1617_v45  ;;  %18033 = vst [vmem:[#allocation16_spill] sm:$0xff] %v11645_v44  ;;  %v9111_v45 = vld [vmem:[%s17749_s1 + $0x60] sm:$0xf] }
 0x14d   :  { %v11654_v47 = vor.u32 %v10430_v46, %v9111_v45 }
 0x14e   :  { %v2580_v51 = vunpack.c.l.b16 %v1761_v48  ;;  %v10719_v48 = vld [vmem:[%s17748_s0 + $0xc0] sm:$0xff] }
 0x14f   :  { %v1294_v54 = vpop.f32.mrf.mxu0  ;;  %2328 = vmatmul.bf16.gmra.mxu3 %v11645_v44  ;;  %18034 = vst [vmem:[#allocation17_spill] sm:$0xff] %v11654_v47 }
 0x150   :  { %v11547_v57 = vpack.c.b16 %v2580_v51, %v2579_v50  ;;  %v1295_v58 = vadd.f32 %v11388_v14, %v1294_v54  ;;  %v10431_v51 = vld [vmem:[%s17749_s1 + $0x74] sm:$0xf] }
 0x151   :  { %2228 = vmatmul.bf16.gmra.mxu1 %v11536_v49 }
 0x152   :  { %9009 = vmatmul.msk.bf16.gmra.mxu0 %vm1004_vm1, %v10715_v53  ;;  %v1618_v60 = vmax.f32 %v1295_v58, 0.0  ;;  %v9121_v53 = vld [vmem:[%s17749_s1 + $0x78] sm:$0xf0] }
 0x153   :  { %v11668_v55 = vor.u32 %v10431_v51, %v9121_v53 }
 0x154   :  { %v1762_v63 = vpack.c.bf16 %v1618_v60, %v1618_v60 }
 0x155   :  { %18035 = vst [vmem:[#allocation18_spill] sm:$0xff] %v11668_v55 }
 0x156   :  { %9240 = vmatmul.msk.bf16.gmra.mxu2 %vm2140_vm2, %v11552_v59  ;;  %v2581_v7 = vunpack.c.l.b16 %v1762_v63 }
 0x157   :  { %v1296_v61 = vpop.f32.mrf.mxu0 }
 0x158   :  { %v1297_v62 = vadd.f32 %v11388_v14, %v1296_v61 }
 0x15a   :  { %v1619_v1 = vmax.f32 %v1297_v62, 0.0 }
 0x15c   :  { %v1763_v4 = vpack.c.bf16 %v1619_v1, %v1619_v1 }
 0x15e   :  { %v2582_v8 = vunpack.c.l.b16 %v1763_v4 }
 0x15f   :  { %v11568_v10 = vpop.f32.mrf.mxu0 }
 0x160   :  { %v11576_v12 = vpack.c.b16 %v2582_v8, %v2581_v7  ;;  %v9119_v8 = vld [vmem:[%s17749_s1 + $0x70] sm:$0xf] }
 0x161   :  { %2233 = vmatmul.bf16.gmra.mxu1 %v11563_v6 }
 0x162   :  { %9010 = vmatmul.msk.bf16.gmra.mxu0 %vm1004_vm1, %v10716_v9  ;;  %v10432_v9 = vld [vmem:[%s17749_s1 + $0x74] sm:$0xf0] }
 0x166   :  { %9241 = vmatmul.msk.bf16.gmra.mxu2 %vm2140_vm2, %v11580_v52 }
 0x167   :  { %v1301_v15 = vpop.f32.mrf.mxu0 }
 0x168   :  { %v1302_v0 = vadd.f32 %v11388_v14, %v1301_v15  ;;  %v10433_v15 = vld [vmem:[%s17749_s1 + $0x84] sm:$0xf] }
 0x16a   :  { %v1621_v29 = vmax.f32 %v1302_v0, 0.0 }
 0x16f   :  { %v1304_v20 = vpop.f32.mrf.mxu0 }
 0x170   :  { %v1305_v2 = vadd.f32 %v11388_v14, %v1304_v20  ;;  %v11686_v20 = vor.u32 %v10432_v9, %v9119_v8 }
 0x171   :  { %2238 = vmatmul.bf16.gmra.mxu1 %v11590_v18 }
 0x172   :  { %9011 = vmatmul.msk.bf16.gmra.mxu0 %vm1004_vm1, %v10717_v40  ;;  %v1300_v40 = vadd.f32 %v11388_v14, %v11568_v10  ;;  %18036 = vst [vmem:[#allocation19_spill] sm:$0xff] %v11686_v20  ;;  %v1622_v28 = vmax.f32 %v1305_v2, 0.0  ;;  %v9129_v10 = vld [vmem:[%s17749_s1 + $0x88] sm:$0xf0] }
 0x173   :  { %v11700_v46 = vor.u32 %v10433_v15, %v9129_v10 }
 0x174   :  { %v1620_v42 = vmax.f32 %v1300_v40, 0.0 }
 0x175   :  { %18037 = vst [vmem:[#allocation20_spill] sm:$0xff] %v11700_v46 }
 0x176   :  { %9242 = vmatmul.msk.bf16.gmra.mxu2 %vm2140_vm2, %v11603_v23 }
 0x177   :  { %v1306_v24 = vpop.f32.mrf.mxu0 }
 0x178   :  { %v1307_v62 = vadd.f32 %v11388_v14, %v1306_v24 }
 0x17a   :  { %v1623_v11 = vmax.f32 %v1307_v62, 0.0 }
 0x17f   :  { %v1309_v34 = vpop.f32.mrf.mxu0 }
 0x180   :  { %v1310_v58 = vadd.f32 %v11388_v14, %v1309_v34 }
 0x181   :  { %2243 = vmatmul.bf16.gmra.mxu1 %v11622_v32 }
 0x182   :  { %9012 = vmatmul.msk.bf16.gmra.mxu0 %vm1004_vm1, %v10718_v33  ;;  %v1624_v3 = vmax.f32 %v1310_v58, 0.0  ;;  %v1767_v33 = vpack.c.bf16 %v1623_v11, %v1623_v11 }
 0x184   :  { %v1768_v22 = vpack.c.bf16 %v1624_v3, %v1624_v3 }
 0x186   :  { %9243 = vmatmul.msk.bf16.gmra.mxu2 %vm2140_vm2, %v11635_v38  ;;  %v2587_v45 = vunpack.c.l.b16 %v1768_v22  ;;  %v10435_v22 = vld [vmem:[%s17749_s1 + $0x94] sm:$0xf] }
 0x187   :  { %v1311_v43 = vpop.f32.mrf.mxu0 }
 0x188   :  { %v1312_v56 = vadd.f32 %v11388_v14, %v1311_v43  ;;  %v1766_v43 = vpack.c.bf16 %v1622_v28, %v1622_v28 }
 0x18a   :  { %v1625_v63 = vmax.f32 %v1312_v56, 0.0  ;;  %v2585_v56 = vunpack.c.l.b16 %v1766_v43  ;;  %v10437_v43 = vld [vmem:[%s17749_s1 + $0xa4] sm:$0xf] }
 0x18c   :  { %v1769_v16 = vpack.c.bf16 %v1625_v63, %v1625_v63 }
 0x18e   :  { %v2588_v34 = vunpack.c.l.b16 %v1769_v16 }
 0x18f   :  { %v1314_v50 = vpop.f32.mrf.mxu0 }
 0x190   :  { %v1315_v54 = vadd.f32 %v11388_v14, %v1314_v50  ;;  %v2586_v50 = vunpack.c.l.b16 %v1767_v33  ;;  %v2599_v53 = vpack.c.b16 %v2588_v34, %v2587_v45  ;;  %v10436_v34 = vld [vmem:[%s17749_s1 + $0x94] sm:$0xf0]  ;;  %v9145_v45 = vld [vmem:[%s17749_s1 + $0xa8] sm:$0xf0] }
 0x191   :  { %2248 = vmatmul.bf16.gmra.mxu1 %v11654_v47 }
 0x192   :  { %9013 = vmatmul.msk.bf16.gmra.mxu0 %vm1004_vm1, %v10719_v48  ;;  %v1626_v60 = vmax.f32 %v1315_v54, 0.0  ;;  %v1765_v48 = vpack.c.bf16 %v1621_v29, %v1621_v29  ;;  %v1764_v54 = vpack.c.bf16 %v1620_v42, %v1620_v42  ;;  %v2598_v63 = vpack.c.b16 %v2586_v50, %v2585_v56  ;;  %v9143_v56 = vld [vmem:[%s17749_s1 + $0xa0] sm:$0xf] }
 0x194   :  { %v1770_v4 = vpack.c.bf16 %v1626_v60, %v1626_v60  ;;  %v2584_v60 = vunpack.c.l.b16 %v1765_v48  ;;  %v2583_v2 = vunpack.c.l.b16 %v1764_v54 }
 0x196   :  { %9244 = vmatmul.msk.bf16.gmra.mxu2 %vm2140_vm2, %v11668_v55  ;;  %v2589_v24 = vunpack.c.l.b16 %v1770_v4  ;;  %v9127_v4 = vld [vmem:[%s17749_s1 + $0x80] sm:$0xf]  ;;  %v2597_v0 = vpack.c.b16 %v2584_v60, %v2583_v2  ;;  %v10439_v2 = vld [vmem:[%s17749_s1 + $0xb4] sm:$0xf] }
 0x197   :  { %v1316_v61 = vpop.f32.mrf.mxu0 }
 0x198   :  { %v1317_v1 = vadd.f32 %v11388_v14, %v1316_v61 }
 0x19a   :  { %v1627_v7 = vmax.f32 %v1317_v1, 0.0 }
 0x19c   :  { %v1771_v17 = vpack.c.bf16 %v1627_v7, %v1627_v7  ;;  %v10434_v7 = vld [vmem:[%s17749_s1 + $0x84] sm:$0xf0] }
 0x19d   :  { %v11711_v11 = vor.u32 %v10434_v7, %v9127_v4 }
 0x19e   :  { %v2590_v25 = vunpack.c.l.b16 %v1771_v17  ;;  %v10721_v17 = vld [vmem:[%s17748_s0 + $0xd0] sm:$0xff] }
 0x19f   :  { %v1319_v31 = vpop.f32.mrf.mxu0  ;;  %18038 = vst [vmem:[#allocation21_spill] sm:$0xff] %v11711_v11 }
 0x1a0   :  { %v1320_v35 = vadd.f32 %v11388_v14, %v1319_v31  ;;  %v2600_v36 = vpack.c.b16 %v2590_v25, %v2589_v24  ;;  %v9137_v24 = vld [vmem:[%s17749_s1 + $0x98] sm:$0xf0] }
 0x1a1   :  { %2253 = vmatmul.bf16.gmra.mxu1 %v11686_v20  ;;  %v11727_v29 = vor.u32 %v10435_v22, %v9137_v24 }
 0x1a2   :  { %9014 = vmatmul.msk.bf16.gmra.mxu0 %vm1004_vm1, %v10720_v26  ;;  %2611 = vmatpush.bf16.msrb.mxu3 %v2600_v36  ;;  %v1628_v51 = vmax.f32 %v1320_v35, 0.0 }
 0x1a3   :  { %18039 = vst [vmem:[#allocation22_spill] sm:$0xff] %v11727_v29 }
 0x1a4   :  { %v1772_v61 = vpack.c.bf16 %v1628_v51, %v1628_v51 }
 0x1a6   :  { %9245 = vmatmul.msk.bf16.gmra.mxu2 %vm2140_vm2, %v11700_v46  ;;  %2612 = vmatpush.bf16.msrb.mxu3 %v2599_v53  ;;  %v2591_v8 = vunpack.c.l.b16 %v1772_v61  ;;  %v10723_v61 = vld [vmem:[%s17748_s0 + $0xe0] sm:$0xff] }
 0x1a7   :  { %v1321_v58 = vpop.f32.mrf.mxu0 }
 0x1a8   :  { %v1322_v62 = vadd.f32 %v11388_v14, %v1321_v58  ;;  %v10438_v58 = vld [vmem:[%s17749_s1 + $0xa4] sm:$0xf0] }
 0x1a9   :  { %v2342_v1 = vpop.f32.mrf.mxu2  ;;  %v11776_v60 = vor.u32 %v10438_v58, %v9143_v56  ;;  %v10442_v56 = vld [vmem:[%s17749_s1 + $0xc4] sm:$0xf0] }
 0x1aa   :  { %v1629_v3 = vmax.f32 %v1322_v62, 0.0  ;;  %2613 = vmatpush.bf16.msrb.mxu3 %v2598_v63 }
 0x1ab   :  { %18042 = vst [vmem:[#allocation25_spill] sm:$0xff] %v11776_v60 }
 0x1ac   :  { %v1773_v9 = vpack.c.bf16 %v1629_v3, %v1629_v3  ;;  %v9153_v3 = vld [vmem:[%s17749_s1 + $0xb8] sm:$0xf0] }
 0x1ad   :  { %v11794_v7 = vor.u32 %v10439_v2, %v9153_v3 }
 0x1ae   :  { %v2592_v16 = vunpack.c.l.b16 %v1773_v9  ;;  %2614 = vmatpush.bf16.msrb.mxu3 %v2597_v0  ;;  %v2219_v40 = vpop.f32.mrf.mxu1 }
 0x1af   :  { %v11716_v28 = vpop.f32.mrf.mxu0  ;;  %v11732_v31 = vadd.f32 %v2342_v1, %v2219_v40  ;;  %18043 = vst [vmem:[#allocation26_spill] sm:$0xff] %v11794_v7  ;;  %v10440_v40 = vld [vmem:[%s17749_s1 + $0xb4] sm:$0xf0] }
 0x1b0   :  { %v2601_v25 = vpack.c.b16 %v2592_v16, %v2591_v8 }
 0x1b1   :  { %v2344_v26 = vpop.f32.mrf.mxu2  ;;  %2258 = vmatmul.bf16.gmra.mxu1 %v11711_v11 }
 0x1b2   :  { %9015 = vmatmul.msk.bf16.gmra.mxu0 %vm1004_vm1, %v10721_v17  ;;  %2615 = vmatpush.bf16.msrb.mxu3 %v11576_v12  ;;  %v9135_v12 = vld [vmem:[%s17749_s1 + $0x90] sm:$0xf] }
 0x1b3   :  { %2741 = vmatpush.bf16.msrb.mxu2 %v2601_v25  ;;  %v11743_v35 = vor.u32 %v10436_v34, %v9135_v12  ;;  %v9151_v17 = vld [vmem:[%s17749_s1 + $0xb0] sm:$0xf]  ;;  %v10724_v25 = vld [vmem:[%s17748_s0 + $0xe8] sm:$0xff] }
 0x1b4   :  { %v11808_v24 = vor.u32 %v10440_v40, %v9151_v17  ;;  %v9161_v12 = vld [vmem:[%s17749_s1 + $0xc8] sm:$0xf0] }
 0x1b5   :  { %18040 = vst [vmem:[#allocation23_spill] sm:$0xff] %v11743_v35 }
 0x1b6   :  { %9246 = vmatmul.msk.bf16.gmra.mxu2 %vm2140_vm2, %v11727_v29  ;;  %2616 = vmatpush.bf16.msrb.mxu3 %v11547_v57  ;;  %v2221_v15 = vpop.f32.mrf.mxu1  ;;  %v10722_v57 = vld [vmem:[%s17748_s0 + $0xd8] sm:$0xff]  ;;  %18045 = vst [vmem:[#allocation28_spill] sm:$0xff] %v11808_v24 }
 0x1b7   :  { %v11734_v10 = vpop.f32.mrf.mxu0  ;;  %v11749_v36 = vadd.f32 %v2344_v26, %v2221_v15 }
 0x1b9   :  { %v2347_v33 = vpop.f32.mrf.mxu2 }
 0x1ba   :  { %2617 = vmatpush.bf16.msrb.mxu3 %v11520_v37 }
 0x1be   :  { %2618 = vmatpush.bf16.msrb.mxu3 %v11493_v19  ;;  %v2224_v42 = vpop.f32.mrf.mxu1  ;;  %v11762_v19 = vor.u32 %v10437_v43, %v9145_v45 }
 0x1bf   :  { %v11751_v37 = vpop.f32.mrf.mxu0  ;;  %v11766_v50 = vadd.f32 %v2347_v33, %v2224_v42  ;;  %v10441_v33 = vld [vmem:[%s17749_s1 + $0xc4] sm:$0xf] }
 0x1c0   :  { %18041 = vst [vmem:[#allocation24_spill] sm:$0xff] %v11762_v19  ;;  %v11824_v43 = vor.u32 %v10441_v33, %v9161_v12  ;;  %v9167_v12 = vld [vmem:[%s17749_s1 + $0xd0] sm:$0xf] }
 0x1c1   :  { %v2349_v48 = vpop.f32.mrf.mxu2  ;;  %2619 = vmatmul.bf16.vlgmr.msrb.gmra.mxu3 %v11480_v13  ;;  %2263 = vmatmul.bf16.gmra.mxu1 %v11743_v35 }
 0x1c2   :  { %9016 = vmatmul.msk.bf16.gmra.mxu0 %vm1004_vm1, %v10722_v57  ;;  %18046 = vst [vmem:[#allocation29_spill] sm:$0xff] %v11824_v43 }
 0x1c6   :  { %9247 = vmatmul.msk.bf16.gmra.mxu2 %vm2140_vm2, %v11762_v19  ;;  %v2226_v51 = vpop.f32.mrf.mxu1 }
 0x1c7   :  { %v11768_v53 = vpop.f32.mrf.mxu0  ;;  %v11781_v62 = vadd.f32 %v2349_v48, %v2226_v51 }
 0x1c9   :  { %v2352_v54 = vpop.f32.mrf.mxu2 }
 0x1ce   :  { %v2229_v63 = vpop.f32.mrf.mxu1 }
 0x1cf   :  { %v11783_v1 = vpop.f32.mrf.mxu0  ;;  %v11798_v8 = vadd.f32 %v2352_v54, %v2229_v63  ;;  %v9159_v54 = vld [vmem:[%s17749_s1 + $0xc0] sm:$0xf]  ;;  %v10725_v63 = vld [vmem:[%s17748_s0 + $0xf0] sm:$0xff] }
 0x1d1   :  { %v2354_v4 = vpop.f32.mrf.mxu2  ;;  %2624 = vmatmul.bf16.gmra.mxu3 %v11509_v30  ;;  %2268 = vmatmul.bf16.gmra.mxu1 %v11776_v60  ;;  %18044 = vst [vmem:[#allocation27_spill] sm:$0xff] %v11798_v8  ;;  %v10447_v8 = vld [vmem:[%s17749_s1 + $0xf4] sm:$0xf] }
 0x1d2   :  { %9017 = vmatmul.msk.bf16.gmra.mxu0 %vm1004_vm1, %v10723_v61  ;;  %v11837_v61 = vor.u32 %v10442_v56, %v9159_v54 }
 0x1d4   :  { %18047 = vst [vmem:[#allocation30_spill] sm:$0xff] %v11837_v61 }
 0x1d6   :  { %9248 = vmatmul.msk.bf16.gmra.mxu2 %vm2140_vm2, %v11794_v7  ;;  %v2231_v9 = vpop.f32.mrf.mxu1 }
 0x1d7   :  { %v11800_v0 = vpop.f32.mrf.mxu0  ;;  %v2355_v22 = vadd.f32 %v2354_v4, %v2231_v9  ;;  %v10443_v4 = vld [vmem:[%s17749_s1 + $0xd4] sm:$0xf]  ;;  %v9169_v9 = vld [vmem:[%s17749_s1 + $0xd8] sm:$0xf0] }
 0x1d9   :  { %v2357_v16 = vpop.f32.mrf.mxu2 }
 0x1de   :  { %v2234_v26 = vpop.f32.mrf.mxu1 }
 0x1df   :  { %v11813_v15 = vpop.f32.mrf.mxu0  ;;  %v2358_v34 = vadd.f32 %v2357_v16, %v2234_v26 }
 0x1e1   :  { %v2359_v57 = vpop.f32.mrf.mxu2  ;;  %2629 = vmatmul.bf16.gmra.mxu3 %v11536_v49  ;;  %2273 = vmatmul.bf16.gmra.mxu1 %v11808_v24  ;;  %v10784_v42 = vpack.i.bf16 %v2358_v34, %v2355_v22  ;;  %v11853_v22 = vor.u32 %v10443_v4, %v9169_v9  ;;  %v10444_v34 = vld [vmem:[%s17749_s1 + $0xd4] sm:$0xf0] }
 0x1e2   :  { %9018 = vmatmul.msk.bf16.gmra.mxu0 %vm1004_vm1, %v10724_v25 }
 0x1e3   :  { %10785 = vrot.lane.b32.xlu0 %v10784_v42, %s11273_s3  ;;  %18048 = vst [vmem:[#allocation31_spill] sm:$0xff] %v11853_v22  ;;  %v11868_v42 = vor.u32 %v10444_v34, %v9167_v12  ;;  %v9175_v12 = vld [vmem:[%s17749_s1 + $0xe0] sm:$0xf]  ;;  %v10446_v34 = vld [vmem:[%s17749_s1 + $0xe4] sm:$0xf0] }
 0x1e5   :  { %18049 = vst [vmem:[#allocation32_spill] sm:$0xff] %v11868_v42 }
 0x1e6   :  { %9249 = vmatmul.msk.bf16.gmra.mxu2 %vm2140_vm2, %v11824_v43  ;;  %v2236_v45 = vpop.f32.mrf.mxu1 }
 0x1e7   :  { %v11829_v48 = vpop.f32.mrf.mxu0  ;;  %v2360_v58 = vadd.f32 %v2359_v57, %v2236_v45  ;;  %v11866_v57 = vpop.f32.mrf.mxu3  ;;  %v10726_v45 = vld [vmem:[%s17748_s0 + $0xf8] sm:$0xff] }
 0x1e9   :  { %v2362_v51 = vpop.f32.mrf.mxu2 }
 0x1ee   :  { %v2239_v2 = vpop.f32.mrf.mxu1 }
 0x1ef   :  { %v11842_v3 = vpop.f32.mrf.mxu0  ;;  %v2363_v16 = vadd.f32 %v2362_v51, %v2239_v2  ;;  %v11888_v9 = vpop.f32.mrf.mxu3 }
 0x1f0   :  { %18052 = vst [vmem:[#allocation35_spill] sm:$0xff] %v11888_v9 }
 0x1f1   :  { %v2364_v17 = vpop.f32.mrf.mxu2  ;;  %2634 = vmatmul.bf16.gmra.mxu3 %v11563_v6  ;;  %v10789_v40 = vpack.i.bf16 %v2363_v16, %v2360_v58  ;;  %2278 = vmatmul.bf16.gmra.mxu1 %v11837_v61  ;;  %v10445_v58 = vld [vmem:[%s17749_s1 + $0xe4] sm:$0xf] }
 0x1f2   :  { %9019 = vmatmul.msk.bf16.gmra.mxu0 %vm1004_vm1, %v10725_v63  ;;  %v9177_v63 = vld [vmem:[%s17749_s1 + $0xe8] sm:$0xf0] }
 0x1f3   :  { %10790 = vrot.lane.b32.xlu0 %v10789_v40, %s11273_s3  ;;  %v11886_v4 = vor.u32 %v10445_v58, %v9177_v63  ;;  %v11904_v58 = vor.u32 %v10446_v34, %v9175_v12 }
 0x1f5   :  { %18051 = vst [vmem:[#allocation34_spill] sm:$0xff] %v11886_v4 }
 0x1f6   :  { %9250 = vmatmul.msk.bf16.gmra.mxu2 %vm2140_vm2, %v11853_v22  ;;  %v2241_v25 = vpop.f32.mrf.mxu1  ;;  %18055 = vst [vmem:[#allocation38_spill] sm:$0xff] %v11904_v58 }
 0x1f7   :  { %v11858_v26 = vpop.f32.mrf.mxu0  ;;  %v11873_v51 = vadd.f32 %v2364_v17, %v2241_v25 }
 0x1f9   :  { %v2367_v33 = vpop.f32.mrf.mxu2  ;;  %18050 = vst [vmem:[#allocation33_spill] sm:$0xff] %v11873_v51 }
 0x1fe   :  { %v2244_v54 = vpop.f32.mrf.mxu1 }
 0x1ff   :  { %v11875_v56 = vpop.f32.mrf.mxu0  ;;  %v11892_v16 = vadd.f32 %v2367_v33, %v2244_v54  ;;  %v10727_v33 = vld [vmem:[%s17748_s0 + $0x100] sm:$0xff] }
 0x201   :  { %v2369_v2 = vpop.f32.mrf.mxu2  ;;  %2639 = vmatmul.bf16.gmra.mxu3 %v11590_v18  ;;  %2283 = vmatmul.bf16.gmra.mxu1 %v11868_v42  ;;  %18053 = vst [vmem:[#allocation36_spill] sm:$0xff] %v11892_v16 }
 0x202   :  { %9020 = vmatmul.msk.bf16.gmra.mxu0 %vm1004_vm1, %v10726_v45  ;;  %v11902_v45 = vpop.f32.mrf.mxu3 }
 0x203   :  { %18054 = vst [vmem:[#allocation37_spill] sm:$0xff] %v11902_v45  ;;  %v1342_v45 = vadd.f32 %v11388_v14, %v11829_v48  ;;  %v1325_v48 = vadd.f32 %v11388_v14, %v11716_v28 }
 0x205   :  { %v1637_v19 = vmax.f32 %v1342_v45, 0.0  ;;  %v1332_v45 = vadd.f32 %v11388_v14, %v11768_v53  ;;  %v1630_v29 = vmax.f32 %v1325_v48, 0.0  ;;  %v11966_v48 = vld [vmem:[%s17747_s8] ss:$0 sm:$0xff] }
 0x206   :  { %9251 = vmatmul.msk.bf16.gmra.mxu2 %vm2140_vm2, %v11886_v4  ;;  %v2246_v17 = vpop.f32.mrf.mxu1  ;;  %v9185_v4 = vld [vmem:[%s17749_s1 + $0xf8] sm:$0xf0] }
 0x207   :  { %v11894_v40 = vpop.f32.mrf.mxu0  ;;  %v11909_v54 = vadd.f32 %v2369_v2, %v2246_v17  ;;  %v11920_v12 = vor.u32 %v10447_v8, %v9185_v4  ;;  %v1335_v2 = vadd.f32 %v11388_v14, %v11783_v1  ;;  %v1337_v17 = vadd.f32 %v11388_v14, %v11800_v0  ;;  %v9183_v0 = vld [vmem:[%s17749_s1 + $0xf0] sm:$0xf] }
 0x209   :  { %v2372_v25 = vpop.f32.mrf.mxu2  ;;  %18056 = vst [vmem:[#allocation39_spill] sm:$0xff] %v11909_v54  ;;  %v1340_v54 = vadd.f32 %v11388_v14, %v11813_v15  ;;  %v1635_v7 = vmax.f32 %v1337_v17, 0.0  ;;  %v10448_v15 = vld [vmem:[%s17749_s1 + $0xf4] sm:$0xf0] }
 0x20a   :  { %18057 = vst [vmem:[#allocation40_spill] sm:$0xff] %v11920_v12  ;;  %v2331_v34 = vpop.f32.mrf.mxu3 }
 0x20b   :  { %v1636_v51 = vmax.f32 %v1340_v54, 0.0  ;;  %v1779_v17 = vpack.c.bf16 %v1635_v7, %v1635_v7 }
 0x20d   :  { %v1780_v34 = vpack.c.bf16 %v1636_v51, %v1636_v51  ;;  %v1633_v51 = vmax.f32 %v1332_v45, 0.0 }
 0x20e   :  { %v2249_v63 = vpop.f32.mrf.mxu1 }
 0x20f   :  { %v1354_v16 = vpop.f32.mrf.mxu0  ;;  %v11932_v43 = vadd.f32 %v2372_v25, %v2249_v63  ;;  %v1327_v25 = vadd.f32 %v11388_v14, %v11734_v10  ;;  %v1330_v63 = vadd.f32 %v11388_v14, %v11751_v37  ;;  %v10449_v10 = vld [vmem:[%s17749_s1 + $0x104] sm:$0xf]  ;;  %v9193_v37 = vld [vmem:[%s17749_s1 + $0x108] sm:$0xf0]  ;;  %v1777_v9 = vpack.c.bf16 %v1633_v51, %v1633_v51 }
 0x211   :  { %v2374_v22 = vpop.f32.mrf.mxu2  ;;  %2644 = vmatmul.bf16.gmra.mxu3 %v11622_v32  ;;  %2288 = vmatmul.bf16.gmra.mxu1 %v11904_v58  ;;  %18058 = vst [vmem:[#allocation41_spill] sm:$0xff] %v11932_v43  ;;  %v1781_v43 = vpack.c.bf16 %v1637_v19, %v1637_v19  ;;  %v1631_v53 = vmax.f32 %v1327_v25, 0.0  ;;  %v2980_v25 = vunpack.c.l.b16 %v1779_v17 }
 0x212   :  { %9021 = vmatmul.msk.bf16.gmra.mxu0 %vm1004_vm1, %v10727_v33  ;;  %v1634_v33 = vmax.f32 %v1335_v2, 0.0  ;;  %v11948_v2 = vor.u32 %v10448_v15, %v9183_v0  ;;  %v1355_v15 = vadd.f32 %v11388_v14, %v1354_v16 }
 0x213   :  { %v1775_v16 = vpack.c.bf16 %v1631_v53, %v1631_v53 }
 0x214   :  { %v1778_v54 = vpack.c.bf16 %v1634_v33, %v1634_v33  ;;  %18059 = vst [vmem:[#allocation42_spill] sm:$0xff] %v11948_v2  ;;  %v1632_v33 = vmax.f32 %v1330_v63, 0.0  ;;  %v1350_v63 = vadd.f32 %v11966_v48, %v11875_v56  ;;  %v1345_v56 = vadd.f32 %v11966_v48, %v11842_v3  ;;  %v9191_v3 = vld [vmem:[%s17749_s1 + $0x100] sm:$0xf] }
 0x216   :  { %9252 = vmatmul.msk.bf16.gmra.mxu2 %vm2140_vm2, %v11920_v12  ;;  %v2251_v8 = vpop.f32.mrf.mxu1  ;;  %v10728_v12 = vld [vmem:[%s17748_s0 + $0x108] sm:$0xff]  ;;  %v2979_v0 = vunpack.c.l.b16 %v1778_v54  ;;  %v1776_v54 = vpack.c.bf16 %v1632_v33, %v1632_v33 }
 0x217   :  { %v1356_v4 = vpop.f32.mrf.mxu0  ;;  %v11960_v19 = vadd.f32 %v2374_v22, %v2251_v8  ;;  %v2982_v22 = vunpack.c.l.b16 %v1781_v43  ;;  %v11972_v8 = vor.u32 %v10449_v10, %v9193_v37  ;;  %v1640_v10 = vmax.f32 %v1350_v63, 0.0 }
 0x218   :  { %v1357_v46 = vadd.f32 %v11966_v48, %v1356_v4  ;;  %v1352_v4 = vadd.f32 %v11966_v48, %v11894_v40  ;;  %v1347_v40 = vadd.f32 %v11966_v48, %v11858_v26  ;;  %v10450_v26 = vld [vmem:[%s17749_s1 + $0x104] sm:$0xf0] }
 0x219   :  { %v2377_v1 = vpop.f32.mrf.mxu2  ;;  %18060 = vst [vmem:[#allocation43_spill] sm:$0xff] %v11960_v19  ;;  %v1642_v19 = vmax.f32 %v1355_v15, 0.0  ;;  %v2978_v15 = vunpack.c.l.b16 %v1777_v9  ;;  %v1784_v63 = vpack.c.bf16 %v1640_v10, %v1640_v10  ;;  %v10451_v10 = vld [vmem:[%s17749_s1 + $0x114] sm:$0xf] }
 0x21a   :  { %18061 = vst [vmem:[#allocation44_spill] sm:$0xff] %v11972_v8  ;;  %v1643_v55 = vmax.f32 %v1357_v46, 0.0  ;;  %v1641_v33 = vmax.f32 %v1352_v4, 0.0 }
 0x21c   :  { %v1787_v51 = vpack.c.bf16 %v1643_v55, %v1643_v55 }
 0x21e   :  { %v2254_v28 = vpop.f32.mrf.mxu1  ;;  %v2988_v4 = vunpack.c.l.b16 %v1787_v51 }
 0x21f   :  { %v1359_v44 = vpop.f32.mrf.mxu0 }
 0x220   :  { %v1360_v7 = vadd.f32 %v11388_v14, %v1359_v44  ;;  %v2981_v44 = vunpack.c.l.b16 %v1780_v34  ;;  %v1774_v14 = vpack.c.bf16 %v1630_v29, %v1630_v29  ;;  %v11984_v29 = vpack.c.b16 %v2980_v25, %v2979_v0 }
 0x221   :  { %v2379_v27 = vpop.f32.mrf.mxu2  ;;  %2649 = vmatmul.bf16.gmra.mxu3 %v11654_v47  ;;  %2293 = vmatmul.bf16.gmra.mxu1 %v11948_v2  ;;  %v2977_v0 = vunpack.c.l.b16 %v1776_v54  ;;  %v10729_v54 = vld [vmem:[%s17748_s0 + $0x110] sm:$0xff] }
 0x222   :  { %9022 = vmatmul.msk.bf16.gmra.mxu0 %vm1004_vm1, %v10728_v12  ;;  %v1644_v45 = vmax.f32 %v1360_v7, 0.0  ;;  %v11980_v43 = vpack.c.b16 %v2982_v22, %v2981_v44  ;;  %v11982_v12 = vadd.f32 %v2377_v1, %v2254_v28  ;;  %v2975_v53 = vunpack.c.l.b16 %v1774_v14 }
 0x223   :  { %v1786_v7 = vpack.c.bf16 %v1642_v19, %v1642_v19  ;;  %v2976_v28 = vunpack.c.l.b16 %v1775_v16  ;;  %v1638_v44 = vmax.f32 %v1345_v56, 0.0  ;;  %v1639_v22 = vmax.f32 %v1347_v40, 0.0 }
 0x224   :  { %18062 = vst [vmem:[#allocation45_spill] sm:$0xff] %v11982_v12  ;;  %v1788_v46 = vpack.c.bf16 %v1644_v45, %v1644_v45  ;;  %v1785_v19 = vpack.c.bf16 %v1641_v33, %v1641_v33  ;;  %v11997_v16 = vor.u32 %v10450_v26, %v9191_v3 }
 0x225   :  { %v2987_v55 = vunpack.c.l.b16 %v1786_v7  ;;  %v12006_v12 = vpack.c.b16 %v2976_v28, %v2975_v53  ;;  %v1782_v51 = vpack.c.bf16 %v1638_v44, %v1638_v44 }
 0x226   :  { %9253 = vmatmul.msk.bf16.gmra.mxu2 %vm2140_vm2, %v11972_v8  ;;  %v2256_v17 = vpop.f32.mrf.mxu1  ;;  %v2989_v14 = vunpack.c.l.b16 %v1788_v46  ;;  %18063 = vst [vmem:[#allocation46_spill] sm:$0xff] %v11997_v16  ;;  %v9201_v46 = vld [vmem:[%s17749_s1 + $0x118] sm:$0xf0] }
 0x227   :  { %v1361_v34 = vpop.f32.mrf.mxu0  ;;  %v12018_v53 = vor.u32 %v10451_v10, %v9201_v46  ;;  %v2999_v28 = vpack.c.b16 %v2988_v4, %v2987_v55  ;;  %v2983_v3 = vunpack.c.l.b16 %v1782_v51 }
 0x228   :  { %v1362_v37 = vadd.f32 %v11966_v48, %v1361_v34  ;;  %v12002_v34 = vpack.c.b16 %v2978_v15, %v2977_v0  ;;  %v1783_v0 = vpack.c.bf16 %v1639_v22, %v1639_v22 }
 0x229   :  { %v2382_v1 = vpop.f32.mrf.mxu2  ;;  %18065 = vst [vmem:[#allocation48_spill] sm:$0xff] %v12018_v53 }
 0x22a   :  { %v1645_v25 = vmax.f32 %v1362_v37, 0.0  ;;  %v12004_v37 = vadd.f32 %v2379_v27, %v2256_v17  ;;  %v2985_v27 = vunpack.c.l.b16 %v1784_v63  ;;  %v2986_v17 = vunpack.c.l.b16 %v1785_v19 }
 0x22b   :  { %v2984_v26 = vunpack.c.l.b16 %v1783_v0 }
 0x22c   :  { %v1789_v45 = vpack.c.bf16 %v1645_v25, %v1645_v25  ;;  %18064 = vst [vmem:[#allocation47_spill] sm:$0xff] %v12004_v37  ;;  %v2998_v44 = vpack.c.b16 %v2986_v17, %v2985_v27  ;;  %v10453_v17 = vld [vmem:[%s17749_s1 + $0x124] sm:$0xf] }
 0x22d   :  { %v2997_v4 = vpack.c.b16 %v2984_v26, %v2983_v3 }
 0x22e   :  { %v2990_v9 = vunpack.c.l.b16 %v1789_v45  ;;  %v2259_v56 = vpop.f32.mrf.mxu1 }
 0x22f   :  { %v1364_v40 = vpop.f32.mrf.mxu0  ;;  %v12022_v22 = vadd.f32 %v2382_v1, %v2259_v56  ;;  %v10452_v1 = vld [vmem:[%s17749_s1 + $0x114] sm:$0xf0] }
 0x230   :  { %v1365_v33 = vadd.f32 %v11966_v48, %v1364_v40  ;;  %v3000_v7 = vpack.c.b16 %v2990_v9, %v2989_v14  ;;  %v9199_v40 = vld [vmem:[%s17749_s1 + $0x110] sm:$0xf]  ;;  %v9225_v9 = vld [vmem:[%s17749_s1 + $0x148] sm:$0xf0] }
 0x231   :  { %v2384_v15 = vpop.f32.mrf.mxu2  ;;  %2654 = vmatmul.bf16.gmra.mxu3 %v11686_v20  ;;  %2298 = vmatmul.bf16.gmra.mxu1 %v11997_v16  ;;  %18066 = vst [vmem:[#allocation49_spill] sm:$0xff] %v12022_v22  ;;  %v12033_v46 = vor.u32 %v10452_v1, %v9199_v40  ;;  %v9233_v22 = vld [vmem:[%s17749_s1 + $0x158] sm:$0xf0] }
 0x232   :  { %9023 = vmatmul.msk.bf16.gmra.mxu0 %vm1004_vm1, %v10729_v54  ;;  %3011 = vmatpush.bf16.msrb.mxu1 %v3000_v7  ;;  %v1646_v25 = vmax.f32 %v1365_v33, 0.0  ;;  %v10730_v7 = vld [vmem:[%s17748_s0 + $0x118] sm:$0xff] }
 0x233   :  { %18067 = vst [vmem:[#allocation50_spill] sm:$0xff] %v12033_v46 }
 0x234   :  { %v1790_v63 = vpack.c.bf16 %v1646_v25, %v1646_v25 }
 0x236   :  { %9254 = vmatmul.msk.bf16.gmra.mxu2 %vm2140_vm2, %v12018_v53  ;;  %3012 = vmatpush.bf16.msrb.mxu1 %v2999_v28  ;;  %v2261_v14 = vpop.f32.mrf.mxu1  ;;  %v2991_v56 = vunpack.c.l.b16 %v1790_v63  ;;  %v9209_v28 = vld [vmem:[%s17749_s1 + $0x128] sm:$0xf0]  ;;  %v10457_v63 = vld [vmem:[%s17749_s1 + $0x144] sm:$0xf] }
 0x237   :  { %v1366_v45 = vpop.f32.mrf.mxu0  ;;  %v12038_v51 = vadd.f32 %v2384_v15, %v2261_v14  ;;  %v12052_v15 = vor.u32 %v10453_v17, %v9209_v28 }
 0x238   :  { %v1367_v19 = vadd.f32 %v11966_v48, %v1366_v45 }
 0x239   :  { %v2387_v54 = vpop.f32.mrf.mxu2  ;;  %18068 = vst [vmem:[#allocation51_spill] sm:$0xff] %v12038_v51 }
 0x23a   :  { %v1647_v55 = vmax.f32 %v1367_v19, 0.0  ;;  %3013 = vmatpush.bf16.msrb.mxu1 %v2998_v44  ;;  %18069 = vst [vmem:[#allocation52_spill] sm:$0xff] %v12052_v15 }
 0x23c   :  { %v1791_v10 = vpack.c.bf16 %v1647_v55, %v1647_v55  ;;  %v10454_v55 = vld [vmem:[%s17749_s1 + $0x124] sm:$0xf0] }
 0x23e   :  { %v2992_v33 = vunpack.c.l.b16 %v1791_v10  ;;  %3014 = vmatpush.bf16.msrb.mxu1 %v2997_v4  ;;  %v2264_v0 = vpop.f32.mrf.mxu1  ;;  %v10731_v4 = vld [vmem:[%s17748_s0 + $0x120] sm:$0xff]  ;;  %v9217_v10 = vld [vmem:[%s17749_s1 + $0x138] sm:$0xf0] }
 0x23f   :  { %v12040_v27 = vpop.f32.mrf.mxu0  ;;  %v12059_v44 = vadd.f32 %v2387_v54, %v2264_v0 }
 0x240   :  { %v3001_v25 = vpack.c.b16 %v2992_v33, %v2991_v56  ;;  %v10455_v56 = vld [vmem:[%s17749_s1 + $0x134] sm:$0xf] }
 0x241   :  { %v2389_v3 = vpop.f32.mrf.mxu2  ;;  %2659 = vmatmul.bf16.gmra.mxu3 %v11711_v11  ;;  %2303 = vmatmul.bf16.gmra.mxu1 %v12033_v46  ;;  %18071 = vst [vmem:[#allocation54_spill] sm:$0xff] %v12059_v44 }
 0x242   :  { %9024 = vmatmul.msk.bf16.gmra.mxu0 %vm1004_vm1, %v10730_v7  ;;  %3015 = vmatpush.bf16.msrb.mxu1 %v11980_v43  ;;  %v9207_v43 = vld [vmem:[%s17749_s1 + $0x120] sm:$0xf] }
 0x243   :  { %3141 = vmatpush.bf16.msra.mxu3 %v3001_v25  ;;  %v12074_v54 = vor.u32 %v10454_v55, %v9207_v43 }
 0x244   :  { %v12054_v26 = vpop.f32.mrf.mxu3 }
 0x245   :  { %18070 = vst [vmem:[#allocation53_spill] sm:$0xff] %v12054_v26 }
 0x246   :  { %9255 = vmatmul.msk.bf16.gmra.mxu2 %vm2140_vm2, %v12052_v15  ;;  %3016 = vmatpush.bf16.msrb.mxu1 %v11984_v29  ;;  %v2266_v14 = vpop.f32.mrf.mxu1  ;;  %18073 = vst [vmem:[#allocation56_spill] sm:$0xff] %v12074_v54 }
 0x247   :  { %v12061_v45 = vpop.f32.mrf.mxu0  ;;  %v12080_v40 = vadd.f32 %v2389_v3, %v2266_v14 }
 0x249   :  { %v2392_v19 = vpop.f32.mrf.mxu2  ;;  %18074 = vst [vmem:[#allocation57_spill] sm:$0xff] %v12080_v40 }
 0x24a   :  { %3017 = vmatpush.bf16.msrb.mxu1 %v12002_v34 }
 0x24c   :  { %v12072_v29 = vpop.f32.mrf.mxu3 }
 0x24d   :  { %18072 = vst [vmem:[#allocation55_spill] sm:$0xff] %v12072_v29 }
 0x24e   :  { %3018 = vmatpush.bf16.msrb.mxu1 %v12006_v12  ;;  %v2269_v34 = vpop.f32.mrf.mxu1  ;;  %v12093_v12 = vor.u32 %v10455_v56, %v9217_v10 }
 0x24f   :  { %v12082_v1 = vpop.f32.mrf.mxu0  ;;  %v12099_v17 = vadd.f32 %v2392_v19, %v2269_v34  ;;  %v9215_v19 = vld [vmem:[%s17749_s1 + $0x130] sm:$0xf]  ;;  %v10456_v34 = vld [vmem:[%s17749_s1 + $0x134] sm:$0xf0] }
 0x250   :  { %18075 = vst [vmem:[#allocation58_spill] sm:$0xff] %v12093_v12 }
 0x251   :  { %v2394_v33 = vpop.f32.mrf.mxu2  ;;  %2664 = vmatmul.bf16.gmra.mxu3 %v11743_v35  ;;  %2308 = vmatmul.bf16.gmra.mxu1 %v12074_v54  ;;  %18077 = vst [vmem:[#allocation60_spill] sm:$0xff] %v12099_v17 }
 0x252   :  { %9025 = vmatmul.msk.bf16.gmra.mxu0 %vm1004_vm1, %v10731_v4 }
 0x254   :  { %v12095_v7 = vpop.f32.mrf.mxu3 }
 0x255   :  { %18076 = vst [vmem:[#allocation59_spill] sm:$0xff] %v12095_v7  ;;  %v10786_v0 = vpop.permute.xlu0 %10785 }
 0x256   :  { %9256 = vmatmul.msk.bf16.gmra.mxu2 %vm2140_vm2, %v12093_v12  ;;  %v2271_v28 = vpop.f32.mrf.mxu1  ;;  %v10788_v25 = vunpack.i.h.bf16 %v10786_v0  ;;  %v10787_v3 = vunpack.i.l.bf16 %v10786_v0 }
 0x257   :  { %v12101_v14 = vpop.f32.mrf.mxu0  ;;  %v12126_v0 = vadd.f32 %v2394_v33, %v2271_v28  ;;  %v12139_v33 = vor.u32 %v10457_v63, %v9225_v9 }
 0x258   :  { %v12105_v43 = vsel %vm2536_vm3, %v11749_v36, %v10788_v25  ;;  %v12109_v55 = vsel %vm2536_vm3, %v11732_v31, %v10787_v3  ;;  %v12121_v36 = vor.u32 %v10456_v34, %v9215_v19  ;;  %v10732_v31 = vld [vmem:[%s17748_s0 + $0x128] sm:$0xff] }
 0x259   :  { %18078 = vst [vmem:[#allocation61_spill] sm:$0xff] %v12105_v43  ;;  %v2397_v4 = vpop.f32.mrf.mxu2  ;;  %v10734_v43 = vld [vmem:[%s17748_s0 + $0x138] sm:$0xff] }
 0x25a   :  { %18079 = vst [vmem:[#allocation62_spill] sm:$0xff] %v12109_v55 }
 0x25b   :  { %18081 = vst [vmem:[#allocation64_spill] sm:$0xff] %v12121_v36 }
 0x25c   :  { %v12119_v10 = vpop.f32.mrf.mxu3  ;;  %18082 = vst [vmem:[#allocation65_spill] sm:$0xff] %v12126_v0 }
 0x25d   :  { %18080 = vst [vmem:[#allocation63_spill] sm:$0xff] %v12119_v10 }
 0x25e   :  { %v2274_v25 = vpop.f32.mrf.mxu1  ;;  %18083 = vst [vmem:[#allocation66_spill] sm:$0xff] %v12139_v33 }
 0x25f   :  { %v12128_v3 = vpop.f32.mrf.mxu0  ;;  %v12145_v34 = vadd.f32 %v2397_v4, %v2274_v25  ;;  %v9223_v4 = vld [vmem:[%s17749_s1 + $0x140] sm:$0xf]  ;;  %v10458_v25 = vld [vmem:[%s17749_s1 + $0x144] sm:$0xf0] }
 0x261   :  { %v2399_v56 = vpop.f32.mrf.mxu2  ;;  %2669 = vmatmul.bf16.gmra.mxu3 %v11776_v60  ;;  %2313 = vmatmul.bf16.gmra.mxu1 %v12121_v36  ;;  %18085 = vst [vmem:[#allocation68_spill] sm:$0xff] %v12145_v34  ;;  %v10459_v34 = vld [vmem:[%s17749_s1 + $0x154] sm:$0xf] }
 0x262   :  { %9026 = vmatmul.msk.bf16.gmra.mxu0 %vm1004_vm1, %v10732_v31 }
 0x264   :  { %v12141_v28 = vpop.f32.mrf.mxu3 }
 0x265   :  { %18084 = vst [vmem:[#allocation67_spill] sm:$0xff] %v12141_v28  ;;  %v10791_v19 = vpop.permute.xlu0 %10790 }
 0x266   :  { %9257 = vmatmul.msk.bf16.gmra.mxu2 %vm2140_vm2, %v12139_v33  ;;  %v2276_v17 = vpop.f32.mrf.mxu1  ;;  %v10793_v0 = vunpack.i.h.bf16 %v10791_v19  ;;  %v10792_v51 = vunpack.i.l.bf16 %v10791_v19 }
 0x267   :  { %v12147_v44 = vpop.f32.mrf.mxu0 }
 0x268   :  { %v12151_v37 = vsel %vm2536_vm3, %v11766_v50, %v10792_v51  ;;  %v12155_v9 = vsel %vm2536_vm3, %v11781_v62, %v10793_v0  ;;  %v12167_v50 = vor.u32 %v10458_v25, %v9223_v4  ;;  %v10733_v62 = vld [vmem:[%s17748_s0 + $0x130] sm:$0xff]  ;;  %v12172_v51 = vadd.f32 %v2399_v56, %v2276_v17 }
 0x269   :  { %18086 = vst [vmem:[#allocation69_spill] sm:$0xff] %v12151_v37  ;;  %v2402_v63 = vpop.f32.mrf.mxu2  ;;  %v12183_v4 = vor.u32 %v10459_v34, %v9233_v22 }
 0x26a   :  { %18087 = vst [vmem:[#allocation70_spill] sm:$0xff] %v12155_v9 }
 0x26b   :  { %18088 = vst [vmem:[#allocation71_spill] sm:$0xff] %v12167_v50 }
 0x26c   :  { %v12165_v19 = vpop.f32.mrf.mxu3  ;;  %18089 = vst [vmem:[#allocation72_spill] sm:$0xff] %v12172_v51 }
 0x26d   :  { %18090 = vst [vmem:[#allocation73_spill] sm:$0xff] %v12183_v4 }
 0x26e   :  { %v2279_v0 = vpop.f32.mrf.mxu1 }
 0x26f   :  { %v1384_v31 = vpop.f32.mrf.mxu0  ;;  %v12189_v56 = vadd.f32 %v2402_v63, %v2279_v0 }
 0x271   :  { %v2404_v37 = vpop.f32.mrf.mxu2  ;;  %2674 = vmatmul.bf16.gmra.mxu3 %v11808_v24  ;;  %2318 = vmatmul.bf16.gmra.mxu1 %v12167_v50  ;;  %18091 = vst [vmem:[#allocation74_spill] sm:$0xff] %v12189_v56 }
 0x272   :  { %9027 = vmatmul.msk.bf16.gmra.mxu0 %vm1004_vm1, %v10733_v62  ;;  %v2016_v62 = vunpack.c.h.b16 %v11640_v41 }
 0x274   :  { %v12185_v17 = vpop.f32.mrf.mxu3  ;;  %v12204_v63 = vpack.c.b16 %v2016_v62, %v2016_v62 }
 0x276   :  { %9258 = vmatmul.msk.bf16.gmra.mxu2 %vm2140_vm2, %v12183_v4  ;;  %v2281_v25 = vpop.f32.mrf.mxu1  ;;  %18093 = vst [vmem:[#allocation76_spill] sm:$0xff] %v12204_v63 }
 0x277   :  { %v1386_v51 = vpop.f32.mrf.mxu0  ;;  %v12197_v22 = vadd.f32 %v2404_v37, %v2281_v25 }
 0x279   :  { %v2407_v9 = vpop.f32.mrf.mxu2  ;;  %18092 = vst [vmem:[#allocation75_spill] sm:$0xff] %v12197_v22 }
 0x27c   :  { %v12191_v55 = vpop.f32.mrf.mxu3 }
 0x27e   :  { %v2284_v34 = vpop.f32.mrf.mxu1 }
 0x27f   :  { %v12199_v33 = vpop.f32.mrf.mxu0  ;;  %v12210_v41 = vadd.f32 %v2407_v9, %v2284_v34 }
 0x281   :  { %v2409_v7 = vpop.f32.mrf.mxu2  ;;  %2679 = vmatmul.bf16.gmra.mxu3 %v11837_v61  ;;  %3019 = vmatmul.bf16.vlgmr.msrb.gmra.mxu1 %v11480_v13  ;;  %18094 = vst [vmem:[#allocation77_spill] sm:$0xff] %v12210_v41 }
 0x282   :  { %9028 = vmatmul.msk.bf16.gmra.mxu0 %vm1004_vm1, %v10734_v43  ;;  %v10735_v43 = vld [vmem:[%s17748_s0 + $0x140] sm:$0xff] }
 0x284   :  { %v12206_v0 = vpop.f32.mrf.mxu3 }
 0x286   :  { %9259 = vmatmul.msk.bf16.gmra.mxu2 %vm2140_vm2, %v12204_v63  ;;  %v2286_v37 = vpop.f32.mrf.mxu1 }
 0x287   :  { %v12212_v25 = vpop.f32.mrf.mxu0  ;;  %v12221_v62 = vadd.f32 %v2409_v7, %v2286_v37  ;;  %v1382_v37 = vadd.f32 %v11966_v48, %v12147_v44  ;;  %v1370_v44 = vadd.f32 %v11966_v48, %v12040_v27 }
 0x289   :  { %v2412_v4 = vpop.f32.mrf.mxu2  ;;  %18095 = vst [vmem:[#allocation78_spill] sm:$0xff] %v12221_v62 }
 0x28c   :  { %v12216_v29 = vpop.f32.mrf.mxu3 }
 0x28e   :  { %v2289_v13 = vpop.f32.mrf.mxu1 }
 0x28f   :  { %v12223_v12 = vpop.f32.mrf.mxu0  ;;  %v12232_v56 = vadd.f32 %v2412_v4, %v2289_v13  ;;  %v1380_v4 = vadd.f32 %v11966_v48, %v12128_v3 }
 0x291   :  { %v2414_v9 = vpop.f32.mrf.mxu2  ;;  %2684 = vmatmul.bf16.gmra.mxu3 %v11868_v42  ;;  %3024 = vmatmul.bf16.gmra.mxu1 %v11509_v30  ;;  %18097 = vst [vmem:[#allocation80_spill] sm:$0xff] %v12232_v56 }
 0x292   :  { %9029 = vmatmul.msk.bf16.gmra.mxu0 %vm1004_vm1, %v10735_v43  ;;  %v10736_v43 = vld [vmem:[%s17748_s0 + $0x148] sm:$0xff] }
 0x294   :  { %v12228_v34 = vpop.f32.mrf.mxu3 }
 0x295   :  { %18096 = vst [vmem:[#allocation79_spill] sm:$0xff] %v12228_v34 }
 0x296   :  { %9260 = vmatmul.msk.bf16.vlgmr.msrb.gmra.mxu2 %vm2140_vm2, %v11464_v5  ;;  %v2291_v22 = vpop.f32.mrf.mxu1 }
 0x297   :  { %v12234_v7 = vpop.f32.mrf.mxu0  ;;  %v12243_v28 = vadd.f32 %v2414_v9, %v2291_v22  ;;  %v1387_v22 = vadd.f32 %v11966_v48, %v1386_v51  ;;  %v1375_v51 = vadd.f32 %v11966_v48, %v12082_v1 }
 0x299   :  { %v2417_v41 = vpop.f32.mrf.mxu2  ;;  %18099 = vst [vmem:[#allocation82_spill] sm:$0xff] %v12243_v28  ;;  %v1655_v26 = vmax.f32 %v1387_v22, 0.0  ;;  %v1650_v1 = vmax.f32 %v1375_v51, 0.0 }
 0x29b   :  { %v1794_v51 = vpack.c.bf16 %v1650_v1, %v1650_v1 }
 0x29c   :  { %v12238_v63 = vpop.f32.mrf.mxu3 }
 0x29d   :  { %18098 = vst [vmem:[#allocation81_spill] sm:$0xff] %v12238_v63  ;;  %v1385_v63 = vadd.f32 %v11966_v48, %v1384_v31  ;;  %v1372_v31 = vadd.f32 %v11966_v48, %v12061_v45  ;;  %v1648_v45 = vmax.f32 %v1370_v44, 0.0 }
 0x29e   :  { %v2294_v30 = vpop.f32.mrf.mxu1 }
 0x29f   :  { %v1399_v34 = vpop.f32.mrf.mxu0  ;;  %v12258_v9 = vadd.f32 %v2417_v41, %v2294_v30  ;;  %v1654_v28 = vmax.f32 %v1385_v63, 0.0  ;;  %v1377_v30 = vadd.f32 %v11966_v48, %v12101_v14  ;;  %v10737_v63 = vld [vmem:[%s17748_s0 + $0x150] sm:$0xff]  ;;  %v1649_v53 = vmax.f32 %v1372_v31, 0.0 }
 0x2a0   :  { %v1792_v44 = vpack.c.bf16 %v1648_v45, %v1648_v45 }
 0x2a1   :  { %v2419_v10 = vpop.f32.mrf.mxu2  ;;  %2689 = vmatmul.bf16.gmra.mxu3 %v11904_v58  ;;  %3029 = vmatmul.bf16.gmra.mxu1 %v11536_v49  ;;  %18101 = vst [vmem:[#allocation84_spill] sm:$0xff] %v12258_v9  ;;  %v1652_v49 = vmax.f32 %v1380_v4, 0.0  ;;  %v1798_v4 = vpack.c.bf16 %v1654_v28, %v1654_v28  ;;  %v1651_v8 = vmax.f32 %v1377_v30, 0.0  ;;  %v1793_v31 = vpack.c.bf16 %v1649_v53, %v1649_v53 }
 0x2a2   :  { %9030 = vmatmul.msk.bf16.gmra.mxu0 %vm1004_vm1, %v10736_v43  ;;  %v3375_v1 = vunpack.c.l.b16 %v1792_v44 }
 0x2a3   :  { %v1796_v41 = vpack.c.bf16 %v1652_v49, %v1652_v49  ;;  %v3381_v14 = vunpack.c.l.b16 %v1798_v4  ;;  %v1795_v30 = vpack.c.bf16 %v1651_v8, %v1651_v8 }
 0x2a4   :  { %v12248_v13 = vpop.f32.mrf.mxu3 }
 0x2a5   :  { %18100 = vst [vmem:[#allocation83_spill] sm:$0xff] %v12248_v13  ;;  %v1653_v13 = vmax.f32 %v1382_v37, 0.0  ;;  %v1799_v37 = vpack.c.bf16 %v1655_v26, %v1655_v26  ;;  %v3379_v49 = vunpack.c.l.b16 %v1796_v41 }
 0x2a6   :  { %9261 = vmatmul.msk.bf16.gmra.mxu2 %vm2140_vm2, %v11498_v21  ;;  %v2296_v62 = vpop.f32.mrf.mxu1 }
 0x2a7   :  { %v1401_v56 = vpop.f32.mrf.mxu0  ;;  %v1797_v9 = vpack.c.bf16 %v1653_v13, %v1653_v13  ;;  %v12274_v15 = vadd.f32 %v2419_v10, %v2296_v62  ;;  %v3382_v28 = vunpack.c.l.b16 %v1799_v37  ;;  %v1400_v13 = vadd.f32 %v11966_v48, %v1399_v34 }
 0x2a8   :  { %v1402_v10 = vadd.f32 %v11966_v48, %v1401_v56  ;;  %v1395_v56 = vadd.f32 %v11966_v48, %v12223_v12  ;;  %v1397_v34 = vadd.f32 %v11966_v48, %v12234_v7  ;;  %v3378_v12 = vunpack.c.l.b16 %v1795_v30 }
 0x2a9   :  { %v2422_v43 = vpop.f32.mrf.mxu2  ;;  %18103 = vst [vmem:[#allocation86_spill] sm:$0xff] %v12274_v15  ;;  %v3380_v26 = vunpack.c.l.b16 %v1797_v9  ;;  %v12285_v41 = vpack.c.b16 %v3382_v28, %v3381_v14  ;;  %v3377_v14 = vunpack.c.l.b16 %v1794_v51 }
 0x2aa   :  { %v1661_v53 = vmax.f32 %v1402_v10, 0.0  ;;  %v1659_v7 = vmax.f32 %v1397_v34, 0.0 }
 0x2ab   :  { %v12289_v4 = vpack.c.b16 %v3380_v26, %v3379_v49  ;;  %v3376_v26 = vunpack.c.l.b16 %v1793_v31 }
 0x2ac   :  { %v12260_v3 = vpop.f32.mrf.mxu3  ;;  %v1805_v10 = vpack.c.bf16 %v1661_v53, %v1661_v53  ;;  %v1803_v34 = vpack.c.bf16 %v1659_v7, %v1659_v7 }
 0x2ad   :  { %18102 = vst [vmem:[#allocation85_spill] sm:$0xff] %v12260_v3  ;;  %v12307_v51 = vpack.c.b16 %v3376_v26, %v3375_v1 }
 0x2ae   :  { %v2299_v22 = vpop.f32.mrf.mxu1  ;;  %v3388_v53 = vunpack.c.l.b16 %v1805_v10  ;;  %v3386_v1 = vunpack.c.l.b16 %v1803_v34 }
 0x2af   :  { %v1404_v3 = vpop.f32.mrf.mxu0  ;;  %v12287_v9 = vadd.f32 %v2422_v43, %v2299_v22  ;;  %v1390_v43 = vadd.f32 %v11966_v48, %v12199_v33  ;;  %v1392_v22 = vadd.f32 %v11966_v48, %v12212_v25  ;;  %v10738_v33 = vld [vmem:[%s17748_s0 + $0x158] sm:$0xff]  ;;  %v3394_v25 = vpack.c.b16 %v3378_v12, %v3377_v14 }
 0x2b0   :  { %v1405_v27 = vadd.f32 %v11966_v48, %v1404_v3 }
 0x2b1   :  { %v2424_v40 = vpop.f32.mrf.mxu2  ;;  %2694 = vmatmul.bf16.gmra.mxu3 %v11948_v2  ;;  %3034 = vmatmul.bf16.gmra.mxu1 %v11563_v6  ;;  %18105 = vst [vmem:[#allocation88_spill] sm:$0xff] %v12287_v9  ;;  %v1658_v9 = vmax.f32 %v1395_v56, 0.0  ;;  %v1656_v44 = vmax.f32 %v1390_v43, 0.0 }
 0x2b2   :  { %9031 = vmatmul.msk.bf16.gmra.mxu0 %vm1004_vm1, %v10737_v63  ;;  %v1662_v62 = vmax.f32 %v1405_v27, 0.0  ;;  %v1660_v63 = vmax.f32 %v1400_v13, 0.0 }
 0x2b3   :  { %v1802_v56 = vpack.c.bf16 %v1658_v9, %v1658_v9 }
 0x2b4   :  { %v12281_v3 = vpop.f32.mrf.mxu3  ;;  %v1806_v8 = vpack.c.bf16 %v1662_v62, %v1662_v62  ;;  %v1804_v13 = vpack.c.bf16 %v1660_v63, %v1660_v63 }
 0x2b5   :  { %18104 = vst [vmem:[#allocation87_spill] sm:$0xff] %v12281_v3 }
 0x2b6   :  { %9262 = vmatmul.msk.bf16.gmra.mxu2 %vm2140_vm2, %v11525_v39  ;;  %v2301_v37 = vpop.f32.mrf.mxu1  ;;  %v3389_v15 = vunpack.c.l.b16 %v1806_v8  ;;  %v3387_v63 = vunpack.c.l.b16 %v1804_v13 }
 0x2b7   :  { %v1406_v27 = vpop.f32.mrf.mxu0  ;;  %v12305_v31 = vadd.f32 %v2424_v40, %v2301_v37  ;;  %v3385_v37 = vunpack.c.l.b16 %v1802_v56 }
 0x2b8   :  { %v1407_v45 = vadd.f32 %v11966_v48, %v1406_v27  ;;  %v1657_v27 = vmax.f32 %v1392_v22, 0.0  ;;  %v3399_v9 = vpack.c.b16 %v3388_v53, %v3387_v63 }
 0x2b9   :  { %v2427_v49 = vpop.f32.mrf.mxu2  ;;  %18106 = vst [vmem:[#allocation89_spill] sm:$0xff] %v12305_v31  ;;  %v3398_v10 = vpack.c.b16 %v3386_v1, %v3385_v37  ;;  %v18124_v31 = vld [vmem:[#allocation18_spill] sm:$0xff] }
 0x2ba   :  { %v1663_v28 = vmax.f32 %v1407_v45, 0.0  ;;  %v1801_v40 = vpack.c.bf16 %v1657_v27, %v1657_v27 }
 0x2bc   :  { %v1807_v62 = vpack.c.bf16 %v1663_v28, %v1663_v28  ;;  %v12300_v3 = vpop.f32.mrf.mxu3  ;;  %v1800_v28 = vpack.c.bf16 %v1656_v44, %v1656_v44  ;;  %v3384_v7 = vunpack.c.l.b16 %v1801_v40 }
 0x2be   :  { %v3390_v6 = vunpack.c.l.b16 %v1807_v62  ;;  %v2304_v30 = vpop.f32.mrf.mxu1  ;;  %v3383_v12 = vunpack.c.l.b16 %v1800_v28 }
 0x2bf   :  { %v1409_v8 = vpop.f32.mrf.mxu0 }
 0x2c0   :  { %v3400_v45 = vpack.c.b16 %v3390_v6, %v3389_v15  ;;  %v1410_v43 = vadd.f32 %v11966_v48, %v1409_v8  ;;  %v12317_v6 = vadd.f32 %v2427_v49, %v2304_v30  ;;  %v3397_v56 = vpack.c.b16 %v3384_v7, %v3383_v12  ;;  %v10739_v49 = vld [vmem:[%s17748_s0 + $0x160] sm:$0xff] }
 0x2c1   :  { %v2429_v22 = vpop.f32.mrf.mxu2  ;;  %2699 = vmatmul.bf16.gmra.mxu3 %v11997_v16  ;;  %3039 = vmatmul.bf16.gmra.mxu1 %v11590_v18 }
 0x2c2   :  { %9032 = vmatmul.msk.bf16.gmra.mxu0 %vm1004_vm1, %v10738_v33  ;;  %3411 = vmatpush.bf16.msra.mxu2 %v3400_v45  ;;  %v1664_v26 = vmax.f32 %v1410_v43, 0.0  ;;  %18107 = vst [vmem:[#allocation90_spill] sm:$0xff] %v12317_v6 }
 0x2c4   :  { %v12313_v14 = vpop.f32.mrf.mxu3  ;;  %v1808_v62 = vpack.c.bf16 %v1664_v26, %v1664_v26 }
 0x2c6   :  { %9263 = vmatmul.msk.bf16.gmra.mxu2 %vm2140_vm2, %v11552_v59  ;;  %v2306_v15 = vpop.f32.mrf.mxu1  ;;  %v3391_v34 = vunpack.c.l.b16 %v1808_v62 }
 0x2c7   :  { %3412 = vmatpush.bf16.msra.mxu2 %v3399_v9  ;;  %v1411_v13 = vpop.f32.mrf.mxu0  ;;  %v12325_v30 = vadd.f32 %v2429_v22, %v2306_v15 }
 0x2c8   :  { %v1412_v44 = vadd.f32 %v11966_v48, %v1411_v13 }
 0x2c9   :  { %v2432_v27 = vpop.f32.mrf.mxu2  ;;  %18108 = vst [vmem:[#allocation91_spill] sm:$0xff] %v12325_v30  ;;  %v18135_v30 = vld [vmem:[#allocation16_spill] sm:$0xff] }
 0x2ca   :  { %v1665_v33 = vmax.f32 %v1412_v44, 0.0 }
 0x2cb   :  { %3413 = vmatpush.bf16.msra.mxu2 %v3398_v10 }
 0x2cc   :  { %v1809_v63 = vpack.c.bf16 %v1665_v33, %v1665_v33  ;;  %v12320_v53 = vpop.f32.mrf.mxu3 }
 0x2ce   :  { %v3392_v8 = vunpack.c.l.b16 %v1809_v63  ;;  %v2309_v45 = vpop.f32.mrf.mxu1 }
 0x2cf   :  { %3414 = vmatpush.bf16.msra.mxu2 %v3397_v56  ;;  %v12327_v43 = vpop.f32.mrf.mxu0  ;;  %v12337_v22 = vadd.f32 %v2432_v27, %v2309_v45 }
 0x2d0   :  { %v3401_v28 = vpack.c.b16 %v3392_v8, %v3391_v34  ;;  %v10741_v34 = vld [vmem:[%s17748_s0 + $0x170] sm:$0xff] }
 0x2d1   :  { %v2434_v40 = vpop.f32.mrf.mxu2  ;;  %2704 = vmatmul.bf16.gmra.mxu3 %v12033_v46  ;;  %3044 = vmatmul.bf16.gmra.mxu1 %v11622_v32  ;;  %18109 = vst [vmem:[#allocation92_spill] sm:$0xff] %v12337_v22 }
 0x2d2   :  { %9033 = vmatmul.msk.bf16.gmra.mxu0 %vm1004_vm1, %v10739_v49  ;;  %3541 = vmatpush.bf16.msra.mxu1 %v3401_v28 }
 0x2d3   :  { %3415 = vmatpush.bf16.msra.mxu2 %v12285_v41  ;;  %v10740_v41 = vld [vmem:[%s17748_s0 + $0x168] sm:$0xff] }
 0x2d4   :  { %v12333_v37 = vpop.f32.mrf.mxu3 }
 0x2d6   :  { %9264 = vmatmul.msk.bf16.gmra.mxu2 %vm2140_vm2, %v11580_v52  ;;  %v2311_v1 = vpop.f32.mrf.mxu1 }
 0x2d7   :  { %3416 = vmatpush.bf16.msra.mxu2 %v12289_v4  ;;  %v12340_v9 = vpop.f32.mrf.mxu0  ;;  %v12349_v7 = vadd.f32 %v2434_v40, %v2311_v1 }
 0x2d9   :  { %v2437_v15 = vpop.f32.mrf.mxu2  ;;  %18110 = vst [vmem:[#allocation93_spill] sm:$0xff] %v12349_v7 }
 0x2db   :  { %3417 = vmatpush.bf16.msra.mxu2 %v3394_v25 }
 0x2dc   :  { %v12344_v12 = vpop.f32.mrf.mxu3 }
 0x2de   :  { %v2314_v13 = vpop.f32.mrf.mxu1 }
 0x2df   :  { %3418 = vmatpush.bf16.msra.mxu2 %v12307_v51  ;;  %v12352_v10 = vpop.f32.mrf.mxu0  ;;  %v12361_v62 = vadd.f32 %v2437_v15, %v2314_v13 }
 0x2e1   :  { %v2439_v4 = vpop.f32.mrf.mxu2  ;;  %2709 = vmatmul.bf16.gmra.mxu3 %v12074_v54  ;;  %3049 = vmatmul.bf16.gmra.mxu1 %v11654_v47  ;;  %18112 = vst [vmem:[#allocation95_spill] sm:$0xff] %v12361_v62 }
 0x2e2   :  { %9034 = vmatmul.msk.bf16.gmra.mxu0 %vm1004_vm1, %v10740_v41 }
 0x2e4   :  { %v12357_v25 = vpop.f32.mrf.mxu3 }
 0x2e5   :  { %18111 = vst [vmem:[#allocation94_spill] sm:$0xff] %v12357_v25 }
 0x2e6   :  { %9265 = vmatmul.msk.bf16.gmra.mxu2 %vm2140_vm2, %v11603_v23  ;;  %v2316_v44 = vpop.f32.mrf.mxu1 }
 0x2e7   :  { %v12363_v27 = vpop.f32.mrf.mxu0  ;;  %v12372_v63 = vadd.f32 %v2439_v4, %v2316_v44  ;;  %v10742_v4 = vld [vmem:[%s17748_s0 + $0x178] sm:$0xff] }
 0x2e9   :  { %v2442_v33 = vpop.f32.mrf.mxu2  ;;  %18114 = vst [vmem:[#allocation97_spill] sm:$0xff] %v12372_v63  ;;  %v18142_v63 = vld [vmem:[#allocation24_spill] sm:$0xff] }
 0x2ec   :  { %v12367_v56 = vpop.f32.mrf.mxu3 }
 0x2ed   :  { %18113 = vst [vmem:[#allocation96_spill] sm:$0xff] %v12367_v56 }
 0x2ee   :  { %v2319_v8 = vpop.f32.mrf.mxu1 }
 0x2ef   :  { %v12374_v49 = vpop.f32.mrf.mxu0  ;;  %v12383_v40 = vadd.f32 %v2442_v33, %v2319_v8  ;;  %v18121_v8 = vld [vmem:[#allocation35_spill] sm:$0xff] }
 0x2f0   :  { %v1425_v32 = vadd.f32 %v11966_v48, %v12374_v49  ;;  %v1415_v49 = vadd.f32 %v11966_v48, %v12327_v43 }
 0x2f1   :  { %v2444_v45 = vpop.f32.mrf.mxu2  ;;  %2714 = vmatmul.bf16.gmra.mxu3 %v12121_v36  ;;  %3054 = vmatmul.bf16.gmra.mxu1 %v11686_v20  ;;  %18116 = vst [vmem:[#allocation99_spill] sm:$0xff] %v12383_v40 }
 0x2f2   :  { %9035 = vmatmul.msk.bf16.gmra.mxu0 %vm1004_vm1, %v10741_v34 }
 0x2f4   :  { %v12379_v28 = vpop.f32.mrf.mxu3 }
 0x2f5   :  { %18115 = vst [vmem:[#allocation98_spill] sm:$0xff] %v12379_v28 }
 0x2f6   :  { %9266 = vmatmul.msk.bf16.gmra.mxu2 %vm2140_vm2, %v11635_v38  ;;  %v2321_v1 = vpop.f32.mrf.mxu1 }
 0x2f7   :  { %v1426_v15 = vpop.f32.mrf.mxu0  ;;  %v12390_v44 = vadd.f32 %v2444_v45, %v2321_v1  ;;  %v18129_v45 = vld [vmem:[#allocation13_spill] sm:$0xff] }
 0x2f8   :  { %v1427_v18 = vadd.f32 %v11966_v48, %v1426_v15 }
 0x2f9   :  { %v2447_v41 = vpop.f32.mrf.mxu2  ;;  %18118 = vst [vmem:[#allocation101_spill] sm:$0xff] %v12390_v44 }
 0x2fa   :  { %v12399_v33 = vadd.f32 %v2447_v41, %v11866_v57 }
 0x2fc   :  { %v12385_v13 = vpop.f32.mrf.mxu3  ;;  %18120 = vst [vmem:[#allocation103_spill] sm:$0xff] %v12399_v33 }
 0x2fd   :  { %18117 = vst [vmem:[#allocation100_spill] sm:$0xff] %v12385_v13 }
 0x2fe   :  { %v12392_v51 = vpop.f32.mrf.mxu1 }
 0x2ff   :  { %18119 = vst [vmem:[#allocation102_spill] sm:$0xff] %v12392_v51  ;;  %v1429_v34 = vpop.f32.mrf.mxu0 }
 0x301   :  { %v2449_v6 = vpop.f32.mrf.mxu2  ;;  %2719 = vmatmul.bf16.gmra.mxu3 %v12167_v50  ;;  %3059 = vmatmul.bf16.gmra.mxu1 %v11711_v11 }
 0x302   :  { %v12402_v13 = vadd.f32 %v2449_v6, %v18121_v8  ;;  %9036 = vmatmul.msk.bf16.gmra.mxu0 %vm1004_vm1, %v10742_v4  ;;  %v10743_v6 = vld [vmem:[%s17748_s0 + $0x180] sm:$0xff] }
 0x304   :  { %18122 = vst [vmem:[#allocation35_spill] sm:$0xff] %v12402_v13  ;;  %v12407_v1 = vpop.f32.mrf.mxu3  ;;  %v18131_v13 = vld [vmem:[#allocation20_spill] sm:$0xff] }
 0x305   :  { %18123 = vst [vmem:[#allocation104_spill] sm:$0xff] %v12407_v1 }
 0x306   :  { %9267 = vmatmul.msk.bf16.gmra.mxu2 %vm2140_vm2, %v18124_v31  ;;  %v12411_v26 = vpop.f32.mrf.mxu1 }
 0x307   :  { %18125 = vst [vmem:[#allocation105_spill] sm:$0xff] %v12411_v26  ;;  %v1431_v40 = vpop.f32.mrf.mxu0  ;;  %v1430_v26 = vadd.f32 %v11966_v48, %v1429_v34  ;;  %v1420_v34 = vadd.f32 %v11966_v48, %v12352_v10 }
 0x308   :  { %v1432_v51 = vadd.f32 %v11966_v48, %v1431_v40  ;;  %v1417_v40 = vadd.f32 %v11966_v48, %v12340_v9 }
 0x309   :  { %v12413_v44 = vpop.f32.mrf.mxu2 }
 0x30a   :  { %18126 = vst [vmem:[#allocation106_spill] sm:$0xff] %v12413_v44 }
 0x30c   :  { %v12415_v57 = vpop.f32.mrf.mxu3 }
 0x30d   :  { %18127 = vst [vmem:[#allocation107_spill] sm:$0xff] %v12415_v57  ;;  %v1668_v57 = vmax.f32 %v1420_v34, 0.0  ;;  %v18147_v34 = vld [vmem:[#allocation33_spill] sm:$0xff] }
 0x30e   :  { %v12420_v41 = vpop.f32.mrf.mxu1 }
 0x30f   :  { %18128 = vst [vmem:[#allocation108_spill] sm:$0xff] %v12420_v41  ;;  %v12422_v4 = vpop.f32.mrf.mxu0  ;;  %v10745_v41 = vld [vmem:[%s17748_s0 + $0x190] sm:$0xff] }
 0x311   :  { %v2454_v8 = vpop.f32.mrf.mxu2  ;;  %2724 = vmatmul.bf16.gmra.mxu3 %v18129_v45  ;;  %3064 = vmatmul.bf16.gmra.mxu1 %v11743_v35  ;;  %v18137_v35 = vld [vmem:[#allocation22_spill] sm:$0xff] }
 0x312   :  { %9037 = vmatmul.msk.bf16.gmra.mxu0 %vm1004_vm1, %v10743_v6  ;;  %v10744_v8 = vld [vmem:[%s17748_s0 + $0x188] sm:$0xff] }
 0x314   :  { %v12427_v33 = vpop.f32.mrf.mxu3 }
 0x315   :  { %18130 = vst [vmem:[#allocation109_spill] sm:$0xff] %v12427_v33  ;;  %v1673_v33 = vmax.f32 %v1432_v51, 0.0 }
 0x316   :  { %9268 = vmatmul.msk.bf16.gmra.mxu2 %vm2140_vm2, %v18131_v13  ;;  %v12431_v1 = vpop.f32.mrf.mxu1 }
 0x317   :  { %18132 = vst [vmem:[#allocation110_spill] sm:$0xff] %v12431_v1  ;;  %v12433_v28 = vpop.f32.mrf.mxu0 }
 0x319   :  { %v12435_v56 = vpop.f32.mrf.mxu2 }
 0x31c   :  { %v12437_v25 = vpop.f32.mrf.mxu3 }
 0x31d   :  { %18133 = vst [vmem:[#allocation111_spill] sm:$0xff] %v12437_v25 }
 0x31e   :  { %v12442_v7 = vpop.f32.mrf.mxu1 }
 0x31f   :  { %18134 = vst [vmem:[#allocation112_spill] sm:$0xff] %v12442_v7  ;;  %v12444_v6 = vpop.f32.mrf.mxu0 }
 0x321   :  { %v12446_v62 = vpop.f32.mrf.mxu2  ;;  %2729 = vmatmul.bf16.gmra.mxu3 %v18135_v30  ;;  %3069 = vmatmul.bf16.gmra.mxu1 %v11776_v60 }
 0x322   :  { %9038 = vmatmul.msk.bf16.gmra.mxu0 %vm1004_vm1, %v10744_v8 }
 0x324   :  { %v12451_v22 = vpop.f32.mrf.mxu3 }
 0x325   :  { %18136 = vst [vmem:[#allocation113_spill] sm:$0xff] %v12451_v22 }
 0x326   :  { %9269 = vmatmul.msk.bf16.gmra.mxu2 %vm2140_vm2, %v18137_v35  ;;  %v12455_v11 = vpop.f32.mrf.mxu1 }
 0x327   :  { %18138 = vst [vmem:[#allocation114_spill] sm:$0xff] %v12455_v11  ;;  %v12457_v20 = vpop.f32.mrf.mxu0  ;;  %v1667_v11 = vmax.f32 %v1417_v40, 0.0 }
 0x329   :  { %v12459_v7 = vpop.f32.mrf.mxu2 }
 0x32c   :  { %v12461_v1 = vpop.f32.mrf.mxu3 }
 0x32d   :  { %18139 = vst [vmem:[#allocation115_spill] sm:$0xff] %v12461_v1 }
 0x32e   :  { %v12466_v60 = vpop.f32.mrf.mxu1 }
 0x32f   :  { %18140 = vst [vmem:[#allocation116_spill] sm:$0xff] %v12466_v60  ;;  %v1444_v8 = vpop.f32.mrf.mxu0 }
 0x331   :  { %v12468_v47 = vpop.f32.mrf.mxu2  ;;  %9283 = vmatmul.msk.bf16.vlgmr.msra.gmra.mxu3 %vm2140_vm2, %v11464_v5  ;;  %3074 = vmatmul.bf16.gmra.mxu1 %v11808_v24  ;;  %v1670_v24 = vmax.f32 %v1425_v32, 0.0 }
 0x332   :  { %9039 = vmatmul.msk.bf16.gmra.mxu0 %vm1004_vm1, %v10745_v41  ;;  %v1671_v41 = vmax.f32 %v1427_v18, 0.0  ;;  %v1817_v18 = vpack.c.bf16 %v1673_v33, %v1673_v33 }
 0x333   :  { %v1814_v32 = vpack.c.bf16 %v1670_v24, %v1670_v24 }
 0x334   :  { %v12474_v44 = vpop.f32.mrf.mxu3  ;;  %v1815_v5 = vpack.c.bf16 %v1671_v41, %v1671_v41  ;;  %v1445_v41 = vadd.f32 %v11966_v48, %v1444_v8 }
 0x335   :  { %18141 = vst [vmem:[#allocation117_spill] sm:$0xff] %v12474_v44  ;;  %v1672_v44 = vmax.f32 %v1430_v26, 0.0  ;;  %v10746_v26 = vld [vmem:[%s17748_s0 + $0x198] sm:$0xff]  ;;  %v3779_v30 = vunpack.c.l.b16 %v1814_v32 }
 0x336   :  { %9270 = vmatmul.msk.bf16.gmra.mxu2 %vm2140_vm2, %v18142_v63  ;;  %v12483_v1 = vpop.f32.mrf.mxu1  ;;  %v3780_v24 = vunpack.c.l.b16 %v1815_v5  ;;  %v18148_v5 = vld [vmem:[#allocation26_spill] sm:$0xff] }
 0x337   :  { %18143 = vst [vmem:[#allocation118_spill] sm:$0xff] %v12483_v1  ;;  %v1446_v22 = vpop.f32.mrf.mxu0  ;;  %v1422_v1 = vadd.f32 %v11966_v48, %v12363_v27  ;;  %v1816_v60 = vpack.c.bf16 %v1672_v44, %v1672_v44  ;;  %v3782_v44 = vunpack.c.l.b16 %v1817_v18 }
 0x339   :  { %v12485_v25 = vpop.f32.mrf.mxu2  ;;  %v1669_v10 = vmax.f32 %v1422_v1, 0.0  ;;  %v3781_v27 = vunpack.c.l.b16 %v1816_v60 }
 0x33b   :  { %v12516_v60 = vpack.c.b16 %v3782_v44, %v3781_v27 }
 0x33c   :  { %v12489_v15 = vpop.f32.mrf.mxu3 }
 0x33d   :  { %18144 = vst [vmem:[#allocation119_spill] sm:$0xff] %v12489_v15  ;;  %v1666_v15 = vmax.f32 %v1415_v49, 0.0  ;;  %v1447_v49 = vadd.f32 %v11966_v48, %v1446_v22 }
 0x33e   :  { %v12500_v43 = vpop.f32.mrf.mxu1 }
 0x33f   :  { %18145 = vst [vmem:[#allocation120_spill] sm:$0xff] %v12500_v43  ;;  %v1449_v51 = vpop.f32.mrf.mxu0  ;;  %v1812_v43 = vpack.c.bf16 %v1668_v57, %v1668_v57  ;;  %v1678_v57 = vmax.f32 %v1445_v41, 0.0  ;;  %v1679_v8 = vmax.f32 %v1447_v49, 0.0 }
 0x340   :  { %v1450_v9 = vadd.f32 %v11966_v48, %v1449_v51  ;;  %v1810_v51 = vpack.c.bf16 %v1666_v15, %v1666_v15  ;;  %v12525_v48 = vld [vmem:[%s17747_s8] ss:$0 sm:$0xff] }
 0x341   :  { %v2755_v45 = vpop.f32.mrf.mxu2  ;;  %9284 = vmatmul.msk.bf16.gmra.mxu3 %vm2140_vm2, %v11498_v21  ;;  %3079 = vmatmul.bf16.gmra.mxu1 %v11837_v61  ;;  %v1811_v21 = vpack.c.bf16 %v1667_v11, %v1667_v11  ;;  %v1813_v61 = vpack.c.bf16 %v1669_v10, %v1669_v10  ;;  %v1440_v11 = vadd.f32 %v12525_v48, %v12444_v6  ;;  %v3777_v27 = vunpack.c.l.b16 %v1812_v43 }
 0x342   :  { %v2756_v33 = vadd.f32 %v2755_v45, %v12165_v19  ;;  %9040 = vmatmul.msk.bf16.gmra.mxu0 %vm1004_vm1, %v10746_v26  ;;  %v1680_v40 = vmax.f32 %v1450_v9, 0.0  ;;  %v12518_v19 = vpack.c.b16 %v3780_v24, %v3779_v30  ;;  %v1442_v22 = vadd.f32 %v12525_v48, %v12457_v20 }
 0x343   :  { %v3775_v26 = vunpack.c.l.b16 %v1810_v51  ;;  %v3776_v9 = vunpack.c.l.b16 %v1811_v21  ;;  %v1435_v10 = vadd.f32 %v12525_v48, %v12422_v4  ;;  %v3778_v44 = vunpack.c.l.b16 %v1813_v61  ;;  %v10747_v4 = vld [vmem:[%s17748_s0 + $0x1a0] sm:$0xff] }
 0x344   :  { %v12510_v1 = vpop.f32.mrf.mxu3  ;;  %v10794_v32 = vpack.i.bf16 %v2756_v33, %v18147_v34  ;;  %v1824_v18 = vpack.c.bf16 %v1680_v40, %v1680_v40  ;;  %v1437_v6 = vadd.f32 %v12525_v48, %v12433_v28  ;;  %v1676_v34 = vmax.f32 %v1440_v11, 0.0 }
 0x345   :  { %18146 = vst [vmem:[#allocation121_spill] sm:$0xff] %v12510_v1  ;;  %v1677_v20 = vmax.f32 %v1442_v22, 0.0  ;;  %v1822_v41 = vpack.c.bf16 %v1678_v57, %v1678_v57  ;;  %v1823_v49 = vpack.c.bf16 %v1679_v8, %v1679_v8  ;;  %v1674_v51 = vmax.f32 %v1435_v10, 0.0 }
 0x346   :  { %9271 = vmatmul.msk.bf16.gmra.mxu2 %vm2140_vm2, %v18148_v5  ;;  %10795 = vrot.lane.b32.xlu1 %v10794_v32, %s11273_s3  ;;  %v12520_v45 = vpop.f32.mrf.mxu1  ;;  %v3789_v32 = vunpack.c.l.b16 %v1824_v18  ;;  %v1675_v21 = vmax.f32 %v1437_v6, 0.0  ;;  %v12541_v61 = vpack.c.b16 %v3778_v44, %v3777_v27  ;;  %v12543_v43 = vpack.c.b16 %v3776_v9, %v3775_v26 }
 0x347   :  { %18149 = vst [vmem:[#allocation33_spill] sm:$0xff] %v12520_v45  ;;  %v1451_v15 = vpop.f32.mrf.mxu0  ;;  %v1820_v11 = vpack.c.bf16 %v1676_v34, %v1676_v34  ;;  %v1821_v22 = vpack.c.bf16 %v1677_v20, %v1677_v20  ;;  %v3787_v57 = vunpack.c.l.b16 %v1822_v41  ;;  %v3788_v8 = vunpack.c.l.b16 %v1823_v49 }
 0x348   :  { %v1452_v30 = vadd.f32 %v12525_v48, %v1451_v15  ;;  %v1818_v27 = vpack.c.bf16 %v1674_v51, %v1674_v51  ;;  %v1819_v44 = vpack.c.bf16 %v1675_v21, %v1675_v21 }
 0x349   :  { %v2758_v24 = vpop.f32.mrf.mxu2  ;;  %v3786_v34 = vunpack.c.l.b16 %v1821_v22  ;;  %v3799_v20 = vpack.c.b16 %v3788_v8, %v3787_v57 }
 0x34a   :  { %v1681_v33 = vmax.f32 %v1452_v30, 0.0  ;;  %v2759_v26 = vadd.f32 %v2758_v24, %v12185_v17  ;;  %v3783_v17 = vunpack.c.l.b16 %v1818_v27 }
 0x34c   :  { %v1825_v40 = vpack.c.bf16 %v1681_v33, %v1681_v33  ;;  %v12536_v1 = vpop.f32.mrf.mxu3  ;;  %v3785_v33 = vunpack.c.l.b16 %v1820_v11 }
 0x34d   :  { %18150 = vst [vmem:[#allocation122_spill] sm:$0xff] %v12536_v1 }
 0x34e   :  { %v3790_v15 = vunpack.c.l.b16 %v1825_v40  ;;  %v12545_v28 = vpop.f32.mrf.mxu1  ;;  %v18153_v40 = vld [vmem:[#allocation29_spill] sm:$0xff] }
 0x34f   :  { %18151 = vst [vmem:[#allocation123_spill] sm:$0xff] %v12545_v28  ;;  %v1454_v18 = vpop.f32.mrf.mxu0  ;;  %v18169_v28 = vld [vmem:[#allocation44_spill] sm:$0xff] }
 0x350   :  { %v3800_v30 = vpack.c.b16 %v3790_v15, %v3789_v32  ;;  %v1455_v10 = vadd.f32 %v12525_v48, %v1454_v18  ;;  %v3798_v15 = vpack.c.b16 %v3786_v34, %v3785_v33 }
 0x351   :  { %v2760_v6 = vpop.f32.mrf.mxu2  ;;  %9285 = vmatmul.msk.bf16.gmra.mxu3 %vm2140_vm2, %v11525_v39  ;;  %3084 = vmatmul.bf16.gmra.mxu1 %v11868_v42  ;;  %v18189_v42 = vld [vmem:[#allocation63_spill] sm:$0xff] }
 0x352   :  { %v2761_v9 = vadd.f32 %v2760_v6, %v12191_v55  ;;  %9041 = vmatmul.msk.bf16.gmra.mxu0 %vm1004_vm1, %v10747_v4  ;;  %3811 = vmatpush.bf16.msrb.mxu3 %v3800_v30  ;;  %v1682_v41 = vmax.f32 %v1455_v10, 0.0  ;;  %v3784_v55 = vunpack.c.l.b16 %v1819_v44  ;;  %v10748_v6 = vld [vmem:[%s17748_s0 + $0x1a8] sm:$0xff] }
 0x354   :  { %v10799_v49 = vpack.i.bf16 %v2761_v9, %v2759_v26  ;;  %v12554_v32 = vpop.f32.mrf.mxu3  ;;  %v1826_v21 = vpack.c.bf16 %v1682_v41, %v1682_v41  ;;  %v3797_v57 = vpack.c.b16 %v3784_v55, %v3783_v17 }
 0x355   :  { %18152 = vst [vmem:[#allocation124_spill] sm:$0xff] %v12554_v32 }
 0x356   :  { %9272 = vmatmul.msk.bf16.gmra.mxu2 %vm2140_vm2, %v18153_v40  ;;  %10800 = vrot.lane.b32.xlu1 %v10799_v49, %s11273_s3  ;;  %v12559_v51 = vpop.f32.mrf.mxu1  ;;  %v3791_v8 = vunpack.c.l.b16 %v1826_v21  ;;  %v18156_v49 = vld [vmem:[#allocation31_spill] sm:$0xff] }
 0x357   :  { %18154 = vst [vmem:[#allocation125_spill] sm:$0xff] %v12559_v51  ;;  %3812 = vmatpush.bf16.msrb.mxu3 %v3799_v20  ;;  %v1456_v24 = vpop.f32.mrf.mxu0 }
 0x358   :  { %v1457_v4 = vadd.f32 %v12525_v48, %v1456_v24 }
 0x359   :  { %v2763_v11 = vpop.f32.mrf.mxu2 }
 0x35a   :  { %v1683_v22 = vmax.f32 %v1457_v4, 0.0  ;;  %v2764_v33 = vadd.f32 %v2763_v11, %v12206_v0 }
 0x35b   :  { %3813 = vmatpush.bf16.msrb.mxu3 %v3798_v15 }
 0x35c   :  { %v1827_v18 = vpack.c.bf16 %v1683_v22, %v1683_v22  ;;  %v12562_v30 = vpop.f32.mrf.mxu3 }
 0x35e   :  { %v3792_v10 = vunpack.c.l.b16 %v1827_v18  ;;  %v12567_v27 = vpop.f32.mrf.mxu1 }
 0x35f   :  { %18155 = vst [vmem:[#allocation126_spill] sm:$0xff] %v12567_v27  ;;  %3814 = vmatpush.bf16.msrb.mxu3 %v3797_v57  ;;  %v12569_v26 = vpop.f32.mrf.mxu0  ;;  %v10750_v57 = vld [vmem:[%s17748_s0 + $0x1b8] sm:$0xff] }
 0x360   :  { %v3801_v9 = vpack.c.b16 %v3792_v10, %v3791_v8 }
 0x361   :  { %v2765_v44 = vpop.f32.mrf.mxu2  ;;  %9286 = vmatmul.msk.bf16.gmra.mxu3 %vm2140_vm2, %v11552_v59  ;;  %3089 = vmatmul.bf16.gmra.mxu1 %v11904_v58 }
 0x362   :  { %v2766_v34 = vadd.f32 %v2765_v44, %v12216_v29  ;;  %9042 = vmatmul.msk.bf16.gmra.mxu0 %vm1004_vm1, %v10748_v6  ;;  %3941 = vmatpush.bf16.msrb.mxu2 %v3801_v9  ;;  %v18164_v9 = vld [vmem:[#allocation40_spill] sm:$0xff] }
 0x363   :  { %3815 = vmatpush.bf16.msrb.mxu3 %v12516_v60  ;;  %v10749_v60 = vld [vmem:[%s17748_s0 + $0x1b0] sm:$0xff] }
 0x364   :  { %v12578_v20 = vpop.f32.mrf.mxu3  ;;  %v10804_v41 = vpack.i.bf16 %v2766_v34, %v2764_v33 }
 0x366   :  { %9273 = vmatmul.msk.bf16.gmra.mxu2 %vm2140_vm2, %v18156_v49  ;;  %10805 = vrot.lane.b32.xlu2 %v10804_v41, %s11273_s3  ;;  %v12583_v17 = vpop.f32.mrf.mxu1 }
 0x367   :  { %18157 = vst [vmem:[#allocation127_spill] sm:$0xff] %v12583_v17  ;;  %3816 = vmatpush.bf16.msrb.mxu3 %v12518_v19  ;;  %v12586_v0 = vpop.f32.mrf.mxu0 }
 0x369   :  { %v12588_v29 = vpop.f32.mrf.mxu2 }
 0x36a   :  { %18158 = vst [vmem:[#allocation128_spill] sm:$0xff] %v12588_v29 }
 0x36b   :  { %3817 = vmatpush.bf16.msrb.mxu3 %v12541_v61  ;;  %v18161_v61 = vld [vmem:[#allocation34_spill] sm:$0xff] }
 0x36c   :  { %v12591_v55 = vpop.f32.mrf.mxu3 }
 0x36e   :  { %v12596_v24 = vpop.f32.mrf.mxu1 }
 0x36f   :  { %18159 = vst [vmem:[#allocation129_spill] sm:$0xff] %v12596_v24  ;;  %3818 = vmatpush.bf16.msrb.mxu3 %v12543_v43  ;;  %v12599_v15 = vpop.f32.mrf.mxu0 }
 0x371   :  { %v12601_v21 = vpop.f32.mrf.mxu2  ;;  %9287 = vmatmul.msk.bf16.gmra.mxu3 %vm2140_vm2, %v11580_v52  ;;  %3094 = vmatmul.bf16.gmra.mxu1 %v11948_v2 }
 0x372   :  { %18160 = vst [vmem:[#allocation130_spill] sm:$0xff] %v12601_v21  ;;  %9043 = vmatmul.msk.bf16.gmra.mxu0 %vm1004_vm1, %v10749_v60  ;;  %v10751_v60 = vld [vmem:[%s17748_s0 + $0x1c0] sm:$0xff] }
 0x374   :  { %v12607_v19 = vpop.f32.mrf.mxu3 }
 0x376   :  { %9274 = vmatmul.msk.bf16.gmra.mxu2 %vm2140_vm2, %v18161_v61  ;;  %v12611_v4 = vpop.f32.mrf.mxu1 }
 0x377   :  { %v12613_v11 = vpop.f32.mrf.mxu0 }
 0x379   :  { %v12615_v43 = vpop.f32.mrf.mxu2 }
 0x37a   :  { %18162 = vst [vmem:[#allocation131_spill] sm:$0xff] %v12615_v43 }
 0x37c   :  { %v12617_v22 = vpop.f32.mrf.mxu3 }
 0x37e   :  { %v12622_v8 = vpop.f32.mrf.mxu1 }
 0x37f   :  { %v12624_v18 = vpop.f32.mrf.mxu0 }
 0x381   :  { %v12626_v10 = vpop.f32.mrf.mxu2  ;;  %9288 = vmatmul.msk.bf16.gmra.mxu3 %vm2140_vm2, %v11603_v23  ;;  %3099 = vmatmul.bf16.gmra.mxu1 %v11997_v16 }
 0x382   :  { %18163 = vst [vmem:[#allocation132_spill] sm:$0xff] %v12626_v10  ;;  %9044 = vmatmul.msk.bf16.gmra.mxu0 %vm1004_vm1, %v10750_v57 }
 0x384   :  { %v12632_v6 = vpop.f32.mrf.mxu3 }
 0x386   :  { %9275 = vmatmul.msk.bf16.gmra.mxu2 %vm2140_vm2, %v18164_v9  ;;  %v12636_v44 = vpop.f32.mrf.mxu1 }
 0x387   :  { %v12638_v33 = vpop.f32.mrf.mxu0 }
 0x389   :  { %v12640_v34 = vpop.f32.mrf.mxu2 }
 0x38a   :  { %18165 = vst [vmem:[#allocation133_spill] sm:$0xff] %v12640_v34 }
 0x38c   :  { %v12642_v41 = vpop.f32.mrf.mxu3 }
 0x38e   :  { %v12647_v24 = vpop.f32.mrf.mxu1 }
 0x38f   :  { %v12649_v57 = vpop.f32.mrf.mxu0 }
 0x391   :  { %v2780_v32 = vpop.f32.mrf.mxu2  ;;  %9289 = vmatmul.msk.bf16.gmra.mxu3 %vm2140_vm2, %v11635_v38  ;;  %3104 = vmatmul.bf16.gmra.mxu1 %v12033_v46  ;;  %v18176_v46 = vld [vmem:[#allocation48_spill] sm:$0xff] }
 0x392   :  { %v12655_v1 = vadd.f32 %v2780_v32, %v12300_v3  ;;  %9045 = vmatmul.msk.bf16.gmra.mxu0 %vm1004_vm1, %v10751_v60  ;;  %v10752_v3 = vld [vmem:[%s17748_s0 + $0x1c8] sm:$0xff] }
 0x394   :  { %18166 = vst [vmem:[#allocation134_spill] sm:$0xff] %v12655_v1  ;;  %v12660_v51 = vpop.f32.mrf.mxu3 }
 0x395   :  { %18168 = vst [vmem:[#allocation135_spill] sm:$0xff] %v12660_v51 }
 0x396   :  { %9276 = vmatmul.msk.bf16.gmra.mxu2 %vm2140_vm2, %v18169_v28  ;;  %v12664_v34 = vpop.f32.mrf.mxu1 }
 0x397   :  { %18170 = vst [vmem:[#allocation136_spill] sm:$0xff] %v12664_v34  ;;  %v1476_v10 = vpop.f32.mrf.mxu0 }
 0x399   :  { %v2783_v43 = vpop.f32.mrf.mxu2 }
 0x39a   :  { %v12679_v29 = vadd.f32 %v2783_v43, %v12313_v14 }
 0x39c   :  { %v12666_v21 = vpop.f32.mrf.mxu3  ;;  %18173 = vst [vmem:[#allocation139_spill] sm:$0xff] %v12679_v29  ;;  %v18181_v29 = vld [vmem:[#allocation52_spill] sm:$0xff] }
 0x39d   :  { %18171 = vst [vmem:[#allocation137_spill] sm:$0xff] %v12666_v21 }
 0x39e   :  { %v12671_v32 = vpop.f32.mrf.mxu1 }
 0x39f   :  { %18172 = vst [vmem:[#allocation138_spill] sm:$0xff] %v12671_v32  ;;  %v12673_v60 = vpop.f32.mrf.mxu0 }
 0x3a1   :  { %v2785_v27 = vpop.f32.mrf.mxu2  ;;  %9290 = vmatmul.msk.bf16.gmra.mxu3 %vm2140_vm2, %v18124_v31  ;;  %3109 = vmatmul.bf16.gmra.mxu1 %v12074_v54 }
 0x3a2   :  { %v12682_v17 = vadd.f32 %v2785_v27, %v12320_v53  ;;  %9046 = vmatmul.msk.bf16.gmra.mxu0 %vm1004_vm1, %v10752_v3  ;;  %v10753_v53 = vld [vmem:[%s17748_s0 + $0x1d0] sm:$0xff] }
 0x3a4   :  { %18174 = vst [vmem:[#allocation140_spill] sm:$0xff] %v12682_v17  ;;  %v12687_v32 = vpop.f32.mrf.mxu3 }
 0x3a5   :  { %18175 = vst [vmem:[#allocation141_spill] sm:$0xff] %v12687_v32 }
 0x3a6   :  { %9277 = vmatmul.msk.bf16.gmra.mxu2 %vm2140_vm2, %v18176_v46  ;;  %v12691_v16 = vpop.f32.mrf.mxu1 }
 0x3a7   :  { %18177 = vst [vmem:[#allocation48_spill] sm:$0xff] %v12691_v16  ;;  %v12693_v34 = vpop.f32.mrf.mxu0 }
 0x3a9   :  { %v2788_v54 = vpop.f32.mrf.mxu2 }
 0x3aa   :  { %v12706_v1 = vadd.f32 %v2788_v54, %v12333_v37  ;;  %v18183_v54 = vld [vmem:[#allocation53_spill] sm:$0xff] }
 0x3ab   :  { %v2744_v37 = vadd.f32 %v12435_v56, %v18183_v54  ;;  %v10754_v56 = vld [vmem:[%s17748_s0 + $0x1d8] sm:$0xff] }
 0x3ac   :  { %v2732_v14 = vpop.f32.mrf.mxu3  ;;  %18179 = vst [vmem:[#allocation143_spill] sm:$0xff] %v12706_v1 }
 0x3ae   :  { %v12698_v27 = vpop.f32.mrf.mxu1 }
 0x3af   :  { %18178 = vst [vmem:[#allocation142_spill] sm:$0xff] %v12698_v27  ;;  %v12700_v43 = vpop.f32.mrf.mxu0 }
 0x3b1   :  { %v2790_v3 = vpop.f32.mrf.mxu2  ;;  %9291 = vmatmul.msk.bf16.gmra.mxu3 %vm2140_vm2, %v18131_v13  ;;  %3114 = vmatmul.bf16.gmra.mxu1 %v12121_v36 }
 0x3b2   :  { %v12709_v16 = vadd.f32 %v2790_v3, %v12344_v12  ;;  %9047 = vmatmul.msk.bf16.gmra.mxu0 %vm1004_vm1, %v10753_v53  ;;  %v18185_v53 = vld [vmem:[#allocation27_spill] sm:$0xff] }
 0x3b4   :  { %18180 = vst [vmem:[#allocation144_spill] sm:$0xff] %v12709_v16  ;;  %v12714_v27 = vpop.f32.mrf.mxu3 }
 0x3b6   :  { %9278 = vmatmul.msk.bf16.gmra.mxu2 %vm2140_vm2, %v18181_v29  ;;  %v12718_v17 = vpop.f32.mrf.mxu1 }
 0x3b7   :  { %18182 = vst [vmem:[#allocation52_spill] sm:$0xff] %v12718_v17  ;;  %v12720_v2 = vpop.f32.mrf.mxu0 }
 0x3b8   :  { %v10796_v36 = vpop.permute.xlu1 %10795 }
 0x3b9   :  { %v10798_v12 = vunpack.i.h.bf16 %v10796_v36  ;;  %v10797_v3 = vunpack.i.l.bf16 %v10796_v36  ;;  %v12724_v58 = vpop.f32.mrf.mxu2 }
 0x3ba   :  { %18184 = vst [vmem:[#allocation53_spill] sm:$0xff] %v12724_v58 }
 0x3bb   :  { %v12728_v14 = vsel %vm2536_vm3, %v18185_v53, %v10797_v3  ;;  %v12731_v1 = vsel %vm2536_vm3, %v2744_v37, %v10798_v12  ;;  %v2751_v3 = vadd.f32 %v12468_v47, %v18189_v42  ;;  %v18190_v53 = vld [vmem:[#allocation67_spill] sm:$0xff] }
 0x3bc   :  { %18186 = vst [vmem:[#allocation27_spill] sm:$0xff] %v12728_v14  ;;  %v12733_v16 = vpop.f32.mrf.mxu3  ;;  %v2754_v37 = vadd.f32 %v12485_v25, %v18190_v53  ;;  %v1477_v25 = vadd.f32 %v12525_v48, %v1476_v10  ;;  %v18194_v53 = vld [vmem:[#allocation58_spill] sm:$0xff] }
 0x3bd   :  { %18187 = vst [vmem:[#allocation145_spill] sm:$0xff] %v12731_v1  ;;  %v1460_v1 = vadd.f32 %v12525_v48, %v12569_v26  ;;  %v1465_v26 = vadd.f32 %v12525_v48, %v12599_v15 }
 0x3be   :  { %v12740_v54 = vpop.f32.mrf.mxu1 }
 0x3bf   :  { %18188 = vst [vmem:[#allocation146_spill] sm:$0xff] %v12740_v54  ;;  %v1489_v36 = vpop.f32.mrf.mxu0 }
 0x3c0   :  { %v10806_v58 = vpop.permute.xlu2 %10805  ;;  %v1490_v15 = vadd.f32 %v12525_v48, %v1489_v36 }
 0x3c1   :  { %v10808_v12 = vunpack.i.h.bf16 %v10806_v58  ;;  %v10807_v45 = vunpack.i.l.bf16 %v10806_v58  ;;  %v12746_v32 = vpop.f32.mrf.mxu2  ;;  %9292 = vmatmul.msk.bf16.gmra.mxu3 %vm2140_vm2, %v18137_v35  ;;  %3119 = vmatmul.bf16.gmra.mxu1 %v12167_v50  ;;  %v1475_v58 = vadd.f32 %v12525_v48, %v12649_v57 }
 0x3c2   :  { %18191 = vst [vmem:[#allocation63_spill] sm:$0xff] %v12746_v32  ;;  %9048 = vmatmul.msk.bf16.gmra.mxu0 %vm1004_vm1, %v10754_v56  ;;  %v18196_v32 = vld [vmem:[#allocation55_spill] sm:$0xff] }
 0x3c3   :  { %v12753_v17 = vsel %vm2536_vm3, %v2751_v3, %v10807_v45  ;;  %v12756_v54 = vsel %vm2536_vm3, %v2754_v37, %v10808_v12  ;;  %v1470_v45 = vadd.f32 %v12525_v48, %v12624_v18  ;;  %v1472_v3 = vadd.f32 %v12525_v48, %v12638_v33 }
 0x3c4   :  { %18192 = vst [vmem:[#allocation67_spill] sm:$0xff] %v12753_v17  ;;  %v12758_v47 = vpop.f32.mrf.mxu3  ;;  %v2746_v42 = vadd.f32 %v12446_v62, %v18196_v32  ;;  %v18197_v17 = vld [vmem:[#allocation59_spill] sm:$0xff]  ;;  %v1690_v50 = vmax.f32 %v1475_v58, 0.0  ;;  %v1691_v18 = vmax.f32 %v1477_v25, 0.0  ;;  %v1467_v32 = vadd.f32 %v12525_v48, %v12613_v11 }
 0x3c5   :  { %18193 = vst [vmem:[#allocation147_spill] sm:$0xff] %v12756_v54  ;;  %v2749_v57 = vadd.f32 %v12459_v7, %v18197_v17  ;;  %v1689_v35 = vmax.f32 %v1472_v3, 0.0  ;;  %v1462_v7 = vadd.f32 %v12525_v48, %v12586_v0  ;;  %v1684_v0 = vmax.f32 %v1460_v1, 0.0 }
 0x3c6   :  { %9279 = vmatmul.msk.bf16.gmra.mxu2 %vm2140_vm2, %v18194_v53  ;;  %v12767_v56 = vpop.f32.mrf.mxu1  ;;  %v1834_v58 = vpack.c.bf16 %v1690_v50, %v1690_v50  ;;  %v1686_v17 = vmax.f32 %v1465_v26, 0.0  ;;  %v18203_v50 = vld [vmem:[#allocation13_spill] sm:$0xff]  ;;  %v1687_v11 = vmax.f32 %v1467_v32, 0.0  ;;  %v1696_v32 = vmax.f32 %v1490_v15, 0.0 }
 0x3c7   :  { %18195 = vst [vmem:[#allocation148_spill] sm:$0xff] %v12767_v56  ;;  %v1491_v37 = vpop.f32.mrf.mxu0  ;;  %v1688_v56 = vmax.f32 %v1470_v45, 0.0  ;;  %v1833_v3 = vpack.c.bf16 %v1689_v35, %v1689_v35  ;;  %v1828_v35 = vpack.c.bf16 %v1684_v0, %v1684_v0  ;;  %v1482_v15 = vadd.f32 %v12525_v48, %v12693_v34 }
 0x3c8   :  { %v10801_v12 = vpop.permute.xlu1 %10800  ;;  %v1492_v1 = vadd.f32 %v12525_v48, %v1491_v37  ;;  %v18205_v37 = vld [vmem:[#allocation66_spill] sm:$0xff] }
 0x3c9   :  { %v10803_v10 = vunpack.i.h.bf16 %v10801_v12  ;;  %v10802_v54 = vunpack.i.l.bf16 %v10801_v12  ;;  %v12777_v14 = vpop.f32.mrf.mxu2  ;;  %v1832_v45 = vpack.c.bf16 %v1688_v56, %v1688_v56 }
 0x3ca   :  { %18198 = vst [vmem:[#allocation55_spill] sm:$0xff] %v12777_v14 }
 0x3cb   :  { %v12782_v33 = vsel %vm2536_vm3, %v2746_v42, %v10802_v54  ;;  %v12785_v21 = vsel %vm2536_vm3, %v2749_v57, %v10803_v10  ;;  %v1835_v54 = vpack.c.bf16 %v1691_v18, %v1691_v18  ;;  %v10755_v42 = vld [vmem:[%s17748_s0 + $0x1e0] sm:$0xff]  ;;  %v1685_v57 = vmax.f32 %v1462_v7, 0.0 }
 0x3cc   :  { %18199 = vst [vmem:[#allocation59_spill] sm:$0xff] %v12782_v33  ;;  %v12789_v62 = vpop.f32.mrf.mxu3  ;;  %v4181_v18 = vunpack.c.l.b16 %v1834_v58  ;;  %v4179_v56 = vunpack.c.l.b16 %v1832_v45  ;;  %v4180_v7 = vunpack.c.l.b16 %v1833_v3  ;;  %v1830_v58 = vpack.c.bf16 %v1686_v17, %v1686_v17 }
 0x3cd   :  { %18200 = vst [vmem:[#allocation149_spill] sm:$0xff] %v12785_v21  ;;  %v4182_v33 = vunpack.c.l.b16 %v1835_v54  ;;  %v1829_v26 = vpack.c.bf16 %v1685_v57, %v1685_v57  ;;  %v1487_v21 = vadd.f32 %v12525_v48, %v12720_v2  ;;  %v1831_v54 = vpack.c.bf16 %v1687_v11, %v1687_v11 }
 0x3ce   :  { %v12800_v25 = vpop.f32.mrf.mxu1  ;;  %v4175_v45 = vunpack.c.l.b16 %v1828_v35  ;;  %v12823_v57 = vpack.c.b16 %v4180_v7, %v4179_v56 }
 0x3cf   :  { %18201 = vst [vmem:[#allocation150_spill] sm:$0xff] %v12800_v25  ;;  %v1494_v12 = vpop.f32.mrf.mxu0  ;;  %v4178_v35 = vunpack.c.l.b16 %v1831_v54 }
 0x3d0   :  { %v1495_v10 = vadd.f32 %v12525_v48, %v1494_v12 }
 0x3d1   :  { %v12804_v14 = vpop.f32.mrf.mxu2  ;;  %9293 = vmatmul.msk.bf16.gmra.mxu3 %vm2140_vm2, %v18142_v63  ;;  %3124 = vmatmul.bf16.gmra.mxu1 %v18203_v50  ;;  %v1697_v50 = vmax.f32 %v1492_v1, 0.0  ;;  %v1695_v1 = vmax.f32 %v1487_v21, 0.0  ;;  %v10756_v21 = vld [vmem:[%s17748_s0 + $0x1e8] sm:$0xff] }
 0x3d2   :  { %18202 = vst [vmem:[#allocation151_spill] sm:$0xff] %v12804_v14  ;;  %9049 = vmatmul.msk.bf16.gmra.mxu0 %vm1004_vm1, %v10755_v42  ;;  %v1698_v12 = vmax.f32 %v1495_v10, 0.0  ;;  %v1485_v14 = vadd.f32 %v12525_v48, %v12700_v43  ;;  %v12819_v42 = vpack.c.b16 %v4182_v33, %v4181_v18  ;;  %v4176_v10 = vunpack.c.l.b16 %v1829_v26 }
 0x3d3   :  { %v1480_v43 = vadd.f32 %v12525_v48, %v12673_v60  ;;  %v1840_v33 = vpack.c.bf16 %v1696_v32, %v1696_v32  ;;  %v1693_v60 = vmax.f32 %v1482_v15, 0.0  ;;  %v1839_v13 = vpack.c.bf16 %v1695_v1, %v1695_v1  ;;  %v18239_v1 = vld [vmem:[#allocation5_spill] sm:$0xff] }
 0x3d4   :  { %v12811_v36 = vpop.f32.mrf.mxu3  ;;  %v1842_v2 = vpack.c.bf16 %v1698_v12, %v1698_v12  ;;  %v1694_v11 = vmax.f32 %v1485_v14, 0.0  ;;  %v12837_v14 = vpack.c.b16 %v4176_v10, %v4175_v45 }
 0x3d5   :  { %18204 = vst [vmem:[#allocation152_spill] sm:$0xff] %v12811_v36  ;;  %v4177_v36 = vunpack.c.l.b16 %v1830_v58  ;;  %v1692_v7 = vmax.f32 %v1480_v43, 0.0  ;;  %v4186_v15 = vunpack.c.l.b16 %v1839_v13 }
 0x3d6   :  { %9280 = vmatmul.msk.bf16.gmra.mxu2 %vm2140_vm2, %v18205_v37  ;;  %v12821_v0 = vpop.f32.mrf.mxu1  ;;  %v4189_v26 = vunpack.c.l.b16 %v1842_v2  ;;  %v1838_v12 = vpack.c.bf16 %v1694_v11, %v1694_v11  ;;  %v1837_v2 = vpack.c.bf16 %v1693_v60, %v1693_v60 }
 0x3d7   :  { %18206 = vst [vmem:[#allocation153_spill] sm:$0xff] %v12821_v0  ;;  %v1496_v3 = vpop.f32.mrf.mxu0  ;;  %v1841_v0 = vpack.c.bf16 %v1697_v50, %v1697_v50  ;;  %v12835_v34 = vpack.c.b16 %v4178_v35, %v4177_v36  ;;  %v1836_v43 = vpack.c.bf16 %v1692_v7, %v1692_v7  ;;  %v18209_v36 = vld [vmem:[#allocation107_spill] sm:$0xff]  ;;  %v18212_v35 = vld [vmem:[#allocation114_spill] sm:$0xff]  ;;  %v18213_v7 = vld [vmem:[#allocation116_spill] sm:$0xff] }
 0x3d8   :  { %v1497_v17 = vadd.f32 %v12525_v48, %v1496_v3  ;;  %v4187_v3 = vunpack.c.l.b16 %v1840_v33 }
 0x3d9   :  { %v12830_v18 = vpop.f32.mrf.mxu2  ;;  %v4188_v37 = vunpack.c.l.b16 %v1841_v0  ;;  %v4185_v0 = vunpack.c.l.b16 %v1838_v12  ;;  %v4183_v60 = vunpack.c.l.b16 %v1836_v43  ;;  %v18214_v12 = vld [vmem:[#allocation73_spill] sm:$0xff] }
 0x3da   :  { %18207 = vst [vmem:[#allocation154_spill] sm:$0xff] %v12830_v18  ;;  %v1699_v56 = vmax.f32 %v1497_v17, 0.0  ;;  %v18244_v18 = vld [vmem:[#allocation7_spill] sm:$0xff] }
 0x3db   :  { %v4199_v45 = vpack.c.b16 %v4188_v37, %v4187_v3  ;;  %v4198_v13 = vpack.c.b16 %v4186_v15, %v4185_v0  ;;  %v10757_v0 = vld [vmem:[%s17748_s0 + $0x1f0] sm:$0xff] }
 0x3dc   :  { %v1843_v63 = vpack.c.bf16 %v1699_v56, %v1699_v56  ;;  %v3155_v25 = vpop.f32.mrf.mxu3 }
 0x3dd   :  { %v3156_v56 = vadd.f32 %v3155_v25, %v18212_v35 }
 0x3de   :  { %v4190_v51 = vunpack.c.l.b16 %v1843_v63  ;;  %v12839_v50 = vpop.f32.mrf.mxu1  ;;  %v18208_v63 = vld [vmem:[#allocation16_spill] sm:$0xff] }
 0x3df   :  { %v1499_v32 = vpop.f32.mrf.mxu0 }
 0x3e0   :  { %v4200_v58 = vpack.c.b16 %v4190_v51, %v4189_v26  ;;  %v1500_v54 = vadd.f32 %v12525_v48, %v1499_v32  ;;  %v4184_v32 = vunpack.c.l.b16 %v1837_v2 }
 0x3e1   :  { %v2805_v17 = vpop.f32.mrf.mxu2  ;;  %9294 = vmatmul.msk.bf16.gmra.mxu3 %vm2140_vm2, %v18148_v5  ;;  %3129 = vmatmul.bf16.gmra.mxu1 %v18208_v63 }
 0x3e2   :  { %v12846_v11 = vadd.f32 %v2805_v17, %v18209_v36  ;;  %9050 = vmatmul.msk.bf16.gmra.mxu0 %vm1004_vm1, %v10756_v21  ;;  %4211 = vmatpush.bf16.msrb.mxu1 %v4200_v58  ;;  %v1700_v51 = vmax.f32 %v1500_v54, 0.0  ;;  %v4197_v36 = vpack.c.b16 %v4184_v32, %v4183_v60  ;;  %v18219_v32 = vld [vmem:[#allocation111_spill] sm:$0xff] }
 0x3e4   :  { %18210 = vst [vmem:[#allocation107_spill] sm:$0xff] %v12846_v11  ;;  %v3158_v33 = vpop.f32.mrf.mxu3  ;;  %v1844_v3 = vpack.c.bf16 %v1700_v51, %v1700_v51 }
 0x3e5   :  { %v3159_v26 = vadd.f32 %v3158_v33, %v18213_v7  ;;  %v18216_v7 = vld [vmem:[#allocation2_spill] sm:$0xff] }
 0x3e6   :  { %9281 = vmatmul.msk.bf16.gmra.mxu2 %vm2140_vm2, %v18214_v12  ;;  %4212 = vmatpush.bf16.msrb.mxu1 %v4199_v45  ;;  %v12855_v17 = vpop.f32.mrf.mxu1  ;;  %v4191_v43 = vunpack.c.l.b16 %v1844_v3  ;;  %v18221_v3 = vld [vmem:[#allocation118_spill] sm:$0xff] }
 0x3e7   :  { %v10809_v21 = vpack.i.bf16 %v3159_v26, %v3156_v56  ;;  %v1501_v37 = vpop.f32.mrf.mxu0  ;;  %v18217_v26 = vld [vmem:[#allocation109_spill] sm:$0xff] }
 0x3e8   :  { %v1502_v58 = vadd.f32 %v12525_v48, %v1501_v37 }
 0x3e9   :  { %v2808_v54 = vpop.f32.mrf.mxu2  ;;  %10810 = vrot.lane.b32.xlu2 %v10809_v21, %s11273_s3 }
 0x3ea   :  { %v1701_v25 = vmax.f32 %v1502_v58, 0.0  ;;  %4213 = vmatpush.bf16.msrb.mxu1 %v4198_v13  ;;  %v12871_v60 = vadd.f32 %v2808_v54, %v18217_v26  ;;  %v18226_v26 = vld [vmem:[#allocation4_spill] sm:$0xff] }
 0x3ec   :  { %v1845_v2 = vpack.c.bf16 %v1701_v25, %v1701_v25  ;;  %v3160_v33 = vpop.f32.mrf.mxu3  ;;  %18218 = vst [vmem:[#allocation116_spill] sm:$0xff] %v12871_v60  ;;  %v18222_v25 = vld [vmem:[#allocation120_spill] sm:$0xff] }
 0x3ed   :  { %v3161_v58 = vadd.f32 %v3160_v33, %v18221_v3  ;;  %v10758_v33 = vld [vmem:[%s17748_s0 + $0x1f8] sm:$0xff] }
 0x3ee   :  { %v4192_v35 = vunpack.c.l.b16 %v1845_v2  ;;  %4214 = vmatpush.bf16.msrb.mxu1 %v4197_v36  ;;  %v12862_v15 = vpop.f32.mrf.mxu1 }
 0x3ef   :  { %18215 = vst [vmem:[#allocation114_spill] sm:$0xff] %v12862_v15  ;;  %v12864_v45 = vpop.f32.mrf.mxu0  ;;  %v10760_v15 = vld [vmem:[%s17748_s0 + $0x208] sm:$0xff] }
 0x3f0   :  { %v4201_v51 = vpack.c.b16 %v4192_v35, %v4191_v43  ;;  %v18223_v43 = vld [vmem:[#allocation76_spill] sm:$0xff] }
 0x3f1   :  { %v2810_v56 = vpop.f32.mrf.mxu2  ;;  %9295 = vmatmul.msk.bf16.gmra.mxu3 %vm2140_vm2, %v18153_v40  ;;  %9306 = vmatmul.msk.bf16.vlgmr.msra.gmra.mxu1 %vm2140_vm2, %v18216_v7 }
 0x3f2   :  { %v12874_v13 = vadd.f32 %v2810_v56, %v18219_v32  ;;  %9051 = vmatmul.msk.bf16.gmra.mxu0 %vm1004_vm1, %v10757_v0  ;;  %4215 = vmatpush.bf16.msrb.mxu1 %v12819_v42 }
 0x3f3   :  { %4341 = vmatpush.bf16.msra.mxu3 %v4201_v51 }
 0x3f4   :  { %18220 = vst [vmem:[#allocation109_spill] sm:$0xff] %v12874_v13  ;;  %v3163_v37 = vpop.f32.mrf.mxu3 }
 0x3f5   :  { %v3164_v36 = vadd.f32 %v3163_v37, %v18222_v25  ;;  %v18229_v37 = vld [vmem:[#allocation115_spill] sm:$0xff] }
 0x3f6   :  { %9282 = vmatmul.msk.bf16.gmra.mxu2 %vm2140_vm2, %v18223_v43  ;;  %4216 = vmatpush.bf16.msrb.mxu1 %v12823_v57  ;;  %v12885_v54 = vpop.f32.mrf.mxu1  ;;  %v18232_v25 = vld [vmem:[#allocation3_spill] sm:$0xff] }
 0x3f7   :  { %18224 = vst [vmem:[#allocation111_spill] sm:$0xff] %v12885_v54  ;;  %v10814_v2 = vpack.i.bf16 %v3164_v36, %v3161_v58  ;;  %v12887_v35 = vpop.f32.mrf.mxu0 }
 0x3f9   :  { %v2813_v42 = vpop.f32.mrf.mxu2  ;;  %10815 = vrot.lane.b32.xlu0 %v10814_v2, %s11273_s3 }
 0x3fa   :  { %4217 = vmatpush.bf16.msrb.mxu1 %v12835_v34  ;;  %v18227_v34 = vld [vmem:[#allocation113_spill] sm:$0xff] }
 0x3fb   :  { %v12906_v32 = vadd.f32 %v2813_v42, %v18227_v34 }
 0x3fc   :  { %v12891_v0 = vpop.f32.mrf.mxu3 }
 0x3fd   :  { %18228 = vst [vmem:[#allocation120_spill] sm:$0xff] %v12906_v32 }
 0x3fe   :  { %4218 = vmatpush.bf16.msrb.mxu1 %v12837_v14  ;;  %v12897_v51 = vpop.f32.mrf.mxu1 }
 0x3ff   :  { %18225 = vst [vmem:[#allocation118_spill] sm:$0xff] %v12897_v51  ;;  %v12899_v57 = vpop.f32.mrf.mxu0 }
 0x401   :  { %v2815_v56 = vpop.f32.mrf.mxu2  ;;  %9296 = vmatmul.msk.bf16.gmra.mxu3 %vm2140_vm2, %v18156_v49  ;;  %9307 = vmatmul.msk.bf16.gmra.mxu1 %vm2140_vm2, %v18226_v26 }
 0x402   :  { %v12909_v14 = vadd.f32 %v2815_v56, %v18229_v37  ;;  %9052 = vmatmul.msk.bf16.gmra.mxu0 %vm1004_vm1, %v10758_v33  ;;  %v10759_v56 = vld [vmem:[%s17748_s0 + $0x200] sm:$0xff] }
 0x404   :  { %18230 = vst [vmem:[#allocation113_spill] sm:$0xff] %v12909_v14  ;;  %v12914_v58 = vpop.f32.mrf.mxu3 }
 0x405   :  { %18231 = vst [vmem:[#allocation115_spill] sm:$0xff] %v12914_v58 }
 0x406   :  { %3419 = vmatmul.bf16.vlgmr.msra.gmra.mxu2 %v18232_v25  ;;  %v12917_v36 = vpop.f32.mrf.mxu1 }
 0x407   :  { %18233 = vst [vmem:[#allocation155_spill] sm:$0xff] %v12917_v36  ;;  %v12919_v2 = vpop.f32.mrf.mxu0 }
 0x409   :  { %v12921_v21 = vpop.f32.mrf.mxu2 }
 0x40a   :  { %18234 = vst [vmem:[#allocation156_spill] sm:$0xff] %v12921_v21 }
 0x40c   :  { %v12923_v42 = vpop.f32.mrf.mxu3 }
 0x40d   :  { %18235 = vst [vmem:[#allocation157_spill] sm:$0xff] %v12923_v42 }
 0x40e   :  { %v12928_v33 = vpop.f32.mrf.mxu1 }
 0x40f   :  { %18236 = vst [vmem:[#allocation158_spill] sm:$0xff] %v12928_v33  ;;  %v12930_v34 = vpop.f32.mrf.mxu0 }
 0x411   :  { %v12932_v37 = vpop.f32.mrf.mxu2  ;;  %9297 = vmatmul.msk.bf16.gmra.mxu3 %vm2140_vm2, %v18161_v61  ;;  %9308 = vmatmul.msk.bf16.gmra.mxu1 %vm2140_vm2, %v11525_v39 }
 0x412   :  { %18237 = vst [vmem:[#allocation159_spill] sm:$0xff] %v12932_v37  ;;  %9053 = vmatmul.msk.bf16.gmra.mxu0 %vm1004_vm1, %v10759_v56 }
 0x414   :  { %v12939_v3 = vpop.f32.mrf.mxu3 }
 0x415   :  { %18238 = vst [vmem:[#allocation160_spill] sm:$0xff] %v12939_v3 }
 0x416   :  { %3424 = vmatmul.bf16.gmra.mxu2 %v18239_v1  ;;  %v12942_v36 = vpop.f32.mrf.mxu1 }
 0x417   :  { %v12944_v51 = vpop.f32.mrf.mxu0 }
 0x419   :  { %v12946_v33 = vpop.f32.mrf.mxu2 }
 0x41a   :  { %18240 = vst [vmem:[#allocation161_spill] sm:$0xff] %v12946_v33 }
 0x41c   :  { %v12948_v54 = vpop.f32.mrf.mxu3 }
 0x41d   :  { %18241 = vst [vmem:[#allocation162_spill] sm:$0xff] %v12948_v54 }
 0x41e   :  { %v12953_v37 = vpop.f32.mrf.mxu1 }
 0x41f   :  { %v1519_v21 = vpop.f32.mrf.mxu0 }
 0x421   :  { %v12955_v56 = vpop.f32.mrf.mxu2  ;;  %9298 = vmatmul.msk.bf16.gmra.mxu3 %vm2140_vm2, %v18164_v9  ;;  %9309 = vmatmul.msk.bf16.gmra.mxu1 %vm2140_vm2, %v11552_v59  ;;  %v18250_v59 = vld [vmem:[#allocation9_spill] sm:$0xff] }
 0x422   :  { %18242 = vst [vmem:[#allocation163_spill] sm:$0xff] %v12955_v56  ;;  %9054 = vmatmul.msk.bf16.gmra.mxu0 %vm1004_vm1, %v10760_v15  ;;  %v10761_v56 = vld [vmem:[%s17748_s0 + $0x210] sm:$0xff] }
 0x424   :  { %v12962_v33 = vpop.f32.mrf.mxu3 }
 0x425   :  { %18243 = vst [vmem:[#allocation164_spill] sm:$0xff] %v12962_v33  ;;  %v18254_v33 = vld [vmem:[#allocation102_spill] sm:$0xff] }
 0x426   :  { %3429 = vmatmul.bf16.gmra.mxu2 %v18244_v18  ;;  %v12965_v54 = vpop.f32.mrf.mxu1 }
 0x427   :  { %v1521_v3 = vpop.f32.mrf.mxu0 }
 0x429   :  { %v12967_v42 = vpop.f32.mrf.mxu2 }
 0x42a   :  { %18245 = vst [vmem:[#allocation165_spill] sm:$0xff] %v12967_v42  ;;  %v10762_v42 = vld [vmem:[%s17748_s0 + $0x218] sm:$0xff] }
 0x42c   :  { %v3180_v58 = vpop.f32.mrf.mxu3 }
 0x42d   :  { %v12987_v10 = vadd.f32 %v3180_v58, %v12611_v4 }
 0x42e   :  { %v12972_v32 = vpop.f32.mrf.mxu1 }
 0x42f   :  { %v12974_v14 = vpop.f32.mrf.mxu0  ;;  %18248 = vst [vmem:[#allocation167_spill] sm:$0xff] %v12987_v10 }
 0x431   :  { %v2830_v60 = vpop.f32.mrf.mxu2  ;;  %9299 = vmatmul.msk.bf16.gmra.mxu3 %vm2140_vm2, %v18169_v28  ;;  %9310 = vmatmul.msk.bf16.gmra.mxu1 %vm2140_vm2, %v11580_v52 }
 0x432   :  { %v12981_v15 = vadd.f32 %v2830_v60, %v12562_v30  ;;  %9055 = vmatmul.msk.bf16.gmra.mxu0 %vm1004_vm1, %v10761_v56 }
 0x434   :  { %18246 = vst [vmem:[#allocation166_spill] sm:$0xff] %v12981_v15  ;;  %v3183_v13 = vpop.f32.mrf.mxu3  ;;  %v3144_v15 = vadd.f32 %v12714_v27, %v18254_v33 }
 0x435   :  { %v12990_v11 = vadd.f32 %v3183_v13, %v12622_v8 }
 0x436   :  { %3434 = vmatmul.bf16.gmra.mxu2 %v18250_v59  ;;  %v12993_v39 = vpop.f32.mrf.mxu1 }
 0x437   :  { %18249 = vst [vmem:[#allocation168_spill] sm:$0xff] %v12990_v11  ;;  %v12997_v60 = vpop.f32.mrf.mxu0  ;;  %v18255_v11 = vld [vmem:[#allocation105_spill] sm:$0xff] }
 0x438   :  { %18251 = vst [vmem:[#allocation169_spill] sm:$0xff] %v12993_v39  ;;  %v3146_v39 = vadd.f32 %v12733_v16, %v18255_v11  ;;  %v1510_v11 = vadd.f32 %v12525_v48, %v12899_v57  ;;  %v1507_v57 = vadd.f32 %v12525_v48, %v12887_v35 }
 0x439   :  { %v2833_v56 = vpop.f32.mrf.mxu2 }
 0x43a   :  { %v13011_v13 = vadd.f32 %v2833_v56, %v12578_v20 }
 0x43c   :  { %v3185_v52 = vpop.f32.mrf.mxu3  ;;  %18252 = vst [vmem:[#allocation170_spill] sm:$0xff] %v13011_v13  ;;  %v1515_v13 = vadd.f32 %v12525_v48, %v12930_v34  ;;  %v1512_v34 = vadd.f32 %v12525_v48, %v12919_v2  ;;  %v1704_v2 = vmax.f32 %v1510_v11, 0.0 }
 0x43d   :  { %v13024_v20 = vadd.f32 %v3185_v52, %v12636_v44 }
 0x43e   :  { %v13002_v4 = vpop.f32.mrf.mxu1 }
 0x43f   :  { %v13004_v58 = vpop.f32.mrf.mxu0  ;;  %18256 = vst [vmem:[#allocation102_spill] sm:$0xff] %v13024_v20 }
 0x441   :  { %v2835_v8 = vpop.f32.mrf.mxu2  ;;  %9300 = vmatmul.msk.bf16.gmra.mxu3 %vm2140_vm2, %v18176_v46  ;;  %9311 = vmatmul.msk.bf16.gmra.mxu1 %vm2140_vm2, %v11603_v23 }
 0x442   :  { %v13014_v30 = vadd.f32 %v2835_v8, %v12591_v55  ;;  %9056 = vmatmul.msk.bf16.gmra.mxu0 %vm1004_vm1, %v10762_v42  ;;  %v18258_v42 = vld [vmem:[#allocation11_spill] sm:$0xff] }
 0x443   :  { %v10811_v10 = vpop.permute.xlu2 %10810 }
 0x444   :  { %18253 = vst [vmem:[#allocation171_spill] sm:$0xff] %v13014_v30  ;;  %v3188_v7 = vpop.f32.mrf.mxu3  ;;  %v10813_v23 = vunpack.i.h.bf16 %v10811_v10  ;;  %v10812_v63 = vunpack.i.l.bf16 %v10811_v10 }
 0x445   :  { %v13027_v55 = vadd.f32 %v3188_v7, %v12647_v24  ;;  %v10763_v7 = vld [vmem:[%s17748_s0 + $0x220] sm:$0xff] }
 0x446   :  { %3439 = vmatmul.bf16.gmra.mxu2 %v18258_v42  ;;  %v13030_v56 = vpop.f32.mrf.mxu1  ;;  %v13033_v27 = vsel %vm2536_vm3, %v3144_v15, %v10812_v63  ;;  %v13036_v16 = vsel %vm2536_vm3, %v3146_v39, %v10813_v23  ;;  %v1520_v23 = vadd.f32 %v12525_v48, %v1519_v21  ;;  %v1522_v15 = vadd.f32 %v12525_v48, %v1521_v3 }
 0x447   :  { %18257 = vst [vmem:[#allocation105_spill] sm:$0xff] %v13027_v55  ;;  %v13040_v10 = vpop.f32.mrf.mxu0  ;;  %v1517_v21 = vadd.f32 %v12525_v48, %v12944_v51  ;;  %v1505_v55 = vadd.f32 %v12525_v48, %v12864_v45 }
 0x448   :  { %18259 = vst [vmem:[#allocation172_spill] sm:$0xff] %v13033_v27  ;;  %v1708_v3 = vmax.f32 %v1520_v23, 0.0  ;;  %v1709_v30 = vmax.f32 %v1522_v15, 0.0 }
 0x449   :  { %18260 = vst [vmem:[#allocation173_spill] sm:$0xff] %v13036_v16  ;;  %v2838_v24 = vpop.f32.mrf.mxu2  ;;  %v1707_v51 = vmax.f32 %v1517_v21, 0.0  ;;  %v1702_v16 = vmax.f32 %v1505_v55, 0.0 }
 0x44a   :  { %v13058_v8 = vadd.f32 %v2838_v24, %v12607_v19  ;;  %v18264_v19 = vld [vmem:[#allocation14_spill] sm:$0xff]  ;;  %v1852_v23 = vpack.c.bf16 %v1708_v3, %v1708_v3  ;;  %v1853_v15 = vpack.c.bf16 %v1709_v30, %v1709_v30 }
 0x44b   :  { %v1851_v21 = vpack.c.bf16 %v1707_v51, %v1707_v51 }
 0x44c   :  { %v13044_v44 = vpop.f32.mrf.mxu3  ;;  %18261 = vst [vmem:[#allocation174_spill] sm:$0xff] %v13058_v8  ;;  %v4581_v3 = vunpack.c.l.b16 %v1852_v23  ;;  %v4582_v30 = vunpack.c.l.b16 %v1853_v15  ;;  %v1846_v15 = vpack.c.bf16 %v1702_v16, %v1702_v16 }
 0x44e   :  { %v13049_v63 = vpop.f32.mrf.mxu1 }
 0x44f   :  { %v1534_v33 = vpop.f32.mrf.mxu0 }
 0x450   :  { %v1535_v55 = vadd.f32 %v12525_v48, %v1534_v33  ;;  %v1532_v33 = vadd.f32 %v12525_v48, %v13040_v10  ;;  %v1527_v10 = vadd.f32 %v12525_v48, %v12997_v60 }
 0x451   :  { %v2840_v39 = vpop.f32.mrf.mxu2  ;;  %9301 = vmatmul.msk.bf16.gmra.mxu3 %vm2140_vm2, %v18181_v29  ;;  %9312 = vmatmul.msk.bf16.gmra.mxu1 %vm2140_vm2, %v11635_v38 }
 0x452   :  { %v13061_v26 = vadd.f32 %v2840_v39, %v12617_v22  ;;  %9057 = vmatmul.msk.bf16.gmra.mxu0 %vm1004_vm1, %v10763_v7  ;;  %v18265_v39 = vld [vmem:[#allocation37_spill] sm:$0xff]  ;;  %v18266_v7 = vld [vmem:[#allocation106_spill] sm:$0xff] }
 0x453   :  { %v13077_v20 = vadd.f32 %v18266_v7, %v18265_v39 }
 0x454   :  { %18262 = vst [vmem:[#allocation175_spill] sm:$0xff] %v13061_v26  ;;  %v13066_v52 = vpop.f32.mrf.mxu3 }
 0x455   :  { %18263 = vst [vmem:[#allocation176_spill] sm:$0xff] %v13066_v52  ;;  %v1706_v52 = vmax.f32 %v1515_v13, 0.0  ;;  %v1705_v13 = vmax.f32 %v1512_v34, 0.0  ;;  %v13105_v34 = vpack.c.b16 %v4582_v30, %v4581_v3  ;;  %v1714_v30 = vmax.f32 %v1535_v55, 0.0 }
 0x456   :  { %3444 = vmatmul.bf16.gmra.mxu2 %v18264_v19  ;;  %v13073_v24 = vpop.f32.mrf.mxu1  ;;  %18267 = vst [vmem:[#allocation37_spill] sm:$0xff] %v13077_v20  ;;  %v1703_v20 = vmax.f32 %v1507_v57, 0.0 }
 0x457   :  { %v1536_v22 = vpop.f32.mrf.mxu0  ;;  %v1850_v27 = vpack.c.bf16 %v1706_v52, %v1706_v52  ;;  %v1849_v35 = vpack.c.bf16 %v1705_v13, %v1705_v13  ;;  %v4580_v52 = vunpack.c.l.b16 %v1851_v21 }
 0x458   :  { %v1537_v51 = vadd.f32 %v12525_v48, %v1536_v22 }
 0x459   :  { %v2843_v8 = vpop.f32.mrf.mxu2  ;;  %v4579_v11 = vunpack.c.l.b16 %v1850_v27  ;;  %v4578_v13 = vunpack.c.l.b16 %v1849_v35  ;;  %v18272_v27 = vld [vmem:[#allocation17_spill] sm:$0xff] }
 0x45a   :  { %v13084_v26 = vadd.f32 %v2843_v8, %v12632_v6  ;;  %v10764_v6 = vld [vmem:[%s17748_s0 + $0x228] sm:$0xff]  ;;  %v1715_v22 = vmax.f32 %v1537_v51, 0.0 }
 0x45b   :  { %v13114_v21 = vpack.c.b16 %v4580_v52, %v4579_v11  ;;  %v1525_v11 = vadd.f32 %v12525_v48, %v12974_v14 }
 0x45c   :  { %18268 = vst [vmem:[#allocation106_spill] sm:$0xff] %v13084_v26  ;;  %v13090_v7 = vpop.f32.mrf.mxu3  ;;  %v1848_v26 = vpack.c.bf16 %v1704_v2, %v1704_v2  ;;  %v1847_v2 = vpack.c.bf16 %v1703_v20, %v1703_v20 }
 0x45d   :  { %18269 = vst [vmem:[#allocation177_spill] sm:$0xff] %v13090_v7 }
 0x45e   :  { %v13097_v8 = vpop.f32.mrf.mxu1  ;;  %v4576_v38 = vunpack.c.l.b16 %v1847_v2  ;;  %v1859_v2 = vpack.c.bf16 %v1715_v22, %v1715_v22 }
 0x45f   :  { %18270 = vst [vmem:[#allocation178_spill] sm:$0xff] %v13097_v8  ;;  %v1539_v45 = vpop.f32.mrf.mxu0 }
 0x460   :  { %v1540_v39 = vadd.f32 %v12525_v48, %v1539_v45  ;;  %v1530_v45 = vadd.f32 %v12525_v48, %v13004_v58 }
 0x461   :  { %v2845_v7 = vpop.f32.mrf.mxu2  ;;  %9302 = vmatmul.msk.bf16.gmra.mxu3 %vm2140_vm2, %v18194_v53  ;;  %9313 = vmatmul.msk.bf16.gmra.mxu1 %vm2140_vm2, %v18124_v31  ;;  %v4577_v31 = vunpack.c.l.b16 %v1848_v26  ;;  %v4575_v26 = vunpack.c.l.b16 %v1846_v15  ;;  %v1713_v15 = vmax.f32 %v1532_v33, 0.0 }
 0x462   :  { %9058 = vmatmul.msk.bf16.gmra.mxu0 %vm1004_vm1, %v10764_v6  ;;  %v1716_v23 = vmax.f32 %v1540_v39, 0.0  ;;  %v18273_v6 = vld [vmem:[#allocation108_spill] sm:$0xff]  ;;  %v1712_v52 = vmax.f32 %v1530_v45, 0.0  ;;  %v13128_v51 = vadd.f32 %v2845_v7, %v12642_v41  ;;  %v1710_v7 = vmax.f32 %v1525_v11, 0.0 }
 0x463   :  { %v3149_v20 = vadd.f32 %v12758_v47, %v18273_v6  ;;  %v18276_v47 = vld [vmem:[#allocation135_spill] sm:$0xff]  ;;  %v4588_v11 = vunpack.c.l.b16 %v1859_v2 }
 0x464   :  { %v13109_v57 = vpop.f32.mrf.mxu3  ;;  %v1860_v39 = vpack.c.bf16 %v1716_v23, %v1716_v23  ;;  %18275 = vst [vmem:[#allocation108_spill] sm:$0xff] %v13128_v51  ;;  %v1856_v8 = vpack.c.bf16 %v1712_v52, %v1712_v52 }
 0x465   :  { %18271 = vst [vmem:[#allocation179_spill] sm:$0xff] %v13109_v57  ;;  %v18274_v57 = vld [vmem:[#allocation110_spill] sm:$0xff] }
 0x466   :  { %3449 = vmatmul.bf16.gmra.mxu2 %v18272_v27  ;;  %v3132_v3 = vpop.f32.mrf.mxu1  ;;  %v3151_v58 = vadd.f32 %v12789_v62, %v18274_v57  ;;  %v13133_v62 = vpack.c.b16 %v4578_v13, %v4577_v31  ;;  %v1858_v57 = vpack.c.bf16 %v1714_v30, %v1714_v30  ;;  %v10765_v31 = vld [vmem:[%s17748_s0 + $0x230] sm:$0xff]  ;;  %v13142_v13 = vpack.c.b16 %v4576_v38, %v4575_v26  ;;  %v13157_v38 = vld [vmem:[%s17747_s8] ss:$0 sm:$0xff] }
 0x467   :  { %v1541_v16 = vpop.f32.mrf.mxu0  ;;  %v4585_v2 = vunpack.c.l.b16 %v1856_v8 }
 0x468   :  { %v1542_v35 = vadd.f32 %v12525_v48, %v1541_v16  ;;  %v4589_v16 = vunpack.c.l.b16 %v1860_v39  ;;  %v1857_v39 = vpack.c.bf16 %v1713_v15, %v1713_v15  ;;  %v1854_v15 = vpack.c.bf16 %v1710_v7, %v1710_v7 }
 0x469   :  { %v2848_v55 = vpop.f32.mrf.mxu2 }
 0x46a   :  { %v1717_v23 = vmax.f32 %v1542_v35, 0.0  ;;  %v13131_v3 = vadd.f32 %v2848_v55, %v18276_v47  ;;  %v1711_v35 = vmax.f32 %v1527_v10, 0.0  ;;  %v4583_v48 = vunpack.c.l.b16 %v1854_v15 }
 0x46b   :  { %v10816_v6 = vpop.permute.xlu0 %10815 }
 0x46c   :  { %18277 = vst [vmem:[#allocation110_spill] sm:$0xff] %v13131_v3  ;;  %v1861_v14 = vpack.c.bf16 %v1717_v23, %v1717_v23  ;;  %v13137_v60 = vpop.f32.mrf.mxu3  ;;  %v10818_v45 = vunpack.i.h.bf16 %v10816_v6  ;;  %v10817_v41 = vunpack.i.l.bf16 %v10816_v6  ;;  %v4587_v23 = vunpack.c.l.b16 %v1858_v57  ;;  %v18281_v6 = vld [vmem:[#allocation66_spill] sm:$0xff] }
 0x46d   :  { %18278 = vst [vmem:[#allocation135_spill] sm:$0xff] %v13137_v60  ;;  %v1855_v57 = vpack.c.bf16 %v1711_v35, %v1711_v35 }
 0x46e   :  { %v4590_v55 = vunpack.c.l.b16 %v1861_v14  ;;  %v13144_v33 = vpop.f32.mrf.mxu1  ;;  %v13147_v30 = vsel %vm2536_vm3, %v3149_v20, %v10817_v41  ;;  %v13150_v22 = vsel %vm2536_vm3, %v3151_v58, %v10818_v45  ;;  %v18282_v58 = vld [vmem:[#allocation20_spill] sm:$0xff]  ;;  %v4586_v14 = vunpack.c.l.b16 %v1857_v39  ;;  %v18285_v39 = vld [vmem:[#allocation137_spill] sm:$0xff] }
 0x46f   :  { %18279 = vst [vmem:[#allocation180_spill] sm:$0xff] %v13147_v30  ;;  %v1544_v10 = vpop.f32.mrf.mxu0  ;;  %v13168_v45 = vpack.c.b16 %v4588_v11, %v4587_v23  ;;  %v4584_v52 = vunpack.c.l.b16 %v1855_v57 }
 0x470   :  { %18280 = vst [vmem:[#allocation181_spill] sm:$0xff] %v13150_v22  ;;  %v1545_v26 = vadd.f32 %v13157_v38, %v1544_v10  ;;  %v13160_v47 = vpack.c.b16 %v4590_v55, %v4589_v16  ;;  %v18284_v55 = vld [vmem:[#allocation19_spill] sm:$0xff]  ;;  %v13174_v51 = vpack.c.b16 %v4586_v14, %v4585_v2 }
 0x471   :  { %v2850_v20 = vpop.f32.mrf.mxu2  ;;  %9303 = vmatmul.msk.bf16.gmra.mxu3 %vm2140_vm2, %v18281_v6  ;;  %9314 = vmatmul.msk.bf16.gmra.mxu1 %vm2140_vm2, %v18282_v58  ;;  %v13184_v15 = vpack.c.b16 %v4584_v52, %v4583_v48  ;;  %v18290_v48 = vld [vmem:[#allocation22_spill] sm:$0xff]  ;;  %v18291_v52 = vld [vmem:[#allocation148_spill] sm:$0xff] }
 0x472   :  { %9059 = vmatmul.msk.bf16.gmra.mxu0 %vm1004_vm1, %v10765_v31  ;;  %v1718_v41 = vmax.f32 %v1545_v26, 0.0  ;;  %v13178_v23 = vadd.f32 %v2850_v20, %v18285_v39  ;;  %v18287_v26 = vld [vmem:[#allocation141_spill] sm:$0xff] }
 0x473   :  { %4611 = vmatpush.bf16.msrb.mxu0 %v13160_v47  ;;  %v10766_v20 = vld [vmem:[%s17748_s0 + $0x238] sm:$0xff] }
 0x474   :  { %v13170_v16 = vpop.f32.mrf.mxu3  ;;  %v1862_v35 = vpack.c.bf16 %v1718_v41, %v1718_v41  ;;  %18286 = vst [vmem:[#allocation137_spill] sm:$0xff] %v13178_v23 }
 0x475   :  { %18283 = vst [vmem:[#allocation20_spill] sm:$0xff] %v13170_v16 }
 0x476   :  { %3454 = vmatmul.bf16.gmra.mxu2 %v18284_v55  ;;  %v3545_v10 = vpop.f32.mrf.mxu1  ;;  %v4591_v57 = vunpack.c.l.b16 %v1862_v35 }
 0x477   :  { %4612 = vmatpush.bf16.msrb.mxu0 %v13168_v45  ;;  %v1546_v7 = vpop.f32.mrf.mxu0 }
 0x478   :  { %v1547_v8 = vadd.f32 %v13157_v38, %v1546_v7 }
 0x479   :  { %v2853_v31 = vpop.f32.mrf.mxu2 }
 0x47a   :  { %v1719_v11 = vmax.f32 %v1547_v8, 0.0  ;;  %v13181_v16 = vadd.f32 %v2853_v31, %v18287_v26 }
 0x47b   :  { %4613 = vmatpush.bf16.msrb.mxu0 %v13174_v51 }
 0x47c   :  { %18288 = vst [vmem:[#allocation141_spill] sm:$0xff] %v13181_v16  ;;  %v1863_v3 = vpack.c.bf16 %v1719_v11, %v1719_v11  ;;  %v3205_v14 = vpop.f32.mrf.mxu3  ;;  %v18293_v11 = vld [vmem:[#allocation150_spill] sm:$0xff] }
 0x47d   :  { %v13201_v35 = vadd.f32 %v3205_v14, %v18291_v52 }
 0x47e   :  { %v4592_v41 = vunpack.c.l.b16 %v1863_v3  ;;  %v3548_v7 = vpop.f32.mrf.mxu1 }
 0x47f   :  { %4614 = vmatpush.bf16.msrb.mxu0 %v13184_v15  ;;  %v13192_v8 = vpop.f32.mrf.mxu0  ;;  %18292 = vst [vmem:[#allocation148_spill] sm:$0xff] %v13201_v35  ;;  %v18302_v35 = vld [vmem:[#allocation23_spill] sm:$0xff] }
 0x480   :  { %18289 = vst [vmem:[#allocation182_spill] sm:$0xff] %v13192_v8  ;;  %v4601_v31 = vpack.c.b16 %v4592_v41, %v4591_v57  ;;  %v18295_v57 = vld [vmem:[#allocation21_spill] sm:$0xff] }
 0x481   :  { %v2855_v39 = vpop.f32.mrf.mxu2  ;;  %9304 = vmatmul.msk.bf16.gmra.mxu3 %vm2140_vm2, %v18214_v12  ;;  %9315 = vmatmul.msk.bf16.gmra.mxu1 %vm2140_vm2, %v18290_v48 }
 0x482   :  { %9060 = vmatmul.msk.bf16.gmra.mxu0 %vm1004_vm1, %v10766_v20  ;;  %4741 = vmatpush.bf16.msra.mxu2 %v4601_v31  ;;  %v18298_v39 = vld [vmem:[#allocation24_spill] sm:$0xff] }
 0x483   :  { %4615 = vmatpush.bf16.msrb.mxu0 %v13105_v34 }
 0x484   :  { %v3208_v3 = vpop.f32.mrf.mxu3 }
 0x485   :  { %v13204_v26 = vadd.f32 %v3208_v3, %v18293_v11 }
 0x486   :  { %3459 = vmatmul.bf16.gmra.mxu2 %v18295_v57  ;;  %v3550_v41 = vpop.f32.mrf.mxu1 }
 0x487   :  { %18294 = vst [vmem:[#allocation150_spill] sm:$0xff] %v13204_v26  ;;  %4616 = vmatpush.bf16.msrb.mxu0 %v13114_v21  ;;  %v13210_v2 = vpop.f32.mrf.mxu0 }
 0x488   :  { %18296 = vst [vmem:[#allocation183_spill] sm:$0xff] %v13210_v2 }
 0x489   :  { %v3420_v20 = vpop.f32.mrf.mxu2 }
 0x48a   :  { %v13213_v31 = vadd.f32 %v13144_v33, %v3420_v20  ;;  %v18299_v20 = vld [vmem:[#allocation153_spill] sm:$0xff] }
 0x48b   :  { %4617 = vmatpush.bf16.msrb.mxu0 %v13133_v62 }
 0x48c   :  { %v3210_v14 = vpop.f32.mrf.mxu3 }
 0x48d   :  { %v13227_v16 = vadd.f32 %v3210_v14, %v18299_v20 }
 0x48e   :  { %v3553_v52 = vpop.f32.mrf.mxu1 }
 0x48f   :  { %4618 = vmatpush.bf16.msrb.mxu0 %v13142_v13  ;;  %v13217_v3 = vpop.f32.mrf.mxu0  ;;  %18300 = vst [vmem:[#allocation153_spill] sm:$0xff] %v13227_v16 }
 0x490   :  { %18297 = vst [vmem:[#allocation184_spill] sm:$0xff] %v13217_v3 }
 0x491   :  { %v3422_v11 = vpop.f32.mrf.mxu2  ;;  %9305 = vmatmul.msk.bf16.gmra.mxu3 %vm2140_vm2, %v18223_v43  ;;  %9316 = vmatmul.msk.bf16.gmra.mxu1 %vm2140_vm2, %v18298_v39 }
 0x492   :  { %4619 = vmatmul.bf16.vlgmr.msrb.gmra.mxu0 %v18232_v25  ;;  %v13224_v23 = vadd.f32 %v3545_v10, %v3422_v11 }
 0x494   :  { %v3213_v33 = vpop.f32.mrf.mxu3 }
 0x495   :  { %v13230_v60 = vadd.f32 %v3213_v33, %v12839_v50 }
 0x496   :  { %3464 = vmatmul.bf16.gmra.mxu2 %v18302_v35  ;;  %v3555_v26 = vpop.f32.mrf.mxu1 }
 0x497   :  { %18301 = vst [vmem:[#allocation185_spill] sm:$0xff] %v13230_v60  ;;  %v13235_v22 = vpop.f32.mrf.mxu0 }
 0x498   :  { %18303 = vst [vmem:[#allocation23_spill] sm:$0xff] %v13235_v22 }
 0x499   :  { %v3425_v2 = vpop.f32.mrf.mxu2 }
 0x49a   :  { %v13237_v8 = vadd.f32 %v3548_v7, %v3425_v2  ;;  %v18305_v2 = vld [vmem:[#allocation25_spill] sm:$0xff] }
 0x49c   :  { %v13239_v10 = vpop.f32.mrf.mxu3 }
 0x49e   :  { %v3558_v11 = vpop.f32.mrf.mxu1 }
 0x49f   :  { %v13241_v3 = vpop.f32.mrf.mxu0 }
 0x4a1   :  { %v3427_v14 = vpop.f32.mrf.mxu2  ;;  %3819 = vmatmul.bf16.vlgmr.msrb.gmra.mxu3 %v18232_v25  ;;  %9317 = vmatmul.msk.bf16.gmra.mxu1 %vm2140_vm2, %v18148_v5 }
 0x4a2   :  { %10775 = vmatpush.bf16.msrb.mxu3 %v13160_v47  ;;  %4624 = vmatmul.bf16.gmra.mxu0 %v18239_v1  ;;  %v13248_v50 = vadd.f32 %v3550_v41, %v3427_v14 }
 0x4a4   :  { %v13250_v33 = vpop.f32.mrf.mxu3 }
 0x4a5   :  { %18304 = vst [vmem:[#allocation186_spill] sm:$0xff] %v13250_v33 }
 0x4a6   :  { %3469 = vmatmul.bf16.gmra.mxu2 %v18305_v2  ;;  %10776 = vmatpush.bf16.msrb.mxu3 %v13168_v45  ;;  %v3560_v7 = vpop.f32.mrf.mxu1  ;;  %v18308_v45 = vld [vmem:[#allocation33_spill] sm:$0xff] }
 0x4a7   :  { %v13254_v20 = vpop.f32.mrf.mxu0  ;;  %v3166_v33 = vadd.f32 %v12891_v0, %v18308_v45 }
 0x4a8   :  { %18306 = vst [vmem:[#allocation25_spill] sm:$0xff] %v13254_v20 }
 0x4a9   :  { %v3430_v30 = vpop.f32.mrf.mxu2 }
 0x4aa   :  { %10777 = vmatpush.bf16.msrb.mxu3 %v13174_v51  ;;  %v13257_v16 = vadd.f32 %v3553_v52, %v3430_v30  ;;  %v18310_v52 = vld [vmem:[#allocation28_spill] sm:$0xff] }
 0x4ac   :  { %v13259_v60 = vpop.f32.mrf.mxu3 }
 0x4ad   :  { %18307 = vst [vmem:[#allocation187_spill] sm:$0xff] %v13259_v60 }
 0x4ae   :  { %10778 = vmatpush.bf16.msrb.mxu3 %v13184_v15  ;;  %v3563_v47 = vpop.f32.mrf.mxu1 }
 0x4af   :  { %v13262_v41 = vpop.f32.mrf.mxu0 }
 0x4b1   :  { %v3432_v14 = vpop.f32.mrf.mxu2  ;;  %3824 = vmatmul.bf16.gmra.mxu3 %v18239_v1  ;;  %9318 = vmatmul.msk.bf16.gmra.mxu1 %vm2140_vm2, %v18153_v40 }
 0x4b2   :  { %10779 = vmatpush.bf16.msrb.mxu3 %v13105_v34  ;;  %4629 = vmatmul.bf16.gmra.mxu0 %v18244_v18  ;;  %v3556_v51 = vadd.f32 %v3555_v26, %v3432_v14 }
 0x4b4   :  { %v13271_v30 = vpop.f32.mrf.mxu3  ;;  %v10819_v15 = vpack.i.bf16 %v3556_v51, %v3166_v33  ;;  %v18314_v51 = vld [vmem:[#allocation30_spill] sm:$0xff] }
 0x4b5   :  { %18309 = vst [vmem:[#allocation33_spill] sm:$0xff] %v13271_v30 }
 0x4b6   :  { %3474 = vmatmul.bf16.gmra.mxu2 %v18310_v52  ;;  %10780 = vmatpush.bf16.msrb.mxu3 %v13114_v21  ;;  %v3565_v60 = vpop.f32.mrf.mxu1 }
 0x4b7   :  { %v13275_v5 = vpop.f32.mrf.mxu0  ;;  %10820 = vrot.lane.b32.xlu1 %v10819_v15, %s11273_s3 }
 0x4b9   :  { %v3435_v40 = vpop.f32.mrf.mxu2 }
 0x4ba   :  { %10781 = vmatpush.bf16.msrb.mxu3 %v13133_v62  ;;  %v3559_v33 = vadd.f32 %v3558_v11, %v3435_v40 }
 0x4bc   :  { %v13279_v0 = vpop.f32.mrf.mxu3 }
 0x4bd   :  { %18311 = vst [vmem:[#allocation28_spill] sm:$0xff] %v13279_v0 }
 0x4be   :  { %10782 = vmatpush.bf16.msrb.mxu3 %v13142_v13  ;;  %v13282_v34 = vpop.f32.mrf.mxu1 }
 0x4bf   :  { %18312 = vst [vmem:[#allocation188_spill] sm:$0xff] %v13282_v34  ;;  %v13284_v26 = vpop.f32.mrf.mxu0 }
 0x4c1   :  { %v3437_v14 = vpop.f32.mrf.mxu2  ;;  %3829 = vmatmul.bf16.gmra.mxu3 %v18244_v18  ;;  %9319 = vmatmul.msk.bf16.gmra.mxu1 %vm2140_vm2, %v18156_v49 }
 0x4c2   :  { %4634 = vmatmul.bf16.gmra.mxu0 %v18250_v59  ;;  %v3561_v21 = vadd.f32 %v3560_v7, %v3437_v14 }
 0x4c4   :  { %v13290_v45 = vpop.f32.mrf.mxu3  ;;  %v10824_v62 = vpack.i.bf16 %v3561_v21, %v3559_v33 }
 0x4c5   :  { %18313 = vst [vmem:[#allocation189_spill] sm:$0xff] %v13290_v45  ;;  %v18319_v45 = vld [vmem:[#allocation32_spill] sm:$0xff] }
 0x4c6   :  { %3479 = vmatmul.bf16.gmra.mxu2 %v18314_v51  ;;  %v13293_v13 = vpop.f32.mrf.mxu1  ;;  %10825 = vrot.lane.b32.xlu2 %v10824_v62, %s11273_s3 }
 0x4c7   :  { %18315 = vst [vmem:[#allocation30_spill] sm:$0xff] %v13293_v13  ;;  %v13296_v15 = vpop.f32.mrf.mxu0 }
 0x4c9   :  { %v3440_v40 = vpop.f32.mrf.mxu2 }
 0x4ca   :  { %v3564_v30 = vadd.f32 %v3563_v47, %v3440_v40 }
 0x4cc   :  { %v3230_v11 = vpop.f32.mrf.mxu3 }
 0x4cd   :  { %v13307_v21 = vadd.f32 %v3230_v11, %v12942_v36 }
 0x4ce   :  { %v13298_v34 = vpop.f32.mrf.mxu1 }
 0x4cf   :  { %18316 = vst [vmem:[#allocation190_spill] sm:$0xff] %v13298_v34  ;;  %v13300_v0 = vpop.f32.mrf.mxu0 }
 0x4d0   :  { %18317 = vst [vmem:[#allocation191_spill] sm:$0xff] %v13307_v21 }
 0x4d1   :  { %v3442_v49 = vpop.f32.mrf.mxu2  ;;  %3834 = vmatmul.bf16.gmra.mxu3 %v18250_v59  ;;  %9320 = vmatmul.msk.bf16.gmra.mxu1 %vm2140_vm2, %v18161_v61 }
 0x4d2   :  { %4639 = vmatmul.bf16.gmra.mxu0 %v18258_v42  ;;  %v3566_v7 = vadd.f32 %v3565_v60, %v3442_v49 }
 0x4d4   :  { %v3233_v33 = vpop.f32.mrf.mxu3  ;;  %v10829_v14 = vpack.i.bf16 %v3566_v7, %v3564_v30 }
 0x4d5   :  { %v13310_v62 = vadd.f32 %v3233_v33, %v12953_v37 }
 0x4d6   :  { %3484 = vmatmul.bf16.gmra.mxu2 %v18319_v45  ;;  %v13313_v47 = vpop.f32.mrf.mxu1  ;;  %10830 = vrot.lane.b32.xlu0 %v10829_v14, %s11273_s3  ;;  %v18326_v14 = vld [vmem:[#allocation38_spill] sm:$0xff] }
 0x4d7   :  { %18318 = vst [vmem:[#allocation192_spill] sm:$0xff] %v13310_v62  ;;  %v13318_v34 = vpop.f32.mrf.mxu0 }
 0x4d8   :  { %18320 = vst [vmem:[#allocation32_spill] sm:$0xff] %v13313_v47 }
 0x4d9   :  { %v13320_v49 = vpop.f32.mrf.mxu2 }
 0x4da   :  { %18321 = vst [vmem:[#allocation193_spill] sm:$0xff] %v13320_v49 }
 0x4dc   :  { %v3235_v60 = vpop.f32.mrf.mxu3 }
 0x4dd   :  { %v13333_v7 = vadd.f32 %v3235_v60, %v12965_v54 }
 0x4de   :  { %v13322_v30 = vpop.f32.mrf.mxu1 }
 0x4df   :  { %18322 = vst [vmem:[#allocation194_spill] sm:$0xff] %v13322_v30  ;;  %v13324_v36 = vpop.f32.mrf.mxu0  ;;  %v18330_v30 = vld [vmem:[#allocation42_spill] sm:$0xff] }
 0x4e0   :  { %18324 = vst [vmem:[#allocation196_spill] sm:$0xff] %v13333_v7 }
 0x4e1   :  { %v13326_v37 = vpop.f32.mrf.mxu2  ;;  %3839 = vmatmul.bf16.gmra.mxu3 %v18258_v42  ;;  %9321 = vmatmul.msk.bf16.gmra.mxu1 %vm2140_vm2, %v18164_v9 }
 0x4e2   :  { %18323 = vst [vmem:[#allocation195_spill] sm:$0xff] %v13326_v37  ;;  %4644 = vmatmul.bf16.gmra.mxu0 %v18264_v19 }
 0x4e4   :  { %v3238_v11 = vpop.f32.mrf.mxu3 }
 0x4e5   :  { %v13336_v33 = vadd.f32 %v3238_v11, %v12972_v32 }
 0x4e6   :  { %3489 = vmatmul.bf16.gmra.mxu2 %v18326_v14  ;;  %v3580_v40 = vpop.f32.mrf.mxu1 }
 0x4e7   :  { %18325 = vst [vmem:[#allocation197_spill] sm:$0xff] %v13336_v33  ;;  %v13341_v47 = vpop.f32.mrf.mxu0 }
 0x4e9   :  { %v13343_v13 = vpop.f32.mrf.mxu2 }
 0x4ea   :  { %18327 = vst [vmem:[#allocation198_spill] sm:$0xff] %v13343_v13 }
 0x4ec   :  { %v13345_v37 = vpop.f32.mrf.mxu3 }
 0x4ee   :  { %v13347_v49 = vpop.f32.mrf.mxu1 }
 0x4ef   :  { %18328 = vst [vmem:[#allocation199_spill] sm:$0xff] %v13347_v49  ;;  %v1584_v21 = vpop.f32.mrf.mxu0 }
 0x4f0   :  { %v1585_v54 = vadd.f32 %v13157_v38, %v1584_v21 }
 0x4f1   :  { %v13350_v60 = vpop.f32.mrf.mxu2  ;;  %3844 = vmatmul.bf16.gmra.mxu3 %v18264_v19  ;;  %9322 = vmatmul.msk.bf16.gmra.mxu1 %vm2140_vm2, %v18169_v28 }
 0x4f2   :  { %18329 = vst [vmem:[#allocation200_spill] sm:$0xff] %v13350_v60  ;;  %4649 = vmatmul.bf16.gmra.mxu0 %v18272_v27  ;;  %v1734_v32 = vmax.f32 %v1585_v54, 0.0 }
 0x4f4   :  { %v3243_v11 = vpop.f32.mrf.mxu3  ;;  %v1878_v33 = vpack.c.bf16 %v1734_v32, %v1734_v32 }
 0x4f5   :  { %v13363_v28 = vadd.f32 %v3243_v11, %v13002_v4  ;;  %v18336_v4 = vld [vmem:[#allocation136_spill] sm:$0xff] }
 0x4f6   :  { %3494 = vmatmul.bf16.gmra.mxu2 %v18330_v30  ;;  %v13357_v13 = vpop.f32.mrf.mxu1  ;;  %v4989_v49 = vunpack.c.l.b16 %v1878_v33 }
 0x4f7   :  { %18331 = vst [vmem:[#allocation201_spill] sm:$0xff] %v13357_v13  ;;  %v1586_v7 = vpop.f32.mrf.mxu0 }
 0x4f8   :  { %v1587_v62 = vadd.f32 %v13157_v38, %v1586_v7  ;;  %18333 = vst [vmem:[#allocation203_spill] sm:$0xff] %v13363_v28 }
 0x4f9   :  { %v13360_v21 = vpop.f32.mrf.mxu2 }
 0x4fa   :  { %18332 = vst [vmem:[#allocation202_spill] sm:$0xff] %v13360_v21  ;;  %v1735_v60 = vmax.f32 %v1587_v62, 0.0 }
 0x4fc   :  { %v1879_v9 = vpack.c.bf16 %v1735_v60, %v1735_v60  ;;  %v3245_v61 = vpop.f32.mrf.mxu3 }
 0x4fd   :  { %v13366_v54 = vadd.f32 %v3245_v61, %v13030_v56  ;;  %v13378_v61 = vadd.f32 %v13044_v44, %v18336_v4 }
 0x4fe   :  { %v4990_v22 = vunpack.c.l.b16 %v1879_v9  ;;  %v13368_v20 = vpop.f32.mrf.mxu1 }
 0x4ff   :  { %18334 = vst [vmem:[#allocation204_spill] sm:$0xff] %v13366_v54  ;;  %v1589_v13 = vpop.f32.mrf.mxu0 }
 0x500   :  { %18335 = vst [vmem:[#allocation205_spill] sm:$0xff] %v13368_v20  ;;  %v5000_v7 = vpack.c.b16 %v4990_v22, %v4989_v49  ;;  %v1590_v21 = vadd.f32 %v13157_v38, %v1589_v13  ;;  %v18339_v13 = vld [vmem:[#allocation46_spill] sm:$0xff] }
 0x501   :  { %v3457_v62 = vpop.f32.mrf.mxu2  ;;  %3849 = vmatmul.bf16.gmra.mxu3 %v18272_v27  ;;  %9323 = vmatmul.msk.bf16.gmra.mxu1 %vm2140_vm2, %v18176_v46  ;;  %18337 = vst [vmem:[#allocation136_spill] sm:$0xff] %v13378_v61 }
 0x502   :  { %4654 = vmatmul.bf16.gmra.mxu0 %v18284_v55  ;;  %v13381_v9 = vadd.f32 %v3580_v40, %v3457_v62  ;;  %5011 = vmatpush.bf16.msra.mxu1 %v5000_v7  ;;  %v1736_v56 = vmax.f32 %v1590_v21, 0.0 }
 0x504   :  { %18338 = vst [vmem:[#allocation206_spill] sm:$0xff] %v13381_v9  ;;  %v3248_v33 = vpop.f32.mrf.mxu3  ;;  %v1880_v11 = vpack.c.bf16 %v1736_v56, %v1736_v56 }
 0x505   :  { %v13392_v21 = vadd.f32 %v3248_v33, %v13049_v63 }
 0x506   :  { %3499 = vmatmul.bf16.gmra.mxu2 %v18339_v13  ;;  %v13386_v49 = vpop.f32.mrf.mxu1  ;;  %v4991_v28 = vunpack.c.l.b16 %v1880_v11 }
 0x507   :  { %18340 = vst [vmem:[#allocation207_spill] sm:$0xff] %v13386_v49  ;;  %v1591_v60 = vpop.f32.mrf.mxu0 }
 0x508   :  { %v1592_v32 = vadd.f32 %v13157_v38, %v1591_v60  ;;  %18342 = vst [vmem:[#allocation209_spill] sm:$0xff] %v13392_v21 }
 0x509   :  { %v13389_v44 = vpop.f32.mrf.mxu2 }
 0x50a   :  { %18341 = vst [vmem:[#allocation208_spill] sm:$0xff] %v13389_v44  ;;  %v1737_v4 = vmax.f32 %v1592_v32, 0.0 }
 0x50c   :  { %v1881_v40 = vpack.c.bf16 %v1737_v4, %v1737_v4  ;;  %v3250_v62 = vpop.f32.mrf.mxu3 }
 0x50d   :  { %v13395_v7 = vadd.f32 %v3250_v62, %v13073_v24  ;;  %v18347_v24 = vld [vmem:[#allocation50_spill] sm:$0xff] }
 0x50e   :  { %v4992_v22 = vunpack.c.l.b16 %v1881_v40  ;;  %v13397_v54 = vpop.f32.mrf.mxu1 }
 0x50f   :  { %18343 = vst [vmem:[#allocation210_spill] sm:$0xff] %v13395_v7  ;;  %v13401_v49 = vpop.f32.mrf.mxu0 }
 0x510   :  { %18344 = vst [vmem:[#allocation211_spill] sm:$0xff] %v13397_v54  ;;  %v13403_v60 = vpack.c.b16 %v4992_v22, %v4991_v28 }
 0x511   :  { %18345 = vst [vmem:[#allocation212_spill] sm:$0xff] %v13401_v49  ;;  %v13405_v32 = vpop.f32.mrf.mxu2  ;;  %3854 = vmatmul.bf16.gmra.mxu3 %v18284_v55  ;;  %9324 = vmatmul.msk.bf16.gmra.mxu1 %vm2140_vm2, %v18181_v29 }
 0x512   :  { %18346 = vst [vmem:[#allocation213_spill] sm:$0xff] %v13405_v32  ;;  %4659 = vmatmul.bf16.gmra.mxu0 %v18295_v57 }
 0x514   :  { %v13411_v63 = vpop.f32.mrf.mxu3 }
 0x516   :  { %3504 = vmatmul.bf16.gmra.mxu2 %v18347_v24  ;;  %v13414_v33 = vpop.f32.mrf.mxu1 }
 0x517   :  { %18348 = vst [vmem:[#allocation214_spill] sm:$0xff] %v13414_v33  ;;  %v13416_v11 = vpop.f32.mrf.mxu0 }
 0x518   :  { %18349 = vst [vmem:[#allocation215_spill] sm:$0xff] %v13416_v11 }
 0x519   :  { %v13418_v4 = vpop.f32.mrf.mxu2 }
 0x51a   :  { %18350 = vst [vmem:[#allocation216_spill] sm:$0xff] %v13418_v4 }
 0x51c   :  { %v3255_v28 = vpop.f32.mrf.mxu3 }
 0x51e   :  { %v13420_v22 = vpop.f32.mrf.mxu1 }
 0x51f   :  { %18351 = vst [vmem:[#allocation217_spill] sm:$0xff] %v13420_v22  ;;  %v13422_v40 = vpop.f32.mrf.mxu0 }
 0x520   :  { %18352 = vst [vmem:[#allocation218_spill] sm:$0xff] %v13422_v40  ;;  %v10826_v62 = vpop.permute.xlu2 %10825 }
 0x521   :  { %v13424_v56 = vpop.f32.mrf.mxu2  ;;  %3859 = vmatmul.bf16.gmra.mxu3 %v18295_v57  ;;  %9325 = vmatmul.msk.bf16.gmra.mxu1 %vm2140_vm2, %v18194_v53  ;;  %v10828_v21 = vunpack.i.h.bf16 %v10826_v62  ;;  %v10827_v7 = vunpack.i.l.bf16 %v10826_v62 }
 0x522   :  { %18353 = vst [vmem:[#allocation219_spill] sm:$0xff] %v13424_v56  ;;  %4664 = vmatmul.bf16.gmra.mxu0 %v18302_v35  ;;  %v18355_v56 = vld [vmem:[#allocation56_spill] sm:$0xff] }
 0x523   :  { %v13432_v33 = vsel %vm2536_vm3, %v13224_v23, %v10827_v7  ;;  %v13436_v28 = vsel %vm2536_vm3, %v13237_v8, %v10828_v21  ;;  %v18359_v23 = vld [vmem:[#allocation112_spill] sm:$0xff] }
 0x524   :  { %v13438_v22 = vpop.f32.mrf.mxu3  ;;  %v18360_v7 = vld [vmem:[#allocation152_spill] sm:$0xff] }
 0x525   :  { %18354 = vst [vmem:[#allocation220_spill] sm:$0xff] %v13438_v22  ;;  %v3154_v44 = vadd.f32 %v18360_v7, %v18359_v23 }
 0x526   :  { %3509 = vmatmul.bf16.gmra.mxu2 %v18355_v56  ;;  %v13443_v20 = vpop.f32.mrf.mxu1 }
 0x527   :  { %18356 = vst [vmem:[#allocation221_spill] sm:$0xff] %v13443_v20  ;;  %v13445_v62 = vpop.f32.mrf.mxu0 }
 0x528   :  { %18357 = vst [vmem:[#allocation222_spill] sm:$0xff] %v13445_v62 }
 0x529   :  { %v13447_v4 = vpop.f32.mrf.mxu2  ;;  %v10821_v32 = vpop.permute.xlu1 %10820 }
 0x52a   :  { %18358 = vst [vmem:[#allocation223_spill] sm:$0xff] %v13447_v4  ;;  %v10823_v61 = vunpack.i.h.bf16 %v10821_v32  ;;  %v10822_v8 = vunpack.i.l.bf16 %v10821_v32 }
 0x52c   :  { %v13451_v21 = vpop.f32.mrf.mxu3  ;;  %v13454_v9 = vsel %vm2536_vm3, %v3154_v44, %v10822_v8  ;;  %v13458_v54 = vsel %vm2536_vm3, %v13213_v31, %v10823_v61  ;;  %v18365_v31 = vld [vmem:[#allocation64_spill] sm:$0xff] }
 0x52d   :  { %18361 = vst [vmem:[#allocation112_spill] sm:$0xff] %v13451_v21 }
 0x52e   :  { %v13462_v62 = vpop.f32.mrf.mxu1 }
 0x52f   :  { %18362 = vst [vmem:[#allocation152_spill] sm:$0xff] %v13462_v62  ;;  %v13464_v4 = vpop.f32.mrf.mxu0 }
 0x530   :  { %18363 = vst [vmem:[#allocation224_spill] sm:$0xff] %v13464_v4  ;;  %v18373_v4 = vld [vmem:[#allocation71_spill] sm:$0xff] }
 0x531   :  { %v13466_v40 = vpop.f32.mrf.mxu2  ;;  %3864 = vmatmul.bf16.gmra.mxu3 %v18302_v35  ;;  %9326 = vmatmul.msk.bf16.gmra.mxu1 %vm2140_vm2, %v18281_v6 }
 0x532   :  { %18364 = vst [vmem:[#allocation225_spill] sm:$0xff] %v13466_v40  ;;  %4669 = vmatmul.bf16.gmra.mxu0 %v18305_v2 }
 0x534   :  { %v13472_v44 = vpop.f32.mrf.mxu3 }
 0x536   :  { %3514 = vmatmul.bf16.gmra.mxu2 %v18365_v31  ;;  %v3605_v61 = vpop.f32.mrf.mxu1 }
 0x537   :  { %v13475_v32 = vpop.f32.mrf.mxu0 }
 0x538   :  { %18366 = vst [vmem:[#allocation226_spill] sm:$0xff] %v13475_v32 }
 0x539   :  { %v13477_v23 = vpop.f32.mrf.mxu2 }
 0x53a   :  { %18367 = vst [vmem:[#allocation227_spill] sm:$0xff] %v13477_v23 }
 0x53c   :  { %v13479_v7 = vpop.f32.mrf.mxu3 }
 0x53d   :  { %18368 = vst [vmem:[#allocation228_spill] sm:$0xff] %v13479_v7  ;;  %v18480_v7 = vld [vmem:[#allocation26_spill] sm:$0xff] }
 0x53e   :  { %v13481_v8 = vpop.f32.mrf.mxu1 }
 0x53f   :  { %18369 = vst [vmem:[#allocation229_spill] sm:$0xff] %v13481_v8  ;;  %v13483_v20 = vpop.f32.mrf.mxu0 }
 0x540   :  { %18370 = vst [vmem:[#allocation230_spill] sm:$0xff] %v13483_v20 }
 0x541   :  { %v13485_v62 = vpop.f32.mrf.mxu2  ;;  %3869 = vmatmul.bf16.gmra.mxu3 %v18305_v2  ;;  %9327 = vmatmul.msk.bf16.gmra.mxu1 %vm2140_vm2, %v18214_v12 }
 0x542   :  { %18371 = vst [vmem:[#allocation231_spill] sm:$0xff] %v13485_v62  ;;  %4674 = vmatmul.bf16.gmra.mxu0 %v18310_v52 }
 0x544   :  { %v13491_v40 = vpop.f32.mrf.mxu3 }
 0x545   :  { %18372 = vst [vmem:[#allocation232_spill] sm:$0xff] %v13491_v40 }
 0x546   :  { %3519 = vmatmul.bf16.gmra.mxu2 %v18373_v4  ;;  %v13494_v23 = vpop.f32.mrf.mxu1 }
 0x547   :  { %18374 = vst [vmem:[#allocation233_spill] sm:$0xff] %v13494_v23  ;;  %v13496_v11 = vpop.f32.mrf.mxu0 }
 0x548   :  { %18375 = vst [vmem:[#allocation234_spill] sm:$0xff] %v13496_v11  ;;  %v10831_v8 = vpop.permute.xlu0 %10830 }
 0x549   :  { %v13498_v49 = vpop.f32.mrf.mxu2  ;;  %v10833_v20 = vunpack.i.h.bf16 %v10831_v8  ;;  %v10832_v62 = vunpack.i.l.bf16 %v10831_v8  ;;  %v18381_v8 = vld [vmem:[#allocation13_spill] sm:$0xff] }
 0x54a   :  { %18376 = vst [vmem:[#allocation235_spill] sm:$0xff] %v13498_v49 }
 0x54b   :  { %v13502_v32 = vsel %vm2536_vm3, %v13248_v50, %v10832_v62  ;;  %v13506_v12 = vsel %vm2536_vm3, %v13257_v16, %v10833_v20  ;;  %v13521_v50 = vadd.f32 %v13239_v10, %v12855_v17  ;;  %v18388_v62 = vld [vmem:[#allocation16_spill] sm:$0xff] }
 0x54c   :  { %v13508_v40 = vpop.f32.mrf.mxu3 }
 0x54d   :  { %18379 = vst [vmem:[#allocation238_spill] sm:$0xff] %v13521_v50 }
 0x54e   :  { %v13514_v11 = vpop.f32.mrf.mxu1 }
 0x54f   :  { %v13512_v6 = vpop.f32.mrf.mxu0  ;;  %18378 = vst [vmem:[#allocation237_spill] sm:$0xff] %v13514_v11 }
 0x550   :  { %18377 = vst [vmem:[#allocation236_spill] sm:$0xff] %v13512_v6 }
 0x551   :  { %v3482_v49 = vpop.f32.mrf.mxu2  ;;  %3874 = vmatmul.bf16.gmra.mxu3 %v18310_v52  ;;  %9328 = vmatmul.msk.bf16.gmra.mxu1 %vm2140_vm2, %v18223_v43 }
 0x552   :  { %4679 = vmatmul.bf16.gmra.mxu0 %v18314_v51  ;;  %v13524_v16 = vadd.f32 %v3605_v61, %v3482_v49 }
 0x554   :  { %18380 = vst [vmem:[#allocation239_spill] sm:$0xff] %v13524_v16  ;;  %v13526_v20 = vpop.f32.mrf.mxu3 }
 0x556   :  { %3524 = vmatmul.bf16.gmra.mxu2 %v18381_v8  ;;  %v13535_v6 = vpop.f32.mrf.mxu1 }
 0x557   :  { %v13531_v23 = vpop.f32.mrf.mxu0  ;;  %18384 = vst [vmem:[#allocation242_spill] sm:$0xff] %v13535_v6 }
 0x558   :  { %18382 = vst [vmem:[#allocation240_spill] sm:$0xff] %v13531_v23  ;;  %v18396_v23 = vld [vmem:[#allocation2_spill] sm:$0xff] }
 0x559   :  { %v13533_v11 = vpop.f32.mrf.mxu2 }
 0x55a   :  { %18383 = vst [vmem:[#allocation241_spill] sm:$0xff] %v13533_v11 }
 0x55c   :  { %v13537_v43 = vpop.f32.mrf.mxu3 }
 0x55e   :  { %v13546_v49 = vpop.f32.mrf.mxu1 }
 0x55f   :  { %v13539_v17 = vpop.f32.mrf.mxu0  ;;  %18387 = vst [vmem:[#allocation245_spill] sm:$0xff] %v13546_v49 }
 0x560   :  { %18385 = vst [vmem:[#allocation243_spill] sm:$0xff] %v13539_v17 }
 0x561   :  { %v13541_v10 = vpop.f32.mrf.mxu2  ;;  %3879 = vmatmul.bf16.gmra.mxu3 %v18314_v51  ;;  %4219 = vmatmul.bf16.vlgmr.msrb.gmra.mxu1 %v18232_v25 }
 0x562   :  { %18386 = vst [vmem:[#allocation244_spill] sm:$0xff] %v13541_v10  ;;  %4684 = vmatmul.bf16.gmra.mxu0 %v18319_v45 }
 0x564   :  { %v13548_v61 = vpop.f32.mrf.mxu3 }
 0x566   :  { %3529 = vmatmul.bf16.gmra.mxu2 %v18388_v62  ;;  %v13557_v17 = vpop.f32.mrf.mxu1 }
 0x567   :  { %v13551_v11 = vpop.f32.mrf.mxu0  ;;  %18392 = vst [vmem:[#allocation249_spill] sm:$0xff] %v13557_v17 }
 0x568   :  { %18389 = vst [vmem:[#allocation246_spill] sm:$0xff] %v13551_v11 }
 0x569   :  { %v13553_v6 = vpop.f32.mrf.mxu2 }
 0x56a   :  { %18390 = vst [vmem:[#allocation247_spill] sm:$0xff] %v13553_v6 }
 0x56c   :  { %v13555_v50 = vpop.f32.mrf.mxu3 }
 0x56d   :  { %18391 = vst [vmem:[#allocation248_spill] sm:$0xff] %v13555_v50 }
 0x56e   :  { %v13570_v11 = vpop.f32.mrf.mxu1 }
 0x56f   :  { %v13564_v49 = vpop.f32.mrf.mxu0  ;;  %18397 = vst [vmem:[#allocation253_spill] sm:$0xff] %v13570_v11 }
 0x570   :  { %18394 = vst [vmem:[#allocation251_spill] sm:$0xff] %v13564_v49 }
 0x571   :  { %v13559_v10 = vpop.f32.mrf.mxu2  ;;  %3884 = vmatmul.bf16.gmra.mxu3 %v18319_v45  ;;  %4224 = vmatmul.bf16.gmra.mxu1 %v18239_v1 }
 0x572   :  { %18393 = vst [vmem:[#allocation250_spill] sm:$0xff] %v13559_v10  ;;  %4689 = vmatmul.bf16.gmra.mxu0 %v18326_v14 }
 0x574   :  { %v13566_v16 = vpop.f32.mrf.mxu3 }
 0x575   :  { %18395 = vst [vmem:[#allocation252_spill] sm:$0xff] %v13566_v16  ;;  %v18404_v16 = vld [vmem:[#allocation4_spill] sm:$0xff] }
 0x576   :  { %9329 = vmatmul.msk.bf16.vlgmr.msrb.gmra.mxu2 %vm2140_vm2, %v18396_v23  ;;  %v13581_v1 = vpop.f32.mrf.mxu1 }
 0x577   :  { %v13576_v10 = vpop.f32.mrf.mxu0  ;;  %18402 = vst [vmem:[#allocation258_spill] sm:$0xff] %v13581_v1 }
 0x578   :  { %18400 = vst [vmem:[#allocation256_spill] sm:$0xff] %v13576_v10 }
 0x579   :  { %v13572_v6 = vpop.f32.mrf.mxu2 }
 0x57a   :  { %18398 = vst [vmem:[#allocation254_spill] sm:$0xff] %v13572_v6 }
 0x57c   :  { %v13574_v17 = vpop.f32.mrf.mxu3 }
 0x57d   :  { %18399 = vst [vmem:[#allocation255_spill] sm:$0xff] %v13574_v17 }
 0x57e   :  { %v13593_v10 = vpop.f32.mrf.mxu1 }
 0x57f   :  { %v13589_v11 = vpop.f32.mrf.mxu0  ;;  %18407 = vst [vmem:[#allocation262_spill] sm:$0xff] %v13593_v10 }
 0x580   :  { %18405 = vst [vmem:[#allocation260_spill] sm:$0xff] %v13589_v11  ;;  %v18412_v11 = vld [vmem:[#allocation6_spill] sm:$0xff] }
 0x581   :  { %v13578_v25 = vpop.f32.mrf.mxu2  ;;  %3889 = vmatmul.bf16.gmra.mxu3 %v18326_v14  ;;  %4229 = vmatmul.bf16.gmra.mxu1 %v18244_v18 }
 0x582   :  { %18401 = vst [vmem:[#allocation257_spill] sm:$0xff] %v13578_v25  ;;  %4694 = vmatmul.bf16.gmra.mxu0 %v18330_v30 }
 0x584   :  { %v13585_v49 = vpop.f32.mrf.mxu3 }
 0x585   :  { %18403 = vst [vmem:[#allocation259_spill] sm:$0xff] %v13585_v49 }
 0x586   :  { %9330 = vmatmul.msk.bf16.gmra.mxu2 %vm2140_vm2, %v18404_v16  ;;  %v3630_v18 = vpop.f32.mrf.mxu1 }
 0x587   :  { %v13597_v17 = vpop.f32.mrf.mxu0 }
 0x588   :  { %18409 = vst [vmem:[#allocation264_spill] sm:$0xff] %v13597_v17 }
 0x589   :  { %v13591_v6 = vpop.f32.mrf.mxu2 }
 0x58a   :  { %18406 = vst [vmem:[#allocation261_spill] sm:$0xff] %v13591_v6 }
 0x58c   :  { %v13595_v25 = vpop.f32.mrf.mxu3 }
 0x58d   :  { %18408 = vst [vmem:[#allocation263_spill] sm:$0xff] %v13595_v25 }
 0x58e   :  { %v13614_v17 = vpop.f32.mrf.mxu1 }
 0x58f   :  { %v13610_v10 = vpop.f32.mrf.mxu0  ;;  %18415 = vst [vmem:[#allocation268_spill] sm:$0xff] %v13614_v17  ;;  %v18420_v17 = vld [vmem:[#allocation8_spill] sm:$0xff] }
 0x590   :  { %18414 = vst [vmem:[#allocation267_spill] sm:$0xff] %v13610_v10 }
 0x591   :  { %v13599_v1 = vpop.f32.mrf.mxu2  ;;  %3894 = vmatmul.bf16.gmra.mxu3 %v18330_v30  ;;  %4234 = vmatmul.bf16.gmra.mxu1 %v18250_v59  ;;  %v18416_v59 = vld [vmem:[#allocation169_spill] sm:$0xff] }
 0x592   :  { %18410 = vst [vmem:[#allocation265_spill] sm:$0xff] %v13599_v1  ;;  %4699 = vmatmul.bf16.gmra.mxu0 %v18339_v13 }
 0x594   :  { %v13604_v49 = vpop.f32.mrf.mxu3 }
 0x595   :  { %18411 = vst [vmem:[#allocation266_spill] sm:$0xff] %v13604_v49  ;;  %v13620_v49 = vadd.f32 %v13345_v37, %v18416_v59 }
 0x596   :  { %9331 = vmatmul.msk.bf16.gmra.mxu2 %vm2140_vm2, %v18412_v11 }
 0x597   :  { %18417 = vst [vmem:[#allocation169_spill] sm:$0xff] %v13620_v49  ;;  %v13629_v53 = vpop.f32.mrf.mxu0 }
 0x598   :  { %18419 = vst [vmem:[#allocation270_spill] sm:$0xff] %v13629_v53  ;;  %v10587_v53 = vld [vmem:[%s17750_s4 + $0x20] sm:$0xff] }
 0x599   :  { %v13608_v6 = vpop.f32.mrf.mxu2 }
 0x59a   :  { %18413 = vst [vmem:[#allocation6_spill] sm:$0xff] %v13608_v6 }
 0x59c   :  { %v13612_v25 = vpop.f32.mrf.mxu3 }
 0x59f   :  { %v13639_v37 = vpop.f32.mrf.mxu0 }
 0x5a0   :  { %18423 = vst [vmem:[#allocation272_spill] sm:$0xff] %v13639_v37  ;;  %v10588_v37 = vld [vmem:[%s17750_s4 + $0x28] sm:$0xff] }
 0x5a1   :  { %v3507_v1 = vpop.f32.mrf.mxu2  ;;  %3899 = vmatmul.bf16.gmra.mxu3 %v18339_v13  ;;  %4239 = vmatmul.bf16.gmra.mxu1 %v18258_v42  ;;  %v13635_v42 = vpop.f32.mrf.mxu1 }
 0x5a2   :  { %4704 = vmatmul.bf16.gmra.mxu0 %v18347_v24  ;;  %v13623_v50 = vadd.f32 %v3630_v18, %v3507_v1  ;;  %18422 = vst [vmem:[#allocation271_spill] sm:$0xff] %v13635_v42  ;;  %v10590_v1 = vld [vmem:[%s17750_s4 + $0x38] sm:$0xff]  ;;  %v18426_v42 = vld [vmem:[#allocation10_spill] sm:$0xff] }
 0x5a3   :  { %5737 = vmatpush.bf16.msra.mxu0 %v10590_v1 }
 0x5a4   :  { %18418 = vst [vmem:[#allocation269_spill] sm:$0xff] %v13623_v50  ;;  %v13625_v6 = vpop.f32.mrf.mxu3 }
 0x5a6   :  { %9332 = vmatmul.msk.bf16.gmra.mxu2 %vm2140_vm2, %v18420_v17 }
 0x5a7   :  { %v13658_v49 = vpop.f32.mrf.mxu0 }
 0x5a8   :  { %18427 = vst [vmem:[#allocation10_spill] sm:$0xff] %v13658_v49 }
 0x5a9   :  { %v13633_v13 = vpop.f32.mrf.mxu2  ;;  %v13649_v10 = vpop.f32.mrf.mxu1 }
 0x5aa   :  { %18421 = vst [vmem:[#allocation8_spill] sm:$0xff] %v13633_v13 }
 0x5ab   :  { %18425 = vst [vmem:[#allocation274_spill] sm:$0xff] %v13649_v10 }
 0x5ac   :  { %v13637_v59 = vpop.f32.mrf.mxu3 }
 0x5b1   :  { %v13641_v18 = vpop.f32.mrf.mxu2  ;;  %3904 = vmatmul.bf16.gmra.mxu3 %v18347_v24  ;;  %4244 = vmatmul.bf16.gmra.mxu1 %v18264_v19  ;;  %v13667_v1 = vpop.f32.mrf.mxu1 }
 0x5b2   :  { %18424 = vst [vmem:[#allocation273_spill] sm:$0xff] %v13641_v18  ;;  %4709 = vmatmul.bf16.gmra.mxu0 %v18355_v56  ;;  %v10589_v18 = vld [vmem:[%s17750_s4 + $0x30] sm:$0xff] }
 0x5b3   :  { %5738 = vmatpush.bf16.msra.mxu0 %v10589_v18  ;;  %18430 = vst [vmem:[#allocation277_spill] sm:$0xff] %v13667_v1  ;;  %v10586_v18 = vld [vmem:[%s17750_s4 + $0x18] sm:$0xff] }
 0x5b4   :  { %v13651_v13 = vpop.f32.mrf.mxu3 }
 0x5b6   :  { %9333 = vmatmul.msk.bf16.gmra.mxu2 %vm2140_vm2, %v18426_v42 }
 0x5b7   :  { %5739 = vmatpush.bf16.msra.mxu0 %v10588_v37  ;;  %v13680_v37 = vpop.f32.mrf.mxu0 }
 0x5b8   :  { %18432 = vst [vmem:[#allocation279_spill] sm:$0xff] %v13680_v37 }
 0x5b9   :  { %v13660_v50 = vpop.f32.mrf.mxu2 }
 0x5ba   :  { %18428 = vst [vmem:[#allocation275_spill] sm:$0xff] %v13660_v50  ;;  %v18434_v50 = vld [vmem:[#allocation12_spill] sm:$0xff] }
 0x5bb   :  { %5740 = vmatpush.bf16.msra.mxu0 %v10587_v53  ;;  %v10585_v53 = vld [vmem:[%s17750_s4 + $0x10] sm:$0xff] }
 0x5bc   :  { %v13665_v10 = vpop.f32.mrf.mxu3 }
 0x5bd   :  { %18429 = vst [vmem:[#allocation276_spill] sm:$0xff] %v13665_v10  ;;  %v10584_v10 = vld [vmem:[%s17750_s4 + $0x8] sm:$0xff] }
 0x5bf   :  { %5741 = vmatpush.bf16.msra.mxu0 %v10586_v18  ;;  %v13702_v24 = vpop.f32.mrf.mxu0 }
 0x5c0   :  { %18439 = vst [vmem:[#allocation282_spill] sm:$0xff] %v13702_v24 }
 0x5c1   :  { %v13672_v19 = vpop.f32.mrf.mxu2  ;;  %3909 = vmatmul.bf16.gmra.mxu3 %v18355_v56  ;;  %4249 = vmatmul.bf16.gmra.mxu1 %v18272_v27  ;;  %v18435_v27 = vld [vmem:[#allocation178_spill] sm:$0xff] }
 0x5c2   :  { %18431 = vst [vmem:[#allocation278_spill] sm:$0xff] %v13672_v19  ;;  %4714 = vmatmul.bf16.gmra.mxu0 %v18365_v31  ;;  %v3643_v19 = vpop.f32.mrf.mxu1  ;;  %v13694_v37 = vadd.f32 %v13411_v63, %v18435_v27  ;;  %v18441_v27 = vld [vmem:[#allocation15_spill] sm:$0xff] }
 0x5c3   :  { %5742 = vmatpush.bf16.msra.mxu0 %v10585_v53  ;;  %v10583_v53 = vld [vmem:[%s17750_s4] sm:$0xff] }
 0x5c4   :  { %v13682_v1 = vpop.f32.mrf.mxu3  ;;  %18436 = vst [vmem:[#allocation12_spill] sm:$0xff] %v13694_v37 }
 0x5c5   :  { %18433 = vst [vmem:[#allocation280_spill] sm:$0xff] %v13682_v1 }
 0x5c6   :  { %9334 = vmatmul.msk.bf16.gmra.mxu2 %vm2140_vm2, %v18434_v50 }
 0x5c7   :  { %5743 = vmatpush.bf16.msra.mxu0 %v10584_v10  ;;  %v13716_v63 = vpop.f32.mrf.mxu0 }
 0x5c8   :  { %18442 = vst [vmem:[#allocation15_spill] sm:$0xff] %v13716_v63 }
 0x5c9   :  { %v3520_v49 = vpop.f32.mrf.mxu2 }
 0x5ca   :  { %v13696_v1 = vadd.f32 %v3643_v19, %v3520_v49 }
 0x5cb   :  { %5744 = vmatpush.bf16.msra.mxu0 %v10583_v53 }
 0x5cc   :  { %18437 = vst [vmem:[#allocation178_spill] sm:$0xff] %v13696_v1  ;;  %v13698_v18 = vpop.f32.mrf.mxu3  ;;  %v18446_v1 = vld [vmem:[#allocation18_spill] sm:$0xff] }
 0x5cd   :  { %18438 = vst [vmem:[#allocation281_spill] sm:$0xff] %v13698_v18  ;;  %v18450_v18 = vld [vmem:[#allocation62_spill] sm:$0xff] }
 0x5cf   :  { %v13722_v56 = vpop.f32.mrf.mxu0 }
 0x5d0   :  { %18444 = vst [vmem:[#allocation285_spill] sm:$0xff] %v13722_v56 }
 0x5d1   :  { %v13707_v21 = vpop.f32.mrf.mxu2  ;;  %3914 = vmatmul.bf16.gmra.mxu3 %v18365_v31  ;;  %4254 = vmatmul.bf16.gmra.mxu1 %v18284_v55 }
 0x5d2   :  { %4719 = vmatmul.bf16.gmra.mxu0 %v18373_v4 }
 0x5d4   :  { %v13712_v19 = vpop.f32.mrf.mxu3 }
 0x5d5   :  { %18440 = vst [vmem:[#allocation283_spill] sm:$0xff] %v13712_v19  ;;  %v18449_v19 = vld [vmem:[#allocation61_spill] sm:$0xff] }
 0x5d6   :  { %9335 = vmatmul.msk.bf16.gmra.mxu2 %vm2140_vm2, %v18441_v27  ;;  %v18451_v55 = vpack.c.bf16 %v18449_v19, %v18450_v18  ;;  %v18459_v18 = vld [vmem:[#allocation69_spill] sm:$0xff] }
 0x5d7   :  { %v13735_v24 = vpop.f32.mrf.mxu0 }
 0x5d8   :  { %18447 = vst [vmem:[#allocation18_spill] sm:$0xff] %v13735_v24 }
 0x5d9   :  { %v13718_v10 = vpop.f32.mrf.mxu2 }
 0x5dc   :  { %v13720_v49 = vpop.f32.mrf.mxu3 }
 0x5dd   :  { %18443 = vst [vmem:[#allocation284_spill] sm:$0xff] %v13720_v49 }
 0x5e1   :  { %v13724_v37 = vpop.f32.mrf.mxu2  ;;  %3919 = vmatmul.bf16.gmra.mxu3 %v18373_v4  ;;  %4259 = vmatmul.bf16.gmra.mxu1 %v18295_v57  ;;  %v13745_v57 = vpop.f32.mrf.mxu0 }
 0x5e2   :  { %4724 = vmatmul.bf16.gmra.mxu0 %v18381_v8  ;;  %18453 = vst [vmem:[#allocation62_spill] sm:$0xff] %v13745_v57 }
 0x5e4   :  { %v13729_v53 = vpop.f32.mrf.mxu3 }
 0x5e5   :  { %18445 = vst [vmem:[#allocation286_spill] sm:$0xff] %v13729_v53 }
 0x5e6   :  { %9336 = vmatmul.msk.bf16.gmra.mxu2 %vm2140_vm2, %v18446_v1 }
 0x5e9   :  { %v13733_v63 = vpop.f32.mrf.mxu2  ;;  %v13753_v24 = vpop.f32.mrf.mxu0 }
 0x5ea   :  { %18456 = vst [vmem:[#allocation290_spill] sm:$0xff] %v13753_v24 }
 0x5ec   :  { %v13737_v49 = vpop.f32.mrf.mxu3 }
 0x5ed   :  { %18448 = vst [vmem:[#allocation287_spill] sm:$0xff] %v13737_v49  ;;  %v18466_v49 = vld [vmem:[#allocation27_spill] sm:$0xff] }
 0x5f1   :  { %v3532_v56 = vpop.f32.mrf.mxu2  ;;  %3924 = vmatmul.bf16.gmra.mxu3 %v18381_v8  ;;  %v18458_v8 = vld [vmem:[#allocation70_spill] sm:$0xff]  ;;  %v13765_v57 = vpop.f32.mrf.mxu0 }
 0x5f2   :  { %5745 = vmatmul.bf16.vlgmr.msra.gmra.mxu0 %v18451_v55  ;;  %v18460_v55 = vpack.c.bf16 %v18458_v8, %v18459_v18  ;;  %18462 = vst [vmem:[#allocation69_spill] sm:$0xff] %v13765_v57  ;;  %v1580_v18 = vadd.f32 %v13157_v38, %v13324_v36  ;;  %v1572_v36 = vadd.f32 %v13157_v38, %v13296_v15 }
 0x5f4   :  { %v13743_v4 = vpop.f32.mrf.mxu3 }
 0x5f5   :  { %18452 = vst [vmem:[#allocation61_spill] sm:$0xff] %v13743_v4 }
 0x5f6   :  { %9337 = vmatmul.msk.bf16.gmra.mxu2 %vm2140_vm2, %v18282_v58 }
 0x5f9   :  { %v13749_v53 = vpop.f32.mrf.mxu2  ;;  %v13783_v57 = vpop.f32.mrf.mxu0 }
 0x5fa   :  { %18454 = vst [vmem:[#allocation288_spill] sm:$0xff] %v13749_v53 }
 0x5fc   :  { %v13751_v31 = vpop.f32.mrf.mxu3 }
 0x5fd   :  { %18455 = vst [vmem:[#allocation289_spill] sm:$0xff] %v13751_v31 }
 0x601   :  { %v13755_v56 = vpop.f32.mrf.mxu2  ;;  %3929 = vmatmul.bf16.gmra.mxu3 %v18388_v62  ;;  %v18465_v62 = vld [vmem:[#allocation145_spill] sm:$0xff] }
 0x602   :  { %18457 = vst [vmem:[#allocation291_spill] sm:$0xff] %v13755_v56  ;;  %5750 = vmatmul.bf16.gmra.mxu0 %v18460_v55  ;;  %v18467_v8 = vpack.c.bf16 %v18465_v62, %v18466_v49  ;;  %v1582_v55 = vadd.f32 %v13157_v38, %v13341_v47  ;;  %v1577_v62 = vadd.f32 %v13157_v38, %v13318_v34 }
 0x603   :  { %18468 = vst [vmem:[#allocation145_spill] sm:$0xff] %v13783_v57  ;;  %v1570_v47 = vadd.f32 %v13157_v38, %v13284_v26  ;;  %v1565_v34 = vadd.f32 %v13157_v38, %v13262_v41 }
 0x604   :  { %v13761_v19 = vpop.f32.mrf.mxu3  ;;  %v1733_v49 = vmax.f32 %v1582_v55, 0.0  ;;  %v1731_v57 = vmax.f32 %v1577_v62, 0.0 }
 0x605   :  { %18461 = vst [vmem:[#allocation70_spill] sm:$0xff] %v13761_v19  ;;  %v1728_v55 = vmax.f32 %v1570_v47, 0.0  ;;  %v1726_v41 = vmax.f32 %v1565_v34, 0.0  ;;  %v18475_v47 = vld [vmem:[#allocation59_spill] sm:$0xff] }
 0x606   :  { %9338 = vmatmul.msk.bf16.gmra.mxu2 %vm2140_vm2, %v18290_v48  ;;  %v1875_v56 = vpack.c.bf16 %v1731_v57, %v1731_v57 }
 0x609   :  { %v13767_v4 = vpop.f32.mrf.mxu2 }
 0x60c   :  { %v13769_v31 = vpop.f32.mrf.mxu3 }
 0x60d   :  { %18463 = vst [vmem:[#allocation292_spill] sm:$0xff] %v13769_v31 }
 0x611   :  { %v13771_v24 = vpop.f32.mrf.mxu2  ;;  %9352 = vmatmul.msk.bf16.vlgmr.msra.gmra.mxu3 %vm2140_vm2, %v18396_v23  ;;  %v1575_v23 = vadd.f32 %v13157_v38, %v13300_v0  ;;  %v13801_v0 = vpop.f32.mrf.mxu0 }
 0x612   :  { %18464 = vst [vmem:[#allocation293_spill] sm:$0xff] %v13771_v24  ;;  %5755 = vmatmul.bf16.gmra.mxu0 %v18467_v8  ;;  %5141 = vmatpush.bf16.msra.mxu3 %v13403_v60  ;;  %v1732_v60 = vmax.f32 %v1580_v18, 0.0  ;;  %v1567_v18 = vadd.f32 %v13157_v38, %v13275_v5  ;;  %v18474_v5 = vld [vmem:[#allocation149_spill] sm:$0xff] }
 0x613   :  { %18472 = vst [vmem:[#allocation296_spill] sm:$0xff] %v13801_v0  ;;  %v1872_v0 = vpack.c.bf16 %v1728_v55, %v1728_v55  ;;  %v1870_v55 = vpack.c.bf16 %v1726_v41, %v1726_v41 }
 0x614   :  { %v13785_v31 = vpop.f32.mrf.mxu3  ;;  %v1876_v19 = vpack.c.bf16 %v1732_v60, %v1732_v60  ;;  %v18473_v60 = vld [vmem:[#allocation25_spill] sm:$0xff] }
 0x615   :  { %18469 = vst [vmem:[#allocation27_spill] sm:$0xff] %v13785_v31  ;;  %v1730_v31 = vmax.f32 %v1575_v23, 0.0  ;;  %v1560_v23 = vadd.f32 %v13157_v38, %v13241_v3  ;;  %v18478_v3 = vld [vmem:[#allocation184_spill] sm:$0xff] }
 0x616   :  { %9339 = vmatmul.msk.bf16.gmra.mxu2 %vm2140_vm2, %v18298_v39  ;;  %v1877_v39 = vpack.c.bf16 %v1733_v49, %v1733_v49  ;;  %v4987_v53 = vunpack.c.l.b16 %v1876_v19  ;;  %v1562_v49 = vadd.f32 %v13157_v38, %v18473_v60  ;;  %v1555_v24 = vadd.f32 %v13157_v38, %v18478_v3 }
 0x617   :  { %v1874_v26 = vpack.c.bf16 %v1730_v31, %v1730_v31  ;;  %v1724_v34 = vmax.f32 %v1560_v23, 0.0 }
 0x618   :  { %v4988_v15 = vunpack.c.l.b16 %v1877_v39  ;;  %v4986_v39 = vunpack.c.l.b16 %v1875_v56  ;;  %v1722_v3 = vmax.f32 %v1555_v24, 0.0 }
 0x619   :  { %v13793_v8 = vpop.f32.mrf.mxu2  ;;  %v4985_v31 = vunpack.c.l.b16 %v1874_v26  ;;  %v13824_v56 = vpop.f32.mrf.mxu0 }
 0x61a   :  { %18470 = vst [vmem:[#allocation294_spill] sm:$0xff] %v13793_v8  ;;  %v1729_v8 = vmax.f32 %v1572_v36, 0.0  ;;  %v18476_v36 = vpack.c.bf16 %v18474_v5, %v18475_v47  ;;  %v4999_v19 = vpack.c.b16 %v4988_v15, %v4987_v53  ;;  %v18482_v15 = vld [vmem:[#allocation182_spill] sm:$0xff] }
 0x61b   :  { %18481 = vst [vmem:[#allocation149_spill] sm:$0xff] %v13824_v56  ;;  %v4998_v53 = vpack.c.b16 %v4986_v39, %v4985_v31  ;;  %v1550_v47 = vadd.f32 %v13157_v38, %v18482_v15 }
 0x61c   :  { %v13799_v48 = vpop.f32.mrf.mxu3  ;;  %v1873_v57 = vpack.c.bf16 %v1729_v8, %v1729_v8  ;;  %5012 = vmatpush.bf16.msra.mxu1 %v4999_v19  ;;  %v4983_v8 = vunpack.c.l.b16 %v1872_v0 }
 0x61d   :  { %18471 = vst [vmem:[#allocation295_spill] sm:$0xff] %v13799_v48  ;;  %v1727_v48 = vmax.f32 %v1567_v18, 0.0  ;;  %v1725_v18 = vmax.f32 %v1562_v49, 0.0  ;;  %v1868_v49 = vpack.c.bf16 %v1724_v34, %v1724_v34  ;;  %v1720_v15 = vmax.f32 %v1550_v47, 0.0 }
 0x61e   :  { %v4984_v26 = vunpack.c.l.b16 %v1873_v57  ;;  %v4981_v57 = vunpack.c.l.b16 %v1870_v55  ;;  %v18487_v55 = vld [vmem:[#allocation67_spill] sm:$0xff] }
 0x61f   :  { %v1871_v5 = vpack.c.bf16 %v1727_v48, %v1727_v48  ;;  %v1869_v0 = vpack.c.bf16 %v1725_v18, %v1725_v18  ;;  %v18486_v18 = vld [vmem:[#allocation147_spill] sm:$0xff] }
 0x620   :  { %5013 = vmatpush.bf16.msra.mxu1 %v4998_v53  ;;  %v4997_v56 = vpack.c.b16 %v4984_v26, %v4983_v8 }
 0x621   :  { %v3955_v62 = vpop.f32.mrf.mxu2  ;;  %9353 = vmatmul.msk.bf16.gmra.mxu3 %vm2140_vm2, %v18404_v16  ;;  %v18479_v16 = vld [vmem:[#allocation23_spill] sm:$0xff]  ;;  %v4980_v34 = vunpack.c.l.b16 %v1869_v0 }
 0x622   :  { %5760 = vmatmul.bf16.gmra.mxu0 %v18476_v36  ;;  %v1557_v60 = vadd.f32 %v13157_v38, %v18479_v16  ;;  %v18483_v36 = vld [vmem:[#allocation183_spill] sm:$0xff]  ;;  %v3956_v41 = vadd.f32 %v3955_v62, %v13508_v40  ;;  %v13835_v40 = vpop.f32.mrf.mxu0  ;;  %v1864_v62 = vpack.c.bf16 %v1720_v15, %v1720_v15 }
 0x623   :  { %v1552_v19 = vadd.f32 %v13157_v38, %v18483_v36  ;;  %v1866_v38 = vpack.c.bf16 %v1722_v3, %v1722_v3  ;;  %18485 = vst [vmem:[#allocation184_spill] sm:$0xff] %v13835_v40 }
 0x624   :  { %v13816_v22 = vpop.f32.mrf.mxu3  ;;  %v1723_v23 = vmax.f32 %v1557_v60, 0.0  ;;  %5014 = vmatpush.bf16.msra.mxu1 %v4997_v56  ;;  %v4979_v60 = vunpack.c.l.b16 %v1868_v49  ;;  %v4975_v3 = vunpack.c.l.b16 %v1864_v62  ;;  %v18498_v62 = vld [vmem:[#allocation31_spill] sm:$0xff] }
 0x625   :  { %18477 = vst [vmem:[#allocation25_spill] sm:$0xff] %v13816_v22  ;;  %v4982_v22 = vunpack.c.l.b16 %v1871_v5  ;;  %v18488_v5 = vpack.c.bf16 %v18486_v18, %v18487_v55  ;;  %v4977_v26 = vunpack.c.l.b16 %v1866_v38 }
 0x626   :  { %9340 = vmatmul.msk.bf16.gmra.mxu2 %vm2140_vm2, %v18480_v7  ;;  %v1721_v7 = vmax.f32 %v1552_v19, 0.0  ;;  %v1867_v24 = vpack.c.bf16 %v1723_v23, %v1723_v23  ;;  %v4995_v47 = vpack.c.b16 %v4980_v34, %v4979_v60  ;;  %v3645_v19 = vpop.f32.mrf.mxu1  ;;  %4264 = vmatmul.bf16.gmra.mxu1 %v18302_v35  ;;  %v18495_v60 = vld [vmem:[#allocation172_spill] sm:$0xff] }
 0x627   :  { %v4996_v53 = vpack.c.b16 %v4982_v22, %v4981_v57  ;;  %v18490_v22 = vld [vmem:[#allocation29_spill] sm:$0xff]  ;;  %v13852_v0 = vadd.f32 %v3645_v19, %v13707_v21 }
 0x628   :  { %v1865_v8 = vpack.c.bf16 %v1721_v7, %v1721_v7  ;;  %v4978_v56 = vunpack.c.l.b16 %v1867_v24  ;;  %v18494_v21 = vld [vmem:[#allocation173_spill] sm:$0xff] }
 0x629   :  { %v3958_v16 = vpop.f32.mrf.mxu2  ;;  %5015 = vmatpush.bf16.msra.mxu1 %v4996_v53  ;;  %18492 = vst [vmem:[#allocation183_spill] sm:$0xff] %v13852_v0  ;;  %v18496_v34 = vpack.c.bf16 %v18494_v21, %v18495_v60  ;;  %v18511_v21 = vpack.c.bf16 %v13458_v54, %v13454_v9  ;;  %v18516_v9 = vpack.c.bf16 %v13436_v28, %v13432_v33 }
 0x62a   :  { %v3959_v48 = vadd.f32 %v3958_v16, %v13526_v20  ;;  %v4976_v16 = vunpack.c.l.b16 %v1865_v8  ;;  %v4994_v23 = vpack.c.b16 %v4978_v56, %v4977_v26  ;;  %v18522_v0 = vpack.c.bf16 %v13506_v12, %v13502_v32 }
 0x62c   :  { %v10834_v31 = vpack.i.bf16 %v3959_v48, %v3956_v41  ;;  %v13832_v39 = vpop.f32.mrf.mxu3  ;;  %v13849_v48 = vpop.f32.mrf.mxu0  ;;  %v4993_v57 = vpack.c.b16 %v4976_v16, %v4975_v3  ;;  %v18504_v3 = vld [vmem:[#allocation181_spill] sm:$0xff]  ;;  %v18505_v16 = vld [vmem:[#allocation180_spill] sm:$0xff] }
 0x62d   :  { %18484 = vst [vmem:[#allocation59_spill] sm:$0xff] %v13832_v39  ;;  %5016 = vmatpush.bf16.msra.mxu1 %v4995_v47 }
 0x62e   :  { %10835 = vrot.lane.b32.xlu1 %v10834_v31, %s11273_s3  ;;  %18491 = vst [vmem:[#allocation182_spill] sm:$0xff] %v13849_v48  ;;  %v3648_v38 = vpop.f32.mrf.mxu1 }
 0x62f   :  { %v13857_v24 = vadd.f32 %v3648_v38, %v13718_v10 }
 0x631   :  { %v3960_v20 = vpop.f32.mrf.mxu2  ;;  %9354 = vmatmul.msk.bf16.gmra.mxu3 %vm2140_vm2, %v18412_v11  ;;  %5017 = vmatpush.bf16.msra.mxu1 %v4994_v23  ;;  %18493 = vst [vmem:[#allocation147_spill] sm:$0xff] %v13857_v24 }
 0x632   :  { %5765 = vmatmul.bf16.gmra.mxu0 %v18488_v5  ;;  %v3961_v41 = vadd.f32 %v3960_v20, %v13537_v43  ;;  %v18517_v43 = vld [vmem:[#allocation44_spill] sm:$0xff] }
 0x634   :  { %v13842_v36 = vpop.f32.mrf.mxu3  ;;  %v13872_v10 = vpop.f32.mrf.mxu0 }
 0x635   :  { %18489 = vst [vmem:[#allocation23_spill] sm:$0xff] %v13842_v36  ;;  %5018 = vmatpush.bf16.msra.mxu1 %v4993_v57 }
 0x636   :  { %9341 = vmatmul.msk.bf16.gmra.mxu2 %vm2140_vm2, %v18490_v22  ;;  %v3650_v20 = vpop.f32.mrf.mxu1  ;;  %4269 = vmatmul.bf16.gmra.mxu1 %v18305_v2  ;;  %18497 = vst [vmem:[#allocation67_spill] sm:$0xff] %v13872_v10 }
 0x637   :  { %v13879_v55 = vadd.f32 %v3650_v20, %v13724_v37  ;;  %v18506_v37 = vpack.c.bf16 %v18504_v3, %v18505_v16 }
 0x639   :  { %v3963_v49 = vpop.f32.mrf.mxu2  ;;  %18500 = vst [vmem:[#allocation173_spill] sm:$0xff] %v13879_v55 }
 0x63a   :  { %v3964_v7 = vadd.f32 %v3963_v49, %v13548_v61 }
 0x63c   :  { %v10839_v31 = vpack.i.bf16 %v3964_v7, %v3961_v41  ;;  %v13854_v15 = vpop.f32.mrf.mxu3  ;;  %v13886_v56 = vpop.f32.mrf.mxu0 }
 0x63d   :  { %18502 = vst [vmem:[#allocation31_spill] sm:$0xff] %v13886_v56 }
 0x63e   :  { %10840 = vrot.lane.b32.xlu2 %v10839_v31, %s11273_s3  ;;  %v3653_v8 = vpop.f32.mrf.mxu1 }
 0x63f   :  { %v13884_v26 = vadd.f32 %v3653_v8, %v13733_v63  ;;  %v18507_v63 = vld [vmem:[#allocation34_spill] sm:$0xff]  ;;  %v18513_v8 = vld [vmem:[#allocation40_spill] sm:$0xff] }
 0x641   :  { %9355 = vmatmul.msk.bf16.gmra.mxu3 %vm2140_vm2, %v18420_v17  ;;  %v13864_v61 = vpop.f32.mrf.mxu2  ;;  %18501 = vst [vmem:[#allocation172_spill] sm:$0xff] %v13884_v26 }
 0x642   :  { %5770 = vmatmul.bf16.gmra.mxu0 %v18496_v34 }
 0x644   :  { %v13869_v53 = vpop.f32.mrf.mxu3  ;;  %v13902_v41 = vpop.f32.mrf.mxu0 }
 0x645   :  { %18508 = vst [vmem:[#allocation181_spill] sm:$0xff] %v13902_v41  ;;  %v18529_v41 = vld [vmem:[#allocation220_spill] sm:$0xff] }
 0x646   :  { %9342 = vmatmul.msk.bf16.gmra.mxu2 %vm2140_vm2, %v18498_v62  ;;  %v3655_v49 = vpop.f32.mrf.mxu1  ;;  %4274 = vmatmul.bf16.gmra.mxu1 %v18310_v52 }
 0x649   :  { %v13876_v18 = vpop.f32.mrf.mxu2 }
 0x64a   :  { %18499 = vst [vmem:[#allocation29_spill] sm:$0xff] %v13876_v18 }
 0x64c   :  { %v13881_v5 = vpop.f32.mrf.mxu3  ;;  %v13915_v60 = vpop.f32.mrf.mxu0 }
 0x64d   :  { %18512 = vst [vmem:[#allocation298_spill] sm:$0xff] %v13915_v60  ;;  %v18531_v60 = vld [vmem:[#allocation112_spill] sm:$0xff] }
 0x64e   :  { %v4220_v31 = vpop.f32.mrf.mxu1 }
 0x651   :  { %9356 = vmatmul.msk.bf16.gmra.mxu3 %vm2140_vm2, %v18426_v42  ;;  %v13892_v19 = vpop.f32.mrf.mxu2 }
 0x652   :  { %18503 = vst [vmem:[#allocation297_spill] sm:$0xff] %v13892_v19  ;;  %5775 = vmatmul.bf16.gmra.mxu0 %v18506_v37 }
 0x654   :  { %v13897_v23 = vpop.f32.mrf.mxu3  ;;  %v13926_v49 = vpop.f32.mrf.mxu0 }
 0x655   :  { %18515 = vst [vmem:[#allocation299_spill] sm:$0xff] %v13926_v49 }
 0x656   :  { %9343 = vmatmul.msk.bf16.gmra.mxu2 %vm2140_vm2, %v18507_v63  ;;  %v4222_v20 = vpop.f32.mrf.mxu1  ;;  %4279 = vmatmul.bf16.gmra.mxu1 %v18314_v51 }
 0x659   :  { %v13904_v7 = vpop.f32.mrf.mxu2 }
 0x65a   :  { %18509 = vst [vmem:[#allocation180_spill] sm:$0xff] %v13904_v7 }
 0x65c   :  { %v13906_v57 = vpop.f32.mrf.mxu3  ;;  %v13940_v10 = vpop.f32.mrf.mxu0 }
 0x65d   :  { %18518 = vst [vmem:[#allocation44_spill] sm:$0xff] %v13940_v10 }
 0x65e   :  { %v4225_v37 = vpop.f32.mrf.mxu1 }
 0x661   :  { %9357 = vmatmul.msk.bf16.gmra.mxu3 %vm2140_vm2, %v18434_v50  ;;  %v13910_v38 = vpop.f32.mrf.mxu2 }
 0x662   :  { %18510 = vst [vmem:[#allocation34_spill] sm:$0xff] %v13910_v38  ;;  %5780 = vmatmul.bf16.gmra.mxu0 %v18511_v21 }
 0x664   :  { %v13917_v34 = vpop.f32.mrf.mxu3  ;;  %v13954_v26 = vpop.f32.mrf.mxu0 }
 0x665   :  { %18521 = vst [vmem:[#allocation302_spill] sm:$0xff] %v13954_v26 }
 0x666   :  { %9344 = vmatmul.msk.bf16.gmra.mxu2 %vm2140_vm2, %v18513_v8  ;;  %v13935_v47 = vpop.f32.mrf.mxu1  ;;  %4284 = vmatmul.bf16.gmra.mxu1 %v18319_v45 }
 0x669   :  { %v13922_v3 = vpop.f32.mrf.mxu2 }
 0x66a   :  { %18514 = vst [vmem:[#allocation40_spill] sm:$0xff] %v13922_v3 }
 0x66c   :  { %v13924_v16 = vpop.f32.mrf.mxu3 }
 0x671   :  { %9358 = vmatmul.msk.bf16.gmra.mxu3 %vm2140_vm2, %v18441_v27  ;;  %v3980_v54 = vpop.f32.mrf.mxu2 }
 0x672   :  { %5785 = vmatmul.bf16.gmra.mxu0 %v18516_v9  ;;  %v13943_v40 = vadd.f32 %v3980_v54, %v13612_v25  ;;  %v4230_v9 = vpop.f32.mrf.mxu1 }
 0x674   :  { %v13933_v21 = vpop.f32.mrf.mxu3  ;;  %18519 = vst [vmem:[#allocation300_spill] sm:$0xff] %v13943_v40 }
 0x676   :  { %9345 = vmatmul.msk.bf16.gmra.mxu2 %vm2140_vm2, %v18517_v43 }
 0x679   :  { %v3983_v48 = vpop.f32.mrf.mxu2 }
 0x67a   :  { %v13946_v56 = vadd.f32 %v3983_v48, %v13625_v6  ;;  %v13961_v6 = vpop.f32.mrf.mxu1  ;;  %4289 = vmatmul.bf16.gmra.mxu1 %v18326_v14 }
 0x67c   :  { %18520 = vst [vmem:[#allocation301_spill] sm:$0xff] %v13946_v56  ;;  %v13948_v33 = vpop.f32.mrf.mxu3 }
 0x681   :  { %9359 = vmatmul.msk.bf16.gmra.mxu3 %vm2140_vm2, %v18446_v1  ;;  %v3985_v55 = vpop.f32.mrf.mxu2 }
 0x682   :  { %5790 = vmatmul.bf16.gmra.mxu0 %v18522_v0  ;;  %v13967_v54 = vadd.f32 %v3985_v55, %v13637_v59  ;;  %v13974_v32 = vpop.f32.mrf.mxu1  ;;  %v18526_v55 = vld [vmem:[#allocation228_spill] sm:$0xff] }
 0x684   :  { %v13959_v25 = vpop.f32.mrf.mxu3  ;;  %18523 = vst [vmem:[#allocation303_spill] sm:$0xff] %v13967_v54 }
 0x686   :  { %9346 = vmatmul.msk.bf16.gmra.mxu2 %vm2140_vm2, %v18176_v46 }
 0x689   :  { %v3988_v48 = vpop.f32.mrf.mxu2 }
 0x68a   :  { %v13970_v28 = vadd.f32 %v3988_v48, %v13651_v13  ;;  %v13982_v26 = vpop.f32.mrf.mxu1  ;;  %4294 = vmatmul.bf16.gmra.mxu1 %v18330_v30  ;;  %v13987_v13 = vpop.f32.mrf.mxu0  ;;  %v18527_v48 = vld [vmem:[#allocation293_spill] sm:$0xff] }
 0x68b   :  { %18525 = vst [vmem:[#allocation305_spill] sm:$0xff] %v13987_v13  ;;  %v3951_v12 = vadd.f32 %v18527_v48, %v18526_v55  ;;  %v18532_v55 = vld [vmem:[#allocation291_spill] sm:$0xff] }
 0x68c   :  { %18524 = vst [vmem:[#allocation304_spill] sm:$0xff] %v13970_v28  ;;  %v3932_v24 = vpop.f32.mrf.mxu3  ;;  %v3946_v48 = vadd.f32 %v18532_v55, %v18531_v60  ;;  %v18537_v60 = vld [vmem:[#allocation46_spill] sm:$0xff]  ;;  %v18548_v28 = vld [vmem:[#allocation73_spill] sm:$0xff] }
 0x68d   :  { %v3949_v24 = vadd.f32 %v13767_v4, %v13472_v44  ;;  %v18530_v4 = vld [vmem:[#allocation288_spill] sm:$0xff] }
 0x68e   :  { %v3944_v44 = vadd.f32 %v18530_v4, %v18529_v41  ;;  %v18536_v41 = vld [vmem:[#allocation58_spill] sm:$0xff] }
 0x691   :  { %9360 = vmatmul.msk.bf16.gmra.mxu3 %vm2140_vm2, %v18282_v58  ;;  %v13978_v0 = vpop.f32.mrf.mxu2 }
 0x692   :  { %v13999_v13 = vpop.f32.mrf.mxu1 }
 0x694   :  { %v4343_v36 = vpop.f32.mrf.mxu3 }
 0x695   :  { %v13980_v39 = vadd.f32 %v4343_v36, %v4220_v31 }
 0x696   :  { %9347 = vmatmul.msk.bf16.gmra.mxu2 %vm2140_vm2, %v18181_v29 }
 0x698   :  { %v10841_v59 = vpop.permute.xlu2 %10840 }
 0x699   :  { %v10843_v3 = vunpack.i.h.bf16 %v10841_v59  ;;  %v10842_v38 = vunpack.i.l.bf16 %v10841_v59  ;;  %v13993_v36 = vpop.f32.mrf.mxu2 }
 0x69a   :  { %18528 = vst [vmem:[#allocation228_spill] sm:$0xff] %v13993_v36  ;;  %v18533_v36 = vld [vmem:[#allocation22_spill] sm:$0xff] }
 0x69b   :  { %v4139_v31 = vsel %vm2536_vm3, %v3949_v24, %v10842_v38  ;;  %v4140_v7 = vsel %vm2536_vm3, %v3951_v12, %v10843_v3  ;;  %v14009_v3 = vpop.f32.mrf.mxu0 }
 0x69c   :  { %v4345_v19 = vpop.f32.mrf.mxu3  ;;  %v5412_v18 = vpack.c.bf16 %v4140_v7, %v4139_v31  ;;  %18535 = vst [vmem:[#allocation220_spill] sm:$0xff] %v14009_v3  ;;  %v18546_v3 = vld [vmem:[#allocation248_spill] sm:$0xff] }
 0x69d   :  { %v13997_v49 = vadd.f32 %v4345_v19, %v4222_v20 }
 0x6a0   :  { %v10836_v10 = vpop.permute.xlu1 %10835 }
 0x6a1   :  { %v10838_v59 = vunpack.i.h.bf16 %v10836_v10  ;;  %v10837_v54 = vunpack.i.l.bf16 %v10836_v10  ;;  %9361 = vmatmul.msk.bf16.gmra.mxu3 %vm2140_vm2, %v18533_v36  ;;  %v14007_v38 = vpop.f32.mrf.mxu2  ;;  %v4242_v10 = vpop.f32.mrf.mxu1  ;;  %4299 = vmatmul.bf16.gmra.mxu1 %v18537_v60 }
 0x6a2   :  { %18534 = vst [vmem:[#allocation293_spill] sm:$0xff] %v14007_v38 }
 0x6a3   :  { %v4137_v19 = vsel %vm2536_vm3, %v3944_v44, %v10837_v54  ;;  %v4138_v7 = vsel %vm2536_vm3, %v3946_v48, %v10838_v59  ;;  %v14020_v4 = vpop.f32.mrf.mxu0  ;;  %v18540_v48 = vld [vmem:[#allocation24_spill] sm:$0xff] }
 0x6a4   :  { %v4348_v20 = vpop.f32.mrf.mxu3  ;;  %v5407_v12 = vpack.c.bf16 %v4138_v7, %v4137_v19  ;;  %18539 = vst [vmem:[#allocation112_spill] sm:$0xff] %v14020_v4  ;;  %v18544_v4 = vld [vmem:[#allocation50_spill] sm:$0xff] }
 0x6a5   :  { %v14013_v24 = vadd.f32 %v4348_v20, %v4225_v37  ;;  %v18543_v20 = vld [vmem:[#allocation66_spill] sm:$0xff] }
 0x6a6   :  { %5795 = vmatmul.bf16.gmra.mxu0 %v5407_v12  ;;  %9348 = vmatmul.msk.bf16.gmra.mxu2 %vm2140_vm2, %v18536_v41 }
 0x6a9   :  { %v14018_v31 = vpop.f32.mrf.mxu2  ;;  %v4245_v44 = vpop.f32.mrf.mxu1 }
 0x6aa   :  { %18538 = vst [vmem:[#allocation288_spill] sm:$0xff] %v14018_v31  ;;  %v3966_v31 = vadd.f32 %v13864_v61, %v18546_v3 }
 0x6ab   :  { %v14031_v7 = vpop.f32.mrf.mxu0 }
 0x6ac   :  { %v4350_v55 = vpop.f32.mrf.mxu3  ;;  %18542 = vst [vmem:[#allocation22_spill] sm:$0xff] %v14031_v7 }
 0x6ad   :  { %v14023_v54 = vadd.f32 %v4350_v55, %v13935_v47 }
 0x6b1   :  { %9362 = vmatmul.msk.bf16.gmra.mxu3 %vm2140_vm2, %v18540_v48  ;;  %v14027_v37 = vpop.f32.mrf.mxu2  ;;  %v4247_v12 = vpop.f32.mrf.mxu1  ;;  %4304 = vmatmul.bf16.gmra.mxu1 %v18544_v4  ;;  %v18550_v4 = vld [vmem:[#allocation287_spill] sm:$0xff] }
 0x6b2   :  { %18541 = vst [vmem:[#allocation291_spill] sm:$0xff] %v14027_v37 }
 0x6b4   :  { %v4353_v59 = vpop.f32.mrf.mxu3 }
 0x6b5   :  { %v14029_v19 = vadd.f32 %v4353_v59, %v4230_v9  ;;  %v18547_v59 = vld [vmem:[#allocation26_spill] sm:$0xff] }
 0x6b6   :  { %5800 = vmatmul.bf16.gmra.mxu0 %v5412_v18  ;;  %9349 = vmatmul.msk.bf16.gmra.mxu2 %vm2140_vm2, %v18543_v20 }
 0x6b9   :  { %v14036_v47 = vpop.f32.mrf.mxu2  ;;  %v4250_v9 = vpop.f32.mrf.mxu1 }
 0x6ba   :  { %18545 = vst [vmem:[#allocation58_spill] sm:$0xff] %v14036_v47  ;;  %v18549_v47 = vld [vmem:[#allocation56_spill] sm:$0xff] }
 0x6bc   :  { %v4355_v55 = vpop.f32.mrf.mxu3 }
 0x6bd   :  { %v4356_v37 = vadd.f32 %v4355_v55, %v13961_v6  ;;  %v18552_v6 = vld [vmem:[#allocation61_spill] sm:$0xff] }
 0x6bf   :  { %v10844_v38 = vpack.i.bf16 %v4356_v37, %v3966_v31 }
 0x6c1   :  { %9363 = vmatmul.msk.bf16.gmra.mxu3 %vm2140_vm2, %v18547_v59  ;;  %10845 = vrot.lane.b32.xlu0 %v10844_v38, %s11273_s3  ;;  %v4005_v18 = vpop.f32.mrf.mxu2  ;;  %v4252_v40 = vpop.f32.mrf.mxu1 }
 0x6c2   :  { %4309 = vmatmul.bf16.gmra.mxu1 %v18549_v47  ;;  %v14048_v61 = vadd.f32 %v4005_v18, %v18550_v4  ;;  %v18554_v18 = vld [vmem:[#allocation76_spill] sm:$0xff] }
 0x6c4   :  { %v4358_v7 = vpop.f32.mrf.mxu3  ;;  %18551 = vst [vmem:[#allocation24_spill] sm:$0xff] %v14048_v61  ;;  %v18556_v61 = vld [vmem:[#allocation289_spill] sm:$0xff] }
 0x6c5   :  { %v4359_v38 = vadd.f32 %v4358_v7, %v13974_v32 }
 0x6c6   :  { %9350 = vmatmul.msk.bf16.gmra.mxu2 %vm2140_vm2, %v18548_v28 }
 0x6c9   :  { %v4008_v56 = vpop.f32.mrf.mxu2  ;;  %v4255_v30 = vpop.f32.mrf.mxu1 }
 0x6ca   :  { %v14051_v3 = vadd.f32 %v4008_v56, %v18552_v6  ;;  %v18555_v6 = vld [vmem:[#allocation64_spill] sm:$0xff] }
 0x6cc   :  { %18553 = vst [vmem:[#allocation66_spill] sm:$0xff] %v14051_v3  ;;  %v4360_v31 = vpop.f32.mrf.mxu3 }
 0x6cd   :  { %v4361_v55 = vadd.f32 %v4360_v31, %v13982_v26  ;;  %v18558_v26 = vld [vmem:[#allocation70_spill] sm:$0xff] }
 0x6cf   :  { %v10849_v60 = vpack.i.bf16 %v4361_v55, %v4359_v38  ;;  %v18562_v38 = vld [vmem:[#allocation71_spill] sm:$0xff] }
 0x6d1   :  { %9364 = vmatmul.msk.bf16.gmra.mxu3 %vm2140_vm2, %v18490_v22  ;;  %v4010_v47 = vpop.f32.mrf.mxu2  ;;  %10850 = vrot.lane.b32.xlu1 %v10849_v60, %s11273_s3  ;;  %v4257_v56 = vpop.f32.mrf.mxu1 }
 0x6d2   :  { %4314 = vmatmul.bf16.gmra.mxu1 %v18555_v6  ;;  %v14064_v32 = vadd.f32 %v4010_v47, %v18556_v61 }
 0x6d4   :  { %v4363_v4 = vpop.f32.mrf.mxu3  ;;  %18557 = vst [vmem:[#allocation248_spill] sm:$0xff] %v14064_v32 }
 0x6d5   :  { %v4364_v60 = vadd.f32 %v4363_v4, %v13999_v13 }
 0x6d6   :  { %9351 = vmatmul.msk.bf16.gmra.mxu2 %vm2140_vm2, %v18554_v18 }
 0x6d9   :  { %v4013_v37 = vpop.f32.mrf.mxu2  ;;  %v4260_v14 = vpop.f32.mrf.mxu1 }
 0x6da   :  { %v14067_v7 = vadd.f32 %v4013_v37, %v18558_v26  ;;  %v18561_v37 = vld [vmem:[#allocation2_spill] sm:$0xff] }
 0x6dc   :  { %18559 = vst [vmem:[#allocation26_spill] sm:$0xff] %v14067_v7  ;;  %v4365_v31 = vpop.f32.mrf.mxu3 }
 0x6dd   :  { %v4366_v55 = vadd.f32 %v4365_v31, %v4242_v10 }
 0x6df   :  { %v10854_v3 = vpack.i.bf16 %v4366_v55, %v4364_v60  ;;  %v18567_v55 = vld [vmem:[#allocation4_spill] sm:$0xff] }
 0x6e1   :  { %9365 = vmatmul.msk.bf16.gmra.mxu3 %vm2140_vm2, %v18498_v62  ;;  %v14074_v6 = vpop.f32.mrf.mxu2  ;;  %10855 = vrot.lane.b32.xlu2 %v10854_v3, %s11273_s3  ;;  %v4262_v26 = vpop.f32.mrf.mxu1 }
 0x6e2   :  { %4319 = vmatmul.bf16.gmra.mxu1 %v18562_v38 }
 0x6e4   :  { %v4368_v47 = vpop.f32.mrf.mxu3 }
 0x6e5   :  { %v14077_v61 = vadd.f32 %v4368_v47, %v4245_v44 }
 0x6e6   :  { %9375 = vmatmul.msk.bf16.vlgmr.msra.gmra.mxu2 %vm2140_vm2, %v18561_v37 }
 0x6e7   :  { %18560 = vst [vmem:[#allocation73_spill] sm:$0xff] %v14077_v61  ;;  %v18568_v61 = vld [vmem:[#allocation13_spill] sm:$0xff] }
 0x6e9   :  { %v14082_v13 = vpop.f32.mrf.mxu2  ;;  %v4265_v31 = vpop.f32.mrf.mxu1 }
 0x6ea   :  { %18563 = vst [vmem:[#allocation287_spill] sm:$0xff] %v14082_v13 }
 0x6ec   :  { %v4370_v10 = vpop.f32.mrf.mxu3 }
 0x6ed   :  { %v14084_v4 = vadd.f32 %v4370_v10, %v4247_v12 }
 0x6ef   :  { %18564 = vst [vmem:[#allocation61_spill] sm:$0xff] %v14084_v4 }
 0x6f1   :  { %9366 = vmatmul.msk.bf16.gmra.mxu3 %vm2140_vm2, %v18507_v63  ;;  %v14088_v60 = vpop.f32.mrf.mxu2  ;;  %v4267_v47 = vpop.f32.mrf.mxu1 }
 0x6f2   :  { %18565 = vst [vmem:[#allocation289_spill] sm:$0xff] %v14088_v60  ;;  %4324 = vmatmul.bf16.gmra.mxu1 %v18568_v61 }
 0x6f4   :  { %v4373_v3 = vpop.f32.mrf.mxu3 }
 0x6f5   :  { %v14090_v44 = vadd.f32 %v4373_v3, %v4250_v9 }
 0x6f6   :  { %9376 = vmatmul.msk.bf16.gmra.mxu2 %vm2140_vm2, %v18567_v55 }
 0x6f7   :  { %18566 = vst [vmem:[#allocation70_spill] sm:$0xff] %v14090_v44  ;;  %v18573_v44 = vld [vmem:[#allocation16_spill] sm:$0xff] }
 0x6f9   :  { %v14095_v32 = vpop.f32.mrf.mxu2  ;;  %v4270_v10 = vpop.f32.mrf.mxu1 }
 0x6fa   :  { %18569 = vst [vmem:[#allocation2_spill] sm:$0xff] %v14095_v32 }
 0x6fc   :  { %v4375_v13 = vpop.f32.mrf.mxu3 }
 0x6fd   :  { %v14097_v12 = vadd.f32 %v4375_v13, %v4252_v40  ;;  %v18575_v40 = vld [vmem:[#allocation276_spill] sm:$0xff] }
 0x6fe   :  { %v14112_v13 = vadd.f32 %v13978_v0, %v18575_v40  ;;  %v18579_v0 = vld [vmem:[#allocation3_spill] sm:$0xff] }
 0x6ff   :  { %18570 = vst [vmem:[#allocation71_spill] sm:$0xff] %v14097_v12 }
 0x700   :  { %18576 = vst [vmem:[#allocation276_spill] sm:$0xff] %v14112_v13 }
 0x701   :  { %9367 = vmatmul.msk.bf16.gmra.mxu3 %vm2140_vm2, %v18513_v8  ;;  %v14101_v4 = vpop.f32.mrf.mxu2  ;;  %v4272_v3 = vpop.f32.mrf.mxu1 }
 0x702   :  { %18571 = vst [vmem:[#allocation4_spill] sm:$0xff] %v14101_v4  ;;  %4329 = vmatmul.bf16.gmra.mxu1 %v18573_v44 }
 0x704   :  { %v4378_v60 = vpop.f32.mrf.mxu3 }
 0x705   :  { %v14103_v9 = vadd.f32 %v4378_v60, %v4255_v30 }
 0x706   :  { %9377 = vmatmul.msk.bf16.gmra.mxu2 %vm2140_vm2, %v18412_v11 }
 0x707   :  { %18572 = vst [vmem:[#allocation306_spill] sm:$0xff] %v14103_v9 }
 0x709   :  { %v14108_v7 = vpop.f32.mrf.mxu2  ;;  %v14118_v30 = vpop.f32.mrf.mxu1 }
 0x70a   :  { %18574 = vst [vmem:[#allocation16_spill] sm:$0xff] %v14108_v7 }
 0x70c   :  { %v4380_v32 = vpop.f32.mrf.mxu3 }
 0x70d   :  { %v14114_v12 = vadd.f32 %v4380_v32, %v4257_v56 }
 0x70f   :  { %18577 = vst [vmem:[#allocation307_spill] sm:$0xff] %v14114_v12 }
 0x711   :  { %9368 = vmatmul.msk.bf16.gmra.mxu3 %vm2140_vm2, %v18517_v43  ;;  %v4030_v60 = vpop.f32.mrf.mxu2  ;;  %v14126_v7 = vpop.f32.mrf.mxu1 }
 0x712   :  { %5019 = vmatmul.bf16.vlgmr.msra.gmra.mxu1 %v18579_v0  ;;  %v14130_v32 = vadd.f32 %v4030_v60, %v13854_v15 }
 0x714   :  { %v4383_v9 = vpop.f32.mrf.mxu3  ;;  %18580 = vst [vmem:[#allocation3_spill] sm:$0xff] %v14130_v32 }
 0x715   :  { %v14122_v61 = vadd.f32 %v4383_v9, %v4260_v14 }
 0x716   :  { %9378 = vmatmul.msk.bf16.gmra.mxu2 %vm2140_vm2, %v18420_v17 }
 0x717   :  { %18578 = vst [vmem:[#allocation308_spill] sm:$0xff] %v14122_v61 }
 0x719   :  { %v4033_v56 = vpop.f32.mrf.mxu2  ;;  %v14141_v12 = vpop.f32.mrf.mxu1 }
 0x71a   :  { %v14133_v40 = vadd.f32 %v4033_v56, %v13869_v53  ;;  %v14149_v53 = vpop.f32.mrf.mxu0 }
 0x71b   :  { %18584 = vst [vmem:[#allocation312_spill] sm:$0xff] %v14149_v53 }
 0x71c   :  { %18581 = vst [vmem:[#allocation309_spill] sm:$0xff] %v14133_v40  ;;  %v4385_v4 = vpop.f32.mrf.mxu3 }
 0x71d   :  { %v14137_v14 = vadd.f32 %v4385_v4, %v4262_v26  ;;  %v18585_v26 = vld [vmem:[#allocation5_spill] sm:$0xff] }
 0x71f   :  { %18582 = vst [vmem:[#allocation310_spill] sm:$0xff] %v14137_v14 }
 0x721   :  { %9369 = vmatmul.msk.bf16.gmra.mxu3 %vm2140_vm2, %v18176_v46  ;;  %v4035_v0 = vpop.f32.mrf.mxu2  ;;  %v14151_v56 = vpop.f32.mrf.mxu1 }
 0x722   :  { %5024 = vmatmul.bf16.gmra.mxu1 %v18585_v26  ;;  %v14155_v13 = vadd.f32 %v4035_v0, %v13881_v5  ;;  %v14168_v61 = vpop.f32.mrf.mxu0  ;;  %v18589_v0 = vld [vmem:[#allocation232_spill] sm:$0xff]  ;;  %v18590_v26 = vld [vmem:[#allocation294_spill] sm:$0xff] }
 0x723   :  { %18588 = vst [vmem:[#allocation314_spill] sm:$0xff] %v14168_v61 }
 0x724   :  { %v4388_v15 = vpop.f32.mrf.mxu3  ;;  %18586 = vst [vmem:[#allocation5_spill] sm:$0xff] %v14155_v13 }
 0x725   :  { %v14145_v60 = vadd.f32 %v4388_v15, %v4265_v31 }
 0x726   :  { %9379 = vmatmul.msk.bf16.gmra.mxu2 %vm2140_vm2, %v18426_v42 }
 0x727   :  { %18583 = vst [vmem:[#allocation311_spill] sm:$0xff] %v14145_v60  ;;  %v18592_v60 = vld [vmem:[#allocation7_spill] sm:$0xff] }
 0x729   :  { %v4038_v4 = vpop.f32.mrf.mxu2  ;;  %v14166_v40 = vpop.f32.mrf.mxu1 }
 0x72a   :  { %v14158_v9 = vadd.f32 %v4038_v4, %v13897_v23  ;;  %v3954_v4 = vadd.f32 %v18590_v26, %v18589_v0  ;;  %v14186_v26 = vpop.f32.mrf.mxu0 }
 0x72b   :  { %18593 = vst [vmem:[#allocation294_spill] sm:$0xff] %v14186_v26 }
 0x72c   :  { %18587 = vst [vmem:[#allocation313_spill] sm:$0xff] %v14158_v9  ;;  %v4390_v32 = vpop.f32.mrf.mxu3 }
 0x72d   :  { %v14162_v15 = vadd.f32 %v4390_v32, %v4267_v47 }
 0x731   :  { %9370 = vmatmul.msk.bf16.gmra.mxu3 %vm2140_vm2, %v18181_v29  ;;  %v14172_v5 = vpop.f32.mrf.mxu2  ;;  %v14183_v9 = vpop.f32.mrf.mxu1 }
 0x732   :  { %5029 = vmatmul.bf16.gmra.mxu1 %v18592_v60 }
 0x733   :  { %v10846_v23 = vpop.permute.xlu0 %10845 }
 0x734   :  { %v10848_v14 = vunpack.i.h.bf16 %v10846_v23  ;;  %v10847_v31 = vunpack.i.l.bf16 %v10846_v23  ;;  %v4393_v47 = vpop.f32.mrf.mxu3 }
 0x735   :  { %v14176_v32 = vadd.f32 %v4393_v47, %v4270_v10 }
 0x736   :  { %v4141_v53 = vsel %vm2536_vm3, %v3954_v4, %v10847_v31  ;;  %v4537_v13 = vsel %vm2536_vm3, %v13980_v39, %v10848_v14  ;;  %9380 = vmatmul.msk.bf16.gmra.mxu2 %vm2140_vm2, %v18434_v50 }
 0x737   :  { %18591 = vst [vmem:[#allocation232_spill] sm:$0xff] %v14176_v32  ;;  %v5417_v61 = vpack.c.bf16 %v4537_v13, %v4141_v53 }
 0x739   :  { %5805 = vmatmul.bf16.gmra.mxu0 %v5417_v61  ;;  %v4043_v0 = vpop.f32.mrf.mxu2  ;;  %v4290_v14 = vpop.f32.mrf.mxu1 }
 0x73a   :  { %v14197_v60 = vadd.f32 %v4043_v0, %v13917_v34 }
 0x73b   :  { %v10856_v23 = vpop.permute.xlu2 %10855 }
 0x73c   :  { %v4395_v10 = vpop.f32.mrf.mxu3  ;;  %v10858_v47 = vunpack.i.h.bf16 %v10856_v23  ;;  %v10857_v32 = vunpack.i.l.bf16 %v10856_v23  ;;  %18595 = vst [vmem:[#allocation315_spill] sm:$0xff] %v14197_v60  ;;  %v18610_v60 = vld [vmem:[#allocation17_spill] sm:$0xff] }
 0x73d   :  { %v14188_v31 = vadd.f32 %v4395_v10, %v4272_v3 }
 0x73e   :  { %v4540_v39 = vsel %vm2536_vm3, %v14023_v54, %v10857_v32  ;;  %v4541_v13 = vsel %vm2536_vm3, %v14029_v19, %v10858_v47  ;;  %v14204_v19 = vpop.f32.mrf.mxu0 }
 0x73f   :  { %18594 = vst [vmem:[#allocation7_spill] sm:$0xff] %v14188_v31  ;;  %v5427_v53 = vpack.c.bf16 %v4541_v13, %v4540_v39  ;;  %v18599_v39 = vld [vmem:[#allocation9_spill] sm:$0xff] }
 0x740   :  { %18597 = vst [vmem:[#allocation317_spill] sm:$0xff] %v14204_v19 }
 0x741   :  { %9371 = vmatmul.msk.bf16.gmra.mxu3 %vm2140_vm2, %v18536_v41  ;;  %v4045_v61 = vpop.f32.mrf.mxu2  ;;  %v4292_v0 = vpop.f32.mrf.mxu1 }
 0x742   :  { %v14200_v4 = vadd.f32 %v4045_v61, %v13924_v16  ;;  %5034 = vmatmul.bf16.gmra.mxu1 %v18599_v39  ;;  %v18605_v39 = vld [vmem:[#allocation11_spill] sm:$0xff] }
 0x743   :  { %v10851_v3 = vpop.permute.xlu1 %10850 }
 0x744   :  { %18596 = vst [vmem:[#allocation316_spill] sm:$0xff] %v14200_v4  ;;  %v4398_v23 = vpop.f32.mrf.mxu3  ;;  %v10853_v32 = vunpack.i.h.bf16 %v10851_v3  ;;  %v10852_v10 = vunpack.i.l.bf16 %v10851_v3 }
 0x745   :  { %v14207_v47 = vadd.f32 %v4398_v23, %v14118_v30 }
 0x746   :  { %9381 = vmatmul.msk.bf16.gmra.mxu2 %vm2140_vm2, %v18441_v27  ;;  %v4538_v34 = vsel %vm2536_vm3, %v13997_v49, %v10852_v10  ;;  %v4539_v16 = vsel %vm2536_vm3, %v14013_v24, %v10853_v32  ;;  %v14219_v30 = vpop.f32.mrf.mxu0 }
 0x747   :  { %18598 = vst [vmem:[#allocation318_spill] sm:$0xff] %v14207_v47  ;;  %v5422_v13 = vpack.c.bf16 %v4539_v16, %v4538_v34 }
 0x748   :  { %18601 = vst [vmem:[#allocation319_spill] sm:$0xff] %v14219_v30  ;;  %v18613_v30 = vld [vmem:[#allocation19_spill] sm:$0xff] }
 0x749   :  { %v4048_v61 = vpop.f32.mrf.mxu2  ;;  %5810 = vmatmul.bf16.gmra.mxu0 %v5422_v13  ;;  %v4295_v23 = vpop.f32.mrf.mxu1 }
 0x74a   :  { %v14224_v10 = vadd.f32 %v4048_v61, %v13933_v21  ;;  %v18607_v61 = vld [vmem:[#allocation292_spill] sm:$0xff] }
 0x74c   :  { %v4400_v3 = vpop.f32.mrf.mxu3  ;;  %18602 = vst [vmem:[#allocation320_spill] sm:$0xff] %v14224_v10 }
 0x74d   :  { %v14217_v54 = vadd.f32 %v4400_v3, %v14126_v7  ;;  %v14243_v3 = vadd.f32 %v14074_v6, %v18607_v61 }
 0x74e   :  { %v14237_v13 = vpop.f32.mrf.mxu0 }
 0x74f   :  { %18600 = vst [vmem:[#allocation9_spill] sm:$0xff] %v14217_v54 }
 0x750   :  { %18606 = vst [vmem:[#allocation11_spill] sm:$0xff] %v14237_v13 }
 0x751   :  { %9372 = vmatmul.msk.bf16.gmra.mxu3 %vm2140_vm2, %v18543_v20  ;;  %v4050_v49 = vpop.f32.mrf.mxu2  ;;  %v4297_v16 = vpop.f32.mrf.mxu1 }
 0x752   :  { %v14227_v24 = vadd.f32 %v4050_v49, %v13948_v33  ;;  %5039 = vmatmul.bf16.gmra.mxu1 %v18605_v39 }
 0x754   :  { %18603 = vst [vmem:[#allocation321_spill] sm:$0xff] %v14227_v24  ;;  %v4403_v32 = vpop.f32.mrf.mxu3 }
 0x755   :  { %v14232_v7 = vadd.f32 %v4403_v32, %v14141_v12 }
 0x756   :  { %9382 = vmatmul.msk.bf16.gmra.mxu2 %vm2140_vm2, %v18446_v1 }
 0x757   :  { %18604 = vst [vmem:[#allocation322_spill] sm:$0xff] %v14232_v7 }
 0x759   :  { %v14239_v21 = vpop.f32.mrf.mxu2  ;;  %5815 = vmatmul.bf16.gmra.mxu0 %v5427_v53  ;;  %v4300_v32 = vpop.f32.mrf.mxu1  ;;  %v18608_v53 = vld [vmem:[#allocation14_spill] sm:$0xff] }
 0x75c   :  { %v4405_v33 = vpop.f32.mrf.mxu3 }
 0x75d   :  { %v14246_v49 = vadd.f32 %v4405_v33, %v14151_v56 }
 0x761   :  { %9373 = vmatmul.msk.bf16.gmra.mxu3 %vm2140_vm2, %v18548_v28  ;;  %v4055_v39 = vpop.f32.mrf.mxu2  ;;  %v4302_v6 = vpop.f32.mrf.mxu1 }
 0x762   :  { %5044 = vmatmul.bf16.gmra.mxu1 %v18608_v53 }
 0x764   :  { %v4408_v34 = vpop.f32.mrf.mxu3 }
 0x765   :  { %v14253_v10 = vadd.f32 %v4408_v34, %v14166_v40 }
 0x766   :  { %9383 = vmatmul.msk.bf16.gmra.mxu2 %vm2140_vm2, %v18282_v58 }
 0x769   :  { %v14258_v56 = vpop.f32.mrf.mxu2  ;;  %v4305_v39 = vpop.f32.mrf.mxu1 }
 0x76c   :  { %v4410_v33 = vpop.f32.mrf.mxu3 }
 0x76d   :  { %v14261_v61 = vadd.f32 %v4410_v33, %v14183_v9 }
 0x771   :  { %9374 = vmatmul.msk.bf16.gmra.mxu3 %vm2140_vm2, %v18554_v18  ;;  %v14267_v40 = vpop.f32.mrf.mxu2  ;;  %v4307_v53 = vpop.f32.mrf.mxu1 }
 0x772   :  { %5049 = vmatmul.bf16.gmra.mxu1 %v18610_v60 }
 0x774   :  { %v4413_v34 = vpop.f32.mrf.mxu3 }
 0x775   :  { %v14269_v24 = vadd.f32 %v4413_v34, %v4290_v14 }
 0x776   :  { %9384 = vmatmul.msk.bf16.gmra.mxu2 %vm2140_vm2, %v18533_v36 }
 0x777   :  { %18609 = vst [vmem:[#allocation292_spill] sm:$0xff] %v14269_v24  ;;  %v18618_v24 = vld [vmem:[#allocation230_spill] sm:$0xff] }
 0x779   :  { %v14274_v9 = vpop.f32.mrf.mxu2  ;;  %v4310_v13 = vpop.f32.mrf.mxu1 }
 0x77c   :  { %v4415_v33 = vpop.f32.mrf.mxu3 }
 0x77d   :  { %v14276_v4 = vadd.f32 %v4415_v33, %v4292_v0 }
 0x77f   :  { %18611 = vst [vmem:[#allocation14_spill] sm:$0xff] %v14276_v4 }
 0x781   :  { %4729 = vmatmul.bf16.vlgmr.msrb.gmra.mxu3 %v18573_v44  ;;  %v14281_v19 = vpop.f32.mrf.mxu2  ;;  %v4312_v60 = vpop.f32.mrf.mxu1 }
 0x782   :  { %5054 = vmatmul.bf16.gmra.mxu1 %v18613_v30 }
 0x784   :  { %v4418_v14 = vpop.f32.mrf.mxu3 }
 0x785   :  { %v14283_v34 = vadd.f32 %v4418_v14, %v4295_v23  ;;  %v18616_v14 = vld [vmem:[#allocation21_spill] sm:$0xff] }
 0x786   :  { %9385 = vmatmul.msk.bf16.gmra.mxu2 %vm2140_vm2, %v18540_v48 }
 0x787   :  { %18612 = vst [vmem:[#allocation17_spill] sm:$0xff] %v14283_v34  ;;  %v18617_v34 = vld [vmem:[#allocation226_spill] sm:$0xff] }
 0x789   :  { %v14288_v7 = vpop.f32.mrf.mxu2  ;;  %v4315_v12 = vpop.f32.mrf.mxu1 }
 0x78c   :  { %v4420_v0 = vpop.f32.mrf.mxu3 }
 0x78d   :  { %v14290_v33 = vadd.f32 %v4420_v0, %v4297_v16 }
 0x78f   :  { %18614 = vst [vmem:[#allocation19_spill] sm:$0xff] %v14290_v33 }
 0x791   :  { %9398 = vmatmul.msk.bf16.vlgmr.msra.gmra.mxu3 %vm2140_vm2, %v18561_v37  ;;  %v4755_v54 = vpop.f32.mrf.mxu2  ;;  %v4317_v23 = vpop.f32.mrf.mxu1 }
 0x792   :  { %5059 = vmatmul.bf16.gmra.mxu1 %v18616_v14  ;;  %v4756_v31 = vadd.f32 %v4755_v54, %v18617_v34  ;;  %v18622_v34 = vld [vmem:[#allocation236_spill] sm:$0xff] }
 0x794   :  { %v4423_v26 = vpop.f32.mrf.mxu3 }
 0x795   :  { %v14294_v47 = vadd.f32 %v4423_v26, %v4300_v32 }
 0x796   :  { %9386 = vmatmul.msk.bf16.gmra.mxu2 %vm2140_vm2, %v18547_v59 }
 0x797   :  { %18615 = vst [vmem:[#allocation323_spill] sm:$0xff] %v14294_v47 }
 0x799   :  { %v4758_v30 = vpop.f32.mrf.mxu2  ;;  %v4320_v37 = vpop.f32.mrf.mxu1 }
 0x79a   :  { %v4759_v16 = vadd.f32 %v4758_v30, %v18618_v24 }
 0x79c   :  { %v4425_v0 = vpop.f32.mrf.mxu3  ;;  %v10859_v33 = vpack.i.bf16 %v4759_v16, %v4756_v31  ;;  %v18621_v31 = vld [vmem:[#allocation234_spill] sm:$0xff] }
 0x79d   :  { %v14301_v4 = vadd.f32 %v4425_v0, %v4302_v6 }
 0x79e   :  { %10860 = vrot.lane.b32.xlu0 %v10859_v33, %s11273_s3 }
 0x79f   :  { %18619 = vst [vmem:[#allocation21_spill] sm:$0xff] %v14301_v4 }
 0x7a1   :  { %9399 = vmatmul.msk.bf16.gmra.mxu3 %vm2140_vm2, %v18567_v55  ;;  %v4760_v26 = vpop.f32.mrf.mxu2  ;;  %v4322_v54 = vpop.f32.mrf.mxu1  ;;  %v14315_v55 = vadd.f32 %v14172_v5, %v13906_v57 }
 0x7a2   :  { %5064 = vmatmul.bf16.gmra.mxu1 %v18302_v35  ;;  %v4761_v6 = vadd.f32 %v4760_v26, %v18621_v31  ;;  %v18633_v31 = vld [vmem:[#allocation267_spill] sm:$0xff] }
 0x7a4   :  { %v4428_v32 = vpop.f32.mrf.mxu3 }
 0x7a5   :  { %v14306_v47 = vadd.f32 %v4428_v32, %v4305_v39 }
 0x7a6   :  { %9387 = vmatmul.msk.bf16.gmra.mxu2 %vm2140_vm2, %v18490_v22 }
 0x7a7   :  { %18620 = vst [vmem:[#allocation226_spill] sm:$0xff] %v14306_v47 }
 0x7a9   :  { %v4763_v24 = vpop.f32.mrf.mxu2  ;;  %v4325_v0 = vpop.f32.mrf.mxu1 }
 0x7aa   :  { %v4764_v14 = vadd.f32 %v4763_v24, %v18622_v34 }
 0x7ac   :  { %v4430_v33 = vpop.f32.mrf.mxu3  ;;  %v10864_v30 = vpack.i.bf16 %v4764_v14, %v4761_v6 }
 0x7ad   :  { %v14317_v16 = vadd.f32 %v4430_v33, %v4307_v53 }
 0x7ae   :  { %10865 = vrot.lane.b32.xlu1 %v10864_v30, %s11273_s3 }
 0x7b1   :  { %9400 = vmatmul.msk.bf16.gmra.mxu3 %vm2140_vm2, %v18412_v11  ;;  %v14324_v35 = vpop.f32.mrf.mxu2  ;;  %v4327_v57 = vpop.f32.mrf.mxu1 }
 0x7b2   :  { %5069 = vmatmul.bf16.gmra.mxu1 %v18305_v2 }
 0x7b4   :  { %v4433_v26 = vpop.f32.mrf.mxu3 }
 0x7b5   :  { %v14326_v32 = vadd.f32 %v4433_v26, %v4310_v13 }
 0x7b6   :  { %9388 = vmatmul.msk.bf16.gmra.mxu2 %vm2140_vm2, %v18498_v62 }
 0x7b9   :  { %v14331_v5 = vpop.f32.mrf.mxu2  ;;  %v4330_v11 = vpop.f32.mrf.mxu1 }
 0x7ba   :  { %18623 = vst [vmem:[#allocation230_spill] sm:$0xff] %v14331_v5 }
 0x7bc   :  { %v4435_v53 = vpop.f32.mrf.mxu3 }
 0x7bd   :  { %v14333_v24 = vadd.f32 %v4435_v53, %v4312_v60  ;;  %v14360_v53 = vadd.f32 %v14239_v21, %v13959_v25 }
 0x7bf   :  { %18627 = vst [vmem:[#allocation325_spill] sm:$0xff] %v14360_v53 }
 0x7c1   :  { %9401 = vmatmul.msk.bf16.gmra.mxu3 %vm2140_vm2, %v18420_v17  ;;  %v14339_v13 = vpop.f32.mrf.mxu2  ;;  %v4332_v2 = vpop.f32.mrf.mxu1 }
 0x7c2   :  { %18624 = vst [vmem:[#allocation234_spill] sm:$0xff] %v14339_v13  ;;  %5074 = vmatmul.bf16.gmra.mxu1 %v18310_v52 }
 0x7c4   :  { %v4438_v6 = vpop.f32.mrf.mxu3 }
 0x7c5   :  { %v14341_v34 = vadd.f32 %v4438_v6, %v4315_v12 }
 0x7c6   :  { %9389 = vmatmul.msk.bf16.gmra.mxu2 %vm2140_vm2, %v18507_v63 }
 0x7c9   :  { %v14346_v60 = vpop.f32.mrf.mxu2  ;;  %v14352_v17 = vpop.f32.mrf.mxu1 }
 0x7ca   :  { %18625 = vst [vmem:[#allocation236_spill] sm:$0xff] %v14346_v60 }
 0x7cc   :  { %v4440_v14 = vpop.f32.mrf.mxu3 }
 0x7cd   :  { %v14348_v33 = vadd.f32 %v4440_v14, %v4317_v23 }
 0x7d1   :  { %9402 = vmatmul.msk.bf16.gmra.mxu3 %vm2140_vm2, %v18426_v42  ;;  %v14356_v12 = vpop.f32.mrf.mxu2  ;;  %v14368_v6 = vpop.f32.mrf.mxu1 }
 0x7d2   :  { %18626 = vst [vmem:[#allocation324_spill] sm:$0xff] %v14356_v12  ;;  %5079 = vmatmul.bf16.gmra.mxu1 %v18314_v51 }
 0x7d4   :  { %v4443_v26 = vpop.f32.mrf.mxu3 }
 0x7d5   :  { %v14362_v52 = vadd.f32 %v4443_v26, %v4320_v37 }
 0x7d6   :  { %9390 = vmatmul.msk.bf16.gmra.mxu2 %vm2140_vm2, %v18513_v8 }
 0x7d7   :  { %18628 = vst [vmem:[#allocation326_spill] sm:$0xff] %v14362_v52  ;;  %v18644_v52 = vld [vmem:[#allocation215_spill] sm:$0xff] }
 0x7d9   :  { %v14371_v42 = vpop.f32.mrf.mxu2  ;;  %v14375_v30 = vpop.f32.mrf.mxu1 }
 0x7da   :  { %18629 = vst [vmem:[#allocation327_spill] sm:$0xff] %v14371_v42 }
 0x7dc   :  { %v4445_v2 = vpop.f32.mrf.mxu3 }
 0x7dd   :  { %v14373_v14 = vadd.f32 %v4445_v2, %v4322_v54  ;;  %v18632_v2 = vld [vmem:[#allocation264_spill] sm:$0xff] }
 0x7df   :  { %18630 = vst [vmem:[#allocation328_spill] sm:$0xff] %v14373_v14 }
 0x7e1   :  { %9403 = vmatmul.msk.bf16.gmra.mxu3 %vm2140_vm2, %v18434_v50  ;;  %v4780_v25 = vpop.f32.mrf.mxu2  ;;  %v14385_v26 = vpop.f32.mrf.mxu1 }
 0x7e2   :  { %5084 = vmatmul.bf16.gmra.mxu1 %v18319_v45  ;;  %v14389_v23 = vadd.f32 %v4780_v25, %v18632_v2 }
 0x7e4   :  { %v4448_v21 = vpop.f32.mrf.mxu3 }
 0x7e5   :  { %v14379_v37 = vadd.f32 %v4448_v21, %v4325_v0  ;;  %v18638_v0 = vld [vmem:[#allocation272_spill] sm:$0xff] }
 0x7e6   :  { %9391 = vmatmul.msk.bf16.gmra.mxu2 %vm2140_vm2, %v18517_v43 }
 0x7e7   :  { %18631 = vst [vmem:[#allocation329_spill] sm:$0xff] %v14379_v37 }
 0x7e9   :  { %v4783_v54 = vpop.f32.mrf.mxu2  ;;  %v14398_v53 = vpop.f32.mrf.mxu1 }
 0x7ea   :  { %v14392_v50 = vadd.f32 %v4783_v54, %v18633_v31  ;;  %v18636_v54 = vld [vmem:[#allocation38_spill] sm:$0xff] }
 0x7ec   :  { %v4450_v39 = vpop.f32.mrf.mxu3 }
 0x7ed   :  { %v14396_v21 = vadd.f32 %v4450_v39, %v4327_v57  ;;  %v18637_v57 = vld [vmem:[#allocation270_spill] sm:$0xff] }
 0x7ef   :  { %18634 = vst [vmem:[#allocation264_spill] sm:$0xff] %v14396_v21 }
 0x7f1   :  { %9404 = vmatmul.msk.bf16.gmra.mxu3 %vm2140_vm2, %v18441_v27  ;;  %v4785_v51 = vpop.f32.mrf.mxu2  ;;  %v14408_v25 = vpop.f32.mrf.mxu1 }
 0x7f2   :  { %5089 = vmatmul.bf16.gmra.mxu1 %v18636_v54  ;;  %v14412_v2 = vadd.f32 %v4785_v51, %v18637_v57 }
 0x7f4   :  { %v4453_v45 = vpop.f32.mrf.mxu3 }
 0x7f5   :  { %v14402_v14 = vadd.f32 %v4453_v45, %v4330_v11 }
 0x7f6   :  { %9392 = vmatmul.msk.bf16.gmra.mxu2 %vm2140_vm2, %v18176_v46 }
 0x7f7   :  { %18635 = vst [vmem:[#allocation267_spill] sm:$0xff] %v14402_v14 }
 0x7f9   :  { %v4788_v39 = vpop.f32.mrf.mxu2  ;;  %v14419_v45 = vpop.f32.mrf.mxu1 }
 0x7fa   :  { %v14415_v27 = vadd.f32 %v4788_v39, %v18638_v0  ;;  %v18640_v0 = vld [vmem:[#allocation42_spill] sm:$0xff] }
 0x7fc   :  { %v4455_v37 = vpop.f32.mrf.mxu3 }
 0x7fd   :  { %v14432_v37 = vpop.f32.mrf.mxu0 }
 0x7fe   :  { %18641 = vst [vmem:[#allocation270_spill] sm:$0xff] %v14432_v37 }
 0x801   :  { %9405 = vmatmul.msk.bf16.gmra.mxu3 %vm2140_vm2, %v18446_v1  ;;  %v14423_v31 = vpop.f32.mrf.mxu2  ;;  %v14429_v51 = vpop.f32.mrf.mxu1  ;;  %v18643_v1 = vld [vmem:[#allocation212_spill] sm:$0xff] }
 0x802   :  { %5094 = vmatmul.bf16.gmra.mxu1 %v18640_v0  ;;  %v4744_v14 = vadd.f32 %v14258_v56, %v18643_v1 }
 0x804   :  { %v14425_v21 = vpop.f32.mrf.mxu3 }
 0x805   :  { %18639 = vst [vmem:[#allocation38_spill] sm:$0xff] %v14425_v21  ;;  %v4746_v21 = vadd.f32 %v14267_v40, %v18644_v52  ;;  %v14446_v37 = vpop.f32.mrf.mxu0  ;;  %v18647_v40 = vld [vmem:[#allocation46_spill] sm:$0xff] }
 0x806   :  { %9393 = vmatmul.msk.bf16.gmra.mxu2 %vm2140_vm2, %v18181_v29  ;;  %18646 = vst [vmem:[#allocation212_spill] sm:$0xff] %v14446_v37 }
 0x809   :  { %v14434_v54 = vpop.f32.mrf.mxu2  ;;  %v14436_v57 = vpop.f32.mrf.mxu1 }
 0x80a   :  { %18642 = vst [vmem:[#allocation272_spill] sm:$0xff] %v14434_v54 }
 0x80c   :  { %v4732_v39 = vpop.f32.mrf.mxu3 }
 0x810   :  { %v10861_v11 = vpop.permute.xlu0 %10860 }
 0x811   :  { %9406 = vmatmul.msk.bf16.gmra.mxu3 %vm2140_vm2, %v18282_v58  ;;  %v10863_v47 = vunpack.i.h.bf16 %v10861_v11  ;;  %v10862_v4 = vunpack.i.l.bf16 %v10861_v11  ;;  %v14444_v0 = vpop.f32.mrf.mxu2  ;;  %v14455_v58 = vpop.f32.mrf.mxu1 }
 0x812   :  { %18645 = vst [vmem:[#allocation42_spill] sm:$0xff] %v14444_v0  ;;  %5099 = vmatmul.bf16.gmra.mxu1 %v18647_v40  ;;  %v14460_v11 = vpop.f32.mrf.mxu0 }
 0x813   :  { %v4937_v39 = vsel %vm2536_vm3, %v4744_v14, %v10862_v4  ;;  %v4938_v54 = vsel %vm2536_vm3, %v4746_v21, %v10863_v47  ;;  %18649 = vst [vmem:[#allocation46_spill] sm:$0xff] %v14460_v11  ;;  %v18650_v21 = vld [vmem:[#allocation218_spill] sm:$0xff] }
 0x814   :  { %v5143_v42 = vpop.f32.mrf.mxu3  ;;  %v5432_v12 = vpack.c.bf16 %v4938_v54, %v4937_v39 }
 0x815   :  { %v14451_v56 = vadd.f32 %v5143_v42, %v14352_v17  ;;  %v4749_v17 = vadd.f32 %v14274_v9, %v18650_v21 }
 0x816   :  { %5820 = vmatmul.bf16.gmra.mxu0 %v5432_v12  ;;  %9394 = vmatmul.msk.bf16.gmra.mxu2 %vm2140_vm2, %v18536_v41  ;;  %v18651_v12 = vld [vmem:[#allocation222_spill] sm:$0xff] }
 0x817   :  { %v4751_v42 = vadd.f32 %v14281_v19, %v18651_v12  ;;  %v18655_v19 = vld [vmem:[#allocation50_spill] sm:$0xff]  ;;  %v18658_v12 = vld [vmem:[#allocation56_spill] sm:$0xff] }
 0x819   :  { %v14458_v52 = vpop.f32.mrf.mxu2  ;;  %v14464_v47 = vpop.f32.mrf.mxu1 }
 0x81a   :  { %18648 = vst [vmem:[#allocation215_spill] sm:$0xff] %v14458_v52  ;;  %v14479_v9 = vpop.f32.mrf.mxu0 }
 0x81b   :  { %18653 = vst [vmem:[#allocation222_spill] sm:$0xff] %v14479_v9  ;;  %v18660_v9 = vld [vmem:[#allocation64_spill] sm:$0xff] }
 0x81c   :  { %v14462_v4 = vpop.f32.mrf.mxu3 }
 0x820   :  { %v10866_v14 = vpop.permute.xlu1 %10865 }
 0x821   :  { %9407 = vmatmul.msk.bf16.gmra.mxu3 %vm2140_vm2, %v18533_v36  ;;  %v10868_v54 = vunpack.i.h.bf16 %v10866_v14  ;;  %v10867_v1 = vunpack.i.l.bf16 %v10866_v14  ;;  %v14472_v39 = vpop.f32.mrf.mxu2  ;;  %v14483_v36 = vpop.f32.mrf.mxu1 }
 0x822   :  { %18652 = vst [vmem:[#allocation218_spill] sm:$0xff] %v14472_v39  ;;  %5104 = vmatmul.bf16.gmra.mxu1 %v18655_v19 }
 0x823   :  { %v4939_v40 = vsel %vm2536_vm3, %v4749_v17, %v10867_v1  ;;  %v4940_v52 = vsel %vm2536_vm3, %v4751_v42, %v10868_v54  ;;  %18654 = vst [vmem:[#allocation330_spill] sm:$0xff] %v14483_v36  ;;  %v18659_v1 = vld [vmem:[#allocation240_spill] sm:$0xff] }
 0x824   :  { %v5148_v37 = vpop.f32.mrf.mxu3  ;;  %v5437_v11 = vpack.c.bf16 %v4940_v52, %v4939_v40  ;;  %v4766_v40 = vadd.f32 %v14324_v35, %v18659_v1  ;;  %v18661_v35 = vld [vmem:[#allocation49_spill] sm:$0xff] }
 0x825   :  { %v14477_v0 = vadd.f32 %v5148_v37, %v14375_v30 }
 0x826   :  { %5825 = vmatmul.bf16.gmra.mxu0 %v5437_v11  ;;  %9395 = vmatmul.msk.bf16.gmra.mxu2 %vm2140_vm2, %v18543_v20 }
 0x829   :  { %v14486_v14 = vpop.f32.mrf.mxu2  ;;  %v14490_v17 = vpop.f32.mrf.mxu1 }
 0x82a   :  { %18656 = vst [vmem:[#allocation50_spill] sm:$0xff] %v14486_v14 }
 0x82c   :  { %v14488_v21 = vpop.f32.mrf.mxu3 }
 0x831   :  { %9408 = vmatmul.msk.bf16.gmra.mxu3 %vm2140_vm2, %v18540_v48  ;;  %v14494_v30 = vpop.f32.mrf.mxu2  ;;  %v14501_v11 = vpop.f32.mrf.mxu1 }
 0x832   :  { %18657 = vst [vmem:[#allocation331_spill] sm:$0xff] %v14501_v11  ;;  %5109 = vmatmul.bf16.gmra.mxu1 %v18658_v12 }
 0x834   :  { %v5153_v37 = vpop.f32.mrf.mxu3 }
 0x835   :  { %v14497_v52 = vadd.f32 %v5153_v37, %v14398_v53 }
 0x836   :  { %9396 = vmatmul.msk.bf16.gmra.mxu2 %vm2140_vm2, %v18548_v28 }
 0x839   :  { %v14504_v42 = vpop.f32.mrf.mxu2  ;;  %v14509_v39 = vpop.f32.mrf.mxu1 }
 0x83c   :  { %v5155_v54 = vpop.f32.mrf.mxu3 }
 0x83d   :  { %v5156_v48 = vadd.f32 %v5155_v54, %v14408_v25  ;;  %v18662_v25 = vld [vmem:[#allocation47_spill] sm:$0xff] }
 0x83e   :  { %v18663_v54 = vpack.i.bf16 %v18661_v35, %v18662_v25  ;;  %v18665_v35 = vld [vmem:[#allocation54_spill] sm:$0xff]  ;;  %v18666_v25 = vld [vmem:[#allocation51_spill] sm:$0xff] }
 0x83f   :  { %v10869_v19 = vpack.i.bf16 %v5156_v48, %v4766_v40  ;;  %v14527_v40 = vpop.f32.mrf.mxu0 }
 0x840   :  { %18664 = vst [vmem:[#allocation56_spill] sm:$0xff] %v14527_v40 }
 0x841   :  { %9409 = vmatmul.msk.bf16.gmra.mxu3 %vm2140_vm2, %v18547_v59  ;;  %10870 = vrot.lane.b32.xlu2 %v10869_v19, %s11273_s3  ;;  %v14514_v53 = vpop.f32.mrf.mxu2  ;;  %v14518_v12 = vpop.f32.mrf.mxu1 }
 0x842   :  { %5114 = vmatmul.bf16.gmra.mxu1 %v18660_v9 }
 0x844   :  { %v5158_v37 = vpop.f32.mrf.mxu3 }
 0x845   :  { %v5159_v48 = vadd.f32 %v5158_v37, %v14419_v45  ;;  %v18670_v37 = vld [vmem:[#allocation75_spill] sm:$0xff] }
 0x846   :  { %9397 = vmatmul.msk.bf16.gmra.mxu2 %vm2140_vm2, %v18554_v18 }
 0x847   :  { %v14542_v36 = vpop.f32.mrf.mxu0 }
 0x848   :  { %18668 = vst [vmem:[#allocation240_spill] sm:$0xff] %v14542_v36 }
 0x849   :  { %10885 = vrot.lane.b32.xlu2 %v18663_v54, %s11273_s3  ;;  %v14525_v1 = vpop.f32.mrf.mxu2  ;;  %v14531_v11 = vpop.f32.mrf.mxu1  ;;  %v18667_v54 = vpack.i.bf16 %v18665_v35, %v18666_v25 }
 0x84c   :  { %v5160_v59 = vpop.f32.mrf.mxu3 }
 0x84d   :  { %v5161_v19 = vadd.f32 %v5160_v59, %v14429_v51  ;;  %v18669_v51 = vld [vmem:[#allocation77_spill] sm:$0xff]  ;;  %v18673_v59 = vld [vmem:[#allocation134_spill] sm:$0xff] }
 0x84f   :  { %v10874_v14 = vpack.i.bf16 %v5161_v19, %v5159_v48  ;;  %v18674_v48 = vld [vmem:[#allocation57_spill] sm:$0xff] }
 0x850   :  { %v18675_v19 = vpack.i.bf16 %v18673_v59, %v18674_v48  ;;  %v18681_v48 = vld [vmem:[#allocation140_spill] sm:$0xff] }
 0x851   :  { %9410 = vmatmul.msk.bf16.gmra.mxu3 %vm2140_vm2, %v18490_v22  ;;  %10875 = vrot.lane.b32.xlu0 %v10874_v14, %s11273_s3  ;;  %v14536_v9 = vpop.f32.mrf.mxu2  ;;  %v14544_v45 = vpop.f32.mrf.mxu1  ;;  %v18671_v22 = vpack.i.bf16 %v18669_v51, %v18670_v37  ;;  %v18677_v51 = vld [vmem:[#allocation80_spill] sm:$0xff]  ;;  %v18678_v37 = vld [vmem:[#allocation78_spill] sm:$0xff] }
 0x852   :  { %10900 = vrot.lane.b32.xlu2 %v18667_v54, %s11273_s3  ;;  %5119 = vmatmul.bf16.gmra.mxu1 %v18562_v38  ;;  %v14561_v38 = vpop.f32.mrf.mxu0 }
 0x853   :  { %18676 = vst [vmem:[#allocation49_spill] sm:$0xff] %v14561_v38  ;;  %v18705_v38 = vld [vmem:[#allocation95_spill] sm:$0xff] }
 0x854   :  { %v5163_v40 = vpop.f32.mrf.mxu3 }
 0x855   :  { %v5164_v25 = vadd.f32 %v5163_v40, %v14436_v57  ;;  %v18682_v57 = vld [vmem:[#allocation139_spill] sm:$0xff] }
 0x856   :  { %v18683_v40 = vpack.i.bf16 %v18681_v48, %v18682_v57  ;;  %v18691_v48 = vld [vmem:[#allocation143_spill] sm:$0xff] }
 0x859   :  { %10890 = vrot.lane.b32.xlu0 %v18671_v22, %s11273_s3  ;;  %v14551_v14 = vpop.f32.mrf.mxu2  ;;  %v14559_v60 = vpop.f32.mrf.mxu1  ;;  %v18679_v22 = vpack.i.bf16 %v18677_v51, %v18678_v37 }
 0x85a   :  { %18672 = vst [vmem:[#allocation64_spill] sm:$0xff] %v14551_v14  ;;  %10915 = vrot.lane.b32.xlu2 %v18675_v19, %s11273_s3 }
 0x85c   :  { %v5165_v35 = vpop.f32.mrf.mxu3 }
 0x85d   :  { %v5166_v54 = vadd.f32 %v5165_v35, %v14455_v58 }
 0x85f   :  { %v10879_v36 = vpack.i.bf16 %v5166_v54, %v5164_v25  ;;  %v18686_v25 = vld [vmem:[#allocation107_spill] sm:$0xff]  ;;  %v18687_v54 = vld [vmem:[#allocation82_spill] sm:$0xff] }
 0x860   :  { %v18688_v51 = vpack.i.bf16 %v18686_v25, %v18687_v54  ;;  %v10597_v54 = vld [vmem:[%s17750_s4 + $0x70] sm:$0xff] }
 0x861   :  { %9411 = vmatmul.msk.bf16.gmra.mxu3 %vm2140_vm2, %v18498_v62  ;;  %10905 = vrot.lane.b32.xlu0 %v18679_v22, %s11273_s3  ;;  %v14569_v59 = vpop.f32.mrf.mxu2  ;;  %v14579_v35 = vpop.f32.mrf.mxu1  ;;  %v18685_v62 = vld [vmem:[#allocation13_spill] sm:$0xff]  ;;  %v18690_v22 = vld [vmem:[#allocation144_spill] sm:$0xff] }
 0x862   :  { %18680 = vst [vmem:[#allocation47_spill] sm:$0xff] %v14569_v59  ;;  %10930 = vrot.lane.b32.xlu2 %v18683_v40, %s11273_s3  ;;  %10880 = vrot.lane.b32.xlu1 %v10879_v36, %s11273_s3  ;;  %v18692_v57 = vpack.i.bf16 %v18690_v22, %v18691_v48  ;;  %v18693_v36 = vld [vmem:[#allocation92_spill] sm:$0xff]  ;;  %v18698_v22 = vld [vmem:[#allocation109_spill] sm:$0xff]  ;;  %v18730_v59 = vld [vmem:[#allocation170_spill] sm:$0xff] }
 0x863   :  { %5124 = vmatmul.bf16.gmra.mxu1 %v18685_v62  ;;  %v14599_v62 = vpop.f32.mrf.mxu0  ;;  %v18699_v48 = vld [vmem:[#allocation116_spill] sm:$0xff] }
 0x864   :  { %v5168_v58 = vpop.f32.mrf.mxu3  ;;  %18696 = vst [vmem:[#allocation77_spill] sm:$0xff] %v14599_v62  ;;  %v18706_v62 = vld [vmem:[#allocation93_spill] sm:$0xff] }
 0x865   :  { %v14577_v19 = vadd.f32 %v5168_v58, %v14464_v47  ;;  %v18694_v47 = vld [vmem:[#allocation91_spill] sm:$0xff]  ;;  %v10598_v58 = vld [vmem:[%s17750_s4 + $0x78] sm:$0xff] }
 0x866   :  { %v18695_v40 = vpack.i.bf16 %v18693_v36, %v18694_v47  ;;  %5846 = vmatpush.bf16.msrb.mxu2 %v10598_v58  ;;  %v18702_v47 = vld [vmem:[#allocation168_spill] sm:$0xff] }
 0x867   :  { %18684 = vst [vmem:[#allocation54_spill] sm:$0xff] %v14577_v19 }
 0x869   :  { %10920 = vrot.lane.b32.xlu0 %v18688_v51, %s11273_s3  ;;  %v14586_v37 = vpop.f32.mrf.mxu2  ;;  %v14606_v51 = vpop.f32.mrf.mxu1 }
 0x86a   :  { %18689 = vst [vmem:[#allocation51_spill] sm:$0xff] %v14586_v37  ;;  %10945 = vrot.lane.b32.xlu2 %v18692_v57, %s11273_s3  ;;  %10895 = vrot.lane.b32.xlu1 %v18695_v40, %s11273_s3  ;;  %v18700_v57 = vpack.i.bf16 %v18698_v22, %v18699_v48  ;;  %v18703_v40 = vld [vmem:[#allocation167_spill] sm:$0xff]  ;;  %v18707_v37 = vpack.i.bf16 %v18705_v38, %v18706_v62  ;;  %v18711_v38 = vld [vmem:[#allocation113_spill] sm:$0xff] }
 0x86b   :  { %5847 = vmatpush.bf16.msrb.mxu2 %v10597_v54  ;;  %v18704_v58 = vpack.i.bf16 %v18702_v47, %v18703_v40  ;;  %v14627_v22 = vpop.f32.mrf.mxu0 }
 0x86c   :  { %v14601_v25 = vpop.f32.mrf.mxu3  ;;  %18708 = vst [vmem:[#allocation57_spill] sm:$0xff] %v14627_v22  ;;  %v18719_v22 = vld [vmem:[#allocation97_spill] sm:$0xff] }
 0x86d   :  { %18697 = vst [vmem:[#allocation75_spill] sm:$0xff] %v14601_v25 }
 0x871   :  { %9412 = vmatmul.msk.bf16.gmra.mxu3 %vm2140_vm2, %v18507_v63  ;;  %10935 = vrot.lane.b32.xlu0 %v18700_v57, %s11273_s3  ;;  %v14614_v36 = vpop.f32.mrf.mxu2  ;;  %v10596_v63 = vld [vmem:[%s17750_s4 + $0x68] sm:$0xff]  ;;  %v10595_v57 = vld [vmem:[%s17750_s4 + $0x60] sm:$0xff]  ;;  %v14635_v47 = vpop.f32.mrf.mxu1 }
 0x872   :  { %18701 = vst [vmem:[#allocation134_spill] sm:$0xff] %v14614_v36  ;;  %10960 = vrot.lane.b32.xlu2 %v18704_v58, %s11273_s3  ;;  %10910 = vrot.lane.b32.xlu1 %v18707_v37, %s11273_s3  ;;  %v18712_v37 = vld [vmem:[#allocation120_spill] sm:$0xff]  ;;  %v18715_v58 = vld [vmem:[#allocation105_spill] sm:$0xff] }
 0x873   :  { %5848 = vmatpush.bf16.msrb.mxu2 %v10596_v63  ;;  %18710 = vst [vmem:[#allocation78_spill] sm:$0xff] %v14635_v47  ;;  %5129 = vmatmul.bf16.gmra.mxu1 %v18573_v44  ;;  %v18713_v62 = vpack.i.bf16 %v18711_v38, %v18712_v37  ;;  %v10594_v44 = vld [vmem:[%s17750_s4 + $0x58] sm:$0xff]  ;;  %v10593_v38 = vld [vmem:[%s17750_s4 + $0x50] sm:$0xff]  ;;  %v14660_v37 = vpop.f32.mrf.mxu0 }
 0x874   :  { %v5173_v54 = vpop.f32.mrf.mxu3  ;;  %18722 = vst [vmem:[#allocation13_spill] sm:$0xff] %v14660_v37  ;;  %v18729_v37 = vld [vmem:[#allocation171_spill] sm:$0xff] }
 0x875   :  { %v14630_v48 = vadd.f32 %v5173_v54, %v14490_v17  ;;  %v18716_v17 = vld [vmem:[#allocation102_spill] sm:$0xff]  ;;  %v18731_v14 = vpack.i.bf16 %v18729_v37, %v18730_v59 }
 0x876   :  { %v18717_v63 = vpack.i.bf16 %v18715_v58, %v18716_v17  ;;  %v18718_v54 = vld [vmem:[#allocation166_spill] sm:$0xff] }
 0x877   :  { %18709 = vst [vmem:[#allocation80_spill] sm:$0xff] %v14630_v48  ;;  %5849 = vmatpush.bf16.msrb.mxu2 %v10595_v57  ;;  %v18720_v36 = vpack.i.bf16 %v18718_v54, %v18719_v22  ;;  %v18724_v22 = vld [vmem:[#allocation148_spill] sm:$0xff]  ;;  %v10591_v59 = vld [vmem:[%s17750_s4 + $0x40] sm:$0xff] }
 0x878   :  { %v18727_v54 = vld [vmem:[#allocation136_spill] sm:$0xff]  ;;  %v18749_v48 = vld [vmem:[#allocation10_spill] sm:$0xff] }
 0x879   :  { %10950 = vrot.lane.b32.xlu0 %v18713_v62, %s11273_s3  ;;  %v14642_v40 = vpop.f32.mrf.mxu2  ;;  %v14662_v62 = vpop.f32.mrf.mxu1 }
 0x87a   :  { %18714 = vst [vmem:[#allocation140_spill] sm:$0xff] %v14642_v40  ;;  %10975 = vrot.lane.b32.xlu2 %v18717_v63, %s11273_s3  ;;  %10925 = vrot.lane.b32.xlu1 %v18720_v36, %s11273_s3  ;;  %v18723_v36 = vld [vmem:[#allocation150_spill] sm:$0xff]  ;;  %v18733_v40 = vld [vmem:[#allocation199_spill] sm:$0xff] }
 0x87b   :  { %5850 = vmatpush.bf16.msrb.mxu2 %v10594_v44  ;;  %v18725_v58 = vpack.i.bf16 %v18723_v36, %v18724_v22  ;;  %v18726_v63 = vld [vmem:[#allocation206_spill] sm:$0xff]  ;;  %v18734_v22 = vld [vmem:[#allocation213_spill] sm:$0xff] }
 0x87c   :  { %v14655_v57 = vpop.f32.mrf.mxu3  ;;  %v18728_v44 = vpack.i.bf16 %v18726_v63, %v18727_v54  ;;  %v14695_v54 = vpop.f32.mrf.mxu0 }
 0x87d   :  { %18721 = vst [vmem:[#allocation139_spill] sm:$0xff] %v14655_v57 }
 0x87e   :  { %18738 = vst [vmem:[#allocation144_spill] sm:$0xff] %v14695_v54 }
 0x87f   :  { %5851 = vmatpush.bf16.msrb.mxu2 %v10593_v38  ;;  %v18732_v38 = vld [vmem:[#allocation208_spill] sm:$0xff] }
 0x880   :  { %v3584_v36 = vadd.f32 %v18733_v40, %v18732_v38  ;;  %v18739_v40 = vld [vmem:[#allocation185_spill] sm:$0xff] }
 0x881   :  { %9413 = vmatmul.msk.bf16.gmra.mxu3 %vm2140_vm2, %v18513_v8  ;;  %10965 = vrot.lane.b32.xlu0 %v18725_v58, %s11273_s3  ;;  %v14670_v17 = vpop.f32.mrf.mxu2  ;;  %v10592_v8 = vld [vmem:[%s17750_s4 + $0x48] sm:$0xff]  ;;  %v18735_v58 = vld [vmem:[#allocation201_spill] sm:$0xff] }
 0x882   :  { %10990 = vrot.lane.b32.xlu2 %v18728_v44, %s11273_s3  ;;  %10940 = vrot.lane.b32.xlu1 %v18731_v14, %s11273_s3  ;;  %v3586_v47 = vadd.f32 %v18735_v58, %v18734_v22  ;;  %v14693_v14 = vpop.f32.mrf.mxu1  ;;  %v18740_v44 = vld [vmem:[#allocation153_spill] sm:$0xff]  ;;  %v18745_v58 = vld [vmem:[#allocation216_spill] sm:$0xff] }
 0x883   :  { %5852 = vmatpush.bf16.msrb.mxu2 %v10592_v8  ;;  %18737 = vst [vmem:[#allocation82_spill] sm:$0xff] %v14693_v14  ;;  %v18741_v38 = vpack.i.bf16 %v18739_v40, %v18740_v44  ;;  %v18746_v14 = vld [vmem:[#allocation205_spill] sm:$0xff]  ;;  %v14714_v40 = vadd.f32 %v14423_v31, %v18749_v48  ;;  %v18754_v31 = vld [vmem:[#allocation192_spill] sm:$0xff] }
 0x884   :  { %v5178_v57 = vpop.f32.mrf.mxu3  ;;  %v11004_v37 = vpack.i.bf16 %v3586_v47, %v3584_v36  ;;  %v3589_v47 = vadd.f32 %v18746_v14, %v18745_v58  ;;  %v18747_v36 = vld [vmem:[#allocation219_spill] sm:$0xff] }
 0x885   :  { %v14688_v63 = vadd.f32 %v5178_v57, %v14509_v39  ;;  %v18742_v39 = vld [vmem:[#allocation175_spill] sm:$0xff]  ;;  %v18743_v57 = vld [vmem:[#allocation174_spill] sm:$0xff] }
 0x886   :  { %v18744_v8 = vpack.i.bf16 %v18742_v39, %v18743_v57  ;;  %v18750_v14 = vld [vmem:[#allocation239_spill] sm:$0xff]  ;;  %v18751_v57 = vld [vmem:[#allocation238_spill] sm:$0xff] }
 0x887   :  { %18736 = vst [vmem:[#allocation107_spill] sm:$0xff] %v14688_v63  ;;  %5853 = vmatpush.bf16.msrb.mxu2 %v10591_v59  ;;  %v18748_v59 = vld [vmem:[#allocation207_spill] sm:$0xff] }
 0x888   :  { %v3591_v54 = vadd.f32 %v18748_v59, %v18747_v36  ;;  %v18758_v36 = vld [vmem:[#allocation229_spill] sm:$0xff] }
 0x889   :  { %10980 = vrot.lane.b32.xlu0 %v18741_v38, %s11273_s3  ;;  %v14701_v22 = vpop.f32.mrf.mxu2  ;;  %v18760_v59 = vld [vmem:[#allocation233_spill] sm:$0xff] }
 0x88a   :  { %11005 = vrot.lane.b32.xlu2 %v11004_v37, %s11273_s3  ;;  %10955 = vrot.lane.b32.xlu1 %v18744_v8, %s11273_s3  ;;  %v14721_v38 = vpop.f32.mrf.mxu1  ;;  %v11019_v39 = vpack.i.bf16 %v3591_v54, %v3589_v47  ;;  %v18752_v8 = vpack.i.bf16 %v18750_v14, %v18751_v57  ;;  %v18759_v47 = vld [vmem:[#allocation244_spill] sm:$0xff]  ;;  %v14740_v37 = vpop.f32.mrf.mxu0 }
 0x88b   :  { %18761 = vst [vmem:[#allocation92_spill] sm:$0xff] %v14740_v37 }
 0x88c   :  { %v5180_v63 = vpop.f32.mrf.mxu3 }
 0x88d   :  { %v14717_v44 = vadd.f32 %v5180_v63, %v14518_v12  ;;  %v18755_v12 = vld [vmem:[#allocation191_spill] sm:$0xff]  ;;  %v18757_v63 = vld [vmem:[#allocation241_spill] sm:$0xff] }
 0x88e   :  { %v18756_v48 = vpack.i.bf16 %v18754_v31, %v18755_v12  ;;  %v3609_v54 = vadd.f32 %v18758_v36, %v18757_v63  ;;  %v18762_v31 = vld [vmem:[#allocation301_spill] sm:$0xff]  ;;  %v18763_v12 = vld [vmem:[#allocation300_spill] sm:$0xff] }
 0x88f   :  { %v18765_v63 = vld [vmem:[#allocation197_spill] sm:$0xff]  ;;  %v18766_v36 = vld [vmem:[#allocation196_spill] sm:$0xff] }
 0x891   :  { %9414 = vmatmul.msk.bf16.gmra.mxu3 %vm2140_vm2, %v18517_v43  ;;  %10995 = vrot.lane.b32.xlu0 %v18752_v8, %s11273_s3  ;;  %v14729_v58 = vpop.f32.mrf.mxu2  ;;  %v3611_v43 = vadd.f32 %v18760_v59, %v18759_v47  ;;  %v18767_v47 = vpack.i.bf16 %v18765_v63, %v18766_v36  ;;  %v18768_v59 = vld [vmem:[#allocation247_spill] sm:$0xff] }
 0x892   :  { %18753 = vst [vmem:[#allocation143_spill] sm:$0xff] %v14729_v58  ;;  %11020 = vrot.lane.b32.xlu2 %v11019_v39, %s11273_s3  ;;  %10970 = vrot.lane.b32.xlu1 %v18756_v48, %s11273_s3  ;;  %v14745_v8 = vpop.f32.mrf.mxu1  ;;  %v18764_v48 = vpack.i.bf16 %v18762_v31, %v18763_v12  ;;  %v14766_v31 = vpop.f32.mrf.mxu0 }
 0x893   :  { %v11009_v57 = vpack.i.bf16 %v3611_v43, %v3609_v54  ;;  %v18770_v54 = vld [vmem:[#allocation250_spill] sm:$0xff]  ;;  %18773 = vst [vmem:[#allocation91_spill] sm:$0xff] %v14766_v31 }
 0x894   :  { %v5183_v25 = vpop.f32.mrf.mxu3  ;;  %v18771_v43 = vld [vmem:[#allocation242_spill] sm:$0xff] }
 0x895   :  { %v14743_v14 = vadd.f32 %v5183_v25, %v14531_v11  ;;  %v18769_v11 = vld [vmem:[#allocation237_spill] sm:$0xff]  ;;  %v3616_v37 = vadd.f32 %v18771_v43, %v18770_v54 }
 0x896   :  { %v3614_v25 = vadd.f32 %v18769_v11, %v18768_v59  ;;  %v18776_v59 = vld [vmem:[#allocation303_spill] sm:$0xff]  ;;  %v18783_v43 = vld [vmem:[#allocation273_spill] sm:$0xff] }
 0x898   :  { %v11024_v63 = vpack.i.bf16 %v3616_v37, %v3614_v25  ;;  %v18781_v37 = vld [vmem:[#allocation8_spill] sm:$0xff] }
 0x899   :  { %11010 = vrot.lane.b32.xlu0 %v11009_v57, %s11273_s3  ;;  %v14748_v39 = vpop.f32.mrf.mxu2  ;;  %v18772_v57 = vld [vmem:[#allocation224_spill] sm:$0xff] }
 0x89a   :  { %11035 = vrot.lane.b32.xlu2 %v18764_v48, %s11273_s3  ;;  %10985 = vrot.lane.b32.xlu1 %v18767_v47, %s11273_s3  ;;  %v4754_v13 = vadd.f32 %v14288_v7, %v18772_v57  ;;  %v14771_v47 = vpop.f32.mrf.mxu1  ;;  %v18782_v25 = vld [vmem:[#allocation268_spill] sm:$0xff]  ;;  %v18784_v57 = vld [vmem:[#allocation271_spill] sm:$0xff] }
 0x89b   :  { %v10871_v19 = vpop.permute.xlu2 %10870  ;;  %v3634_v54 = vadd.f32 %v18782_v25, %v18781_v37 }
 0x89c   :  { %v10873_v5 = vunpack.i.h.bf16 %v10871_v19  ;;  %v10872_v18 = vunpack.i.l.bf16 %v10871_v19  ;;  %v14764_v58 = vpop.f32.mrf.mxu3  ;;  %v18775_v19 = vld [vmem:[#allocation304_spill] sm:$0xff] }
 0x89d   :  { %v18777_v11 = vpack.i.bf16 %v18775_v19, %v18776_v59  ;;  %v10613_v59 = vld [vmem:[%s17750_s4 + $0xf0] sm:$0xff] }
 0x89e   :  { %v4941_v12 = vsel %vm2536_vm3, %v4754_v13, %v10872_v18  ;;  %v5337_v48 = vsel %vm2536_vm3, %v14451_v56, %v10873_v5  ;;  %v18778_v18 = vld [vmem:[#allocation269_spill] sm:$0xff] }
 0x89f   :  { %v5442_v36 = vpack.c.bf16 %v5337_v48, %v4941_v12  ;;  %v18779_v13 = vld [vmem:[#allocation169_spill] sm:$0xff]  ;;  %v3636_v12 = vadd.f32 %v18784_v57, %v18783_v43 }
 0x8a0   :  { %v18780_v5 = vpack.i.bf16 %v18778_v18, %v18779_v13  ;;  %v10614_v56 = vld [vmem:[%s17750_s4 + $0xf8] sm:$0xff] }
 0x8a1   :  { %9415 = vmatmul.msk.bf16.gmra.mxu3 %vm2140_vm2, %v18176_v46  ;;  %11025 = vrot.lane.b32.xlu0 %v11024_v63, %s11273_s3  ;;  %v14776_v7 = vpop.f32.mrf.mxu2  ;;  %v11014_v43 = vpack.i.bf16 %v3636_v12, %v3634_v54  ;;  %v10606_v54 = vld [vmem:[%s17750_s4 + $0xb8] sm:$0xff]  ;;  %v10612_v12 = vld [vmem:[%s17750_s4 + $0xe8] sm:$0xff] }
 0x8a2   :  { %18774 = vst [vmem:[#allocation109_spill] sm:$0xff] %v14776_v7  ;;  %11050 = vrot.lane.b32.xlu2 %v18777_v11, %s11273_s3  ;;  %11000 = vrot.lane.b32.xlu1 %v18780_v5, %s11273_s3  ;;  %v18785_v11 = vld [vmem:[#allocation39_spill] sm:$0xff]  ;;  %v14802_v5 = vpop.f32.mrf.mxu0  ;;  %v14804_v25 = vpop.f32.mrf.mxu1 }
 0x8a3   :  { %5830 = vmatmul.bf16.gmra.mxu0 %v5442_v36  ;;  %v10886_v46 = vpop.permute.xlu2 %10885  ;;  %6064 = vmatpush.bf16.msrb.mxu1 %v10614_v56  ;;  %v18786_v36 = vld [vmem:[#allocation36_spill] sm:$0xff]  ;;  %18787 = vst [vmem:[#allocation116_spill] sm:$0xff] %v14802_v5  ;;  %v18803_v5 = vld [vmem:[#allocation26_spill] sm:$0xff] }
 0x8a4   :  { %v10888_v48 = vunpack.i.h.bf16 %v10886_v46  ;;  %v10887_v63 = vunpack.i.l.bf16 %v10886_v46  ;;  %v14793_v19 = vpop.f32.mrf.mxu3  ;;  %18788 = vst [vmem:[#allocation168_spill] sm:$0xff] %v14804_v25  ;;  %v18789_v46 = vld [vmem:[#allocation66_spill] sm:$0xff]  ;;  %v18790_v56 = vld [vmem:[#allocation24_spill] sm:$0xff]  ;;  %5955 = vmatpush.bf16.msrb.mxu0 %v10606_v54 }
 0x8a5   :  { %v18791_v57 = vpack.i.bf16 %v18789_v46, %v18790_v56 }
 0x8a6   :  { %v2543_v18 = vsel %vm2536_vm3, %v18785_v11, %v10888_v48  ;;  %v2542_v13 = vsel %vm2536_vm3, %v18786_v36, %v10887_v63  ;;  %v18793_v48 = vld [vmem:[#allocation307_spill] sm:$0xff]  ;;  %v18794_v11 = vld [vmem:[#allocation276_spill] sm:$0xff]  ;;  %v18798_v36 = vld [vmem:[#allocation278_spill] sm:$0xff] }
 0x8a7   :  { %v5358_v37 = vpack.c.bf16 %v2543_v18, %v2542_v13  ;;  %6065 = vmatpush.bf16.msrb.mxu1 %v10613_v59  ;;  %v18795_v7 = vpack.i.bf16 %v18793_v48, %v18794_v11  ;;  %v18796_v63 = vld [vmem:[#allocation275_spill] sm:$0xff]  ;;  %v18797_v59 = vld [vmem:[#allocation274_spill] sm:$0xff]  ;;  %v18799_v13 = vld [vmem:[#allocation277_spill] sm:$0xff] }
 0x8a8   :  { %v3639_v18 = vadd.f32 %v18797_v59, %v18796_v63  ;;  %v10611_v48 = vld [vmem:[%s17750_s4 + $0xe0] sm:$0xff]  ;;  %v18801_v63 = vld [vmem:[#allocation41_spill] sm:$0xff] }
 0x8a9   :  { %11040 = vrot.lane.b32.xlu0 %v18791_v57, %s11273_s3  ;;  %5854 = vmatmul.bf16.vlgmr.msrb.gmra.mxu2 %v5358_v37  ;;  %v14810_v31 = vpop.f32.mrf.mxu2  ;;  %v3641_v37 = vadd.f32 %v18799_v13, %v18798_v36  ;;  %v10605_v57 = vld [vmem:[%s17750_s4 + $0xb0] sm:$0xff]  ;;  %v18802_v36 = vld [vmem:[#allocation43_spill] sm:$0xff] }
 0x8aa   :  { %18792 = vst [vmem:[#allocation167_spill] sm:$0xff] %v14810_v31  ;;  %11065 = vrot.lane.b32.xlu2 %v18795_v7, %s11273_s3  ;;  %11015 = vrot.lane.b32.xlu1 %v11014_v43, %s11273_s3  ;;  %v14835_v11 = vpop.f32.mrf.mxu0  ;;  %v14841_v54 = vpop.f32.mrf.mxu1  ;;  %v18804_v31 = vld [vmem:[#allocation248_spill] sm:$0xff] }
 0x8ab   :  { %6066 = vmatpush.bf16.msrb.mxu1 %v10612_v12  ;;  %18800 = vst [vmem:[#allocation95_spill] sm:$0xff] %v14835_v11  ;;  %v11029_v12 = vpack.i.bf16 %v3641_v37, %v3639_v18  ;;  %5956 = vmatpush.bf16.msrb.mxu0 %v10605_v57  ;;  %v18805_v25 = vpack.i.bf16 %v18803_v5, %v18804_v31  ;;  %v10604_v18 = vld [vmem:[%s17750_s4 + $0xa8] sm:$0xff] }
 0x8ac   :  { %v10901_v46 = vpop.permute.xlu2 %10900  ;;  %v14827_v56 = vpop.f32.mrf.mxu3  ;;  %v18810_v5 = vld [vmem:[#allocation79_spill] sm:$0xff] }
 0x8ad   :  { %v10903_v7 = vunpack.i.h.bf16 %v10901_v46  ;;  %v10902_v43 = vunpack.i.l.bf16 %v10901_v46 }
 0x8af   :  { %v2544_v59 = vsel %vm2536_vm3, %v18801_v63, %v10902_v43  ;;  %v2545_v13 = vsel %vm2536_vm3, %v18802_v36, %v10903_v7  ;;  %6067 = vmatpush.bf16.msrb.mxu1 %v10611_v48  ;;  %v18807_v43 = vld [vmem:[#allocation310_spill] sm:$0xff]  ;;  %v18808_v63 = vld [vmem:[#allocation308_spill] sm:$0xff]  ;;  %5957 = vmatpush.bf16.msrb.mxu0 %v10604_v18 }
 0x8b0   :  { %v5363_v46 = vpack.c.bf16 %v2545_v13, %v2544_v59  ;;  %v18809_v7 = vpack.i.bf16 %v18807_v43, %v18808_v63  ;;  %v10603_v13 = vld [vmem:[%s17750_s4 + $0xa0] sm:$0xff]  ;;  %v18812_v43 = vld [vmem:[#allocation45_spill] sm:$0xff] }
 0x8b1   :  { %9416 = vmatmul.msk.bf16.gmra.mxu3 %vm2140_vm2, %v18181_v29  ;;  %11055 = vrot.lane.b32.xlu0 %v18805_v25, %s11273_s3  ;;  %v14849_v11 = vpop.f32.mrf.mxu2  ;;  %v10610_v29 = vld [vmem:[%s17750_s4 + $0xd8] sm:$0xff]  ;;  %v18811_v25 = vld [vmem:[#allocation128_spill] sm:$0xff] }
 0x8b2   :  { %18806 = vst [vmem:[#allocation93_spill] sm:$0xff] %v14849_v11  ;;  %11080 = vrot.lane.b32.xlu2 %v18809_v7, %s11273_s3  ;;  %11030 = vrot.lane.b32.xlu1 %v11029_v12, %s11273_s3  ;;  %v2769_v57 = vadd.f32 %v18811_v25, %v18810_v5  ;;  %v10609_v12 = vld [vmem:[%s17750_s4 + $0xd0] sm:$0xff]  ;;  %v14876_v18 = vpop.f32.mrf.mxu1  ;;  %v18816_v5 = vld [vmem:[#allocation311_spill] sm:$0xff] }
 0x8b3   :  { %6068 = vmatpush.bf16.msrb.mxu1 %v10610_v29  ;;  %5958 = vmatpush.bf16.msrb.mxu0 %v10603_v13  ;;  %v18817_v25 = vpack.i.bf16 %v14162_v15, %v18816_v5  ;;  %v10602_v13 = vld [vmem:[%s17750_s4 + $0x98] sm:$0xff] }
 0x8b4   :  { %v10916_v37 = vpop.permute.xlu2 %10915  ;;  %v5193_v31 = vpop.f32.mrf.mxu3  ;;  %v18821_v15 = vld [vmem:[#allocation81_spill] sm:$0xff] }
 0x8b5   :  { %v10918_v48 = vunpack.i.h.bf16 %v10916_v37  ;;  %v10917_v59 = vunpack.i.l.bf16 %v10916_v37  ;;  %v14865_v36 = vadd.f32 %v5193_v31, %v14606_v51  ;;  %v14878_v51 = vpop.f32.mrf.mxu0  ;;  %v18814_v37 = vpack.i.bf16 %v14246_v49, %v14243_v3  ;;  %v10608_v3 = vld [vmem:[%s17750_s4 + $0xc8] sm:$0xff] }
 0x8b6   :  { %18813 = vst [vmem:[#allocation113_spill] sm:$0xff] %v14878_v51 }
 0x8b7   :  { %v2546_v63 = vsel %vm2536_vm3, %v18812_v43, %v10917_v59  ;;  %v2942_v7 = vsel %vm2536_vm3, %v2769_v57, %v10918_v48  ;;  %6069 = vmatpush.bf16.msrb.mxu1 %v10609_v12  ;;  %v18818_v57 = vld [vmem:[#allocation309_spill] sm:$0xff]  ;;  %v18819_v48 = vld [vmem:[#allocation3_spill] sm:$0xff]  ;;  %5959 = vmatpush.bf16.msrb.mxu0 %v10602_v13  ;;  %v18822_v12 = vld [vmem:[#allocation130_spill] sm:$0xff] }
 0x8b8   :  { %v5368_v29 = vpack.c.bf16 %v2942_v7, %v2546_v63  ;;  %v18820_v59 = vpack.i.bf16 %v18818_v57, %v18819_v48  ;;  %v2771_v43 = vadd.f32 %v18822_v12, %v18821_v15  ;;  %v18823_v63 = vld [vmem:[#allocation83_spill] sm:$0xff]  ;;  %v10601_v57 = vld [vmem:[%s17750_s4 + $0x90] sm:$0xff]  ;;  %v10607_v48 = vld [vmem:[%s17750_s4 + $0xc0] sm:$0xff] }
 0x8b9   :  { %11070 = vrot.lane.b32.xlu0 %v18814_v37, %s11273_s3  ;;  %5859 = vmatmul.bf16.gmra.mxu2 %v5363_v46  ;;  %v14884_v31 = vpop.f32.mrf.mxu2  ;;  %v18824_v7 = vld [vmem:[#allocation131_spill] sm:$0xff] }
 0x8ba   :  { %18815 = vst [vmem:[#allocation120_spill] sm:$0xff] %v14884_v31  ;;  %11095 = vrot.lane.b32.xlu2 %v18817_v25, %s11273_s3  ;;  %11045 = vrot.lane.b32.xlu1 %v18820_v59, %s11273_s3  ;;  %v2774_v37 = vadd.f32 %v18824_v7, %v18823_v63  ;;  %v14920_v15 = vpop.f32.mrf.mxu1  ;;  %v18828_v63 = vld [vmem:[#allocation313_spill] sm:$0xff] }
 0x8bb   :  { %6070 = vmatpush.bf16.msrb.mxu1 %v10608_v3  ;;  %5960 = vmatpush.bf16.msrb.mxu0 %v10601_v57  ;;  %v18829_v7 = vld [vmem:[#allocation5_spill] sm:$0xff] }
 0x8bc   :  { %v10931_v49 = vpop.permute.xlu2 %10930  ;;  %v14900_v46 = vpop.f32.mrf.mxu3 }
 0x8bd   :  { %v10933_v5 = vunpack.i.h.bf16 %v10931_v49  ;;  %v10932_v25 = vunpack.i.l.bf16 %v10931_v49  ;;  %v18825_v49 = vpack.i.bf16 %v14261_v61, %v14253_v10  ;;  %v18832_v61 = vld [vmem:[#allocation85_spill] sm:$0xff] }
 0x8bf   :  { %v14913_v59 = vsel %vm2536_vm3, %v2771_v43, %v10932_v25  ;;  %v14916_v13 = vsel %vm2536_vm3, %v2774_v37, %v10933_v5  ;;  %6071 = vmatpush.bf16.msrb.mxu1 %v10607_v48  ;;  %v18827_v43 = vpack.i.bf16 %v14392_v50, %v14389_v23  ;;  %v18830_v37 = vpack.i.bf16 %v18828_v63, %v18829_v7  ;;  %v14941_v5 = vpop.f32.mrf.mxu0  ;;  %v18833_v25 = vld [vmem:[#allocation132_spill] sm:$0xff]  ;;  %v18834_v63 = vld [vmem:[#allocation87_spill] sm:$0xff]  ;;  %v18835_v7 = vld [vmem:[#allocation133_spill] sm:$0xff] }
 0x8c0   :  { %18831 = vst [vmem:[#allocation102_spill] sm:$0xff] %v14941_v5  ;;  %v2776_v57 = vadd.f32 %v18833_v25, %v18832_v61  ;;  %v5146_v48 = vadd.f32 %v14462_v4, %v14368_v6  ;;  %v10599_v6 = vld [vmem:[%s17750_s4 + $0x80] sm:$0xff] }
 0x8c1   :  { %9417 = vmatmul.msk.bf16.gmra.mxu3 %vm2140_vm2, %v18536_v41  ;;  %11085 = vrot.lane.b32.xlu0 %v18825_v49, %s11273_s3  ;;  %v14928_v12 = vpop.f32.mrf.mxu2  ;;  %v10600_v41 = vld [vmem:[%s17750_s4 + $0x88] sm:$0xff] }
 0x8c2   :  { %18826 = vst [vmem:[#allocation105_spill] sm:$0xff] %v14928_v12  ;;  %11110 = vrot.lane.b32.xlu2 %v18827_v43, %s11273_s3  ;;  %11060 = vrot.lane.b32.xlu1 %v18830_v37, %s11273_s3  ;;  %v2779_v37 = vadd.f32 %v18835_v7, %v18834_v63  ;;  %v14964_v25 = vpop.f32.mrf.mxu1  ;;  %v18844_v63 = vld [vmem:[#allocation115_spill] sm:$0xff] }
 0x8c3   :  { %v10876_v10 = vpop.permute.xlu0 %10875  ;;  %5961 = vmatpush.bf16.msrb.mxu0 %v10600_v41  ;;  %18836 = vst [vmem:[#allocation166_spill] sm:$0xff] %v14964_v25  ;;  %v18977_v25 = vld [vmem:[#allocation288_spill] sm:$0xff] }
 0x8c4   :  { %v10878_v23 = vunpack.i.h.bf16 %v10876_v10  ;;  %v10877_v50 = vunpack.i.l.bf16 %v10876_v10  ;;  %v10946_v49 = vpop.permute.xlu2 %10945  ;;  %v5198_v43 = vpop.f32.mrf.mxu3 }
 0x8c5   :  { %v10948_v3 = vunpack.i.h.bf16 %v10946_v49  ;;  %v10947_v51 = vunpack.i.l.bf16 %v10946_v49  ;;  %v14950_v31 = vadd.f32 %v5198_v43, %v14662_v62  ;;  %v18843_v43 = vld [vmem:[#allocation123_spill] sm:$0xff] }
 0x8c6   :  { %v5338_v12 = vsel %vm2536_vm3, %v5146_v48, %v10877_v50  ;;  %v5339_v61 = vsel %vm2536_vm3, %v14477_v0, %v10878_v23  ;;  %v18837_v48 = vld [vmem:[#allocation14_spill] sm:$0xff]  ;;  %v18838_v0 = vld [vmem:[#allocation292_spill] sm:$0xff] }
 0x8c7   :  { %v5447_v4 = vpack.c.bf16 %v5339_v61, %v5338_v12  ;;  %v14959_v41 = vsel %vm2536_vm3, %v2776_v57, %v10947_v51  ;;  %v14962_v10 = vsel %vm2536_vm3, %v2779_v37, %v10948_v3  ;;  %5962 = vmatpush.bf16.msrb.mxu0 %v10599_v6  ;;  %v18839_v23 = vpack.i.bf16 %v18837_v48, %v18838_v0  ;;  %v18842_v12 = vld [vmem:[#allocation290_spill] sm:$0xff]  ;;  %v14990_v0 = vpop.f32.mrf.mxu0 }
 0x8c8   :  { %v5378_v62 = vpack.c.bf16 %v14962_v10, %v14959_v41  ;;  %v18840_v51 = vpack.i.bf16 %v14415_v27, %v14412_v2  ;;  %v18841_v3 = vpack.i.bf16 %v14317_v16, %v14315_v55  ;;  %v4809_v57 = vadd.f32 %v14504_v42, %v18842_v12  ;;  %v18845_v2 = vld [vmem:[#allocation125_spill] sm:$0xff]  ;;  %18847 = vst [vmem:[#allocation97_spill] sm:$0xff] %v14990_v0  ;;  %v18848_v55 = vld [vmem:[#allocation62_spill] sm:$0xff]  ;;  %v18889_v10 = vld [vmem:[#allocation156_spill] sm:$0xff] }
 0x8c9   :  { %11100 = vrot.lane.b32.xlu0 %v18839_v23, %s11273_s3  ;;  %5864 = vmatmul.bf16.gmra.mxu2 %v5368_v29  ;;  %v14972_v50 = vpop.f32.mrf.mxu2  ;;  %v3169_v29 = vadd.f32 %v18844_v63, %v18843_v43  ;;  %v18846_v27 = vld [vmem:[#allocation157_spill] sm:$0xff]  ;;  %v4806_v16 = vadd.f32 %v14494_v30, %v18848_v55  ;;  %v18855_v55 = vld [vmem:[#allocation160_spill] sm:$0xff] }
 0x8ca   :  { %11125 = vrot.lane.b32.xlu2 %v18840_v51, %s11273_s3  ;;  %11075 = vrot.lane.b32.xlu1 %v18841_v3, %s11273_s3  ;;  %v3171_v48 = vadd.f32 %v18846_v27, %v18845_v2  ;;  %v18850_v3 = vld [vmem:[#allocation60_spill] sm:$0xff]  ;;  %v15010_v30 = vpop.f32.mrf.mxu1  ;;  %v18853_v27 = vpack.i.bf16 %v14333_v24, %v14326_v32  ;;  %v5186_v32 = vadd.f32 %v14764_v58, %v14544_v45  ;;  %v18888_v41 = vld [vmem:[#allocation117_spill] sm:$0xff] }
 0x8cb   :  { %5835 = vmatmul.bf16.gmra.mxu0 %v5447_v4  ;;  %v10891_v49 = vpop.permute.xlu0 %10890  ;;  %v18849_v4 = vld [vmem:[#allocation65_spill] sm:$0xff]  ;;  %v18860_v45 = vld [vmem:[#allocation68_spill] sm:$0xff] }
 0x8cc   :  { %v10893_v7 = vunpack.i.h.bf16 %v10891_v49  ;;  %v10892_v37 = vunpack.i.l.bf16 %v10891_v49  ;;  %v10961_v61 = vpop.permute.xlu2 %10960  ;;  %v14986_v6 = vpop.f32.mrf.mxu3  ;;  %v11114_v49 = vpack.i.bf16 %v4809_v57, %v4806_v16 }
 0x8cd   :  { %v10963_v23 = vunpack.i.h.bf16 %v10961_v61  ;;  %v10962_v42 = vunpack.i.l.bf16 %v10961_v61 }
 0x8ce   :  { %v14996_v51 = vsel %vm2536_vm3, %v18849_v4, %v10893_v7  ;;  %v15000_v12 = vsel %vm2536_vm3, %v18850_v3, %v10892_v37  ;;  %v18851_v37 = vld [vmem:[#allocation145_spill] sm:$0xff]  ;;  %v5151_v4 = vadd.f32 %v14488_v21, %v14385_v26 }
 0x8cf   :  { %v5359_v43 = vpack.c.bf16 %v14996_v51, %v15000_v12  ;;  %v15005_v63 = vsel %vm2536_vm3, %v3169_v29, %v10962_v42  ;;  %v15008_v2 = vsel %vm2536_vm3, %v3171_v48, %v10963_v23  ;;  %v4814_v61 = vadd.f32 %v14525_v1, %v18851_v37  ;;  %v18854_v48 = vld [vmem:[#allocation126_spill] sm:$0xff]  ;;  %v18856_v23 = vld [vmem:[#allocation127_spill] sm:$0xff]  ;;  %v18890_v12 = vld [vmem:[#allocation168_spill] sm:$0xff] }
 0x8d0   :  { %v5383_v7 = vpack.c.bf16 %v15008_v2, %v15005_v63  ;;  %v18852_v29 = vpack.i.bf16 %v14717_v44, %v14714_v40  ;;  %v3174_v16 = vadd.f32 %v18855_v55, %v18854_v48  ;;  %v18857_v42 = vld [vmem:[#allocation162_spill] sm:$0xff]  ;;  %v18858_v44 = vld [vmem:[#allocation69_spill] sm:$0xff]  ;;  %v18914_v2 = vld [vmem:[#allocation259_spill] sm:$0xff] }
 0x8d1   :  { %9418 = vmatmul.msk.bf16.gmra.mxu3 %vm2140_vm2, %v18543_v20  ;;  %11115 = vrot.lane.b32.xlu0 %v11114_v49, %s11273_s3  ;;  %v4855_v57 = vpop.f32.mrf.mxu2  ;;  %v10618_v20 = vld [vmem:[%s17750_s4 + $0x118] sm:$0xff]  ;;  %v3176_v1 = vadd.f32 %v18857_v42, %v18856_v23  ;;  %v4811_v3 = vadd.f32 %v14514_v53, %v18858_v44  ;;  %v10617_v53 = vld [vmem:[%s17750_s4 + $0x110] sm:$0xff] }
 0x8d2   :  { %11140 = vrot.lane.b32.xlu2 %v18852_v29, %s11273_s3  ;;  %11090 = vrot.lane.b32.xlu1 %v18853_v27, %s11273_s3  ;;  %v15040_v29 = vpop.f32.mrf.mxu0 }
 0x8d3   :  { %v10906_v40 = vpop.permute.xlu0 %10905  ;;  %6177 = vmatpush.bf16.msrb.mxu3 %v10618_v20  ;;  %18859 = vst [vmem:[#allocation150_spill] sm:$0xff] %v15040_v29  ;;  %v11129_v26 = vpack.i.bf16 %v4814_v61, %v4811_v3  ;;  %v18861_v20 = vld [vmem:[#allocation72_spill] sm:$0xff] }
 0x8d4   :  { %v10908_v24 = vunpack.i.h.bf16 %v10906_v40  ;;  %v10907_v49 = vunpack.i.l.bf16 %v10906_v40  ;;  %v10976_v57 = vpop.permute.xlu2 %10975  ;;  %v10881_v37 = vpop.permute.xlu1 %10880 }
 0x8d5   :  { %v10978_v27 = vunpack.i.h.bf16 %v10976_v57  ;;  %v10977_v48 = vunpack.i.l.bf16 %v10976_v57  ;;  %v10883_v55 = vunpack.i.h.bf16 %v10881_v37  ;;  %v10882_v23 = vunpack.i.l.bf16 %v10881_v37  ;;  %v5203_v42 = vpop.f32.mrf.mxu3 }
 0x8d6   :  { %v15043_v21 = vadd.f32 %v5203_v42, %v14721_v38  ;;  %v15050_v58 = vsel %vm2536_vm3, %v18860_v45, %v10907_v49  ;;  %v15054_v40 = vsel %vm2536_vm3, %v18861_v20, %v10908_v24  ;;  %v11154_v57 = vpack.i.bf16 %v5186_v32, %v14743_v14  ;;  %v15065_v49 = vpop.f32.mrf.mxu1  ;;  %v18865_v32 = vld [vmem:[#allocation94_spill] sm:$0xff] }
 0x8d7   :  { %v5340_v44 = vsel %vm2536_vm3, %v5151_v4, %v10882_v23  ;;  %v5341_v61 = vsel %vm2536_vm3, %v14497_v52, %v10883_v55  ;;  %v5364_v38 = vpack.c.bf16 %v15054_v40, %v15050_v58  ;;  %v15062_v3 = vsel %vm2536_vm3, %v3174_v16, %v10977_v48  ;;  %18862 = vst [vmem:[#allocation148_spill] sm:$0xff] %v15065_v49  ;;  %v10616_v16 = vld [vmem:[%s17750_s4 + $0x108] sm:$0xff] }
 0x8d8   :  { %v5452_v37 = vpack.c.bf16 %v5341_v61, %v5340_v44  ;;  %6178 = vmatpush.bf16.msrb.mxu3 %v10617_v53  ;;  %v15068_v24 = vsel %vm2536_vm3, %v3176_v1, %v10978_v27  ;;  %v18863_v52 = vpack.c.bf16 %v14916_v13, %v14913_v59  ;;  %v18864_v14 = vpack.i.bf16 %v14348_v33, %v14341_v34  ;;  %v18866_v27 = vld [vmem:[#allocation53_spill] sm:$0xff]  ;;  %v18867_v13 = vld [vmem:[#allocation298_spill] sm:$0xff]  ;;  %v18868_v33 = vld [vmem:[#allocation296_spill] sm:$0xff] }
 0x8d9   :  { %11130 = vrot.lane.b32.xlu0 %v11129_v26, %s11273_s3  ;;  %v2794_v59 = vadd.f32 %v18866_v27, %v18865_v32  ;;  %v4834_v48 = vadd.f32 %v14701_v22, %v18867_v13  ;;  %v4816_v26 = vadd.f32 %v14536_v9, %v18868_v33  ;;  %v5191_v53 = vadd.f32 %v14827_v56, %v14579_v35  ;;  %v18869_v61 = vld [vmem:[#allocation181_spill] sm:$0xff] }
 0x8da   :  { %5869 = vmatmul.bf16.gmra.mxu2 %v18863_v52  ;;  %11105 = vrot.lane.b32.xlu1 %v18864_v14, %s11273_s3  ;;  %v18870_v52 = vld [vmem:[#allocation74_spill] sm:$0xff]  ;;  %v15107_v35 = vpop.f32.mrf.mxu0  ;;  %v5189_v56 = vadd.f32 %v14793_v19, %v14559_v60  ;;  %v18874_v60 = vld [vmem:[#allocation96_spill] sm:$0xff]  ;;  %v18875_v19 = vld [vmem:[#allocation63_spill] sm:$0xff] }
 0x8db   :  { %11155 = vrot.lane.b32.xlu2 %v11154_v57, %s11273_s3  ;;  %5840 = vmatmul.bf16.gmra.mxu0 %v5452_v37  ;;  %v10921_v1 = vpop.permute.xlu0 %10920  ;;  %v4831_v57 = vadd.f32 %v14670_v17, %v18869_v61  ;;  %v10615_v37 = vld [vmem:[%s17750_s4 + $0x100] sm:$0xff]  ;;  %18871 = vst [vmem:[#allocation206_spill] sm:$0xff] %v15107_v35 }
 0x8dc   :  { %v10923_v55 = vunpack.i.h.bf16 %v10921_v1  ;;  %v10922_v23 = vunpack.i.l.bf16 %v10921_v1  ;;  %v15088_v42 = vpop.permute.xlu2 %10990  ;;  %v10896_v34 = vpop.permute.xlu1 %10895  ;;  %6179 = vmatpush.bf16.msrb.mxu3 %v10616_v16  ;;  %v18872_v16 = vld [vmem:[#allocation86_spill] sm:$0xff] }
 0x8dd   :  { %v10898_v45 = vunpack.i.h.bf16 %v10896_v34  ;;  %v10897_v20 = vunpack.i.l.bf16 %v10896_v34  ;;  %v5205_v44 = vpop.f32.mrf.mxu3  ;;  %v11119_v27 = vpack.i.bf16 %v4834_v48, %v4831_v57  ;;  %v18876_v48 = vld [vmem:[#allocation98_spill] sm:$0xff] }
 0x8de   :  { %v5206_v22 = vadd.f32 %v5205_v44, %v14745_v8  ;;  %v15102_v14 = vsel %vm2536_vm3, %v18870_v52, %v10922_v23  ;;  %v15105_v9 = vsel %vm2536_vm3, %v2794_v59, %v10923_v55  ;;  %v18873_v8 = vld [vmem:[#allocation84_spill] sm:$0xff]  ;;  %v15117_v34 = vpop.f32.mrf.mxu1  ;;  %v11169_v59 = vpack.i.bf16 %v5191_v53, %v5189_v56  ;;  %v18879_v56 = vld [vmem:[#allocation299_spill] sm:$0xff] }
 0x8df   :  { %v2553_v17 = vsel %vm2536_vm3, %v18872_v16, %v10898_v45  ;;  %v2552_v1 = vsel %vm2536_vm3, %v18873_v8, %v10897_v20  ;;  %v2796_v55 = vadd.f32 %v18875_v19, %v18874_v60  ;;  %v18880_v16 = vld [vmem:[#allocation143_spill] sm:$0xff] }
 0x8e0   :  { %v5360_v13 = vpack.c.bf16 %v2553_v17, %v2552_v1  ;;  %v11144_v23 = vpack.i.bf16 %v5206_v22, %v4816_v26  ;;  %6180 = vmatpush.bf16.msrb.mxu3 %v10615_v37  ;;  %v18877_v26 = vld [vmem:[#allocation55_spill] sm:$0xff]  ;;  %v4836_v17 = vadd.f32 %v18880_v16, %v18879_v56 }
 0x8e1   :  { %9419 = vmatmul.msk.bf16.gmra.mxu3 %vm2140_vm2, %v18548_v28  ;;  %v2799_v45 = vadd.f32 %v18877_v26, %v18876_v48  ;;  %v18878_v28 = vld [vmem:[#allocation44_spill] sm:$0xff] }
 0x8e2   :  { %11145 = vrot.lane.b32.xlu0 %v11144_v23, %s11273_s3  ;;  %11120 = vrot.lane.b32.xlu1 %v11119_v27, %s11273_s3  ;;  %v4839_v57 = vadd.f32 %v14748_v39, %v18878_v28  ;;  %v18881_v27 = vld [vmem:[#allocation88_spill] sm:$0xff]  ;;  %v18882_v23 = vld [vmem:[#allocation89_spill] sm:$0xff]  ;;  %v15148_v48 = vpop.f32.mrf.mxu0 }
 0x8e3   :  { %6072 = vmatmul.bf16.vlgmr.msrb.gmra.mxu1 %v5360_v13  ;;  %v10936_v33 = vpop.permute.xlu0 %10935  ;;  %11170 = vrot.lane.b32.xlu2 %v11169_v59, %s11273_s3  ;;  %18883 = vst [vmem:[#allocation136_spill] sm:$0xff] %v15148_v48  ;;  %v18884_v26 = vld [vmem:[#allocation100_spill] sm:$0xff] }
 0x8e4   :  { %v10938_v20 = vunpack.i.h.bf16 %v10936_v33  ;;  %v10937_v44 = vunpack.i.l.bf16 %v10936_v33  ;;  %v15128_v53 = vpop.permute.xlu2 %11005  ;;  %v10911_v61 = vpop.permute.xlu1 %10910  ;;  %v11134_v60 = vpack.i.bf16 %v4839_v57, %v4836_v17 }
 0x8e5   :  { %v10913_v22 = vunpack.i.h.bf16 %v10911_v61  ;;  %v10912_v37 = vunpack.i.l.bf16 %v10911_v61  ;;  %v5208_v52 = vpop.f32.mrf.mxu3  ;;  %v18887_v61 = vld [vmem:[#allocation154_spill] sm:$0xff] }
 0x8e6   :  { %v15135_v8 = vsel %vm2536_vm3, %v2796_v55, %v10937_v44  ;;  %v15138_v1 = vsel %vm2536_vm3, %v2799_v45, %v10938_v20  ;;  %v15146_v33 = vpop.f32.mrf.mxu1  ;;  %v18885_v45 = vld [vmem:[#allocation151_spill] sm:$0xff]  ;;  %v18886_v44 = vld [vmem:[#allocation104_spill] sm:$0xff]  ;;  %v5209_v51 = vadd.f32 %v5208_v52, %v14771_v47 }
 0x8e7   :  { %v2554_v13 = vsel %vm2536_vm3, %v18881_v27, %v10912_v37  ;;  %v2555_v59 = vsel %vm2536_vm3, %v18882_v23, %v10913_v22  ;;  %v2801_v20 = vadd.f32 %v18885_v45, %v18884_v26  ;;  %v2804_v28 = vadd.f32 %v18887_v61, %v18886_v44  ;;  %v18893_v44 = vld [vmem:[#allocation119_spill] sm:$0xff] }
 0x8e8   :  { %v5365_v19 = vpack.c.bf16 %v2555_v59, %v2554_v13  ;;  %v18891_v59 = vld [vmem:[#allocation90_spill] sm:$0xff]  ;;  %v18894_v61 = vld [vmem:[#allocation159_spill] sm:$0xff] }
 0x8ea   :  { %5874 = vmatmul.bf16.gmra.mxu2 %v5378_v62  ;;  %11135 = vrot.lane.b32.xlu1 %v11134_v60, %s11273_s3  ;;  %v2819_v62 = vadd.f32 %v18889_v10, %v18888_v41  ;;  %v18897_v41 = vld [vmem:[#allocation138_spill] sm:$0xff]  ;;  %v18898_v10 = vld [vmem:[#allocation176_spill] sm:$0xff] }
 0x8eb   :  { %5963 = vmatmul.bf16.vlgmr.msrb.gmra.mxu0 %v5359_v43  ;;  %v10951_v55 = vpop.permute.xlu0 %10950 }
 0x8ec   :  { %v10953_v57 = vunpack.i.h.bf16 %v10951_v55  ;;  %v10952_v22 = vunpack.i.l.bf16 %v10951_v55  ;;  %v15161_v37 = vpop.permute.xlu2 %11020  ;;  %v10926_v56 = vpop.permute.xlu1 %10925 }
 0x8ed   :  { %v10928_v16 = vunpack.i.h.bf16 %v10926_v56  ;;  %v10927_v17 = vunpack.i.l.bf16 %v10926_v56  ;;  %v5210_v27 = vpop.f32.mrf.mxu3 }
 0x8ee   :  { %v5211_v43 = vadd.f32 %v5210_v27, %v18890_v12  ;;  %v15168_v13 = vsel %vm2536_vm3, %v2801_v20, %v10952_v22  ;;  %v15171_v23 = vsel %vm2536_vm3, %v2804_v28, %v10953_v57  ;;  %v15184_v52 = vpop.f32.mrf.mxu1  ;;  %v18892_v20 = vld [vmem:[#allocation76_spill] sm:$0xff]  ;;  %v2821_v28 = vadd.f32 %v18894_v61, %v18893_v44  ;;  %v18895_v57 = vld [vmem:[#allocation121_spill] sm:$0xff] }
 0x8ef   :  { %v15175_v60 = vsel %vm2536_vm3, %v18891_v59, %v10927_v17  ;;  %v15178_v55 = vsel %vm2536_vm3, %v2819_v62, %v10928_v16  ;;  %v18896_v22 = vld [vmem:[#allocation161_spill] sm:$0xff]  ;;  %v3194_v62 = vadd.f32 %v18898_v10, %v18897_v41  ;;  %v15195_v16 = vpop.f32.mrf.mxu0  ;;  %v18900_v27 = vld [vmem:[#allocation48_spill] sm:$0xff]  ;;  %v18904_v41 = vld [vmem:[#allocation255_spill] sm:$0xff] }
 0x8f0   :  { %v11159_v45 = vpack.i.bf16 %v5211_v43, %v5209_v51  ;;  %v2824_v56 = vadd.f32 %v18896_v22, %v18895_v57  ;;  %18899 = vst [vmem:[#allocation171_spill] sm:$0xff] %v15195_v16  ;;  %v18901_v51 = vld [vmem:[#allocation177_spill] sm:$0xff]  ;;  %v18902_v43 = vld [vmem:[#allocation252_spill] sm:$0xff] }
 0x8f1   :  { %9420 = vmatmul.msk.bf16.gmra.mxu3 %vm2140_vm2, %v18892_v20  ;;  %v3196_v12 = vadd.f32 %v18901_v51, %v18900_v27  ;;  %v18903_v59 = vld [vmem:[#allocation29_spill] sm:$0xff]  ;;  %v18946_v16 = vld [vmem:[#allocation164_spill] sm:$0xff] }
 0x8f2   :  { %11160 = vrot.lane.b32.xlu0 %v11159_v45, %s11273_s3  ;;  %v3969_v20 = vadd.f32 %v18903_v59, %v18902_v43  ;;  %v18905_v10 = vld [vmem:[#allocation297_spill] sm:$0xff]  ;;  %v18917_v59 = vld [vmem:[#allocation34_spill] sm:$0xff] }
 0x8f3   :  { %6077 = vmatmul.bf16.gmra.mxu1 %v5365_v19  ;;  %v10966_v17 = vpop.permute.xlu0 %10965  ;;  %v3971_v47 = vadd.f32 %v18905_v10, %v18904_v41  ;;  %v18912_v10 = vld [vmem:[#allocation52_spill] sm:$0xff] }
 0x8f4   :  { %v10968_v45 = vunpack.i.h.bf16 %v10966_v17  ;;  %v10967_v26 = vunpack.i.l.bf16 %v10966_v17  ;;  %v11036_v39 = vpop.permute.xlu2 %11035  ;;  %v10941_v44 = vpop.permute.xlu1 %10940 }
 0x8f5   :  { %v11038_v61 = vunpack.i.h.bf16 %v11036_v39  ;;  %v11037_v32 = vunpack.i.l.bf16 %v11036_v39  ;;  %v10943_v57 = vunpack.i.h.bf16 %v10941_v44  ;;  %v10942_v22 = vunpack.i.l.bf16 %v10941_v44  ;;  %v5213_v4 = vpop.f32.mrf.mxu3  ;;  %v18913_v39 = vld [vmem:[#allocation135_spill] sm:$0xff] }
 0x8f6   :  { %v15204_v19 = vsel %vm2536_vm3, %v3194_v62, %v10967_v26  ;;  %v15207_v27 = vsel %vm2536_vm3, %v3196_v12, %v10968_v45  ;;  %v15222_v26 = vpop.f32.mrf.mxu1  ;;  %v18907_v12 = vld [vmem:[#allocation163_spill] sm:$0xff]  ;;  %v5214_v58 = vadd.f32 %v5213_v4, %v14841_v54 }
 0x8f7   :  { %v15210_v51 = vsel %vm2536_vm3, %v2821_v28, %v10942_v22  ;;  %v15213_v17 = vsel %vm2536_vm3, %v2824_v56, %v10943_v57  ;;  %v15218_v43 = vsel %vm2536_vm3, %v3969_v20, %v11037_v32  ;;  %v15225_v62 = vsel %vm2536_vm3, %v3971_v47, %v11038_v61  ;;  %v18906_v56 = vld [vmem:[#allocation122_spill] sm:$0xff]  ;;  %v18908_v32 = vld [vmem:[#allocation124_spill] sm:$0xff]  ;;  %v18909_v20 = vld [vmem:[#allocation165_spill] sm:$0xff]  ;;  %v15247_v35 = vpop.f32.mrf.mxu0 }
 0x8f8   :  { %v2826_v45 = vadd.f32 %v18907_v12, %v18906_v56  ;;  %v2829_v44 = vadd.f32 %v18909_v20, %v18908_v32  ;;  %v18910_v57 = vld [vmem:[#allocation142_spill] sm:$0xff]  ;;  %v18911_v22 = vld [vmem:[#allocation179_spill] sm:$0xff]  ;;  %v3201_v47 = vadd.f32 %v18913_v39, %v18912_v10  ;;  %18918 = vst [vmem:[#allocation170_spill] sm:$0xff] %v15247_v35  ;;  %v18947_v35 = vld [vmem:[#allocation193_spill] sm:$0xff] }
 0x8f9   :  { %v3199_v41 = vadd.f32 %v18911_v22, %v18910_v57  ;;  %v18916_v28 = vld [vmem:[#allocation263_spill] sm:$0xff] }
 0x8fa   :  { %5879 = vmatmul.bf16.gmra.mxu2 %v5383_v7  ;;  %v18915_v7 = vld [vmem:[#allocation180_spill] sm:$0xff]  ;;  %v3976_v56 = vadd.f32 %v18917_v59, %v18916_v28 }
 0x8fb   :  { %5968 = vmatmul.bf16.gmra.mxu0 %v5364_v38  ;;  %v10981_v63 = vpop.permute.xlu0 %10980  ;;  %v3974_v61 = vadd.f32 %v18915_v7, %v18914_v2 }
 0x8fc   :  { %v10983_v12 = vunpack.i.h.bf16 %v10981_v63  ;;  %v10982_v0 = vunpack.i.l.bf16 %v10981_v63  ;;  %v11051_v32 = vpop.permute.xlu2 %11050  ;;  %v10956_v20 = vpop.permute.xlu1 %10955 }
 0x8fd   :  { %v11053_v57 = vunpack.i.h.bf16 %v11051_v32  ;;  %v11052_v22 = vunpack.i.l.bf16 %v11051_v32  ;;  %v10958_v39 = vunpack.i.h.bf16 %v10956_v20  ;;  %v10957_v10 = vunpack.i.l.bf16 %v10956_v20  ;;  %v5215_v48 = vpop.f32.mrf.mxu3  ;;  %v18924_v32 = vld [vmem:[#allocation186_spill] sm:$0xff]  ;;  %v18925_v20 = vld [vmem:[#allocation111_spill] sm:$0xff] }
 0x8fe   :  { %v5216_v40 = vadd.f32 %v5215_v48, %v14876_v18  ;;  %v15252_v38 = vsel %vm2536_vm3, %v3199_v41, %v10982_v0  ;;  %v15255_v59 = vsel %vm2536_vm3, %v3201_v47, %v10983_v12  ;;  %v15268_v18 = vpop.f32.mrf.mxu1  ;;  %v18919_v48 = vld [vmem:[#allocation101_spill] sm:$0xff]  ;;  %v18922_v47 = vpack.c.bf16 %v15178_v55, %v15175_v60  ;;  %v18923_v12 = vld [vmem:[#allocation114_spill] sm:$0xff] }
 0x8ff   :  { %v15258_v28 = vsel %vm2536_vm3, %v2826_v45, %v10957_v10  ;;  %v15261_v63 = vsel %vm2536_vm3, %v2829_v44, %v10958_v39  ;;  %v15266_v7 = vsel %vm2536_vm3, %v3974_v61, %v11052_v22  ;;  %v15273_v4 = vsel %vm2536_vm3, %v3976_v56, %v11053_v57  ;;  %v18920_v45 = vld [vmem:[#allocation99_spill] sm:$0xff]  ;;  %v18927_v39 = vld [vmem:[#allocation266_spill] sm:$0xff]  ;;  %v18928_v10 = vld [vmem:[#allocation40_spill] sm:$0xff]  ;;  %v15296_v55 = vpop.f32.mrf.mxu0 }
 0x900   :  { %v11174_v54 = vpack.i.bf16 %v5216_v40, %v5214_v58  ;;  %v18921_v41 = vpack.c.bf16 %v18919_v48, %v18920_v45  ;;  %v3219_v56 = vadd.f32 %v18924_v32, %v18923_v12  ;;  %v18926_v57 = vld [vmem:[#allocation187_spill] sm:$0xff]  ;;  %v3979_v58 = vadd.f32 %v18928_v10, %v18927_v39  ;;  %18930 = vst [vmem:[#allocation199_spill] sm:$0xff] %v15296_v55  ;;  %v18931_v39 = vld [vmem:[#allocation73_spill] sm:$0xff]  ;;  %v18934_v10 = vld [vmem:[#allocation118_spill] sm:$0xff] }
 0x901   :  { %v3221_v22 = vadd.f32 %v18926_v57, %v18925_v20  ;;  %v18948_v55 = vld [vmem:[#allocation188_spill] sm:$0xff] }
 0x902   :  { %9565 = vmatmul.msk.bf16.vlgmr.msrb.gmra.mxu3 %vm2536_vm3, %v18921_v41  ;;  %11175 = vrot.lane.b32.xlu0 %v11174_v54, %s11273_s3 }
 0x903   :  { %6082 = vmatmul.bf16.gmra.mxu1 %v18922_v47  ;;  %v15285_v61 = vpop.permute.xlu0 %10995 }
 0x904   :  { %v11066_v40 = vpop.permute.xlu2 %11065  ;;  %v10971_v48 = vpop.permute.xlu1 %10970 }
 0x905   :  { %v11068_v45 = vunpack.i.h.bf16 %v11066_v40  ;;  %v11067_v41 = vunpack.i.l.bf16 %v11066_v40  ;;  %v10973_v54 = vunpack.i.h.bf16 %v10971_v48  ;;  %v10972_v44 = vunpack.i.l.bf16 %v10971_v48  ;;  %v5218_v2 = vpop.f32.mrf.mxu3  ;;  %v18936_v48 = vld [vmem:[#allocation155_spill] sm:$0xff] }
 0x906   :  { %v15294_v60 = vadd.f32 %v5218_v2, %v14920_v15  ;;  %v15307_v20 = vpop.f32.mrf.mxu1  ;;  %v18932_v2 = vpack.c.bf16 %v15068_v24, %v15062_v3 }
 0x907   :  { %v15299_v47 = vsel %vm2536_vm3, %v3219_v56, %v10972_v44  ;;  %v15302_v12 = vsel %vm2536_vm3, %v3221_v22, %v10973_v54  ;;  %v15305_v32 = vsel %vm2536_vm3, %v3979_v58, %v11067_v41  ;;  %v15313_v15 = vsel %vm2536_vm3, %v18931_v39, %v11068_v45  ;;  %v18935_v58 = vld [vmem:[#allocation33_spill] sm:$0xff]  ;;  %v18937_v41 = vld [vmem:[#allocation28_spill] sm:$0xff]  ;;  %v15331_v44 = vpop.f32.mrf.mxu0 }
 0x908   :  { %18929 = vst [vmem:[#allocation208_spill] sm:$0xff] %v15294_v60  ;;  %v18933_v56 = vpack.c.bf16 %v15105_v9, %v15102_v14  ;;  %v3224_v40 = vadd.f32 %v18935_v58, %v18934_v10  ;;  %v3226_v45 = vadd.f32 %v18937_v41, %v18936_v48  ;;  %v10993_v58 = vunpack.i.h.bf16 %v15088_v42 }
 0x909   :  { %18939 = vst [vmem:[#allocation201_spill] sm:$0xff] %v15331_v44  ;;  %v10992_v48 = vunpack.i.l.bf16 %v15088_v42  ;;  %v3569_v44 = vadd.f32 %v18948_v55, %v18947_v35  ;;  %v18951_v55 = vld [vmem:[#allocation71_spill] sm:$0xff] }
 0x90a   :  { %5884 = vmatmul.bf16.gmra.mxu2 %v18932_v2 }
 0x90b   :  { %5973 = vmatmul.bf16.gmra.mxu0 %v18933_v56  ;;  %v15323_v22 = vpop.permute.xlu0 %11010  ;;  %v18940_v56 = vld [vmem:[#allocation61_spill] sm:$0xff] }
 0x90c   :  { %v11081_v54 = vpop.permute.xlu2 %11080  ;;  %v10986_v39 = vpop.permute.xlu1 %10985 }
 0x90d   :  { %v11083_v57 = vunpack.i.h.bf16 %v11081_v54  ;;  %v11082_v3 = vunpack.i.l.bf16 %v11081_v54  ;;  %v10988_v24 = vunpack.i.h.bf16 %v10986_v39  ;;  %v10987_v2 = vunpack.i.l.bf16 %v10986_v39  ;;  %v15329_v0 = vpop.f32.mrf.mxu3  ;;  %v18941_v39 = vld [vmem:[#allocation70_spill] sm:$0xff] }
 0x90e   :  { %18938 = vst [vmem:[#allocation213_spill] sm:$0xff] %v15329_v0  ;;  %v15345_v41 = vpop.f32.mrf.mxu1  ;;  %v18949_v54 = vpack.c.bf16 %v15213_v17, %v15210_v51 }
 0x90f   :  { %v15334_v14 = vsel %vm2536_vm3, %v3224_v40, %v10987_v2  ;;  %v15337_v9 = vsel %vm2536_vm3, %v3226_v45, %v10988_v24  ;;  %v15341_v10 = vsel %vm2536_vm3, %v18940_v56, %v11082_v3  ;;  %v15351_v40 = vsel %vm2536_vm3, %v18941_v39, %v11083_v57  ;;  %v18942_v2 = vld [vmem:[#allocation35_spill] sm:$0xff]  ;;  %v18945_v56 = vld [vmem:[#allocation129_spill] sm:$0xff] }
 0x910   :  { %v18943_v45 = vld [vmem:[#allocation103_spill] sm:$0xff]  ;;  %v3179_v42 = vadd.f32 %v18946_v16, %v18945_v56 }
 0x911   :  { %v18944_v24 = vpack.c.bf16 %v18942_v2, %v18943_v45  ;;  %v3742_v45 = vsel %vm2536_vm3, %v3569_v44, %v10993_v58  ;;  %v18956_v58 = vld [vmem:[#allocation280_spill] sm:$0xff] }
 0x912   :  { %v3346_v2 = vsel %vm2536_vm3, %v3179_v42, %v10992_v48  ;;  %v15385_v48 = vpop.f32.mrf.mxu0 }
 0x913   :  { %9566 = vmatmul.msk.bf16.gmra.mxu3 %vm2536_vm3, %v18944_v24  ;;  %6087 = vmatmul.bf16.gmra.mxu1 %v18949_v54  ;;  %v15366_v57 = vpop.permute.xlu0 %11025  ;;  %v5393_v35 = vpack.c.bf16 %v3742_v45, %v3346_v2  ;;  %v18953_v54 = vld [vmem:[#allocation306_spill] sm:$0xff]  ;;  %18954 = vst [vmem:[#allocation175_spill] sm:$0xff] %v15385_v48  ;;  %v18959_v2 = vld [vmem:[#allocation293_spill] sm:$0xff] }
 0x914   :  { %v11096_v39 = vpop.permute.xlu2 %11095  ;;  %v15368_v29 = vpop.permute.xlu1 %11000  ;;  %v18961_v48 = vld [vmem:[#allocation230_spill] sm:$0xff] }
 0x915   :  { %v11098_v24 = vunpack.i.h.bf16 %v11096_v39  ;;  %v11097_v3 = vunpack.i.l.bf16 %v11096_v39  ;;  %v5223_v11 = vpop.f32.mrf.mxu3  ;;  %v18958_v39 = vld [vmem:[#allocation281_spill] sm:$0xff] }
 0x916   :  { %v15373_v16 = vadd.f32 %v5223_v11, %v15010_v30  ;;  %v15379_v17 = vpop.f32.mrf.mxu1  ;;  %v18955_v11 = vpack.c.bf16 %v15138_v1, %v15135_v8  ;;  %v3996_v45 = vadd.f32 %v18959_v2, %v18958_v39  ;;  %v18963_v8 = vld [vmem:[#allocation246_spill] sm:$0xff]  ;;  %v11007_v2 = vunpack.i.l.bf16 %v15128_v53 }
 0x917   :  { %v15377_v51 = vsel %vm2536_vm3, %v18951_v55, %v11097_v3  ;;  %v15383_v56 = vsel %vm2536_vm3, %v18953_v54, %v11098_v24  ;;  %v18957_v3 = vld [vmem:[#allocation228_spill] sm:$0xff]  ;;  %v18964_v1 = vld [vmem:[#allocation234_spill] sm:$0xff] }
 0x918   :  { %18950 = vst [vmem:[#allocation185_spill] sm:$0xff] %v15373_v16  ;;  %v3994_v42 = vadd.f32 %v18957_v3, %v18956_v58 }
 0x919   :  { %18952 = vst [vmem:[#allocation153_spill] sm:$0xff] %v15377_v51 }
 0x91a   :  { %5889 = vmatmul.bf16.gmra.mxu2 %v5393_v35  ;;  %v18960_v35 = vld [vmem:[#allocation243_spill] sm:$0xff] }
 0x91b   :  { %5978 = vmatmul.bf16.gmra.mxu0 %v18955_v11  ;;  %v11041_v30 = vpop.permute.xlu0 %11040  ;;  %v4769_v49 = vadd.f32 %v18961_v48, %v18960_v35  ;;  %v4771_v11 = vadd.f32 %v18964_v1, %v18963_v8  ;;  %v11008_v48 = vunpack.i.h.bf16 %v15128_v53  ;;  %v18974_v1 = vld [vmem:[#allocation198_spill] sm:$0xff]  ;;  %v18976_v53 = vld [vmem:[#allocation283_spill] sm:$0xff] }
 0x91c   :  { %v11043_v55 = vunpack.i.h.bf16 %v11041_v30  ;;  %v11042_v24 = vunpack.i.l.bf16 %v11041_v30  ;;  %v11111_v54 = vpop.permute.xlu2 %11110  ;;  %v15396_v5 = vpop.permute.xlu1 %11015  ;;  %v18975_v30 = vld [vmem:[#allocation190_spill] sm:$0xff]  ;;  %v3999_v60 = vadd.f32 %v18977_v25, %v18976_v53  ;;  %v18982_v25 = vld [vmem:[#allocation251_spill] sm:$0xff] }
 0x91d   :  { %v11113_v44 = vunpack.i.h.bf16 %v11111_v54  ;;  %v11112_v16 = vunpack.i.l.bf16 %v11111_v54  ;;  %v15400_v0 = vpop.f32.mrf.mxu3 }
 0x91e   :  { %18962 = vst [vmem:[#allocation174_spill] sm:$0xff] %v15400_v0  ;;  %v15405_v58 = vsel %vm2536_vm3, %v3994_v42, %v11042_v24  ;;  %v15408_v3 = vsel %vm2536_vm3, %v3996_v45, %v11043_v55  ;;  %v15417_v54 = vpop.f32.mrf.mxu1  ;;  %v18969_v42 = vld [vmem:[#allocation106_spill] sm:$0xff]  ;;  %v18970_v24 = vld [vmem:[#allocation37_spill] sm:$0xff]  ;;  %v18972_v55 = vld [vmem:[#allocation195_spill] sm:$0xff]  ;;  %v3574_v0 = vadd.f32 %v18975_v30, %v18974_v1 }
 0x91f   :  { %18965 = vst [vmem:[#allocation216_spill] sm:$0xff] %v15405_v58  ;;  %v15413_v39 = vsel %vm2536_vm3, %v4769_v49, %v11112_v16  ;;  %v15420_v35 = vsel %vm2536_vm3, %v4771_v11, %v11113_v44  ;;  %v18971_v8 = vpack.c.bf16 %v18969_v42, %v18970_v24  ;;  %v18973_v49 = vld [vmem:[#allocation30_spill] sm:$0xff]  ;;  %v18978_v58 = vld [vmem:[#allocation284_spill] sm:$0xff]  ;;  %v18979_v44 = vld [vmem:[#allocation291_spill] sm:$0xff]  ;;  %v18981_v42 = vpack.c.bf16 %v15261_v63, %v15258_v28 }
 0x920   :  { %18966 = vst [vmem:[#allocation205_spill] sm:$0xff] %v15408_v3  ;;  %v3571_v16 = vadd.f32 %v18973_v49, %v18972_v55  ;;  %v4001_v11 = vadd.f32 %v18979_v44, %v18978_v58  ;;  %v15436_v3 = vpop.f32.mrf.mxu0  ;;  %v3744_v49 = vsel %vm2536_vm3, %v3574_v0, %v11008_v48  ;;  %v18983_v1 = vld [vmem:[#allocation236_spill] sm:$0xff]  ;;  %v15450_v28 = vld [vmem:[%s17751_s9] ss:$0 sm:$0xff] }
 0x921   :  { %18967 = vst [vmem:[#allocation219_spill] sm:$0xff] %v15413_v39  ;;  %v4774_v53 = vadd.f32 %v18983_v1, %v18982_v25  ;;  %v18984_v63 = vld [vmem:[#allocation256_spill] sm:$0xff] }
 0x922   :  { %18968 = vst [vmem:[#allocation207_spill] sm:$0xff] %v15420_v35  ;;  %v3743_v30 = vsel %vm2536_vm3, %v3571_v16, %v11007_v2 }
 0x923   :  { %9567 = vmatmul.msk.bf16.gmra.mxu3 %vm2536_vm3, %v18971_v8  ;;  %18980 = vst [vmem:[#allocation10_spill] sm:$0xff] %v15436_v3  ;;  %6092 = vmatmul.bf16.gmra.mxu1 %v18981_v42  ;;  %v11056_v24 = vpop.permute.xlu0 %11055  ;;  %v18985_v42 = vld [vmem:[#allocation324_spill] sm:$0xff]  ;;  %v5398_v48 = vpack.c.bf16 %v3744_v49, %v3743_v30  ;;  %v18994_v30 = vld [vmem:[#allocation27_spill] sm:$0xff] }
 0x924   :  { %v11058_v8 = vunpack.i.h.bf16 %v11056_v24  ;;  %v11057_v45 = vunpack.i.l.bf16 %v11056_v24  ;;  %v11126_v39 = vpop.permute.xlu2 %11125  ;;  %v15441_v55 = vpop.permute.xlu1 %11030  ;;  %v4776_v24 = vadd.f32 %v18985_v42, %v18984_v63  ;;  %v18995_v49 = vld [vmem:[#allocation287_spill] sm:$0xff] }
 0x925   :  { %v11128_v58 = vunpack.i.h.bf16 %v11126_v39  ;;  %v11127_v44 = vunpack.i.l.bf16 %v11126_v39  ;;  %v5228_v3 = vpop.f32.mrf.mxu3  ;;  %v4019_v63 = vadd.f32 %v18995_v49, %v18994_v30  ;;  %v18998_v39 = vld [vmem:[#allocation260_spill] sm:$0xff] }
 0x926   :  { %v15455_v35 = vadd.f32 %v5228_v3, %v15117_v34  ;;  %v15458_v2 = vsel %vm2536_vm3, %v3999_v60, %v11057_v45  ;;  %v15461_v0 = vsel %vm2536_vm3, %v4001_v11, %v11058_v8  ;;  %v15468_v25 = vpop.f32.mrf.mxu1  ;;  %v18991_v60 = vld [vmem:[#allocation312_spill] sm:$0xff]  ;;  %v18992_v45 = vld [vmem:[#allocation286_spill] sm:$0xff]  ;;  %v19002_v34 = vpack.c.bf16 %v15171_v23, %v15168_v13 }
 0x927   :  { %18987 = vst [vmem:[#allocation238_spill] sm:$0xff] %v15458_v2  ;;  %v15466_v16 = vsel %vm2536_vm3, %v4774_v53, %v11127_v44  ;;  %v15471_v1 = vsel %vm2536_vm3, %v4776_v24, %v11128_v58  ;;  %v5747_v3 = vadd.f32 %v15450_v28, %v18991_v60  ;;  %v18993_v11 = vld [vmem:[#allocation58_spill] sm:$0xff]  ;;  %v18996_v53 = vld [vmem:[#allocation295_spill] sm:$0xff]  ;;  %v18997_v44 = vld [vmem:[#allocation289_spill] sm:$0xff] }
 0x928   :  { %18986 = vst [vmem:[#allocation239_spill] sm:$0xff] %v15455_v35  ;;  %v4004_v8 = vadd.f32 %v18993_v11, %v18992_v45  ;;  %v4021_v42 = vadd.f32 %v18997_v44, %v18996_v53  ;;  %v18999_v35 = vld [vmem:[#allocation327_spill] sm:$0xff]  ;;  %v19000_v24 = vld [vmem:[#allocation302_spill] sm:$0xff]  ;;  %v11022_v45 = vunpack.i.l.bf16 %v15161_v37 }
 0x929   :  { %18988 = vst [vmem:[#allocation192_spill] sm:$0xff] %v15461_v0  ;;  %v4779_v58 = vadd.f32 %v18999_v35, %v18998_v39 }
 0x92a   :  { %18989 = vst [vmem:[#allocation191_spill] sm:$0xff] %v15466_v16  ;;  %5894 = vmatmul.bf16.gmra.mxu2 %v5398_v48  ;;  %v19001_v48 = vld [vmem:[#allocation109_spill] sm:$0xff]  ;;  %v11023_v16 = vunpack.i.h.bf16 %v15161_v37  ;;  %v19005_v37 = vld [vmem:[#allocation232_spill] sm:$0xff] }
 0x92b   :  { %18990 = vst [vmem:[#allocation241_spill] sm:$0xff] %v15471_v1  ;;  %v4841_v2 = vadd.f32 %v19001_v48, %v19000_v24  ;;  %5983 = vmatmul.bf16.gmra.mxu0 %v19002_v34  ;;  %v11071_v60 = vpop.permute.xlu0 %11070  ;;  %v15492_v24 = vpop.f32.mrf.mxu0 }
 0x92c   :  { %v11073_v11 = vunpack.i.h.bf16 %v11071_v60  ;;  %v11072_v30 = vunpack.i.l.bf16 %v11071_v60  ;;  %v11141_v49 = vpop.permute.xlu2 %11140  ;;  %v11046_v1 = vpop.permute.xlu1 %11045  ;;  %19003 = vst [vmem:[#allocation229_spill] sm:$0xff] %v15492_v24  ;;  %v19015_v24 = vld [vmem:[#allocation108_spill] sm:$0xff] }
 0x92d   :  { %v11143_v53 = vunpack.i.h.bf16 %v11141_v49  ;;  %v11142_v44 = vunpack.i.l.bf16 %v11141_v49  ;;  %v11048_v0 = vunpack.i.h.bf16 %v11046_v1  ;;  %v11047_v35 = vunpack.i.l.bf16 %v11046_v1  ;;  %v5230_v39 = vpop.f32.mrf.mxu3  ;;  %v5855_v51 = vpop.f32.mrf.mxu2  ;;  %v19014_v49 = vld [vmem:[#allocation110_spill] sm:$0xff] }
 0x92e   :  { %v5231_v13 = vadd.f32 %v5230_v39, %v15146_v33  ;;  %v15495_v23 = vadd.f32 %v5855_v51, %v5747_v3  ;;  %v15498_v34 = vsel %vm2536_vm3, %v4004_v8, %v11072_v30  ;;  %v15502_v48 = vsel %vm2536_vm3, %v19005_v37, %v11073_v11  ;;  %v15515_v3 = vpop.f32.mrf.mxu1  ;;  %v19008_v11 = vld [vmem:[#allocation54_spill] sm:$0xff]  ;;  %v19023_v8 = vld [vmem:[#allocation75_spill] sm:$0xff] }
 0x92f   :  { %19004 = vst [vmem:[#allocation244_spill] sm:$0xff] %v15498_v34  ;;  %v15505_v60 = vsel %vm2536_vm3, %v4019_v63, %v11047_v35  ;;  %v15508_v1 = vsel %vm2536_vm3, %v4021_v42, %v11048_v0  ;;  %v15513_v33 = vsel %vm2536_vm3, %v4779_v58, %v11142_v44  ;;  %v15521_v30 = vsel %vm2536_vm3, %v19008_v11, %v11143_v53  ;;  %v19010_v63 = vld [vmem:[#allocation200_spill] sm:$0xff]  ;;  %v19012_v42 = vld [vmem:[#allocation202_spill] sm:$0xff]  ;;  %v19017_v44 = vld [vmem:[#allocation25_spill] sm:$0xff] }
 0x930   :  { %19006 = vst [vmem:[#allocation233_spill] sm:$0xff] %v15502_v48  ;;  %v11149_v51 = vpack.i.bf16 %v5231_v13, %v4841_v2  ;;  %v19011_v35 = vld [vmem:[#allocation32_spill] sm:$0xff]  ;;  %v19013_v39 = vld [vmem:[#allocation194_spill] sm:$0xff]  ;;  %v19016_v58 = vpack.c.bf16 %v19014_v49, %v19015_v24  ;;  %v19019_v11 = vpack.c.bf16 %v15302_v12, %v15299_v47  ;;  %v19020_v24 = vld [vmem:[#allocation59_spill] sm:$0xff] }
 0x931   :  { %19007 = vst [vmem:[#allocation301_spill] sm:$0xff] %v15513_v33  ;;  %v3576_v0 = vadd.f32 %v19011_v35, %v19010_v63  ;;  %v3579_v37 = vadd.f32 %v19013_v39, %v19012_v42  ;;  %v19018_v13 = vld [vmem:[#allocation2_spill] sm:$0xff]  ;;  %v19021_v49 = vld [vmem:[#allocation4_spill] sm:$0xff] }
 0x932   :  { %19009 = vst [vmem:[#allocation300_spill] sm:$0xff] %v15521_v30  ;;  %11150 = vrot.lane.b32.xlu1 %v11149_v51, %s11273_s3  ;;  %v4024_v53 = vadd.f32 %v19018_v13, %v19017_v44  ;;  %v4026_v39 = vadd.f32 %v19021_v49, %v19020_v24  ;;  %v19026_v24 = vld [vmem:[#allocation318_spill] sm:$0xff] }
 0x933   :  { %9568 = vmatmul.msk.bf16.gmra.mxu3 %vm2536_vm3, %v19016_v58  ;;  %6097 = vmatmul.bf16.gmra.mxu1 %v19019_v11  ;;  %v11086_v63 = vpop.permute.xlu0 %11085  ;;  %v3745_v35 = vsel %vm2536_vm3, %v3576_v0, %v11022_v45  ;;  %v3746_v42 = vsel %vm2536_vm3, %v3579_v37, %v11023_v16  ;;  %v19022_v58 = vld [vmem:[#allocation330_spill] sm:$0xff]  ;;  %v15547_v45 = vpop.f32.mrf.mxu0  ;;  %v19025_v0 = vld [vmem:[#allocation7_spill] sm:$0xff] }
 0x934   :  { %v5171_v2 = vadd.f32 %v19023_v8, %v19022_v58  ;;  %v11088_v33 = vunpack.i.h.bf16 %v11086_v63  ;;  %v11087_v51 = vunpack.i.l.bf16 %v11086_v63  ;;  %v11061_v30 = vpop.permute.xlu1 %11060  ;;  %19024 = vst [vmem:[#allocation197_spill] sm:$0xff] %v15547_v45  ;;  %v5403_v16 = vpack.c.bf16 %v3746_v42, %v3745_v35  ;;  %v19028_v58 = vld [vmem:[#allocation80_spill] sm:$0xff] }
 0x935   :  { %v11156_v34 = vpop.permute.xlu2 %11155  ;;  %v11063_v44 = vunpack.i.h.bf16 %v11061_v30  ;;  %v11062_v13 = vunpack.i.l.bf16 %v11061_v30  ;;  %v5233_v48 = vpop.f32.mrf.mxu3 }
 0x936   :  { %v15545_v47 = vpop.f32.mrf.mxu2  ;;  %v11158_v12 = vunpack.i.h.bf16 %v11156_v34  ;;  %v11157_v11 = vunpack.i.l.bf16 %v11156_v34  ;;  %v15551_v37 = vsel %vm2536_vm3, %v19025_v0, %v11087_v51  ;;  %v15555_v8 = vsel %vm2536_vm3, %v19026_v24, %v11088_v33  ;;  %v5132_v35 = vpop.f32.mrf.mxu1  ;;  %v19031_v24 = vld [vmem:[#allocation23_spill] sm:$0xff] }
 0x937   :  { %v15558_v63 = vsel %vm2536_vm3, %v4024_v53, %v11062_v13  ;;  %v15561_v30 = vsel %vm2536_vm3, %v4026_v39, %v11063_v44  ;;  %v19029_v39 = vpack.c.bf16 %v15207_v27, %v15204_v19  ;;  %v19030_v44 = vld [vmem:[#allocation294_spill] sm:$0xff]  ;;  %v19032_v35 = vld [vmem:[#allocation16_spill] sm:$0xff]  ;;  %v19033_v27 = vld [vmem:[#allocation9_spill] sm:$0xff] }
 0x938   :  { %v15566_v49 = vsel %vm2536_vm3, %v5171_v2, %v11157_v11  ;;  %v15572_v33 = vsel %vm2536_vm3, %v19028_v58, %v11158_v12  ;;  %v5752_v2 = vadd.f32 %v15450_v28, %v19030_v44  ;;  %v4029_v34 = vadd.f32 %v19032_v35, %v19031_v24  ;;  %v19035_v44 = vld [vmem:[#allocation322_spill] sm:$0xff] }
 0x939   :  { %19027 = vst [vmem:[#allocation196_spill] sm:$0xff] %v15566_v49  ;;  %v5234_v12 = vadd.f32 %v5233_v48, %v15184_v52  ;;  %v19036_v52 = vld [vmem:[#allocation17_spill] sm:$0xff] }
 0x93a   :  { %5899 = vmatmul.bf16.gmra.mxu2 %v5403_v16 }
 0x93b   :  { %5988 = vmatmul.bf16.gmra.mxu0 %v19029_v39  ;;  %v11101_v51 = vpop.permute.xlu0 %11100 }
 0x93c   :  { %v11103_v13 = vunpack.i.h.bf16 %v11101_v51  ;;  %v11102_v11 = vunpack.i.l.bf16 %v11101_v51  ;;  %v11076_v0 = vpop.permute.xlu1 %11075 }
 0x93d   :  { %v11078_v16 = vunpack.i.h.bf16 %v11076_v0  ;;  %v11077_v58 = vunpack.i.l.bf16 %v11076_v0  ;;  %v5235_v42 = vpop.f32.mrf.mxu3  ;;  %v11171_v49 = vpop.permute.xlu2 %11170 }
 0x93e   :  { %v5860_v53 = vpop.f32.mrf.mxu2  ;;  %v5236_v45 = vadd.f32 %v5235_v42, %v15222_v26  ;;  %v15589_v39 = vsel %vm2536_vm3, %v19033_v27, %v11102_v11  ;;  %v15593_v51 = vsel %vm2536_vm3, %v19035_v44, %v11103_v13  ;;  %v11173_v42 = vunpack.i.h.bf16 %v11171_v49  ;;  %v15606_v0 = vpop.f32.mrf.mxu0  ;;  %v19049_v26 = vld [vmem:[#allocation42_spill] sm:$0xff] }
 0x93f   :  { %v15585_v19 = vadd.f32 %v5860_v53, %v5752_v2  ;;  %19034 = vst [vmem:[#allocation247_spill] sm:$0xff] %v15589_v39  ;;  %v15596_v24 = vsel %vm2536_vm3, %v4029_v34, %v11077_v58  ;;  %v15600_v48 = vsel %vm2536_vm3, %v19036_v52, %v11078_v16  ;;  %v19037_v53 = vld [vmem:[#allocation331_spill] sm:$0xff]  ;;  %v11172_v27 = vunpack.i.l.bf16 %v11171_v49  ;;  %v19040_v34 = vld [vmem:[#allocation141_spill] sm:$0xff] }
 0x940   :  { %v19038_v2 = vld [vmem:[#allocation139_spill] sm:$0xff]  ;;  %19039 = vst [vmem:[#allocation237_spill] sm:$0xff] %v15606_v0  ;;  %v11164_v35 = vpack.i.bf16 %v5236_v45, %v5234_v12  ;;  %v19041_v58 = vld [vmem:[#allocation137_spill] sm:$0xff]  ;;  %v19045_v45 = vpack.c.bf16 %v15337_v9, %v15334_v14 }
 0x941   :  { %v5176_v11 = vadd.f32 %v19038_v2, %v19037_v53  ;;  %v19042_v44 = vpack.c.bf16 %v19040_v34, %v19041_v58  ;;  %v19043_v16 = vld [vmem:[#allocation107_spill] sm:$0xff]  ;;  %v19047_v34 = vld [vmem:[#allocation272_spill] sm:$0xff]  ;;  %v19061_v49 = vld [vmem:[#allocation245_spill] sm:$0xff] }
 0x942   :  { %v15616_v52 = vsel %vm2536_vm3, %v19043_v16, %v11173_v42  ;;  %11165 = vrot.lane.b32.xlu1 %v11164_v35, %s11273_s3  ;;  %v19046_v2 = vld [vmem:[#allocation279_spill] sm:$0xff] }
 0x943   :  { %9569 = vmatmul.msk.bf16.gmra.mxu3 %vm2536_vm3, %v19042_v44  ;;  %v15620_v53 = vsel %vm2536_vm3, %v5176_v11, %v11172_v27  ;;  %6102 = vmatmul.bf16.gmra.mxu1 %v19045_v45  ;;  %v11116_v12 = vpop.permute.xlu0 %11115  ;;  %v4794_v58 = vadd.f32 %v19047_v34, %v19046_v2  ;;  %v19048_v44 = vld [vmem:[#allocation282_spill] sm:$0xff]  ;;  %v19052_v45 = vld [vmem:[#allocation19_spill] sm:$0xff] }
 0x944   :  { %19044 = vst [vmem:[#allocation250_spill] sm:$0xff] %v15620_v53  ;;  %v4796_v42 = vadd.f32 %v19049_v26, %v19048_v44  ;;  %v11118_v16 = vunpack.i.h.bf16 %v11116_v12  ;;  %v11117_v13 = vunpack.i.l.bf16 %v11116_v12  ;;  %v11091_v35 = vpop.permute.xlu1 %11090  ;;  %v19053_v34 = vld [vmem:[#allocation323_spill] sm:$0xff]  ;;  %v19060_v12 = vld [vmem:[#allocation254_spill] sm:$0xff] }
 0x945   :  { %v11093_v0 = vunpack.i.h.bf16 %v11091_v35  ;;  %v11092_v11 = vunpack.i.l.bf16 %v11091_v35  ;;  %v5238_v27 = vpop.f32.mrf.mxu3  ;;  %v19056_v35 = vld [vmem:[#allocation158_spill] sm:$0xff] }
 0x946   :  { %v15631_v39 = vpop.f32.mrf.mxu2  ;;  %v15634_v14 = vsel %vm2536_vm3, %v4794_v58, %v11117_v13  ;;  %v15637_v9 = vsel %vm2536_vm3, %v4796_v42, %v11118_v16  ;;  %v11002_v58 = vunpack.i.l.bf16 %v15368_v29  ;;  %v19055_v42 = vpack.c.bf16 %v15225_v62, %v15218_v43 }
 0x947   :  { %19050 = vst [vmem:[#allocation242_spill] sm:$0xff] %v15634_v14  ;;  %v15641_v2 = vsel %vm2536_vm3, %v19052_v45, %v11092_v11  ;;  %v15645_v26 = vsel %vm2536_vm3, %v19053_v34, %v11093_v0  ;;  %v11003_v16 = vunpack.i.h.bf16 %v15368_v29  ;;  %v19057_v11 = vld [vmem:[#allocation189_spill] sm:$0xff]  ;;  %v19058_v45 = vpack.c.bf16 %v15255_v59, %v15252_v38 }
 0x948   :  { %19051 = vst [vmem:[#allocation224_spill] sm:$0xff] %v15637_v9  ;;  %v15649_v44 = vpop.f32.mrf.mxu0  ;;  %v3229_v0 = vadd.f32 %v19057_v11, %v19056_v35  ;;  %v3619_v13 = vadd.f32 %v19061_v49, %v19060_v12  ;;  %v5239_v35 = vadd.f32 %v5238_v27, %v15268_v18  ;;  %v19064_v12 = vld [vmem:[#allocation226_spill] sm:$0xff] }
 0x949   :  { %19054 = vst [vmem:[#allocation304_spill] sm:$0xff] %v15649_v44  ;;  %v19062_v44 = vld [vmem:[#allocation319_spill] sm:$0xff]  ;;  %v19075_v18 = vld [vmem:[#allocation38_spill] sm:$0xff] }
 0x94a   :  { %5904 = vmatmul.bf16.gmra.mxu2 %v19055_v42  ;;  %v5757_v14 = vadd.f32 %v15450_v28, %v19062_v44  ;;  %v3356_v53 = vsel %vm2536_vm3, %v3229_v0, %v11002_v58  ;;  %v3752_v11 = vsel %vm2536_vm3, %v3619_v13, %v11003_v16  ;;  %v10998_v13 = vunpack.i.h.bf16 %v15285_v61  ;;  %v19069_v0 = vld [vmem:[#allocation146_spill] sm:$0xff] }
 0x94b   :  { %5993 = vmatmul.bf16.gmra.mxu0 %v19058_v45  ;;  %v15663_v34 = vpop.permute.xlu0 %11130  ;;  %v19063_v45 = vld [vmem:[#allocation21_spill] sm:$0xff]  ;;  %v5395_v27 = vpack.c.bf16 %v3752_v11, %v3356_v53  ;;  %v10997_v16 = vunpack.i.l.bf16 %v15285_v61  ;;  %v19073_v53 = vld [vmem:[#allocation18_spill] sm:$0xff]  ;;  %v15704_v61 = vadd.f32 %v14972_v50, %v19075_v18 }
 0x94c   :  { %19059 = vst [vmem:[#allocation303_spill] sm:$0xff] %v15663_v34  ;;  %v11106_v9 = vpop.permute.xlu1 %11105  ;;  %v19074_v11 = vld [vmem:[#allocation50_spill] sm:$0xff] }
 0x94d   :  { %v11108_v43 = vunpack.i.h.bf16 %v11106_v9  ;;  %v11107_v62 = vunpack.i.l.bf16 %v11106_v9  ;;  %v5240_v42 = vpop.f32.mrf.mxu3 }
 0x94e   :  { %v5865_v29 = vpop.f32.mrf.mxu2  ;;  %v5241_v38 = vadd.f32 %v5240_v42, %v15307_v20  ;;  %v19066_v20 = vld [vmem:[#allocation204_spill] sm:$0xff]  ;;  %v19071_v42 = vld [vmem:[#allocation223_spill] sm:$0xff] }
 0x94f   :  { %v15672_v59 = vadd.f32 %v5865_v29, %v5757_v14  ;;  %v15677_v49 = vsel %vm2536_vm3, %v19063_v45, %v11107_v62  ;;  %v15681_v44 = vsel %vm2536_vm3, %v19064_v12, %v11108_v43  ;;  %v19067_v14 = vld [vmem:[#allocation203_spill] sm:$0xff]  ;;  %v19070_v43 = vld [vmem:[#allocation20_spill] sm:$0xff]  ;;  %v4804_v45 = vadd.f32 %v19074_v11, %v19073_v53  ;;  %v19080_v53 = vld [vmem:[#allocation261_spill] sm:$0xff] }
 0x950   :  { %v11179_v9 = vpack.i.bf16 %v5241_v38, %v5239_v35  ;;  %v15683_v34 = vpop.f32.mrf.mxu0  ;;  %v19068_v58 = vpack.c.bf16 %v19066_v20, %v19067_v14  ;;  %v3204_v62 = vadd.f32 %v19070_v43, %v19069_v0  ;;  %v19072_v29 = vld [vmem:[#allocation211_spill] sm:$0xff]  ;;  %v19081_v11 = vld [vmem:[#allocation253_spill] sm:$0xff] }
 0x951   :  { %19065 = vst [vmem:[#allocation269_spill] sm:$0xff] %v15683_v34  ;;  %v3594_v35 = vadd.f32 %v19072_v29, %v19071_v42 }
 0x952   :  { %11180 = vrot.lane.b32.xlu1 %v11179_v9, %s11273_s3 }
 0x953   :  { %9570 = vmatmul.msk.bf16.gmra.mxu3 %vm2536_vm3, %v19068_v58  ;;  %6107 = vmatmul.bf16.gmra.mxu1 %v5395_v27  ;;  %v3351_v27 = vsel %vm2536_vm3, %v3204_v62, %v10997_v16  ;;  %v3747_v0 = vsel %vm2536_vm3, %v3594_v35, %v10998_v13  ;;  %v11018_v13 = vunpack.i.h.bf16 %v15396_v5  ;;  %v11017_v16 = vunpack.i.l.bf16 %v15396_v5  ;;  %v19079_v62 = vld [vmem:[#allocation249_spill] sm:$0xff] }
 0x954   :  { %v11146_v38 = vpop.permute.xlu0 %11145  ;;  %v5394_v18 = vpack.c.bf16 %v3747_v0, %v3351_v27 }
 0x955   :  { %v11148_v12 = vunpack.i.h.bf16 %v11146_v38  ;;  %v11147_v20 = vunpack.i.l.bf16 %v11146_v38  ;;  %v5243_v14 = vpop.f32.mrf.mxu3 }
 0x956   :  { %v15700_v58 = vpop.f32.mrf.mxu2  ;;  %v15707_v9 = vadd.f32 %v5243_v14, %v15345_v41  ;;  %v19077_v41 = vpack.c.bf16 %v15273_v4, %v15266_v7 }
 0x957   :  { %v15712_v43 = vsel %vm2536_vm3, %v4804_v45, %v11147_v20  ;;  %v15716_v42 = vsel %vm2536_vm3, %v14865_v36, %v11148_v12  ;;  %v19078_v36 = vld [vmem:[#allocation257_spill] sm:$0xff]  ;;  %v3624_v45 = vadd.f32 %v19081_v11, %v19080_v53  ;;  %v19082_v12 = vld [vmem:[#allocation270_spill] sm:$0xff]  ;;  %v11012_v53 = vunpack.i.l.bf16 %v15323_v22 }
 0x958   :  { %v15720_v38 = vpop.f32.mrf.mxu0  ;;  %v3621_v35 = vadd.f32 %v19079_v62, %v19078_v36  ;;  %v5762_v20 = vadd.f32 %v15450_v28, %v19082_v12  ;;  %v11013_v62 = vunpack.i.h.bf16 %v15323_v22  ;;  %v19088_v11 = vld [vmem:[#allocation214_spill] sm:$0xff] }
 0x959   :  { %19076 = vst [vmem:[#allocation169_spill] sm:$0xff] %v15720_v38  ;;  %v3754_v4 = vsel %vm2536_vm3, %v3624_v45, %v11018_v13 }
 0x95a   :  { %5909 = vmatmul.bf16.gmra.mxu2 %v19077_v41  ;;  %v3753_v7 = vsel %vm2536_vm3, %v3621_v35, %v11017_v16  ;;  %v19084_v41 = vld [vmem:[#allocation210_spill] sm:$0xff]  ;;  %v19089_v16 = vld [vmem:[#allocation227_spill] sm:$0xff]  ;;  %v19090_v35 = vld [vmem:[#allocation217_spill] sm:$0xff] }
 0x95b   :  { %5998 = vmatmul.bf16.gmra.mxu0 %v5394_v18  ;;  %v5400_v0 = vpack.c.bf16 %v3754_v4, %v3753_v7  ;;  %v19085_v18 = vld [vmem:[#allocation209_spill] sm:$0xff]  ;;  %v3599_v13 = vadd.f32 %v19090_v35, %v19089_v16  ;;  %v19097_v16 = vld [vmem:[#allocation46_spill] sm:$0xff] }
 0x95c   :  { %v19086_v36 = vpack.c.bf16 %v19084_v41, %v19085_v18 }
 0x95d   :  { %v5245_v14 = vpop.f32.mrf.mxu3 }
 0x95e   :  { %v5870_v29 = vpop.f32.mrf.mxu2 }
 0x95f   :  { %v15735_v50 = vadd.f32 %v5870_v29, %v5762_v20  ;;  %v19087_v29 = vld [vmem:[#allocation225_spill] sm:$0xff]  ;;  %v19091_v20 = vld [vmem:[#allocation78_spill] sm:$0xff] }
 0x960   :  { %v15739_v27 = vpop.f32.mrf.mxu0  ;;  %v6073_v5 = vpop.f32.mrf.mxu1  ;;  %v3596_v12 = vadd.f32 %v19088_v11, %v19087_v29  ;;  %v5196_v7 = vadd.f32 %v14900_v46, %v19091_v20  ;;  %v3749_v29 = vsel %vm2536_vm3, %v3599_v13, %v11013_v62  ;;  %v19092_v62 = vpack.c.bf16 %v15313_v15, %v15305_v32  ;;  %v19094_v20 = vld [vmem:[#allocation258_spill] sm:$0xff] }
 0x961   :  { %19083 = vst [vmem:[#allocation8_spill] sm:$0xff] %v15739_v27 }
 0x963   :  { %9571 = vmatmul.msk.bf16.gmra.mxu3 %vm2536_vm3, %v19086_v36  ;;  %6112 = vmatmul.bf16.gmra.mxu1 %v5400_v0  ;;  %v15756_v36 = vadd.f32 %v5245_v14, %v15379_v17  ;;  %v3748_v0 = vsel %vm2536_vm3, %v3596_v12, %v11012_v53  ;;  %v11033_v12 = vunpack.i.h.bf16 %v15441_v55 }
 0x964   :  { %v11161_v45 = vpop.permute.xlu0 %11160  ;;  %v5399_v53 = vpack.c.bf16 %v3749_v29, %v3748_v0 }
 0x965   :  { %v5248_v4 = vpop.f32.mrf.mxu3  ;;  %v11163_v41 = vunpack.i.h.bf16 %v11161_v45  ;;  %v11162_v18 = vunpack.i.l.bf16 %v11161_v45  ;;  %v19093_v45 = vld [vmem:[#allocation265_spill] sm:$0xff] }
 0x966   :  { %v15753_v27 = vpop.f32.mrf.mxu2  ;;  %v15759_v22 = vadd.f32 %v5248_v4, %v15417_v54  ;;  %v19095_v4 = vld [vmem:[#allocation6_spill] sm:$0xff] }
 0x967   :  { %v15764_v11 = vsel %vm2536_vm3, %v5196_v7, %v11162_v18  ;;  %v15768_v46 = vsel %vm2536_vm3, %v14950_v31, %v11163_v41  ;;  %v11032_v31 = vunpack.i.l.bf16 %v15441_v55  ;;  %v3626_v7 = vadd.f32 %v19094_v20, %v19093_v45  ;;  %v19096_v41 = vld [vmem:[#allocation262_spill] sm:$0xff] }
 0x968   :  { %v5964_v35 = vpop.f32.mrf.mxu0  ;;  %v6075_v17 = vpop.f32.mrf.mxu1  ;;  %v3629_v18 = vadd.f32 %v19096_v41, %v19095_v4  ;;  %v19099_v4 = vld [vmem:[#allocation178_spill] sm:$0xff]  ;;  %v19100_v41 = vld [vmem:[#allocation12_spill] sm:$0xff] }
 0x969   :  { %v5965_v14 = vadd.f32 %v5964_v35, %v15495_v23  ;;  %v5767_v23 = vadd.f32 %v15450_v28, %v19097_v16  ;;  %v19098_v35 = vld [vmem:[#allocation314_spill] sm:$0xff]  ;;  %v3755_v55 = vsel %vm2536_vm3, %v3626_v7, %v11032_v31  ;;  %v19101_v16 = vpack.c.bf16 %v19099_v4, %v19100_v41  ;;  %v19102_v31 = vld [vmem:[#allocation231_spill] sm:$0xff]  ;;  %v19103_v7 = vld [vmem:[#allocation221_spill] sm:$0xff] }
 0x96a   :  { %5914 = vmatmul.bf16.gmra.mxu2 %v19092_v62  ;;  %v5749_v32 = vadd.f32 %v15450_v28, %v19098_v35  ;;  %v11028_v35 = vunpack.i.h.bf16 %v15366_v57 }
 0x96b   :  { %6003 = vmatmul.bf16.gmra.mxu0 %v5399_v53  ;;  %v6074_v13 = vadd.f32 %v6073_v5, %v5965_v14  ;;  %v3756_v5 = vsel %vm2536_vm3, %v3629_v18, %v11033_v12  ;;  %v3601_v12 = vadd.f32 %v19103_v7, %v19102_v31  ;;  %v19104_v18 = vld [vmem:[#allocation235_spill] sm:$0xff] }
 0x96c   :  { %v5858_v14 = vadd.f32 %v15545_v47, %v5749_v32  ;;  %v5405_v20 = vpack.c.bf16 %v3756_v5, %v3755_v55  ;;  %v19105_v47 = vld [vmem:[#allocation152_spill] sm:$0xff] }
 0x96d   :  { %v5250_v15 = vpop.f32.mrf.mxu3  ;;  %v3604_v32 = vadd.f32 %v19105_v47, %v19104_v18  ;;  %v19109_v18 = vld [vmem:[#allocation317_spill] sm:$0xff] }
 0x96e   :  { %v5875_v0 = vpop.f32.mrf.mxu2  ;;  %v5754_v47 = vadd.f32 %v15450_v28, %v19109_v18 }
 0x96f   :  { %v15788_v29 = vadd.f32 %v5875_v0, %v5767_v23  ;;  %v11027_v23 = vunpack.i.l.bf16 %v15366_v57 }
 0x970   :  { %v5966_v62 = vpop.f32.mrf.mxu0  ;;  %v6078_v53 = vpop.f32.mrf.mxu1 }
 0x971   :  { %v5967_v45 = vadd.f32 %v5966_v62, %v5858_v14  ;;  %v19106_v14 = vld [vmem:[#allocation82_spill] sm:$0xff] }
 0x972   :  { %v5201_v55 = vadd.f32 %v14986_v6, %v19106_v14 }
 0x973   :  { %9572 = vmatmul.msk.bf16.gmra.mxu3 %vm2536_vm3, %v19101_v16  ;;  %6117 = vmatmul.bf16.gmra.mxu1 %v5405_v20  ;;  %v6076_v0 = vadd.f32 %v6075_v17, %v5967_v45  ;;  %v15808_v16 = vadd.f32 %v5250_v15, %v15468_v25  ;;  %v3750_v17 = vsel %vm2536_vm3, %v3601_v12, %v11027_v23  ;;  %v19108_v12 = vld [vmem:[#allocation56_spill] sm:$0xff] }
 0x974   :  { %v11176_v54 = vpop.permute.xlu0 %11175  ;;  %v3751_v45 = vsel %vm2536_vm3, %v3604_v32, %v11028_v35  ;;  %v19107_v35 = vpack.c.bf16 %v15351_v40, %v15341_v10  ;;  %v19110_v10 = vld [vmem:[#allocation147_spill] sm:$0xff] }
 0x975   :  { %v5253_v5 = vpop.f32.mrf.mxu3  ;;  %v11178_v4 = vunpack.i.h.bf16 %v11176_v54  ;;  %v11177_v41 = vunpack.i.l.bf16 %v11176_v54  ;;  %v5404_v23 = vpack.c.bf16 %v3751_v45, %v3750_v17  ;;  %v19111_v40 = vld [vmem:[#allocation183_spill] sm:$0xff] }
 0x976   :  { %v15805_v62 = vpop.f32.mrf.mxu2  ;;  %v15811_v57 = vadd.f32 %v5253_v5, %v15515_v3  ;;  %v5863_v5 = vadd.f32 %v15631_v39, %v5754_v47  ;;  %v19112_v17 = vpack.c.bf16 %v19110_v10, %v19111_v40  ;;  %v19116_v47 = vld [vmem:[#allocation205_spill] sm:$0xff] }
 0x977   :  { %v15816_v20 = vsel %vm2536_vm3, %v5201_v55, %v11177_v41  ;;  %v15820_v6 = vsel %vm2536_vm3, %v15043_v21, %v11178_v4  ;;  %v5772_v21 = vadd.f32 %v15450_v28, %v19108_v12 }
 0x978   :  { %v5969_v31 = vpop.f32.mrf.mxu0  ;;  %v6080_v25 = vpop.f32.mrf.mxu1 }
 0x979   :  { %v5970_v15 = vadd.f32 %v5969_v31, %v15585_v19 }
 0x97a   :  { %5919 = vmatmul.bf16.gmra.mxu2 %v19107_v35 }
 0x97b   :  { %6008 = vmatmul.bf16.gmra.mxu0 %v5404_v23  ;;  %v6079_v7 = vadd.f32 %v6078_v53, %v5970_v15  ;;  %v19113_v53 = vpack.c.bf16 %v15508_v1, %v15505_v60  ;;  %v19119_v60 = vld [vmem:[#allocation11_spill] sm:$0xff] }
 0x97c   :  { %v5759_v1 = vadd.f32 %v15450_v28, %v19119_v60  ;;  %v19124_v60 = vld [vmem:[#allocation207_spill] sm:$0xff] }
 0x97d   :  { %v5255_v32 = vpop.f32.mrf.mxu3 }
 0x97e   :  { %v5880_v14 = vpop.f32.mrf.mxu2  ;;  %v19117_v32 = vld [vmem:[#allocation216_spill] sm:$0xff] }
 0x97f   :  { %v15834_v55 = vadd.f32 %v5880_v14, %v5772_v21  ;;  %v19114_v21 = vld [vmem:[#allocation153_spill] sm:$0xff]  ;;  %v19118_v14 = vpack.c.bf16 %v19116_v47, %v19117_v32 }
 0x980   :  { %v5971_v19 = vpop.f32.mrf.mxu0  ;;  %v6083_v4 = vpop.f32.mrf.mxu1  ;;  %v19115_v18 = vpack.c.bf16 %v15383_v56, %v19114_v21  ;;  %v19123_v21 = vpack.c.bf16 %v15561_v30, %v15558_v63  ;;  %v19130_v30 = vld [vmem:[#allocation212_spill] sm:$0xff] }
 0x981   :  { %v5972_v41 = vadd.f32 %v5971_v19, %v5863_v5 }
 0x983   :  { %9573 = vmatmul.msk.bf16.gmra.mxu3 %vm2536_vm3, %v19112_v17  ;;  %6122 = vmatmul.bf16.gmra.mxu1 %v19113_v53  ;;  %v6081_v45 = vadd.f32 %v6080_v25, %v5972_v41  ;;  %v5868_v41 = vadd.f32 %v15700_v58, %v5759_v1  ;;  %v19120_v53 = vld [vmem:[#allocation172_spill] sm:$0xff]  ;;  %v19125_v1 = vld [vmem:[#allocation219_spill] sm:$0xff] }
 0x985   :  { %v6182_v15 = vpop.f32.mrf.mxu3 }
 0x986   :  { %v15844_v31 = vpop.f32.mrf.mxu2  ;;  %v6183_v35 = vadd.f32 %v6182_v15, %v6074_v13  ;;  %v19121_v15 = vld [vmem:[#allocation173_spill] sm:$0xff] }
 0x988   :  { %v5974_v23 = vpop.f32.mrf.mxu0  ;;  %v6085_v12 = vpop.f32.mrf.mxu1  ;;  %v6282_v10 = vmax.f32 %v6183_v35, 0.0 }
 0x989   :  { %v5975_v39 = vadd.f32 %v5974_v23, %v15672_v59  ;;  %v19122_v23 = vpack.c.bf16 %v19120_v53, %v19121_v15 }
 0x98a   :  { %5924 = vmatmul.bf16.gmra.mxu2 %v19115_v18 }
 0x98b   :  { %6013 = vmatmul.bf16.gmra.mxu0 %v19118_v14  ;;  %v6084_v5 = vadd.f32 %v6083_v4, %v5975_v39  ;;  %v15862_v4 = vpop.permute.xlu1 %11120 }
 0x98d   :  { %v6184_v19 = vpop.f32.mrf.mxu3 }
 0x98e   :  { %v15855_v25 = vpop.f32.mrf.mxu2  ;;  %v6185_v13 = vadd.f32 %v6184_v19, %v6076_v0  ;;  %v19126_v19 = vpack.c.bf16 %v19124_v60, %v19125_v1  ;;  %v19132_v60 = vld [vmem:[#allocation315_spill] sm:$0xff] }
 0x990   :  { %v6283_v59 = vmax.f32 %v6185_v13, 0.0  ;;  %v5976_v40 = vpop.f32.mrf.mxu0  ;;  %v6088_v17 = vpop.f32.mrf.mxu1  ;;  %v19127_v13 = vld [vmem:[#allocation192_spill] sm:$0xff] }
 0x991   :  { %v5977_v56 = vadd.f32 %v5976_v40, %v5868_v41  ;;  %v19128_v41 = vld [vmem:[#allocation238_spill] sm:$0xff] }
 0x992   :  { %v15864_v39 = vpack.c.bf16 %v6283_v59, %v6282_v10  ;;  %v19129_v10 = vpack.c.bf16 %v19127_v13, %v19128_v41  ;;  %v19135_v13 = vld [vmem:[#allocation31_spill] sm:$0xff] }
 0x993   :  { %9574 = vmatmul.msk.bf16.gmra.mxu3 %vm2536_vm3, %v19122_v23  ;;  %6127 = vmatmul.bf16.gmra.mxu1 %v19123_v21  ;;  %v6086_v0 = vadd.f32 %v6085_v12, %v5977_v56  ;;  %v15878_v63 = vpop.permute.xlu1 %11135  ;;  %v5764_v12 = vadd.f32 %v15450_v28, %v19130_v30 }
 0x996   :  { %v15869_v58 = vpop.f32.mrf.mxu2  ;;  %v6187_v35 = vpop.f32.mrf.mxu3 }
 0x997   :  { %v6188_v18 = vadd.f32 %v6187_v35, %v6079_v7 }
 0x998   :  { %v5979_v47 = vpop.f32.mrf.mxu0  ;;  %v6090_v32 = vpop.f32.mrf.mxu1 }
 0x999   :  { %v5980_v14 = vadd.f32 %v5979_v47, %v15735_v50  ;;  %v5873_v50 = vadd.f32 %v15753_v27, %v5764_v12  ;;  %v6284_v53 = vmax.f32 %v6188_v18, 0.0  ;;  %v19131_v47 = vld [vmem:[#allocation316_spill] sm:$0xff] }
 0x99a   :  { %5929 = vmatmul.bf16.gmra.mxu2 %v19126_v19  ;;  %v19133_v1 = vpack.c.bf16 %v19131_v47, %v19132_v60  ;;  %v19136_v27 = vld [vmem:[#allocation140_spill] sm:$0xff] }
 0x99b   :  { %6018 = vmatmul.bf16.gmra.mxu0 %v19129_v10  ;;  %v6089_v59 = vadd.f32 %v6088_v17, %v5980_v14  ;;  %v19134_v14 = vpack.c.bf16 %v15600_v48, %v15596_v24  ;;  %v4829_v18 = vadd.f32 %v19136_v27, %v19135_v13  ;;  %v19142_v60 = vld [vmem:[#allocation244_spill] sm:$0xff] }
 0x99e   :  { %v15882_v40 = vpop.f32.mrf.mxu2  ;;  %v6189_v7 = vpop.f32.mrf.mxu3 }
 0x99f   :  { %v6190_v56 = vadd.f32 %v6189_v7, %v6081_v45 }
 0x9a0   :  { %v5981_v23 = vpop.f32.mrf.mxu0  ;;  %v6093_v21 = vpop.f32.mrf.mxu1 }
 0x9a1   :  { %v6285_v15 = vmax.f32 %v6190_v56, 0.0  ;;  %v5982_v35 = vadd.f32 %v5981_v23, %v5873_v50  ;;  %v19137_v50 = vld [vmem:[#allocation208_spill] sm:$0xff]  ;;  %v19138_v23 = vld [vmem:[#allocation241_spill] sm:$0xff] }
 0x9a3   :  { %9575 = vmatmul.msk.bf16.gmra.mxu3 %vm2536_vm3, %v19133_v1  ;;  %v15889_v17 = vpack.c.bf16 %v6285_v15, %v6284_v53  ;;  %6132 = vmatmul.bf16.gmra.mxu1 %v19134_v14  ;;  %v6091_v19 = vadd.f32 %v6090_v32, %v5982_v35  ;;  %v19139_v35 = vld [vmem:[#allocation191_spill] sm:$0xff] }
 0x9a4   :  { %v11151_v45 = vpop.permute.xlu1 %11150  ;;  %v19140_v47 = vpack.c.bf16 %v19138_v23, %v19139_v35  ;;  %v19145_v23 = vld [vmem:[#allocation321_spill] sm:$0xff]  ;;  %v19146_v35 = vld [vmem:[#allocation320_spill] sm:$0xff] }
 0x9a5   :  { %v11153_v41 = vunpack.i.h.bf16 %v11151_v45  ;;  %v11152_v10 = vunpack.i.l.bf16 %v11151_v45  ;;  %v19144_v45 = vld [vmem:[#allocation144_spill] sm:$0xff] }
 0x9a6   :  { %v15896_v30 = vpop.f32.mrf.mxu2  ;;  %v6192_v12 = vpop.f32.mrf.mxu3  ;;  %v5787_v13 = vadd.f32 %v15450_v28, %v19144_v45 }
 0x9a7   :  { %v6193_v7 = vadd.f32 %v6192_v12, %v6084_v5  ;;  %v15899_v56 = vsel %vm2536_vm3, %v4829_v18, %v11152_v10  ;;  %v15903_v53 = vsel %vm2536_vm3, %v19137_v50, %v11153_v41  ;;  %v19141_v5 = vld [vmem:[#allocation233_spill] sm:$0xff] }
 0x9a8   :  { %v5984_v24 = vpop.f32.mrf.mxu0  ;;  %v15905_v48 = vpop.f32.mrf.mxu1  ;;  %v19143_v1 = vpack.c.bf16 %v19141_v5, %v19142_v60  ;;  %v19149_v60 = vld [vmem:[#allocation166_spill] sm:$0xff] }
 0x9a9   :  { %v5985_v15 = vadd.f32 %v5984_v24, %v15788_v29  ;;  %v6286_v12 = vmax.f32 %v6193_v7, 0.0 }
 0x9aa   :  { %5934 = vmatmul.bf16.gmra.mxu2 %v19140_v47  ;;  %v19147_v47 = vpack.c.bf16 %v19145_v23, %v19146_v35  ;;  %v19152_v23 = vld [vmem:[#allocation185_spill] sm:$0xff]  ;;  %v19153_v35 = vld [vmem:[#allocation300_spill] sm:$0xff] }
 0x9ab   :  { %6023 = vmatmul.bf16.gmra.mxu0 %v19143_v1  ;;  %v6094_v14 = vadd.f32 %v6093_v21, %v5985_v15  ;;  %v19148_v21 = vpack.c.bf16 %v15645_v26, %v15641_v2  ;;  %v19150_v1 = vld [vmem:[#allocation213_spill] sm:$0xff]  ;;  %v19158_v26 = vld [vmem:[#allocation326_spill] sm:$0xff] }
 0x9ae   :  { %v5895_v27 = vpop.f32.mrf.mxu2  ;;  %v6194_v18 = vpop.f32.mrf.mxu3 }
 0x9af   :  { %v15918_v41 = vadd.f32 %v5895_v27, %v5787_v13  ;;  %v6195_v10 = vadd.f32 %v6194_v18, %v6086_v0  ;;  %v5221_v0 = vadd.f32 %v19150_v1, %v19149_v60 }
 0x9b0   :  { %v5986_v29 = vpop.f32.mrf.mxu0  ;;  %v15920_v24 = vpop.f32.mrf.mxu1 }
 0x9b1   :  { %v6287_v50 = vmax.f32 %v6195_v10, 0.0 }
 0x9b3   :  { %9576 = vmatmul.msk.bf16.gmra.mxu3 %vm2536_vm3, %v19147_v47  ;;  %v15926_v5 = vpack.c.bf16 %v6287_v50, %v6286_v12  ;;  %6137 = vmatmul.bf16.gmra.mxu1 %v19148_v21  ;;  %v19154_v47 = vld [vmem:[#allocation301_spill] sm:$0xff] }
 0x9b4   :  { %v11166_v15 = vpop.permute.xlu1 %11165  ;;  %v19155_v21 = vpack.c.bf16 %v19153_v35, %v19154_v47  ;;  %v19159_v35 = vld [vmem:[#allocation325_spill] sm:$0xff] }
 0x9b5   :  { %v11168_v13 = vunpack.i.h.bf16 %v11166_v15  ;;  %v11167_v27 = vunpack.i.l.bf16 %v11166_v15  ;;  %v19157_v15 = vld [vmem:[#allocation91_spill] sm:$0xff]  ;;  %v19160_v47 = vpack.c.bf16 %v19158_v26, %v19159_v35 }
 0x9b6   :  { %v15933_v7 = vpop.f32.mrf.mxu2  ;;  %v6197_v45 = vpop.f32.mrf.mxu3  ;;  %v5792_v60 = vadd.f32 %v15450_v28, %v19157_v15  ;;  %v19164_v15 = vld [vmem:[#allocation174_spill] sm:$0xff] }
 0x9b7   :  { %19151 = vst [vmem:[#allocation268_spill] sm:$0xff] %v15933_v7  ;;  %v6198_v18 = vadd.f32 %v6197_v45, %v6089_v59  ;;  %v15936_v10 = vsel %vm2536_vm3, %v5221_v0, %v11167_v27  ;;  %v15940_v12 = vsel %vm2536_vm3, %v19152_v23, %v11168_v13  ;;  %v19156_v59 = vpack.c.bf16 %v15555_v8, %v15551_v37 }
 0x9b8   :  { %v5989_v50 = vpop.f32.mrf.mxu0  ;;  %v15942_v2 = vpop.f32.mrf.mxu1  ;;  %v19161_v8 = vpack.c.bf16 %v15681_v44, %v15677_v49  ;;  %v19166_v49 = vld [vmem:[#allocation239_spill] sm:$0xff] }
 0x9b9   :  { %v6288_v27 = vmax.f32 %v6198_v18, 0.0  ;;  %v19163_v18 = vld [vmem:[#allocation148_spill] sm:$0xff] }
 0x9ba   :  { %5939 = vmatmul.bf16.gmra.mxu2 %v19155_v21  ;;  %v19162_v21 = vld [vmem:[#allocation222_spill] sm:$0xff] }
 0x9bb   :  { %6028 = vmatmul.bf16.gmra.mxu0 %v19156_v59  ;;  %v5769_v59 = vadd.f32 %v15450_v28, %v19162_v21 }
 0x9bd   :  { %v5878_v35 = vadd.f32 %v15805_v62, %v5769_v59  ;;  %v11123_v62 = vunpack.i.h.bf16 %v15862_v4  ;;  %v19169_v59 = vld [vmem:[#allocation247_spill] sm:$0xff] }
 0x9be   :  { %v5900_v1 = vpop.f32.mrf.mxu2  ;;  %v6199_v0 = vpop.f32.mrf.mxu3 }
 0x9bf   :  { %v15954_v45 = vadd.f32 %v5900_v1, %v5792_v60  ;;  %v6200_v13 = vadd.f32 %v6199_v0, %v6091_v19  ;;  %v5226_v60 = vadd.f32 %v19164_v15, %v19163_v18  ;;  %v19175_v18 = vld [vmem:[#allocation47_spill] sm:$0xff] }
 0x9c0   :  { %v5991_v54 = vpop.f32.mrf.mxu0  ;;  %v15956_v3 = vpop.f32.mrf.mxu1 }
 0x9c1   :  { %v6289_v23 = vmax.f32 %v6200_v13, 0.0 }
 0x9c3   :  { %9577 = vmatmul.msk.bf16.gmra.mxu3 %vm2536_vm3, %v19160_v47  ;;  %v15962_v37 = vpack.c.bf16 %v6289_v23, %v6288_v27  ;;  %6142 = vmatmul.bf16.gmra.mxu1 %v19161_v8  ;;  %v5987_v47 = vadd.f32 %v5986_v29, %v5878_v35  ;;  %v19171_v29 = vld [vmem:[#allocation95_spill] sm:$0xff] }
 0x9c4   :  { %v11181_v19 = vpop.permute.xlu1 %11180 }
 0x9c5   :  { %v11183_v13 = vunpack.i.h.bf16 %v11181_v19  ;;  %v11182_v26 = vunpack.i.l.bf16 %v11181_v19  ;;  %v19167_v19 = vld [vmem:[#allocation196_spill] sm:$0xff] }
 0x9c6   :  { %v15971_v1 = vpop.f32.mrf.mxu2  ;;  %v6202_v0 = vpop.f32.mrf.mxu3  ;;  %v19168_v15 = vpack.c.bf16 %v15572_v33, %v19167_v19  ;;  %v6096_v33 = vadd.f32 %v15905_v48, %v5987_v47  ;;  %v19179_v47 = vld [vmem:[#allocation240_spill] sm:$0xff] }
 0x9c7   :  { %19165 = vst [vmem:[#allocation273_spill] sm:$0xff] %v15971_v1  ;;  %v6203_v27 = vadd.f32 %v6202_v0, %v6094_v14  ;;  %v15975_v23 = vsel %vm2536_vm3, %v5226_v60, %v11182_v26  ;;  %v15979_v44 = vsel %vm2536_vm3, %v19166_v49, %v11183_v13  ;;  %v11122_v14 = vunpack.i.l.bf16 %v15862_v4  ;;  %v19172_v13 = vld [vmem:[#allocation149_spill] sm:$0xff]  ;;  %v19173_v26 = vld [vmem:[#allocation64_spill] sm:$0xff] }
 0x9c8   :  { %v15981_v8 = vpop.f32.mrf.mxu0  ;;  %v15983_v21 = vpop.f32.mrf.mxu1  ;;  %v19170_v60 = vpack.c.bf16 %v15593_v51, %v19169_v59  ;;  %v5797_v0 = vadd.f32 %v15450_v28, %v19171_v29  ;;  %v4819_v35 = vadd.f32 %v19173_v26, %v19172_v13  ;;  %v19174_v49 = vld [vmem:[#allocation184_spill] sm:$0xff]  ;;  %v19176_v26 = vld [vmem:[#allocation329_spill] sm:$0xff] }
 0x9c9   :  { %v4821_v32 = vadd.f32 %v19175_v18, %v19174_v49  ;;  %v6290_v59 = vmax.f32 %v6203_v27, 0.0  ;;  %v19177_v18 = vld [vmem:[#allocation328_spill] sm:$0xff] }
 0x9ca   :  { %5944 = vmatmul.bf16.gmra.mxu2 %v19168_v15  ;;  %v4952_v34 = vsel %vm2536_vm3, %v4819_v35, %v11122_v14  ;;  %v19178_v49 = vpack.c.bf16 %v19176_v26, %v19177_v18  ;;  %v5774_v14 = vadd.f32 %v15450_v28, %v19179_v47  ;;  %v19185_v26 = vld [vmem:[#allocation242_spill] sm:$0xff] }
 0x9cb   :  { %6033 = vmatmul.bf16.gmra.mxu0 %v19170_v60  ;;  %v4953_v51 = vsel %vm2536_vm3, %v4821_v32, %v11123_v62  ;;  %v5990_v62 = vadd.f32 %v5989_v50, %v15834_v55  ;;  %v19188_v50 = vld [vmem:[#allocation51_spill] sm:$0xff]  ;;  %v19190_v47 = vld [vmem:[#allocation134_spill] sm:$0xff] }
 0x9cc   :  { %v5435_v13 = vpack.c.bf16 %v4953_v51, %v4952_v34  ;;  %v5883_v27 = vadd.f32 %v15844_v31, %v5774_v14  ;;  %v11137_v51 = vunpack.i.l.bf16 %v15878_v63  ;;  %v19184_v31 = vld [vmem:[#allocation224_spill] sm:$0xff] }
 0x9cd   :  { %v19186_v55 = vpack.c.bf16 %v19184_v31, %v19185_v26 }
 0x9ce   :  { %v5905_v19 = vpop.f32.mrf.mxu2  ;;  %v6204_v15 = vpop.f32.mrf.mxu3  ;;  %v5992_v35 = vadd.f32 %v5991_v54, %v5883_v27  ;;  %v19187_v54 = vld [vmem:[#allocation182_spill] sm:$0xff] }
 0x9cf   :  { %v16002_v38 = vadd.f32 %v5905_v19, %v5797_v0  ;;  %v6205_v4 = vadd.f32 %v6204_v15, %v6096_v33  ;;  %v19181_v19 = vld [vmem:[#allocation250_spill] sm:$0xff]  ;;  %v4824_v18 = vadd.f32 %v19188_v50, %v19187_v54  ;;  %v19191_v50 = vld [vmem:[#allocation267_spill] sm:$0xff] }
 0x9d0   :  { %v16006_v29 = vpop.f32.mrf.mxu0  ;;  %v16008_v7 = vpop.f32.mrf.mxu1  ;;  %v19182_v15 = vpack.c.bf16 %v15616_v52, %v19181_v19  ;;  %v6101_v27 = vadd.f32 %v15942_v2, %v5992_v35  ;;  %v19194_v2 = vld [vmem:[#allocation303_spill] sm:$0xff] }
 0x9d1   :  { %v6291_v60 = vmax.f32 %v6205_v4, 0.0  ;;  %v11138_v4 = vunpack.i.h.bf16 %v15878_v63  ;;  %v11132_v35 = vunpack.i.l.bf16 %v19194_v2 }
 0x9d3   :  { %9578 = vmatmul.msk.bf16.gmra.mxu3 %vm2536_vm3, %v19178_v49  ;;  %v16014_v48 = vpack.c.bf16 %v6291_v60, %v6290_v59  ;;  %6147 = vmatmul.bf16.gmra.mxu1 %v5435_v13  ;;  %v6099_v59 = vadd.f32 %v15920_v24, %v5990_v62  ;;  %v19183_v60 = vld [vmem:[#allocation102_spill] sm:$0xff]  ;;  %v19189_v49 = vld [vmem:[#allocation67_spill] sm:$0xff]  ;;  %v4954_v62 = vsel %vm2536_vm3, %v4824_v18, %v11137_v51  ;;  %v19197_v18 = vld [vmem:[#allocation285_spill] sm:$0xff] }
 0x9d4   :  { %v5802_v13 = vadd.f32 %v15450_v28, %v19183_v60  ;;  %v4826_v52 = vadd.f32 %v19190_v47, %v19189_v49  ;;  %v19195_v51 = vld [vmem:[#allocation15_spill] sm:$0xff]  ;;  %v19198_v47 = vld [vmem:[#allocation218_spill] sm:$0xff] }
 0x9d6   :  { %v16018_v0 = vpop.f32.mrf.mxu2  ;;  %v6207_v32 = vpop.f32.mrf.mxu3  ;;  %v4955_v60 = vsel %vm2536_vm3, %v4826_v52, %v11138_v4  ;;  %v4801_v52 = vadd.f32 %v19198_v47, %v19197_v18 }
 0x9d7   :  { %19180 = vst [vmem:[#allocation271_spill] sm:$0xff] %v16018_v0  ;;  %v6208_v14 = vadd.f32 %v6207_v32, %v6099_v59  ;;  %v5440_v54 = vpack.c.bf16 %v4955_v60, %v4954_v62  ;;  %v19192_v0 = vld [vmem:[#allocation264_spill] sm:$0xff]  ;;  %v11133_v32 = vunpack.i.h.bf16 %v19194_v2 }
 0x9d8   :  { %v5999_v34 = vpop.f32.mrf.mxu0  ;;  %v16022_v33 = vpop.f32.mrf.mxu1  ;;  %v19193_v49 = vpack.c.bf16 %v19191_v50, %v19192_v0 }
 0x9d9   :  { %v6292_v31 = vmax.f32 %v6208_v14, 0.0 }
 0x9da   :  { %5949 = vmatmul.bf16.gmra.mxu2 %v19182_v15 }
 0x9db   :  { %6038 = vmatmul.bf16.gmra.mxu0 %v19186_v55 }
 0x9de   :  { %v5910_v19 = vpop.f32.mrf.mxu2  ;;  %v6209_v63 = vpop.f32.mrf.mxu3 }
 0x9df   :  { %v16040_v15 = vadd.f32 %v5910_v19, %v5802_v13  ;;  %v6210_v24 = vadd.f32 %v6209_v63, %v6101_v27  ;;  %v19196_v13 = vld [vmem:[#allocation215_spill] sm:$0xff]  ;;  %v4950_v19 = vsel %vm2536_vm3, %v4801_v52, %v11133_v32 }
 0x9e0   :  { %v6001_v55 = vpop.f32.mrf.mxu0  ;;  %v6113_v1 = vpop.f32.mrf.mxu1  ;;  %v4799_v4 = vadd.f32 %v19196_v13, %v19195_v51  ;;  %v19202_v51 = vld [vmem:[#allocation305_spill] sm:$0xff]  ;;  %v19203_v13 = vld [vmem:[#allocation167_spill] sm:$0xff] }
 0x9e1   :  { %v6293_v26 = vmax.f32 %v6210_v24, 0.0  ;;  %v4844_v18 = vadd.f32 %v19203_v13, %v19202_v51 }
 0x9e2   :  { %v4949_v0 = vsel %vm2536_vm3, %v4799_v4, %v11132_v35 }
 0x9e3   :  { %9579 = vmatmul.msk.bf16.gmra.mxu3 %vm2536_vm3, %v19193_v49  ;;  %v16050_v59 = vpack.c.bf16 %v6293_v26, %v6292_v31  ;;  %6152 = vmatmul.bf16.gmra.mxu1 %v5440_v54  ;;  %v5439_v60 = vpack.c.bf16 %v4950_v19, %v4949_v0  ;;  %v19199_v31 = vld [vmem:[#allocation220_spill] sm:$0xff]  ;;  %v19200_v26 = vld [vmem:[#allocation93_spill] sm:$0xff]  ;;  %v19201_v49 = vld [vmem:[#allocation150_spill] sm:$0xff] }
 0x9e4   :  { %v4846_v54 = vadd.f32 %v19200_v26, %v19199_v31  ;;  %v5807_v2 = vadd.f32 %v15450_v28, %v19201_v49  ;;  %v19204_v0 = vld [vmem:[#allocation57_spill] sm:$0xff] }
 0x9e5   :  { %v5782_v19 = vadd.f32 %v15450_v28, %v19204_v0 }
 0x9e6   :  { %v16056_v14 = vpop.f32.mrf.mxu2  ;;  %v6212_v27 = vpop.f32.mrf.mxu3  ;;  %v5436_v47 = vpack.c.bf16 %v4846_v54, %v4844_v18 }
 0x9e7   :  { %v5891_v26 = vadd.f32 %v15882_v40, %v5782_v19 }
 0x9e8   :  { %v6004_v63 = vpop.f32.mrf.mxu0  ;;  %v16060_v24 = vpop.f32.mrf.mxu1 }
 0x9e9   :  { %v6005_v62 = vadd.f32 %v6004_v63, %v15918_v41  ;;  %v19206_v63 = vld [vmem:[#allocation77_spill] sm:$0xff] }
 0x9eb   :  { %6043 = vmatmul.bf16.gmra.mxu0 %v5439_v60  ;;  %v6114_v50 = vadd.f32 %v6113_v1, %v6005_v62  ;;  %v19205_v1 = vpack.c.bf16 %v15903_v53, %v15899_v56  ;;  %v5779_v62 = vadd.f32 %v15450_v28, %v19206_v63  ;;  %v19207_v60 = vld [vmem:[#allocation13_spill] sm:$0xff]  ;;  %v6000_v56 = vadd.f32 %v5999_v34, %v5891_v26 }
 0x9ec   :  { %v5784_v31 = vadd.f32 %v15450_v28, %v19207_v60  ;;  %v19210_v60 = vld [vmem:[#allocation105_spill] sm:$0xff] }
 0x9ed   :  { %v5888_v13 = vadd.f32 %v15869_v58, %v5779_v62  ;;  %v6109_v63 = vadd.f32 %v16008_v7, %v6000_v56  ;;  %v19212_v62 = vld [vmem:[#allocation112_spill] sm:$0xff]  ;;  %v19214_v56 = vpack.c.bf16 %v15940_v12, %v15936_v10 }
 0x9ee   :  { %v5915_v35 = vpop.f32.mrf.mxu2  ;;  %v6214_v4 = vpop.f32.mrf.mxu3  ;;  %v5893_v18 = vadd.f32 %v15896_v30, %v5784_v31  ;;  %v19211_v30 = vpack.c.bf16 %v15716_v42, %v15712_v43  ;;  %v19213_v31 = vld [vmem:[#allocation120_spill] sm:$0xff] }
 0x9ef   :  { %v16069_v32 = vadd.f32 %v5915_v35, %v5807_v2  ;;  %v19208_v2 = vld [vmem:[#allocation49_spill] sm:$0xff]  ;;  %v5997_v35 = vadd.f32 %v16006_v29, %v5888_v13 }
 0x9f0   :  { %v16071_v52 = vpop.f32.mrf.mxu0  ;;  %v6118_v41 = vpop.f32.mrf.mxu1  ;;  %v5777_v51 = vadd.f32 %v15450_v28, %v19208_v2  ;;  %v19209_v28 = vld [vmem:[#allocation22_spill] sm:$0xff] }
 0x9f1   :  { %v4851_v58 = vadd.f32 %v19210_v60, %v19209_v28  ;;  %v6106_v29 = vadd.f32 %v15983_v21, %v5997_v35  ;;  %v19216_v60 = vpack.c.bf16 %v15707_v9, %v15704_v61  ;;  %v19218_v61 = vpack.c.bf16 %v15820_v6, %v15816_v20 }
 0x9f2   :  { %v5886_v53 = vadd.f32 %v15855_v25, %v5777_v51 }
 0x9f3   :  { %9580 = vmatmul.msk.bf16.gmra.mxu3 %vm2536_vm3, %v5436_v47  ;;  %6157 = vmatmul.bf16.gmra.mxu1 %v19205_v1  ;;  %v6002_v47 = vadd.f32 %v6001_v55, %v5893_v18  ;;  %v6215_v2 = vadd.f32 %v6214_v4, %v6106_v29 }
 0x9f4   :  { %v5995_v19 = vadd.f32 %v15981_v8, %v5886_v53 }
 0x9f5   :  { %v6111_v55 = vadd.f32 %v16022_v33, %v6002_v47  ;;  %v6295_v33 = vmax.f32 %v6215_v2, 0.0  ;;  %v19221_v2 = vpack.c.bf16 %v15811_v57, %v15808_v16 }
 0x9f6   :  { %v16084_v54 = vpop.f32.mrf.mxu2  ;;  %v6217_v49 = vpop.f32.mrf.mxu3  ;;  %v6104_v7 = vadd.f32 %v15956_v3, %v5995_v19  ;;  %v19215_v19 = vpack.c.bf16 %v15768_v46, %v15764_v11 }
 0x9f7   :  { %v6218_v34 = vadd.f32 %v6217_v49, %v6109_v63 }
 0x9f8   :  { %v6009_v0 = vpop.f32.mrf.mxu0  ;;  %v16092_v1 = vpop.f32.mrf.mxu1  ;;  %v6213_v18 = vadd.f32 %v6212_v27, %v6104_v7 }
 0x9f9   :  { %v6010_v40 = vadd.f32 %v6009_v0, %v15954_v45  ;;  %v4849_v45 = vadd.f32 %v19213_v31, %v19212_v62  ;;  %v6296_v43 = vmax.f32 %v6218_v34, 0.0  ;;  %v16168_v62 = vld [vmem:[%s17751_s9] ss:$0 sm:$0xff] }
 0x9fa   :  { %v6294_v53 = vmax.f32 %v6213_v18, 0.0 }
 0x9fb   :  { %6048 = vmatmul.bf16.gmra.mxu0 %v19211_v30  ;;  %v6119_v25 = vadd.f32 %v6118_v41, %v6010_v40  ;;  %v5441_v13 = vpack.c.bf16 %v4851_v58, %v4849_v45 }
 0x9fc   :  { %v6328_v27 = vpack.c.bf16 %v6295_v33, %v6294_v53 }
 0x9fe   :  { %v16106_v26 = vpop.f32.mrf.mxu2  ;;  %v6219_v8 = vpop.f32.mrf.mxu3 }
 0x9ff   :  { %v6220_v51 = vadd.f32 %v6219_v8, %v6111_v55 }
 0xa00   :  { %v16109_v41 = vpop.f32.mrf.mxu0  ;;  %v6123_v21 = vpop.f32.mrf.mxu1 }
 0xa01   :  { %v6297_v42 = vmax.f32 %v6220_v51, 0.0 }
 0xa03   :  { %9581 = vmatmul.msk.bf16.gmra.mxu3 %vm2536_vm3, %v5441_v13  ;;  %v6329_v49 = vpack.c.bf16 %v6297_v42, %v6296_v43  ;;  %6162 = vmatmul.bf16.gmra.mxu1 %v19214_v56 }
 0xa05   :  { %7075 = vmatpush.bf16.msra.mxu2 %v6329_v49 }
 0xa06   :  { %v16115_v3 = vpop.f32.mrf.mxu2  ;;  %v6222_v4 = vpop.f32.mrf.mxu3 }
 0xa07   :  { %v16117_v35 = vadd.f32 %v6222_v4, %v6114_v50 }
 0xa08   :  { %v6014_v47 = vpop.f32.mrf.mxu0  ;;  %v16119_v0 = vpop.f32.mrf.mxu1 }
 0xa09   :  { %7076 = vmatpush.bf16.msra.mxu2 %v6328_v27  ;;  %v6015_v40 = vadd.f32 %v6014_v47, %v16002_v38  ;;  %v19217_v38 = vpack.c.bf16 %v15979_v44, %v15975_v23 }
 0xa0b   :  { %6053 = vmatmul.bf16.gmra.mxu0 %v19215_v19  ;;  %v6124_v10 = vadd.f32 %v6123_v21, %v6015_v40 }
 0xa0d   :  { %7077 = vmatpush.bf16.msra.mxu2 %v16050_v59 }
 0xa0e   :  { %v16126_v12 = vpop.f32.mrf.mxu2  ;;  %v16128_v63 = vpop.f32.mrf.mxu3 }
 0xa10   :  { %v16130_v50 = vpop.f32.mrf.mxu0  ;;  %v6128_v28 = vpop.f32.mrf.mxu1 }
 0xa11   :  { %7078 = vmatpush.bf16.msra.mxu2 %v16014_v48 }
 0xa13   :  { %9582 = vmatmul.msk.bf16.gmra.mxu3 %vm2536_vm3, %v19216_v60  ;;  %6167 = vmatmul.bf16.gmra.mxu1 %v19217_v38 }
 0xa15   :  { %7079 = vmatpush.bf16.msra.mxu2 %v15962_v37 }
 0xa16   :  { %v5927_v11 = vpop.f32.mrf.mxu2  ;;  %v6227_v46 = vpop.f32.mrf.mxu3 }
 0xa17   :  { %v16141_v59 = vadd.f32 %v6227_v46, %v6119_v25 }
 0xa18   :  { %v6019_v58 = vpop.f32.mrf.mxu0  ;;  %v16143_v30 = vpop.f32.mrf.mxu1 }
 0xa19   :  { %7080 = vmatpush.bf16.msra.mxu2 %v15926_v5  ;;  %v6020_v48 = vadd.f32 %v6019_v58, %v16040_v15  ;;  %v19219_v5 = vpack.c.bf16 %v15759_v22, %v15756_v36 }
 0xa1b   :  { %6058 = vmatmul.bf16.gmra.mxu0 %v19218_v61  ;;  %v6129_v9 = vadd.f32 %v6128_v28, %v6020_v48  ;;  %v19222_v61 = vld [vmem:[#allocation201_spill] sm:$0xff] }
 0xa1d   :  { %7081 = vmatpush.bf16.msra.mxu2 %v15889_v17 }
 0xa1e   :  { %v5930_v23 = vpop.f32.mrf.mxu2  ;;  %v16151_v37 = vpop.f32.mrf.mxu3 }
 0xa20   :  { %v16153_v44 = vpop.f32.mrf.mxu0  ;;  %v6133_v25 = vpop.f32.mrf.mxu1 }
 0xa21   :  { %7082 = vmatpush.bf16.msra.mxu2 %v15864_v39  ;;  %v19220_v39 = vld [vmem:[#allocation10_spill] sm:$0xff] }
 0xa22   :  { %v5827_v36 = vadd.f32 %v16168_v62, %v19220_v39  ;;  %v19225_v39 = vld [vmem:[#allocation170_spill] sm:$0xff] }
 0xa23   :  { %9583 = vmatmul.msk.bf16.gmra.mxu3 %vm2536_vm3, %v19219_v5 }
 0xa26   :  { %v5932_v15 = vpop.f32.mrf.mxu2  ;;  %v6232_v29 = vpop.f32.mrf.mxu3 }
 0xa27   :  { %v16160_v20 = vadd.f32 %v6232_v29, %v6124_v10  ;;  %v19224_v29 = vld [vmem:[#allocation175_spill] sm:$0xff] }
 0xa28   :  { %v6024_v6 = vpop.f32.mrf.mxu0  ;;  %v16162_v34 = vpop.f32.mrf.mxu1 }
 0xa29   :  { %v6025_v17 = vadd.f32 %v6024_v6, %v16069_v32  ;;  %v5824_v6 = vadd.f32 %v16168_v62, %v19224_v29 }
 0xa2b   :  { %v6134_v55 = vadd.f32 %v6133_v25, %v6025_v17  ;;  %v19223_v25 = vld [vmem:[#allocation199_spill] sm:$0xff] }
 0xa2c   :  { %v5819_v5 = vadd.f32 %v16168_v62, %v19223_v25  ;;  %v19227_v25 = vld [vmem:[#allocation136_spill] sm:$0xff] }
 0xa2d   :  { %v5812_v29 = vadd.f32 %v16168_v62, %v19227_v25 }
 0xa2e   :  { %v5935_v22 = vpop.f32.mrf.mxu2  ;;  %v16172_v31 = vpop.f32.mrf.mxu3 }
 0xa2f   :  { %v5936_v45 = vadd.f32 %v5935_v22, %v5827_v36  ;;  %v5817_v36 = vadd.f32 %v16168_v62, %v19225_v39  ;;  %v5928_v22 = vadd.f32 %v5927_v11, %v5819_v5  ;;  %v5921_v5 = vadd.f32 %v16106_v26, %v5812_v29 }
 0xa30   :  { %v6026_v8 = vpop.f32.mrf.mxu0  ;;  %v16174_v7 = vpop.f32.mrf.mxu1 }
 0xa33   :  { %9584 = vmatmul.msk.bf16.gmra.mxu3 %vm2536_vm3, %v19221_v2  ;;  %v5933_v2 = vadd.f32 %v5932_v15, %v5824_v6  ;;  %v19229_v15 = vld [vmem:[#allocation206_spill] sm:$0xff] }
 0xa36   :  { %v6237_v32 = vpop.f32.mrf.mxu3 }
 0xa37   :  { %v16180_v51 = vadd.f32 %v6237_v32, %v6129_v9  ;;  %v5822_v9 = vadd.f32 %v16168_v62, %v19222_v61  ;;  %v16196_v32 = vpop.f32.mrf.mxu2 }
 0xa38   :  { %v6029_v13 = vpop.f32.mrf.mxu0  ;;  %v6140_v18 = vpop.f32.mrf.mxu1 }
 0xa39   :  { %v5931_v17 = vadd.f32 %v5930_v23, %v5822_v9 }
 0xa3e   :  { %v16182_v43 = vpop.f32.mrf.mxu3 }
 0xa40   :  { %v6031_v42 = vpop.f32.mrf.mxu0  ;;  %v6143_v21 = vpop.f32.mrf.mxu1 }
 0xa46   :  { %v6242_v33 = vpop.f32.mrf.mxu3 }
 0xa47   :  { %v16184_v49 = vadd.f32 %v6242_v33, %v6134_v55  ;;  %v19226_v33 = vld [vmem:[#allocation171_spill] sm:$0xff] }
 0xa48   :  { %v6034_v56 = vpop.f32.mrf.mxu0  ;;  %v6145_v53 = vpop.f32.mrf.mxu1 }
 0xa4e   :  { %v16186_v4 = vpop.f32.mrf.mxu3 }
 0xa50   :  { %v6036_v27 = vpop.f32.mrf.mxu0  ;;  %v6148_v57 = vpop.f32.mrf.mxu1 }
 0xa56   :  { %v6247_v16 = vpop.f32.mrf.mxu3 }
 0xa58   :  { %v6039_v47 = vpop.f32.mrf.mxu0  ;;  %v6150_v19 = vpop.f32.mrf.mxu1 }
 0xa5e   :  { %v6249_v40 = vpop.f32.mrf.mxu3 }
 0xa60   :  { %v6041_v10 = vpop.f32.mrf.mxu0  ;;  %v6153_v46 = vpop.f32.mrf.mxu1 }
 0xa61   :  { %v6042_v61 = vadd.f32 %v6041_v10, %v5933_v2 }
 0xa66   :  { %v6252_v28 = vpop.f32.mrf.mxu3 }
 0xa68   :  { %v6044_v60 = vpop.f32.mrf.mxu0 }
 0xa69   :  { %v6045_v38 = vadd.f32 %v6044_v60, %v5936_v45  ;;  %v6040_v45 = vadd.f32 %v6039_v47, %v5931_v17  ;;  %v5814_v60 = vadd.f32 %v16168_v62, %v19226_v33  ;;  %v5809_v47 = vadd.f32 %v16168_v62, %v19229_v15 }
 0xa6b   :  { %v6154_v58 = vadd.f32 %v6153_v46, %v6045_v38  ;;  %v5926_v38 = vadd.f32 %v16126_v12, %v5817_v36  ;;  %v6037_v46 = vadd.f32 %v6036_v27, %v5928_v22  ;;  %v5923_v9 = vadd.f32 %v16115_v3, %v5814_v60 }
 0xa6c   :  { %v6149_v11 = vadd.f32 %v6148_v57, %v6040_v45  ;;  %v6151_v12 = vadd.f32 %v6150_v19, %v6042_v61  ;;  %v5918_v27 = vadd.f32 %v16084_v54, %v5809_v47  ;;  %v6030_v36 = vadd.f32 %v6029_v13, %v5921_v5  ;;  %v16212_v57 = vpop.f32.mrf.mxu1  ;;  %v16215_v19 = vpop.f32.mrf.mxu2  ;;  %v19234_v5 = vld [vmem:[#allocation273_spill] sm:$0xff] }
 0xa6d   :  { %v6035_v39 = vadd.f32 %v6034_v56, %v5926_v38  ;;  %v6032_v6 = vadd.f32 %v6031_v42, %v5923_v9  ;;  %v6146_v17 = vadd.f32 %v6145_v53, %v6037_v46 }
 0xa6e   :  { %v6254_v48 = vpop.f32.mrf.mxu3  ;;  %v6027_v56 = vadd.f32 %v6026_v8, %v5918_v27  ;;  %v6139_v54 = vadd.f32 %v16174_v7, %v6030_v36 }
 0xa6f   :  { %v6144_v22 = vadd.f32 %v6143_v21, %v6035_v39  ;;  %v6255_v2 = vadd.f32 %v6254_v48, %v6146_v17  ;;  %v6141_v45 = vadd.f32 %v6140_v18, %v6032_v6 }
 0xa70   :  { %v16203_v23 = vpop.f32.mrf.mxu0  ;;  %v6136_v18 = vadd.f32 %v16162_v34, %v6027_v56 }
 0xa71   :  { %19228 = vst [vmem:[#allocation39_spill] sm:$0xff] %v16203_v23  ;;  %v19230_v23 = vld [vmem:[#allocation97_spill] sm:$0xff]  ;;  %v6253_v60 = vadd.f32 %v6252_v28, %v6144_v22  ;;  %v6250_v13 = vadd.f32 %v6249_v40, %v6141_v45  ;;  %v6311_v21 = vmax.f32 %v6255_v2, 0.0  ;;  %v6248_v28 = vadd.f32 %v6247_v16, %v6139_v54  ;;  %v19236_v2 = vld [vmem:[#allocation268_spill] sm:$0xff] }
 0xa72   :  { %v5804_v3 = vadd.f32 %v16168_v62, %v19230_v23  ;;  %v6245_v7 = vadd.f32 %v16186_v4, %v6136_v18  ;;  %v6302_v54 = vmax.f32 %v16160_v20, 0.0 }
 0xa73   :  { %v6310_v61 = vmax.f32 %v6253_v60, 0.0  ;;  %v6309_v40 = vmax.f32 %v6250_v13, 0.0  ;;  %v6308_v34 = vmax.f32 %v6248_v28, 0.0 }
 0xa74   :  { %v5913_v53 = vadd.f32 %v16056_v14, %v5804_v3  ;;  %v19232_v14 = vld [vmem:[#allocation271_spill] sm:$0xff]  ;;  %v16232_v16 = vpop.f32.mrf.mxu1  ;;  %v6307_v4 = vmax.f32 %v6245_v7, 0.0 }
 0xa75   :  { %v6336_v39 = vpack.c.bf16 %v6311_v21, %v6310_v61  ;;  %v19237_v61 = vld [vmem:[#allocation304_spill] sm:$0xff] }
 0xa76   :  { %v6257_v55 = vpop.f32.mrf.mxu3  ;;  %v6022_v8 = vadd.f32 %v16153_v44, %v5913_v53 }
 0xa77   :  { %v6258_v33 = vadd.f32 %v6257_v55, %v6149_v11  ;;  %v19231_v55 = vld [vmem:[#allocation113_spill] sm:$0xff]  ;;  %v19233_v11 = vld [vmem:[#allocation116_spill] sm:$0xff] }
 0xa78   :  { %v5799_v38 = vadd.f32 %v16168_v62, %v19231_v55  ;;  %v16220_v46 = vpop.f32.mrf.mxu0  ;;  %v5794_v15 = vadd.f32 %v16168_v62, %v19233_v11  ;;  %v6131_v44 = vadd.f32 %v16143_v30, %v6022_v8  ;;  %v6306_v30 = vmax.f32 %v16184_v49, 0.0 }
 0xa79   :  { %v6312_v26 = vmax.f32 %v6258_v33, 0.0  ;;  %v6335_v33 = vpack.c.bf16 %v6309_v40, %v6308_v34  ;;  %v10461_v34 = vld [vmem:[%s17752_s2 + $0x4] sm:$0xf] }
 0xa7a   :  { %v5908_v29 = vadd.f32 %v19232_v14, %v5799_v38  ;;  %v5903_v6 = vadd.f32 %v19234_v5, %v5794_v15  ;;  %v6240_v17 = vadd.f32 %v16182_v43, %v6131_v44  ;;  %v6334_v56 = vpack.c.bf16 %v6307_v4, %v6306_v30  ;;  %v10462_v14 = vld [vmem:[%s17752_s2 + $0x8] sm:$0xf0]  ;;  %v9589_v5 = vld [vmem:[%s17752_s2 + $0xc] sm:$0xf0] }
 0xa7b   :  { %v6298_v38 = vmax.f32 %v16117_v35, 0.0  ;;  %v19238_v35 = vld [vmem:[#allocation269_spill] sm:$0xff] }
 0xa7c   :  { %v6017_v47 = vadd.f32 %v16130_v50, %v5908_v29  ;;  %v6305_v3 = vmax.f32 %v6240_v17, 0.0  ;;  %v5839_v29 = vadd.f32 %v16168_v62, %v19238_v35  ;;  %v9592_v17 = vor.u32 %v10461_v34, %v9589_v5  ;;  %v9611_v34 = vld [vmem:[%s17752_s2 + $0x30] sm:$0xf] }
 0xa7e   :  { %v6259_v10 = vpop.f32.mrf.mxu3  ;;  %v6126_v50 = vadd.f32 %v16119_v0, %v6017_v47 }
 0xa7f   :  { %v6260_v25 = vadd.f32 %v6259_v10, %v6151_v12  ;;  %v19235_v12 = vld [vmem:[#allocation92_spill] sm:$0xff]  ;;  %v6012_v10 = vadd.f32 %v16109_v41, %v5903_v6  ;;  %v6304_v41 = vmax.f32 %v16180_v51, 0.0 }
 0xa80   :  { %v5789_v27 = vadd.f32 %v16168_v62, %v19235_v12  ;;  %v16243_v36 = vpop.f32.mrf.mxu0 }
 0xa81   :  { %v6313_v42 = vmax.f32 %v6260_v25, 0.0  ;;  %v6235_v25 = vadd.f32 %v16172_v31, %v6126_v50  ;;  %v6121_v60 = vadd.f32 %v16092_v1, %v6012_v10 }
 0xa82   :  { %v5898_v43 = vadd.f32 %v19236_v2, %v5789_v27 }
 0xa83   :  { %v6337_v48 = vpack.c.bf16 %v6313_v42, %v6312_v26  ;;  %v6230_v0 = vadd.f32 %v16151_v37, %v6121_v60  ;;  %v6303_v49 = vmax.f32 %v6235_v25, 0.0  ;;  %v6333_v26 = vpack.c.bf16 %v6305_v3, %v6304_v41  ;;  %v16253_v42 = vpop.f32.mrf.mxu1  ;;  %v10465_v60 = vld [vmem:[%s17752_s2 + $0x20] sm:$0xf0]  ;;  %v19240_v41 = vld [vmem:[#allocation8_spill] sm:$0xff] }
 0xa84   :  { %v6007_v45 = vadd.f32 %v16071_v52, %v5898_v43  ;;  %v19239_v43 = vld [vmem:[#allocation169_spill] sm:$0xff] }
 0xa85   :  { %7288 = vmatpush.bf16.msra.mxu0 %v6337_v48  ;;  %v6301_v1 = vmax.f32 %v6230_v0, 0.0  ;;  %v6332_v21 = vpack.c.bf16 %v6303_v49, %v6302_v54  ;;  %v6300_v48 = vmax.f32 %v16141_v59, 0.0  ;;  %v9587_v59 = vld [vmem:[%s17752_s2] sm:$0xf]  ;;  %v5842_v25 = vadd.f32 %v16168_v62, %v19239_v43  ;;  %v10470_v43 = vld [vmem:[%s17752_s2 + $0x4c] sm:$0xf] }
 0xa86   :  { %v6262_v23 = vpop.f32.mrf.mxu3  ;;  %v6116_v53 = vadd.f32 %v16060_v24, %v6007_v45  ;;  %v9588_v7 = vor.u32 %v10462_v14, %v9587_v59  ;;  %v9599_v45 = vld [vmem:[%s17752_s2 + $0x18] sm:$0xf]  ;;  %v5844_v0 = vadd.f32 %v16168_v62, %v19240_v41  ;;  %v9635_v41 = vld [vmem:[%s17752_s2 + $0x60] sm:$0xf] }
 0xa87   :  { %v16226_v9 = vadd.f32 %v6262_v23, %v6154_v58  ;;  %v16236_v58 = vpop.f32.mrf.mxu2  ;;  %v6331_v55 = vpack.c.bf16 %v6301_v1, %v6300_v48 }
 0xa88   :  { %v6225_v52 = vadd.f32 %v16128_v63, %v6116_v53  ;;  %v6054_v51 = vpop.f32.mrf.mxu0  ;;  %v5837_v63 = vadd.f32 %v16168_v62, %v19237_v61  ;;  %7083 = vmatmul.bf16.vlgmr.msra.gmra.mxu2 %v9588_v7 }
 0xa89   :  { %7289 = vmatpush.bf16.msra.mxu0 %v6336_v39 }
 0xa8a   :  { %v6299_v37 = vmax.f32 %v6225_v52, 0.0  ;;  %v9601_v52 = vld [vmem:[%s17752_s2 + $0x24] sm:$0xf0] }
 0xa8b   :  { %v6163_v24 = vpop.f32.mrf.mxu1 }
 0xa8c   :  { %v6330_v20 = vpack.c.bf16 %v6299_v37, %v6298_v38  ;;  %v19242_v38 = vld [vmem:[#allocation197_spill] sm:$0xff] }
 0xa8d   :  { %7290 = vmatpush.bf16.msra.mxu0 %v6335_v33 }
 0xa8e   :  { %v16245_v22 = vpop.f32.mrf.mxu3 }
 0xa8f   :  { %v5945_v31 = vpop.f32.mrf.mxu2 }
 0xa90   :  { %v6056_v28 = vpop.f32.mrf.mxu0  ;;  %v5946_v23 = vadd.f32 %v5945_v31, %v5837_v63  ;;  %v10464_v31 = vld [vmem:[%s17752_s2 + $0x1c] sm:$0xf] }
 0xa91   :  { %7291 = vmatpush.bf16.msra.mxu0 %v6334_v56 }
 0xa92   :  { %v6055_v11 = vadd.f32 %v6054_v51, %v5946_v23  ;;  %v19241_v51 = vld [vmem:[#allocation237_spill] sm:$0xff] }
 0xa93   :  { %v6165_v15 = vpop.f32.mrf.mxu1  ;;  %v5834_v48 = vadd.f32 %v16168_v62, %v19241_v51  ;;  %v10477_v51 = vld [vmem:[%s17752_s2 + $0x80] sm:$0xf0] }
 0xa94   :  { %v6164_v6 = vadd.f32 %v6163_v24, %v6055_v11  ;;  %v5832_v24 = vadd.f32 %v16168_v62, %v19242_v38  ;;  %v19244_v11 = vld [vmem:[#allocation39_spill] sm:$0xff] }
 0xa95   :  { %7292 = vmatpush.bf16.msra.mxu0 %v6333_v26  ;;  %v9600_v26 = vor.u32 %v10465_v60, %v9599_v45  ;;  %v10466_v45 = vld [vmem:[%s17752_s2 + $0x28] sm:$0xf0] }
 0xa96   :  { %v16257_v13 = vpop.f32.mrf.mxu3  ;;  %v5941_v59 = vadd.f32 %v16215_v19, %v5832_v24  ;;  %v9631_v24 = vld [vmem:[%s17752_s2 + $0x50] sm:$0xf] }
 0xa97   :  { %v5947_v18 = vpop.f32.mrf.mxu2 }
 0xa98   :  { %v5948_v39 = vadd.f32 %v5947_v18, %v5839_v29  ;;  %v6059_v4 = vpop.f32.mrf.mxu0  ;;  %7088 = vmatmul.bf16.gmra.mxu2 %v9600_v26  ;;  %v10473_v26 = vld [vmem:[%s17752_s2 + $0x64] sm:$0xf] }
 0xa99   :  { %7293 = vmatpush.bf16.msra.mxu0 %v6332_v21 }
 0xa9a   :  { %v6057_v47 = vadd.f32 %v6056_v28, %v5948_v39  ;;  %v19243_v28 = vld [vmem:[#allocation229_spill] sm:$0xff] }
 0xa9b   :  { %v6168_v2 = vpop.f32.mrf.mxu1  ;;  %v5829_v61 = vadd.f32 %v16168_v62, %v19243_v28  ;;  %v9659_v28 = vld [vmem:[%s17752_s2 + $0x90] sm:$0xf] }
 0xa9c   :  { %v6166_v33 = vadd.f32 %v6165_v15, %v6057_v47 }
 0xa9d   :  { %7294 = vmatpush.bf16.msra.mxu0 %v6331_v55  ;;  %v9604_v55 = vor.u32 %v10464_v31, %v9601_v52  ;;  %v5938_v7 = vadd.f32 %v16196_v32, %v5829_v61  ;;  %v10468_v32 = vld [vmem:[%s17752_s2 + $0x38] sm:$0xf0]  ;;  %v9619_v31 = vld [vmem:[%s17752_s2 + $0x38] sm:$0xf]  ;;  %v10469_v52 = vld [vmem:[%s17752_s2 + $0x40] sm:$0xf0] }
 0xa9e   :  { %v16262_v8 = vpop.f32.mrf.mxu3  ;;  %v10480_v61 = vld [vmem:[%s17752_s2 + $0x98] sm:$0xf0] }
 0xa9f   :  { %v5950_v44 = vpop.f32.mrf.mxu2 }
 0xaa0   :  { %v5951_v49 = vadd.f32 %v5950_v44, %v5842_v25  ;;  %v6061_v53 = vpop.f32.mrf.mxu0  ;;  %v9625_v25 = vld [vmem:[%s17752_s2 + $0x54] sm:$0xf0] }
 0xaa1   :  { %7295 = vmatpush.bf16.msra.mxu0 %v6330_v20  ;;  %v5943_v20 = vadd.f32 %v16236_v58, %v5834_v48  ;;  %v6047_v58 = vadd.f32 %v19244_v11, %v5938_v7 }
 0xaa2   :  { %v6060_v21 = vadd.f32 %v6059_v4, %v5951_v49 }
 0xaa3   :  { %v6170_v63 = vpop.f32.mrf.mxu1  ;;  %v6052_v14 = vadd.f32 %v16243_v36, %v5943_v20  ;;  %v10472_v20 = vld [vmem:[%s17752_s2 + $0x58] sm:$0xf0] }
 0xaa4   :  { %7296 = vmatmul.bf16.vlgmr.msra.gmra.mxu0 %v9592_v17  ;;  %v6169_v18 = vadd.f32 %v6168_v2, %v6060_v21  ;;  %v9647_v21 = vld [vmem:[%s17752_s2 + $0x78] sm:$0xf] }
 0xaa5   :  { %v6161_v15 = vadd.f32 %v16253_v42, %v6052_v14  ;;  %v9612_v42 = vor.u32 %v10468_v32, %v9611_v34  ;;  %v9648_v48 = vor.u32 %v10477_v51, %v9647_v21  ;;  %v9661_v14 = vld [vmem:[%s17752_s2 + $0x9c] sm:$0xf0]  ;;  %v10486_v34 = vld [vmem:[%s17752_s2 + $0xc8] sm:$0xf0] }
 0xaa6   :  { %v6272_v40 = vpop.f32.mrf.mxu3 }
 0xaa7   :  { %v6273_v12 = vadd.f32 %v6272_v40, %v6164_v6  ;;  %v5952_v56 = vpop.f32.mrf.mxu2  ;;  %v6050_v40 = vadd.f32 %v16220_v46, %v5941_v59  ;;  %v6270_v19 = vadd.f32 %v16262_v8, %v6161_v15  ;;  %v6156_v46 = vadd.f32 %v16212_v57, %v6047_v58  ;;  %v9613_v8 = vld [vmem:[%s17752_s2 + $0x3c] sm:$0xf0]  ;;  %v10479_v59 = vld [vmem:[%s17752_s2 + $0x94] sm:$0xf]  ;;  %v10482_v58 = vld [vmem:[%s17752_s2 + $0xac] sm:$0xf] }
 0xaa8   :  { %v5953_v1 = vadd.f32 %v5952_v56, %v5844_v0  ;;  %7093 = vmatmul.bf16.gmra.mxu2 %v9612_v42  ;;  %v9607_v56 = vld [vmem:[%s17752_s2 + $0x20] sm:$0xf]  ;;  %v10474_v0 = vld [vmem:[%s17752_s2 + $0x68] sm:$0xf0]  ;;  %v9673_v15 = vld [vmem:[%s17752_s2 + $0xb4] sm:$0xf0] }
 0xaa9   :  { %v6318_v50 = vmax.f32 %v6273_v12, 0.0  ;;  %v6159_v44 = vadd.f32 %v16232_v16, %v6050_v40  ;;  %v10467_v16 = vld [vmem:[%s17752_s2 + $0x34] sm:$0xf]  ;;  %v6265_v6 = vadd.f32 %v16245_v22, %v6156_v46  ;;  %v6317_v17 = vmax.f32 %v6270_v19, 0.0  ;;  %v9671_v40 = vld [vmem:[%s17752_s2 + $0xa8] sm:$0xf] }
 0xaaa   :  { %v6062_v37 = vadd.f32 %v6061_v53, %v5953_v1  ;;  %v9608_v60 = vor.u32 %v10466_v45, %v9607_v56  ;;  %v9636_v49 = vor.u32 %v10474_v0, %v9635_v41  ;;  %v9637_v53 = vld [vmem:[%s17752_s2 + $0x6c] sm:$0xf0]  ;;  %v9620_v1 = vor.u32 %v10469_v52, %v9619_v31  ;;  %v10485_v42 = vld [vmem:[%s17752_s2 + $0xc4] sm:$0xf]  ;;  %v10484_v56 = vld [vmem:[%s17752_s2 + $0xb8] sm:$0xf0] }
 0xaab   :  { %v6268_v5 = vadd.f32 %v16257_v13, %v6159_v44  ;;  %v6315_v57 = vmax.f32 %v6265_v6, 0.0  ;;  %v6314_v13 = vmax.f32 %v16226_v9, 0.0  ;;  %v10471_v9 = vld [vmem:[%s17752_s2 + $0x50] sm:$0xf0]  ;;  %v10478_v44 = vld [vmem:[%s17752_s2 + $0x88] sm:$0xf0] }
 0xaac   :  { %v6171_v35 = vadd.f32 %v6170_v63, %v6062_v37  ;;  %v10476_v37 = vld [vmem:[%s17752_s2 + $0x7c] sm:$0xf]  ;;  %v9660_v63 = vor.u32 %v10480_v61, %v9659_v28  ;;  %v10491_v52 = vld [vmem:[%s17752_s2 + $0xf4] sm:$0xf]  ;;  %v9719_v61 = vld [vmem:[%s17752_s2 + $0x108] sm:$0xf] }
 0xaad   :  { %v6316_v4 = vmax.f32 %v6268_v5, 0.0  ;;  %v6338_v22 = vpack.c.bf16 %v6315_v57, %v6314_v13 }
 0xaae   :  { %v6274_v27 = vpop.f32.mrf.mxu3 }
 0xaaf   :  { %v6275_v10 = vadd.f32 %v6274_v27, %v6166_v33  ;;  %v9616_v33 = vor.u32 %v10467_v16, %v9613_v8  ;;  %v6339_v12 = vpack.c.bf16 %v6317_v17, %v6316_v4  ;;  %v9595_v27 = vld [vmem:[%s17752_s2 + $0x8] sm:$0xf]  ;;  %v9685_v16 = vld [vmem:[%s17752_s2 + $0xcc] sm:$0xf0]  ;;  %v9667_v17 = vld [vmem:[%s17752_s2 + $0x98] sm:$0xf] }
 0xab0   :  { %v9688_v6 = vor.u32 %v10485_v42, %v9685_v16  ;;  %v10481_v4 = vld [vmem:[%s17752_s2 + $0xa0] sm:$0xf0] }
 0xab1   :  { %v6319_v30 = vmax.f32 %v6275_v10, 0.0  ;;  %v10463_v10 = vld [vmem:[%s17752_s2 + $0x10] sm:$0xf0] }
 0xab3   :  { %v6340_v3 = vpack.c.bf16 %v6319_v30, %v6318_v50  ;;  %v9596_v50 = vor.u32 %v10463_v10, %v9595_v27  ;;  %v9623_v30 = vld [vmem:[%s17752_s2 + $0x48] sm:$0xf]  ;;  %v9695_v27 = vld [vmem:[%s17752_s2 + $0xd8] sm:$0xf]  ;;  %v10489_v10 = vld [vmem:[%s17752_s2 + $0xe0] sm:$0xf0] }
 0xab4   :  { %7301 = vmatmul.bf16.gmra.mxu0 %v9604_v55  ;;  %v9624_v2 = vor.u32 %v10471_v9, %v9623_v30  ;;  %v9649_v55 = vld [vmem:[%s17752_s2 + $0x84] sm:$0xf0]  ;;  %v10488_v9 = vld [vmem:[%s17752_s2 + $0xdc] sm:$0xf] }
 0xab5   :  { %v9652_v38 = vor.u32 %v10476_v37, %v9649_v55  ;;  %v10487_v37 = vld [vmem:[%s17752_s2 + $0xd0] sm:$0xf0] }
 0xab6   :  { %v6277_v54 = vpop.f32.mrf.mxu3 }
 0xab7   :  { %v6278_v29 = vadd.f32 %v6277_v54, %v6169_v18  ;;  %v9640_v54 = vor.u32 %v10473_v26, %v9637_v53  ;;  %v9632_v18 = vor.u32 %v10472_v20, %v9631_v24  ;;  %v10492_v26 = vld [vmem:[%s17752_s2 + $0xf8] sm:$0xf0] }
 0xab8   :  { %7098 = vmatmul.bf16.gmra.mxu2 %v9624_v2  ;;  %v9697_v2 = vld [vmem:[%s17752_s2 + $0xe4] sm:$0xf0] }
 0xab9   :  { %v6320_v47 = vmax.f32 %v6278_v29, 0.0  ;;  %v9643_v29 = vld [vmem:[%s17752_s2 + $0x68] sm:$0xf] }
 0xabe   :  { %v6279_v23 = vpop.f32.mrf.mxu3 }
 0xabf   :  { %v6280_v39 = vadd.f32 %v6279_v23, %v6171_v35  ;;  %v9664_v35 = vor.u32 %v10479_v59, %v9661_v14  ;;  %v10475_v23 = vld [vmem:[%s17752_s2 + $0x70] sm:$0xf0] }
 0xac0   :  { %v9644_v7 = vor.u32 %v10475_v23, %v9643_v29 }
 0xac1   :  { %v6321_v62 = vmax.f32 %v6280_v39, 0.0  ;;  %v10483_v39 = vld [vmem:[%s17752_s2 + $0xb0] sm:$0xf0] }
 0xac2   :  { %v9672_v11 = vor.u32 %v10483_v39, %v9671_v40  ;;  %v9721_v40 = vld [vmem:[%s17752_s2 + $0x114] sm:$0xf0] }
 0xac3   :  { %v6341_v36 = vpack.c.bf16 %v6321_v62, %v6320_v47  ;;  %v9676_v47 = vor.u32 %v10482_v58, %v9673_v15  ;;  %v9655_v62 = vld [vmem:[%s17752_s2 + $0x80] sm:$0xf]  ;;  %v10490_v15 = vld [vmem:[%s17752_s2 + $0xe8] sm:$0xf0] }
 0xac4   :  { %7306 = vmatmul.bf16.gmra.mxu0 %v9616_v33  ;;  %v9656_v19 = vor.u32 %v10478_v44, %v9655_v62  ;;  %v9668_v33 = vor.u32 %v10481_v4, %v9667_v17  ;;  %v9703_v58 = vld [vmem:[%s17752_s2 + $0xe0] sm:$0xf]  ;;  %v10497_v17 = vld [vmem:[%s17752_s2 + $0x124] sm:$0xf]  ;;  %v9733_v4 = vld [vmem:[%s17752_s2 + $0x12c] sm:$0xf0] }
 0xac5   :  { %7505 = vmatpush.bf16.msra.mxu1 %v6341_v36  ;;  %v9683_v36 = vld [vmem:[%s17752_s2 + $0xc0] sm:$0xf] }
 0xac6   :  { %v9684_v32 = vor.u32 %v10486_v34, %v9683_v36 }
 0xac8   :  { %7103 = vmatmul.bf16.gmra.mxu2 %v9636_v49  ;;  %v9707_v49 = vld [vmem:[%s17752_s2 + $0xf0] sm:$0xf] }
 0xac9   :  { %7506 = vmatpush.bf16.msra.mxu1 %v6340_v3  ;;  %v9628_v3 = vor.u32 %v10470_v43, %v9625_v25  ;;  %v9700_v25 = vor.u32 %v10488_v9, %v9697_v2  ;;  %v9708_v53 = vor.u32 %v10492_v26, %v9707_v49  ;;  %v9743_v9 = vld [vmem:[%s17752_s2 + $0x138] sm:$0xf]  ;;  %v10501_v2 = vld [vmem:[%s17752_s2 + $0x140] sm:$0xf0]  ;;  %v9727_v49 = vld [vmem:[%s17752_s2 + $0x110] sm:$0xf] }
 0xaca   :  { %v10496_v26 = vld [vmem:[%s17752_s2 + $0x118] sm:$0xf0] }
 0xacd   :  { %7507 = vmatpush.bf16.msra.mxu1 %v6339_v12 }
 0xad1   :  { %7508 = vmatpush.bf16.msra.mxu1 %v6338_v22  ;;  %v9696_v22 = vor.u32 %v10489_v10, %v9695_v27 }
 0xad4   :  { %10065 = vmatmul.msk.bf16.vlgmr.msra.gmra.mxu1 %vm2536_vm3, %v9596_v50  ;;  %7311 = vmatmul.bf16.gmra.mxu0 %v9628_v3  ;;  %v9679_v3 = vld [vmem:[%s17752_s2 + $0xb0] sm:$0xf] }
 0xad5   :  { %v9680_v45 = vor.u32 %v10484_v56, %v9679_v3 }
 0xad8   :  { %7108 = vmatmul.bf16.gmra.mxu2 %v9648_v48  ;;  %v9691_v48 = vld [vmem:[%s17752_s2 + $0xc8] sm:$0xf] }
 0xad9   :  { %v9692_v55 = vor.u32 %v10487_v37, %v9691_v48 }
 0xae4   :  { %10066 = vmatmul.msk.bf16.gmra.mxu1 %vm2536_vm3, %v9608_v60  ;;  %7316 = vmatmul.bf16.gmra.mxu0 %v9640_v54 }
 0xae8   :  { %7113 = vmatmul.bf16.gmra.mxu2 %v9660_v63  ;;  %v10495_v63 = vld [vmem:[%s17752_s2 + $0x110] sm:$0xf0] }
 0xae9   :  { %v9720_v59 = vor.u32 %v10495_v63, %v9719_v61  ;;  %v9739_v63 = vld [vmem:[%s17752_s2 + $0x128] sm:$0xf] }
 0xaf4   :  { %10067 = vmatmul.msk.bf16.gmra.mxu1 %vm2536_vm3, %v9620_v1  ;;  %7321 = vmatmul.bf16.gmra.mxu0 %v9652_v38  ;;  %v9709_v1 = vld [vmem:[%s17752_s2 + $0xfc] sm:$0xf0] }
 0xaf5   :  { %v9712_v51 = vor.u32 %v10491_v52, %v9709_v1 }
 0xaf8   :  { %7118 = vmatmul.bf16.gmra.mxu2 %v9672_v11 }
 0xb04   :  { %10068 = vmatmul.msk.bf16.gmra.mxu1 %vm2536_vm3, %v9632_v18  ;;  %7326 = vmatmul.bf16.gmra.mxu0 %v9664_v35 }
 0xb08   :  { %7123 = vmatmul.bf16.gmra.mxu2 %v9684_v32  ;;  %v9731_v32 = vld [vmem:[%s17752_s2 + $0x120] sm:$0xf] }
 0xb0b   :  { %v7084_v46 = vpop.f32.mrf.mxu2 }
 0xb13   :  { %v7086_v57 = vpop.f32.mrf.mxu2 }
 0xb14   :  { %10069 = vmatmul.msk.bf16.gmra.mxu1 %vm2536_vm3, %v9644_v7  ;;  %7331 = vmatmul.bf16.gmra.mxu0 %v9676_v47  ;;  %v10494_v7 = vld [vmem:[%s17752_s2 + $0x10c] sm:$0xf]  ;;  %v9704_v47 = vor.u32 %v10490_v15, %v9703_v58 }
 0xb15   :  { %v9724_v11 = vor.u32 %v10494_v7, %v9721_v40 }
 0xb18   :  { %7128 = vmatmul.bf16.gmra.mxu2 %v9696_v22 }
 0xb1b   :  { %v7089_v50 = vpop.f32.mrf.mxu2 }
 0xb21   :  { %v7297_v5 = vpop.f32.mrf.mxu0 }
 0xb22   :  { %v7298_v8 = vadd.f32 %v7297_v5, %v7084_v46  ;;  %v10498_v46 = vld [vmem:[%s17752_s2 + $0x128] sm:$0xf0] }
 0xb23   :  { %v7091_v60 = vpop.f32.mrf.mxu2  ;;  %v9732_v5 = vor.u32 %v10498_v46, %v9731_v32  ;;  %v9751_v32 = vld [vmem:[%s17752_s2 + $0x140] sm:$0xf]  ;;  %v10502_v46 = vld [vmem:[%s17752_s2 + $0x148] sm:$0xf0] }
 0xb24   :  { %10070 = vmatmul.msk.bf16.gmra.mxu1 %vm2536_vm3, %v9656_v19  ;;  %7336 = vmatmul.bf16.gmra.mxu0 %v9688_v6 }
 0xb28   :  { %7133 = vmatmul.bf16.gmra.mxu2 %v9708_v53  ;;  %v9728_v53 = vor.u32 %v10496_v26, %v9727_v49 }
 0xb29   :  { %v7299_v12 = vpop.f32.mrf.mxu0 }
 0xb2a   :  { %v7300_v13 = vadd.f32 %v7299_v12, %v7086_v57  ;;  %v9736_v57 = vor.u32 %v10497_v17, %v9733_v4  ;;  %v9715_v12 = vld [vmem:[%s17752_s2 + $0xf8] sm:$0xf] }
 0xb2b   :  { %v7094_v54 = vpop.f32.mrf.mxu2 }
 0xb31   :  { %v7302_v30 = vpop.f32.mrf.mxu0 }
 0xb32   :  { %v7303_v43 = vadd.f32 %v7302_v30, %v7089_v50 }
 0xb33   :  { %v7096_v20 = vpop.f32.mrf.mxu2 }
 0xb34   :  { %10071 = vmatmul.msk.bf16.gmra.mxu1 %vm2536_vm3, %v9668_v33  ;;  %7341 = vmatmul.bf16.gmra.mxu0 %v9700_v25 }
 0xb38   :  { %7138 = vmatmul.bf16.gmra.mxu2 %v9720_v59  ;;  %v10499_v59 = vld [vmem:[%s17752_s2 + $0x130] sm:$0xf0] }
 0xb39   :  { %v7304_v41 = vpop.f32.mrf.mxu0 }
 0xb3a   :  { %v7305_v0 = vadd.f32 %v7304_v41, %v7091_v60  ;;  %v10500_v60 = vld [vmem:[%s17752_s2 + $0x13c] sm:$0xf]  ;;  %v9745_v41 = vld [vmem:[%s17752_s2 + $0x144] sm:$0xf0] }
 0xb3b   :  { %v7099_v29 = vpop.f32.mrf.mxu2 }
 0xb41   :  { %v7307_v31 = vpop.f32.mrf.mxu0 }
 0xb42   :  { %v7308_v21 = vadd.f32 %v7307_v31, %v7094_v54 }
 0xb43   :  { %v7101_v19 = vpop.f32.mrf.mxu2 }
 0xb44   :  { %10072 = vmatmul.msk.bf16.gmra.mxu1 %vm2536_vm3, %v9680_v45  ;;  %7346 = vmatmul.bf16.gmra.mxu0 %v9712_v51  ;;  %v10504_v51 = vld [vmem:[%s17752_s2 + $0x158] sm:$0xf0] }
 0xb48   :  { %7143 = vmatmul.bf16.gmra.mxu2 %v9732_v5 }
 0xb49   :  { %v7309_v18 = vpop.f32.mrf.mxu0 }
 0xb4a   :  { %v7310_v28 = vadd.f32 %v7309_v18, %v7096_v20  ;;  %v10503_v18 = vld [vmem:[%s17752_s2 + $0x154] sm:$0xf] }
 0xb51   :  { %v7510_v38 = vpop.f32.mrf.mxu1  ;;  %v7312_v23 = vpop.f32.mrf.mxu0 }
 0xb52   :  { %v16485_v24 = vadd.f32 %v7510_v38, %v7298_v8  ;;  %v7313_v39 = vadd.f32 %v7312_v23, %v7099_v29  ;;  %v7104_v8 = vpop.f32.mrf.mxu2 }
 0xb54   :  { %10073 = vmatmul.msk.bf16.gmra.mxu1 %vm2536_vm3, %v9692_v55  ;;  %7351 = vmatmul.bf16.gmra.mxu0 %v9724_v11  ;;  %v10507_v11 = vld [vmem:[%s17752_s2 + $0x170] sm:$0xf0] }
 0xb59   :  { %v7512_v14 = vpop.f32.mrf.mxu1  ;;  %v7314_v36 = vpop.f32.mrf.mxu0 }
 0xb5a   :  { %v16494_v35 = vadd.f32 %v7512_v14, %v7300_v13  ;;  %v7315_v34 = vadd.f32 %v7314_v36, %v7101_v19  ;;  %v10493_v13 = vld [vmem:[%s17752_s2 + $0x100] sm:$0xf0]  ;;  %v7106_v50 = vpop.f32.mrf.mxu2  ;;  %v9740_v14 = vor.u32 %v10499_v59, %v9739_v63  ;;  %v10506_v19 = vld [vmem:[%s17752_s2 + $0x16c] sm:$0xf]  ;;  %v9769_v36 = vld [vmem:[%s17752_s2 + $0x174] sm:$0xf0] }
 0xb5b   :  { %v9716_v27 = vor.u32 %v10493_v13, %v9715_v12  ;;  %v9779_v13 = vld [vmem:[%s17752_s2 + $0x180] sm:$0xf]  ;;  %v9775_v59 = vld [vmem:[%s17752_s2 + $0x170] sm:$0xf] }
 0xb61   :  { %v7515_v62 = vpop.f32.mrf.mxu1  ;;  %v7317_v6 = vpop.f32.mrf.mxu0 }
 0xb62   :  { %v16508_v44 = vadd.f32 %v7515_v62, %v7303_v43  ;;  %v7318_v33 = vadd.f32 %v7317_v6, %v7104_v8  ;;  %v9744_v43 = vor.u32 %v10501_v2, %v9743_v9  ;;  %v7109_v56 = vpop.f32.mrf.mxu2  ;;  %v9752_v8 = vor.u32 %v10502_v46, %v9751_v32  ;;  %v10509_v2 = vld [vmem:[%s17752_s2 + $0x184] sm:$0xf] }
 0xb64   :  { %10074 = vmatmul.msk.bf16.gmra.mxu1 %vm2536_vm3, %v9704_v47  ;;  %7356 = vmatmul.bf16.gmra.mxu0 %v9736_v57 }
 0xb65   :  { %7148 = vmatmul.bf16.gmra.mxu2 %v9744_v43  ;;  %v9781_v43 = vld [vmem:[%s17752_s2 + $0x18c] sm:$0xf0] }
 0xb69   :  { %v7517_v42 = vpop.f32.mrf.mxu1  ;;  %v7319_v30 = vpop.f32.mrf.mxu0 }
 0xb6a   :  { %v16517_v16 = vadd.f32 %v7517_v42, %v7305_v0  ;;  %v9748_v0 = vor.u32 %v10500_v60, %v9745_v41  ;;  %v7111_v52 = vpop.f32.mrf.mxu2  ;;  %v7320_v42 = vadd.f32 %v7319_v30, %v7106_v50 }
 0xb71   :  { %v7520_v10 = vpop.f32.mrf.mxu1  ;;  %v7322_v45 = vpop.f32.mrf.mxu0 }
 0xb72   :  { %v16531_v22 = vadd.f32 %v7520_v10, %v7308_v21  ;;  %v9755_v21 = vld [vmem:[%s17752_s2 + $0x150] sm:$0xf]  ;;  %v7114_v38 = vpop.f32.mrf.mxu2  ;;  %v7323_v5 = vadd.f32 %v7322_v45, %v7109_v56  ;;  %v9763_v56 = vld [vmem:[%s17752_s2 + $0x158] sm:$0xf]  ;;  %v10505_v45 = vld [vmem:[%s17752_s2 + $0x160] sm:$0xf0] }
 0xb73   :  { %v9756_v48 = vor.u32 %v10504_v51, %v9755_v21 }
 0xb74   :  { %10075 = vmatmul.msk.bf16.gmra.mxu1 %vm2536_vm3, %v9716_v27  ;;  %7361 = vmatmul.bf16.gmra.mxu0 %v9748_v0  ;;  %v10510_v27 = vld [vmem:[%s17752_s2 + $0x188] sm:$0xf0]  ;;  %v9764_v0 = vor.u32 %v10505_v45, %v9763_v56 }
 0xb75   :  { %7153 = vmatmul.bf16.gmra.mxu2 %v9756_v48  ;;  %v9780_v10 = vor.u32 %v10510_v27, %v9779_v13  ;;  %v9791_v48 = vld [vmem:[%s17752_s2 + $0x198] sm:$0xf]  ;;  %v10625_v13 = vld [vmem:[%s17753_s5 + $0x30] sm:$0xff]  ;;  %v9787_v27 = vld [vmem:[%s17752_s2 + $0x188] sm:$0xf] }
 0xb79   :  { %v7522_v25 = vpop.f32.mrf.mxu1  ;;  %v7324_v1 = vpop.f32.mrf.mxu0 }
 0xb7a   :  { %v16540_v3 = vadd.f32 %v7522_v25, %v7310_v28  ;;  %v9757_v28 = vld [vmem:[%s17752_s2 + $0x15c] sm:$0xf0]  ;;  %v16579_v7 = vpop.f32.mrf.mxu2  ;;  %v9784_v25 = vor.u32 %v10509_v2, %v9781_v43  ;;  %v7325_v41 = vadd.f32 %v7324_v1, %v7111_v52 }
 0xb7b   :  { %v9760_v61 = vor.u32 %v10503_v18, %v9757_v28  ;;  %v10512_v18 = vld [vmem:[%s17752_s2 + $0x19c] sm:$0xf]  ;;  %v9793_v28 = vld [vmem:[%s17752_s2 + $0x1a4] sm:$0xf0] }
 0xb7c   :  { %v9796_v63 = vor.u32 %v10512_v18, %v9793_v28  ;;  %v9799_v28 = vld [vmem:[%s17752_s2 + $0x1a0] sm:$0xf] }
 0xb81   :  { %v7525_v54 = vpop.f32.mrf.mxu1  ;;  %v7327_v20 = vpop.f32.mrf.mxu0 }
 0xb82   :  { %v16554_v31 = vadd.f32 %v7525_v54, %v7313_v39  ;;  %v9767_v39 = vld [vmem:[%s17752_s2 + $0x168] sm:$0xf]  ;;  %v7119_v47 = vpop.f32.mrf.mxu2  ;;  %v7328_v60 = vadd.f32 %v7327_v20, %v7114_v38 }
 0xb83   :  { %v9768_v58 = vor.u32 %v10507_v11, %v9767_v39 }
 0xb84   :  { %10076 = vmatmul.msk.bf16.gmra.mxu1 %vm2536_vm3, %v9728_v53  ;;  %7366 = vmatmul.bf16.gmra.mxu0 %v9760_v61 }
 0xb85   :  { %7158 = vmatmul.bf16.gmra.mxu2 %v9768_v58 }
 0xb89   :  { %v7527_v37 = vpop.f32.mrf.mxu1  ;;  %v16581_v40 = vpop.f32.mrf.mxu0 }
 0xb8a   :  { %v16563_v55 = vadd.f32 %v7527_v37, %v7315_v34  ;;  %v9772_v34 = vor.u32 %v10506_v19, %v9769_v36  ;;  %v10513_v37 = vld [vmem:[%s17752_s2 + $0x1a0] sm:$0xf0]  ;;  %v7330_v39 = vadd.f32 %v16581_v40, %v16579_v7  ;;  %v10626_v40 = vld [vmem:[%s17753_s5 + $0x38] sm:$0xff] }
 0xb8b   :  { %v9792_v52 = vor.u32 %v10513_v37, %v9791_v48  ;;  %8154 = vmatpush.bf16.msra.mxu3 %v10626_v40  ;;  %v10521_v40 = vld [vmem:[%s17752_s2 + $0x1e4] sm:$0xf] }
 0xb8f   :  { %8155 = vmatpush.bf16.msra.mxu3 %v10625_v13 }
 0xb91   :  { %v7530_v29 = vpop.f32.mrf.mxu1  ;;  %v7332_v62 = vpop.f32.mrf.mxu0 }
 0xb92   :  { %v16577_v23 = vadd.f32 %v7530_v29, %v7318_v33  ;;  %v16602_v33 = vpop.f32.mrf.mxu2  ;;  %v7333_v29 = vadd.f32 %v7332_v62, %v7119_v47  ;;  %v10516_v47 = vld [vmem:[%s17752_s2 + $0x1b8] sm:$0xf0] }
 0xb94   :  { %10077 = vmatmul.msk.bf16.gmra.mxu1 %vm2536_vm3, %v9740_v14  ;;  %7371 = vmatmul.bf16.gmra.mxu0 %v9772_v34  ;;  %v10508_v14 = vld [vmem:[%s17752_s2 + $0x178] sm:$0xf0] }
 0xb95   :  { %7163 = vmatmul.bf16.gmra.mxu2 %v9780_v10  ;;  %v9776_v11 = vor.u32 %v10508_v14, %v9775_v59  ;;  %v10511_v10 = vld [vmem:[%s17752_s2 + $0x190] sm:$0xf0]  ;;  %v10620_v14 = vld [vmem:[%s17753_s5 + $0x8] sm:$0xff] }
 0xb96   :  { %v9788_v43 = vor.u32 %v10511_v10, %v9787_v27 }
 0xb99   :  { %v7532_v15 = vpop.f32.mrf.mxu1  ;;  %v16604_v57 = vpop.f32.mrf.mxu0 }
 0xb9a   :  { %v7533_v17 = vadd.f32 %v7532_v15, %v7320_v42  ;;  %v16614_v30 = vpop.f32.mrf.mxu2  ;;  %v7335_v2 = vadd.f32 %v16604_v57, %v16602_v33  ;;  %v9815_v33 = vld [vmem:[%s17752_s2 + $0x1c8] sm:$0xf]  ;;  %v10519_v57 = vld [vmem:[%s17752_s2 + $0x1d0] sm:$0xf0] }
 0xba1   :  { %v7535_v6 = vpop.f32.mrf.mxu1  ;;  %v7337_v9 = vpop.f32.mrf.mxu0 }
 0xba2   :  { %v7536_v4 = vadd.f32 %v7535_v6, %v7323_v5  ;;  %v16628_v54 = vpop.f32.mrf.mxu2  ;;  %v9803_v5 = vld [vmem:[%s17752_s2 + $0x1b0] sm:$0xf]  ;;  %v10515_v6 = vld [vmem:[%s17752_s2 + $0x1b4] sm:$0xf] }
 0xba3   :  { %v9804_v7 = vor.u32 %v10516_v47, %v9803_v5 }
 0xba4   :  { %v11184_v12 = vpack.i.bf16 %v7536_v4, %v7533_v17  ;;  %10078 = vmatmul.msk.bf16.gmra.mxu1 %vm2536_vm3, %v9752_v8  ;;  %7376 = vmatmul.bf16.gmra.mxu0 %v9784_v25  ;;  %v9805_v17 = vld [vmem:[%s17752_s2 + $0x1bc] sm:$0xf0]  ;;  %v10624_v25 = vld [vmem:[%s17753_s5 + $0x28] sm:$0xff] }
 0xba5   :  { %7168 = vmatmul.bf16.gmra.mxu2 %v9792_v52  ;;  %8156 = vmatpush.bf16.msra.mxu3 %v10624_v25 }
 0xba6   :  { %11185 = vrot.lane.b32.xlu2 %v11184_v12, %s11273_s3  ;;  %v9808_v12 = vor.u32 %v10515_v6, %v9805_v17  ;;  %v9811_v6 = vld [vmem:[%s17752_s2 + $0x1b8] sm:$0xf] }
 0xba9   :  { %v7537_v50 = vpop.f32.mrf.mxu1  ;;  %v16630_v21 = vpop.f32.mrf.mxu0 }
 0xbaa   :  { %v7538_v26 = vadd.f32 %v7537_v50, %v7325_v41  ;;  %v7129_v38 = vpop.f32.mrf.mxu2  ;;  %v7338_v50 = vadd.f32 %v7337_v9, %v16614_v30  ;;  %v10623_v30 = vld [vmem:[%s17753_s5 + $0x20] sm:$0xff]  ;;  %v9816_v9 = vor.u32 %v10519_v57, %v9815_v33  ;;  %v9823_v57 = vld [vmem:[%s17752_s2 + $0x1d0] sm:$0xf] }
 0xbab   :  { %8157 = vmatpush.bf16.msra.mxu3 %v10623_v30 }
 0xbb1   :  { %v7540_v49 = vpop.f32.mrf.mxu1  ;;  %v7342_v20 = vpop.f32.mrf.mxu0 }
 0xbb2   :  { %v7541_v53 = vadd.f32 %v7540_v49, %v7328_v60  ;;  %v16646_v61 = vadd.f32 %v7342_v20, %v7129_v38  ;;  %v7131_v36 = vpop.f32.mrf.mxu2  ;;  %v10518_v38 = vld [vmem:[%s17752_s2 + $0x1cc] sm:$0xf]  ;;  %v9817_v20 = vld [vmem:[%s17752_s2 + $0x1d4] sm:$0xf0] }
 0xbb4   :  { %v11189_v51 = vpack.i.bf16 %v7541_v53, %v7538_v26  ;;  %10079 = vmatmul.msk.bf16.gmra.mxu1 %vm2536_vm3, %v9764_v0  ;;  %7381 = vmatmul.bf16.gmra.mxu0 %v9796_v63  ;;  %v7340_v53 = vadd.f32 %v16630_v21, %v16628_v54  ;;  %v9820_v54 = vor.u32 %v10518_v38, %v9817_v20  ;;  %v10621_v21 = vld [vmem:[%s17753_s5 + $0x10] sm:$0xff]  ;;  %v10514_v63 = vld [vmem:[%s17752_s2 + $0x1a8] sm:$0xf0] }
 0xbb5   :  { %7173 = vmatmul.bf16.gmra.mxu2 %v9804_v7  ;;  %v9800_v59 = vor.u32 %v10514_v63, %v9799_v28 }
 0xbb6   :  { %11190 = vrot.lane.b32.xlu0 %v11189_v51, %s11273_s3  ;;  %v10622_v51 = vld [vmem:[%s17753_s5 + $0x18] sm:$0xff] }
 0xbb7   :  { %8158 = vmatpush.bf16.msra.mxu3 %v10622_v51 }
 0xbb9   :  { %v7542_v1 = vpop.f32.mrf.mxu1  ;;  %v7344_v34 = vpop.f32.mrf.mxu0 }
 0xbba   :  { %v7543_v15 = vadd.f32 %v7542_v1, %v7330_v39  ;;  %v16656_v32 = vadd.f32 %v7344_v34, %v7131_v36  ;;  %v7134_v42 = vpop.f32.mrf.mxu2  ;;  %v10522_v36 = vld [vmem:[%s17752_s2 + $0x1e8] sm:$0xf0]  ;;  %v10619_v34 = vld [vmem:[%s17753_s5] sm:$0xff] }
 0xbbb   :  { %8159 = vmatpush.bf16.msra.mxu3 %v10621_v21 }
 0xbbf   :  { %8160 = vmatpush.bf16.msra.mxu3 %v10620_v14  ;;  %v9853_v14 = vld [vmem:[%s17752_s2 + $0x21c] sm:$0xf0] }
 0xbc1   :  { %v7545_v58 = vpop.f32.mrf.mxu1  ;;  %v7347_v8 = vpop.f32.mrf.mxu0 }
 0xbc2   :  { %v7546_v19 = vadd.f32 %v7545_v58, %v7333_v29  ;;  %v16675_v4 = vadd.f32 %v7347_v8, %v7134_v42  ;;  %v7136_v41 = vpop.f32.mrf.mxu2 }
 0xbc3   :  { %8161 = vmatpush.bf16.msra.mxu3 %v10619_v34 }
 0xbc4   :  { %v11194_v46 = vpack.i.bf16 %v7546_v19, %v7543_v15  ;;  %10080 = vmatmul.msk.bf16.gmra.mxu1 %vm2536_vm3, %v9776_v11  ;;  %7386 = vmatmul.bf16.gmra.mxu0 %v9808_v12  ;;  %v9827_v19 = vld [vmem:[%s17752_s2 + $0x1e0] sm:$0xf] }
 0xbc5   :  { %7178 = vmatmul.bf16.gmra.mxu2 %v9816_v9 }
 0xbc6   :  { %11195 = vrot.lane.b32.xlu1 %v11194_v46, %s11273_s3 }
 0xbc9   :  { %v7547_v62 = vpop.f32.mrf.mxu1  ;;  %v7349_v0 = vpop.f32.mrf.mxu0 }
 0xbca   :  { %v7548_v45 = vadd.f32 %v7547_v62, %v7335_v2  ;;  %v16692_v49 = vadd.f32 %v7349_v0, %v7136_v41  ;;  %v7139_v52 = vpop.f32.mrf.mxu2  ;;  %v9829_v62 = vld [vmem:[%s17752_s2 + $0x1ec] sm:$0xf0]  ;;  %v9839_v2 = vld [vmem:[%s17752_s2 + $0x1f8] sm:$0xf]  ;;  %v10524_v41 = vld [vmem:[%s17752_s2 + $0x1fc] sm:$0xf] }
 0xbcb   :  { %v9832_v8 = vor.u32 %v10521_v40, %v9829_v62  ;;  %v9841_v0 = vld [vmem:[%s17752_s2 + $0x204] sm:$0xf0] }
 0xbcc   :  { %v9844_v33 = vor.u32 %v10524_v41, %v9841_v0 }
 0xbd1   :  { %v7550_v56 = vpop.f32.mrf.mxu1  ;;  %v7352_v1 = vpop.f32.mrf.mxu0 }
 0xbd2   :  { %v7551_v60 = vadd.f32 %v7550_v56, %v7338_v50  ;;  %v7353_v18 = vadd.f32 %v7352_v1, %v7139_v52  ;;  %v7141_v11 = vpop.f32.mrf.mxu2 }
 0xbd4   :  { %v11199_v26 = vpack.i.bf16 %v7551_v60, %v7548_v45  ;;  %10081 = vmatmul.msk.bf16.gmra.mxu1 %vm2536_vm3, %v9788_v43  ;;  %7391 = vmatmul.bf16.gmra.mxu0 %v9820_v54  ;;  %v10525_v43 = vld [vmem:[%s17752_s2 + $0x200] sm:$0xf0]  ;;  %v9851_v54 = vld [vmem:[%s17752_s2 + $0x210] sm:$0xf] }
 0xbd5   :  { %v9840_v25 = vor.u32 %v10525_v43, %v9839_v2 }
 0xbd6   :  { %11200 = vrot.lane.b32.xlu2 %v11199_v26, %s11273_s3 }
 0xbd9   :  { %v7552_v48 = vpop.f32.mrf.mxu1  ;;  %v7354_v58 = vpop.f32.mrf.mxu0 }
 0xbda   :  { %v7553_v37 = vadd.f32 %v7552_v48, %v7340_v53  ;;  %v7355_v15 = vadd.f32 %v7354_v58, %v7141_v11  ;;  %v7144_v47 = vpop.f32.mrf.mxu2  ;;  %v9835_v58 = vld [vmem:[%s17752_s2 + $0x1e8] sm:$0xf] }
 0xbdc   :  { %7739 = vrot.lane.b32.xlu0 %v7553_v37, %s11273_s3 }
 0xbe1   :  { %v7555_v29 = vpop.f32.mrf.mxu1  ;;  %v7357_v7 = vpop.f32.mrf.mxu0 }
 0xbe2   :  { %v16730_v39 = vadd.f32 %v7555_v29, %v16646_v61  ;;  %v9828_v61 = vor.u32 %v10522_v36, %v9827_v19  ;;  %v7358_v42 = vadd.f32 %v7357_v7, %v7144_v47  ;;  %v7146_v27 = vpop.f32.mrf.mxu2  ;;  %v9863_v47 = vld [vmem:[%s17752_s2 + $0x228] sm:$0xf]  ;;  %v10531_v7 = vld [vmem:[%s17752_s2 + $0x230] sm:$0xf0] }
 0xbe3   :  { %v9864_v40 = vor.u32 %v10531_v7, %v9863_v47  ;;  %v10537_v47 = vld [vmem:[%s17752_s2 + $0x260] sm:$0xf0] }
 0xbe4   :  { %10082 = vmatmul.msk.bf16.gmra.mxu1 %vm2536_vm3, %v9800_v59  ;;  %7183 = vmatmul.bf16.gmra.mxu2 %v9828_v61 }
 0xbe5   :  { %7396 = vmatmul.bf16.gmra.mxu0 %v9832_v8 }
 0xbe9   :  { %v7557_v46 = vpop.f32.mrf.mxu1  ;;  %v7359_v10 = vpop.f32.mrf.mxu0 }
 0xbea   :  { %v16743_v5 = vadd.f32 %v7557_v46, %v16656_v32  ;;  %v10517_v32 = vld [vmem:[%s17752_s2 + $0x1c0] sm:$0xf0]  ;;  %v7360_v50 = vadd.f32 %v7359_v10, %v7146_v27  ;;  %v9847_v27 = vld [vmem:[%s17752_s2 + $0x200] sm:$0xf]  ;;  %v10526_v10 = vld [vmem:[%s17752_s2 + $0x208] sm:$0xf0] }
 0xbeb   :  { %v9812_v17 = vor.u32 %v10517_v32, %v9811_v6  ;;  %v10530_v6 = vld [vmem:[%s17752_s2 + $0x22c] sm:$0xf]  ;;  %v9865_v32 = vld [vmem:[%s17752_s2 + $0x234] sm:$0xf0] }
 0xbf1   :  { %v7560_v12 = vpop.f32.mrf.mxu1  ;;  %v7362_v60 = vpop.f32.mrf.mxu0 }
 0xbf2   :  { %v16758_v13 = vadd.f32 %v7560_v12, %v16675_v4  ;;  %v7149_v4 = vpop.f32.mrf.mxu2  ;;  %v9868_v12 = vor.u32 %v10530_v6, %v9865_v32  ;;  %v10536_v32 = vld [vmem:[%s17752_s2 + $0x25c] sm:$0xf] }
 0xbf3   :  { %v7363_v26 = vadd.f32 %v7362_v60, %v7149_v4  ;;  %v9875_v4 = vld [vmem:[%s17752_s2 + $0x240] sm:$0xf]  ;;  %v10534_v60 = vld [vmem:[%s17752_s2 + $0x248] sm:$0xf0] }
 0xbf4   :  { %10083 = vmatmul.msk.bf16.gmra.mxu1 %vm2536_vm3, %v9812_v17  ;;  %7188 = vmatmul.bf16.gmra.mxu2 %v9840_v25  ;;  %v9876_v41 = vor.u32 %v10534_v60, %v9875_v4  ;;  %v9871_v60 = vld [vmem:[%s17752_s2 + $0x230] sm:$0xf] }
 0xbf5   :  { %7401 = vmatmul.bf16.gmra.mxu0 %v9844_v33 }
 0xbf9   :  { %v7562_v56 = vpop.f32.mrf.mxu1  ;;  %v16786_v1 = vpop.f32.mrf.mxu0 }
 0xbfa   :  { %v16768_v45 = vadd.f32 %v7562_v56, %v16692_v49  ;;  %v10520_v49 = vld [vmem:[%s17752_s2 + $0x1d8] sm:$0xf0]  ;;  %v16784_v52 = vpop.f32.mrf.mxu2 }
 0xbfb   :  { %v9824_v30 = vor.u32 %v10520_v49, %v9823_v57 }
 0xc00   :  { %v11186_v9 = vpop.permute.xlu2 %11185 }
 0xc01   :  { %v7565_v53 = vpop.f32.mrf.mxu1  ;;  %v11188_v51 = vunpack.i.h.bf16 %v11186_v9  ;;  %v11187_v48 = vunpack.i.l.bf16 %v11186_v9  ;;  %v9877_v9 = vld [vmem:[%s17752_s2 + $0x24c] sm:$0xf0] }
 0xc02   :  { %v16782_v37 = vadd.f32 %v7565_v53, %v7353_v18  ;;  %v10528_v18 = vld [vmem:[%s17752_s2 + $0x218] sm:$0xf0]  ;;  %v7154_v29 = vpop.f32.mrf.mxu2 }
 0xc03   :  { %v7859_v38 = vsel %vm2536_vm3, %v16494_v35, %v11188_v51  ;;  %v7858_v20 = vsel %vm2536_vm3, %v16485_v24, %v11187_v48  ;;  %v9852_v28 = vor.u32 %v10528_v18, %v9851_v54  ;;  %v7367_v35 = vpop.f32.mrf.mxu0  ;;  %v10527_v24 = vld [vmem:[%s17752_s2 + $0x214] sm:$0xf]  ;;  %v9859_v54 = vld [vmem:[%s17752_s2 + $0x218] sm:$0xf]  ;;  %v10529_v18 = vld [vmem:[%s17752_s2 + $0x220] sm:$0xf0] }
 0xc04   :  { %10084 = vmatmul.msk.bf16.gmra.mxu1 %vm2536_vm3, %v9824_v30  ;;  %v7894_v21 = vpack.c.bf16 %v7859_v38, %v7858_v20  ;;  %v9856_v11 = vor.u32 %v10527_v24, %v9853_v14  ;;  %v10533_v30 = vld [vmem:[%s17752_s2 + $0x244] sm:$0xf] }
 0xc05   :  { %7193 = vmatmul.bf16.gmra.mxu2 %v9852_v28  ;;  %v9880_v51 = vor.u32 %v10533_v30, %v9877_v9  ;;  %v7365_v28 = vadd.f32 %v16786_v1, %v16784_v52  ;;  %v9887_v52 = vld [vmem:[%s17752_s2 + $0x258] sm:$0xf] }
 0xc06   :  { %8162 = vmatmul.bf16.vlgmr.msra.gmra.mxu3 %v7894_v21  ;;  %7406 = vmatmul.bf16.gmra.mxu0 %v9856_v11  ;;  %v7368_v21 = vadd.f32 %v7367_v35, %v7154_v29  ;;  %v9888_v7 = vor.u32 %v10537_v47, %v9887_v52  ;;  %v9911_v47 = vld [vmem:[%s17752_s2 + $0x288] sm:$0xf] }
 0xc09   :  { %v7567_v63 = vpop.f32.mrf.mxu1 }
 0xc0a   :  { %v16799_v59 = vadd.f32 %v7567_v63, %v7355_v15  ;;  %v10523_v15 = vld [vmem:[%s17752_s2 + $0x1f0] sm:$0xf0]  ;;  %v16817_v46 = vpop.f32.mrf.mxu2  ;;  %v9860_v63 = vor.u32 %v10529_v18, %v9859_v54 }
 0xc0b   :  { %v9836_v19 = vor.u32 %v10523_v15, %v9835_v58  ;;  %v16815_v61 = vpop.f32.mrf.mxu0 }
 0xc11   :  { %v7570_v36 = vpop.f32.mrf.mxu1 }
 0xc12   :  { %v16813_v34 = vadd.f32 %v7570_v36, %v7358_v42  ;;  %v16836_v17 = vpop.f32.mrf.mxu2 }
 0xc13   :  { %v16828_v42 = vpop.f32.mrf.mxu0 }
 0xc14   :  { %10085 = vmatmul.msk.bf16.gmra.mxu1 %vm2536_vm3, %v9836_v19 }
 0xc15   :  { %7198 = vmatmul.bf16.gmra.mxu2 %v9864_v40 }
 0xc16   :  { %7411 = vmatmul.bf16.gmra.mxu0 %v9868_v12  ;;  %v9889_v12 = vld [vmem:[%s17752_s2 + $0x264] sm:$0xf0] }
 0xc19   :  { %v7572_v62 = vpop.f32.mrf.mxu1 }
 0xc1a   :  { %v16826_v8 = vadd.f32 %v7572_v62, %v7360_v50  ;;  %v9848_v50 = vor.u32 %v10526_v10, %v9847_v27  ;;  %v16848_v56 = vpop.f32.mrf.mxu2  ;;  %v9892_v10 = vor.u32 %v10536_v32, %v9889_v12 }
 0xc1b   :  { %v16846_v25 = vpop.f32.mrf.mxu0 }
 0xc21   :  { %v7575_v2 = vpop.f32.mrf.mxu1 }
 0xc22   :  { %v16844_v43 = vadd.f32 %v7575_v2, %v7363_v26  ;;  %v16865_v53 = vpop.f32.mrf.mxu2 }
 0xc23   :  { %v16857_v49 = vpop.f32.mrf.mxu0 }
 0xc24   :  { %10086 = vmatmul.msk.bf16.gmra.mxu1 %vm2536_vm3, %v9848_v50 }
 0xc25   :  { %7203 = vmatmul.bf16.gmra.mxu2 %v9876_v41  ;;  %v10532_v41 = vld [vmem:[%s17752_s2 + $0x238] sm:$0xf0] }
 0xc26   :  { %7416 = vmatmul.bf16.gmra.mxu0 %v9880_v51 }
 0xc28   :  { %v11191_v0 = vpop.permute.xlu0 %11190 }
 0xc29   :  { %v7577_v33 = vpop.f32.mrf.mxu1  ;;  %v11193_v26 = vunpack.i.h.bf16 %v11191_v0  ;;  %v11192_v57 = vunpack.i.l.bf16 %v11191_v0  ;;  %v7373_v0 = vadd.f32 %v16828_v42, %v16836_v17  ;;  %v10540_v42 = vld [vmem:[%s17752_s2 + $0x278] sm:$0xf0] }
 0xc2a   :  { %v7578_v11 = vadd.f32 %v7577_v33, %v7365_v28  ;;  %v16881_v19 = vpop.f32.mrf.mxu2  ;;  %v9872_v33 = vor.u32 %v10532_v41, %v9871_v60  ;;  %v9883_v28 = vld [vmem:[%s17752_s2 + $0x248] sm:$0xf] }
 0xc2b   :  { %v7860_v48 = vsel %vm2536_vm3, %v16508_v44, %v11192_v57  ;;  %v7861_v38 = vsel %vm2536_vm3, %v16517_v16, %v11193_v26  ;;  %v16879_v15 = vpop.f32.mrf.mxu0 }
 0xc2c   :  { %v7899_v20 = vpack.c.bf16 %v7861_v38, %v7860_v48  ;;  %v9899_v48 = vld [vmem:[%s17752_s2 + $0x270] sm:$0xf]  ;;  %v10539_v38 = vld [vmem:[%s17752_s2 + $0x274] sm:$0xf] }
 0xc2e   :  { %8167 = vmatmul.bf16.gmra.mxu3 %v7899_v20  ;;  %v9901_v20 = vld [vmem:[%s17752_s2 + $0x27c] sm:$0xf0] }
 0xc2f   :  { %v9904_v18 = vor.u32 %v10539_v38, %v9901_v20 }
 0xc30   :  { %v11201_v44 = vpop.permute.xlu2 %11200 }
 0xc31   :  { %v7580_v24 = vpop.f32.mrf.mxu1  ;;  %v11203_v14 = vunpack.i.h.bf16 %v11201_v44  ;;  %v11202_v16 = vunpack.i.l.bf16 %v11201_v44  ;;  %v7378_v44 = vadd.f32 %v16857_v49, %v16865_v53  ;;  %v10543_v49 = vld [vmem:[%s17752_s2 + $0x290] sm:$0xf0] }
 0xc32   :  { %v7581_v58 = vadd.f32 %v7580_v24, %v7368_v21  ;;  %v16903_v27 = vpop.f32.mrf.mxu2  ;;  %v7375_v24 = vadd.f32 %v16846_v25, %v16848_v56  ;;  %v9912_v25 = vor.u32 %v10543_v49, %v9911_v47  ;;  %v10548_v47 = vld [vmem:[%s17752_s2 + $0x2bc] sm:$0xf]  ;;  %v9937_v49 = vld [vmem:[%s17752_s2 + $0x2c4] sm:$0xf0] }
 0xc33   :  { %v7864_v36 = vsel %vm2536_vm3, %v16554_v31, %v11202_v16  ;;  %v7865_v35 = vsel %vm2536_vm3, %v16563_v55, %v11203_v14  ;;  %v16895_v6 = vpop.f32.mrf.mxu0 }
 0xc34   :  { %v11204_v29 = vpack.i.bf16 %v7581_v58, %v7578_v11  ;;  %10087 = vmatmul.msk.bf16.gmra.mxu1 %vm2536_vm3, %v9860_v63  ;;  %v7909_v1 = vpack.c.bf16 %v7865_v35, %v7864_v36  ;;  %v10535_v63 = vld [vmem:[%s17752_s2 + $0x250] sm:$0xf0] }
 0xc35   :  { %7208 = vmatmul.bf16.gmra.mxu2 %v9888_v7  ;;  %v9884_v14 = vor.u32 %v10535_v63, %v9883_v28 }
 0xc36   :  { %11205 = vrot.lane.b32.xlu1 %v11204_v29, %s11273_s3  ;;  %7421 = vmatmul.bf16.gmra.mxu0 %v9892_v10  ;;  %v9895_v10 = vld [vmem:[%s17752_s2 + $0x260] sm:$0xf] }
 0xc38   :  { %v11196_v31 = vpop.permute.xlu1 %11195 }
 0xc39   :  { %v7582_v40 = vpop.f32.mrf.mxu1  ;;  %v11198_v62 = vunpack.i.h.bf16 %v11196_v31  ;;  %v11197_v55 = vunpack.i.l.bf16 %v11196_v31  ;;  %v10542_v31 = vld [vmem:[%s17752_s2 + $0x28c] sm:$0xf] }
 0xc3a   :  { %v16921_v9 = vpop.f32.mrf.mxu2 }
 0xc3b   :  { %v7862_v50 = vsel %vm2536_vm3, %v16531_v22, %v11197_v55  ;;  %v7863_v2 = vsel %vm2536_vm3, %v16540_v3, %v11198_v62  ;;  %v7370_v22 = vadd.f32 %v16815_v61, %v16817_v46  ;;  %v16919_v30 = vpop.f32.mrf.mxu0  ;;  %v9900_v61 = vor.u32 %v10540_v42, %v9899_v48  ;;  %v10545_v42 = vld [vmem:[%s17752_s2 + $0x2a4] sm:$0xf] }
 0xc3c   :  { %v7904_v4 = vpack.c.bf16 %v7863_v2, %v7862_v50  ;;  %v7383_v50 = vadd.f32 %v16895_v6, %v16903_v27  ;;  %v7380_v2 = vadd.f32 %v16879_v15, %v16881_v19  ;;  %v10546_v6 = vld [vmem:[%s17752_s2 + $0x2a8] sm:$0xf0]  ;;  %v7385_v19 = vadd.f32 %v16919_v30, %v16921_v9  ;;  %v9907_v30 = vld [vmem:[%s17752_s2 + $0x278] sm:$0xf]  ;;  %v10541_v9 = vld [vmem:[%s17752_s2 + $0x280] sm:$0xf0] }
 0xc3d   :  { %v7583_v3 = vadd.f32 %v7582_v40, %v7370_v22  ;;  %v9913_v40 = vld [vmem:[%s17752_s2 + $0x294] sm:$0xf0]  ;;  %v9908_v20 = vor.u32 %v10541_v9, %v9907_v30  ;;  %v10555_v30 = vld [vmem:[%s17752_s2 + $0x2f0] sm:$0xf0] }
 0xc3e   :  { %8172 = vmatmul.bf16.gmra.mxu3 %v7904_v4  ;;  %v9916_v55 = vor.u32 %v10542_v31, %v9913_v40  ;;  %v10630_v40 = vld [vmem:[%s17753_s5 + $0x58] sm:$0xff] }
 0xc41   :  { %v7585_v26 = vpop.f32.mrf.mxu1 }
 0xc42   :  { %v7586_v57 = vadd.f32 %v7585_v26, %v7373_v0  ;;  %v7174_v54 = vpop.f32.mrf.mxu2 }
 0xc43   :  { %v7387_v17 = vpop.f32.mrf.mxu0 }
 0xc44   :  { %v11209_v51 = vpack.i.bf16 %v7586_v57, %v7583_v3  ;;  %10088 = vmatmul.msk.bf16.gmra.mxu1 %vm2536_vm3, %v9872_v33  ;;  %v16937_v21 = vadd.f32 %v7387_v17, %v7174_v54  ;;  %v9923_v57 = vld [vmem:[%s17752_s2 + $0x2a0] sm:$0xf]  ;;  %v10634_v54 = vld [vmem:[%s17753_s5 + $0x78] sm:$0xff] }
 0xc45   :  { %7213 = vmatmul.bf16.gmra.mxu2 %v9900_v61  ;;  %v9924_v15 = vor.u32 %v10546_v6, %v9923_v57  ;;  %v9925_v61 = vld [vmem:[%s17752_s2 + $0x2ac] sm:$0xf0]  ;;  %8187 = vmatpush.bf16.msrb.mxu3 %v10634_v54 }
 0xc46   :  { %11210 = vrot.lane.b32.xlu2 %v11209_v51, %s11273_s3  ;;  %7426 = vmatmul.bf16.gmra.mxu0 %v9904_v18  ;;  %v9928_v17 = vor.u32 %v10545_v42, %v9925_v61 }
 0xc49   :  { %v7587_v46 = vpop.f32.mrf.mxu1 }
 0xc4a   :  { %v7588_v11 = vadd.f32 %v7587_v46, %v7375_v24  ;;  %v7176_v35 = vpop.f32.mrf.mxu2 }
 0xc4b   :  { %v7389_v36 = vpop.f32.mrf.mxu0 }
 0xc4c   :  { %v16950_v52 = vadd.f32 %v7389_v36, %v7176_v35 }
 0xc4e   :  { %8177 = vmatmul.bf16.gmra.mxu3 %v7909_v1  ;;  %v7740_v56 = vpop.permute.xlu0 %7739 }
 0xc4f   :  { %v7866_v1 = vsel %vm2536_vm3, %v16577_v23, %v7740_v56  ;;  %v10538_v23 = vld [vmem:[%s17752_s2 + $0x268] sm:$0xf0]  ;;  %v9940_v56 = vor.u32 %v10548_v47, %v9937_v49 }
 0xc50   :  { %v7914_v12 = vpack.c.bf16 %v7866_v1, %v7866_v1  ;;  %v9896_v4 = vor.u32 %v10538_v23, %v9895_v10  ;;  %v10631_v1 = vld [vmem:[%s17753_s5 + $0x60] sm:$0xff] }
 0xc51   :  { %v7590_v16 = vpop.f32.mrf.mxu1 }
 0xc52   :  { %v7591_v58 = vadd.f32 %v7590_v16, %v7378_v44  ;;  %v7179_v62 = vpop.f32.mrf.mxu2  ;;  %v10549_v16 = vld [vmem:[%s17752_s2 + $0x2c0] sm:$0xf0] }
 0xc53   :  { %v7392_v7 = vpop.f32.mrf.mxu0 }
 0xc54   :  { %v11214_v29 = vpack.i.bf16 %v7591_v58, %v7588_v11  ;;  %10089 = vmatmul.msk.bf16.gmra.mxu1 %vm2536_vm3, %v9884_v14  ;;  %v16967_v32 = vadd.f32 %v7392_v7, %v7179_v62  ;;  %v9935_v14 = vld [vmem:[%s17752_s2 + $0x2b8] sm:$0xf]  ;;  %v10632_v58 = vld [vmem:[%s17753_s5 + $0x68] sm:$0xff]  ;;  %v10544_v7 = vld [vmem:[%s17752_s2 + $0x298] sm:$0xf0] }
 0xc55   :  { %7218 = vmatmul.bf16.gmra.mxu2 %v9912_v25  ;;  %v9936_v11 = vor.u32 %v10549_v16, %v9935_v14  ;;  %v9943_v16 = vld [vmem:[%s17752_s2 + $0x2c0] sm:$0xf] }
 0xc56   :  { %11215 = vrot.lane.b32.xlu0 %v11214_v29, %s11273_s3  ;;  %7431 = vmatmul.bf16.gmra.mxu0 %v9916_v55 }
 0xc59   :  { %v7592_v53 = vpop.f32.mrf.mxu1 }
 0xc5a   :  { %v7593_v41 = vadd.f32 %v7592_v53, %v7380_v2  ;;  %v7181_v33 = vpop.f32.mrf.mxu2  ;;  %v10552_v2 = vld [vmem:[%s17752_s2 + $0x2d8] sm:$0xf0] }
 0xc5b   :  { %v7394_v22 = vpop.f32.mrf.mxu0 }
 0xc5c   :  { %v16980_v3 = vadd.f32 %v7394_v22, %v7181_v33  ;;  %v10551_v33 = vld [vmem:[%s17752_s2 + $0x2d4] sm:$0xf] }
 0xc5e   :  { %8182 = vmatmul.bf16.gmra.mxu3 %v7914_v12 }
 0xc61   :  { %v7595_v60 = vpop.f32.mrf.mxu1 }
 0xc62   :  { %v7596_v0 = vadd.f32 %v7595_v60, %v7383_v50  ;;  %v9947_v50 = vld [vmem:[%s17752_s2 + $0x2d0] sm:$0xf]  ;;  %v10628_v60 = vld [vmem:[%s17753_s5 + $0x48] sm:$0xff] }
 0xc63   :  { %v7397_v48 = vpop.f32.mrf.mxu0 }
 0xc64   :  { %v11219_v26 = vpack.i.bf16 %v7596_v0, %v7593_v41  ;;  %10090 = vmatmul.msk.bf16.gmra.mxu1 %vm2536_vm3, %v9896_v4  ;;  %v9948_v4 = vor.u32 %v10552_v2, %v9947_v50 }
 0xc65   :  { %7223 = vmatmul.bf16.gmra.mxu2 %v9924_v15 }
 0xc66   :  { %11220 = vrot.lane.b32.xlu1 %v11219_v26, %s11273_s3  ;;  %7436 = vmatmul.bf16.gmra.mxu0 %v9928_v17  ;;  %v9949_v26 = vld [vmem:[%s17752_s2 + $0x2dc] sm:$0xf0]  ;;  %v9959_v17 = vld [vmem:[%s17752_s2 + $0x2e8] sm:$0xf] }
 0xc67   :  { %v7184_v46 = vpop.f32.mrf.mxu2  ;;  %v9952_v6 = vor.u32 %v10551_v33, %v9949_v26  ;;  %v9960_v9 = vor.u32 %v10555_v30, %v9959_v17  ;;  %v9955_v26 = vld [vmem:[%s17752_s2 + $0x2d8] sm:$0xf] }
 0xc68   :  { %v16997_v38 = vadd.f32 %v7397_v48, %v7184_v46 }
 0xc69   :  { %v7597_v27 = vpop.f32.mrf.mxu1 }
 0xc6a   :  { %v7598_v51 = vadd.f32 %v7597_v27, %v7385_v19  ;;  %v10627_v19 = vld [vmem:[%s17753_s5 + $0x40] sm:$0xff]  ;;  %v10547_v27 = vld [vmem:[%s17752_s2 + $0x2b0] sm:$0xf0] }
 0xc6b   :  { %v7399_v63 = vpop.f32.mrf.mxu0 }
 0xc6c   :  { %7775 = vrot.lane.b32.xlu2 %v7598_v51, %s11273_s3 }
 0xc6f   :  { %v7186_v44 = vpop.f32.mrf.mxu2 }
 0xc70   :  { %v17013_v24 = vadd.f32 %v7399_v63, %v7186_v44  ;;  %v9961_v63 = vld [vmem:[%s17752_s2 + $0x2f4] sm:$0xf0] }
 0xc71   :  { %v7600_v18 = vpop.f32.mrf.mxu1 }
 0xc72   :  { %v17010_v28 = vadd.f32 %v7600_v18, %v16937_v21  ;;  %v10633_v21 = vld [vmem:[%s17753_s5 + $0x70] sm:$0xff]  ;;  %v10554_v18 = vld [vmem:[%s17752_s2 + $0x2ec] sm:$0xf] }
 0xc73   :  { %8188 = vmatpush.bf16.msrb.mxu3 %v10633_v21  ;;  %v7402_v29 = vpop.f32.mrf.mxu0  ;;  %v9964_v14 = vor.u32 %v10554_v18, %v9961_v63  ;;  %v9985_v18 = vld [vmem:[%s17752_s2 + $0x324] sm:$0xf0] }
 0xc74   :  { %10091 = vmatmul.msk.bf16.gmra.mxu1 %vm2536_vm3, %v9908_v20 }
 0xc75   :  { %7228 = vmatmul.bf16.gmra.mxu2 %v9936_v11 }
 0xc76   :  { %7441 = vmatmul.bf16.gmra.mxu0 %v9940_v56 }
 0xc77   :  { %8189 = vmatpush.bf16.msrb.mxu3 %v10632_v58  ;;  %v7189_v25 = vpop.f32.mrf.mxu2 }
 0xc78   :  { %v7403_v53 = vadd.f32 %v7402_v29, %v7189_v25 }
 0xc79   :  { %v7602_v36 = vpop.f32.mrf.mxu1 }
 0xc7a   :  { %v17028_v35 = vadd.f32 %v7602_v36, %v16950_v52  ;;  %v9919_v52 = vld [vmem:[%s17752_s2 + $0x290] sm:$0xf] }
 0xc7b   :  { %8190 = vmatpush.bf16.msrb.mxu3 %v10631_v1  ;;  %v9920_v31 = vor.u32 %v10544_v7, %v9919_v52  ;;  %v7404_v12 = vpop.f32.mrf.mxu0  ;;  %v9971_v7 = vld [vmem:[%s17752_s2 + $0x300] sm:$0xf] }
 0xc7f   :  { %8191 = vmatpush.bf16.msrb.mxu3 %v10630_v40  ;;  %v7191_v10 = vpop.f32.mrf.mxu2 }
 0xc80   :  { %v17052_v23 = vadd.f32 %v7404_v12, %v7191_v10 }
 0xc81   :  { %v7605_v62 = vpop.f32.mrf.mxu1 }
 0xc82   :  { %v17049_v55 = vadd.f32 %v7605_v62, %v16967_v32  ;;  %v10629_v32 = vld [vmem:[%s17753_s5 + $0x50] sm:$0xff] }
 0xc83   :  { %8192 = vmatpush.bf16.msrb.mxu3 %v10629_v32  ;;  %v7407_v22 = vpop.f32.mrf.mxu0  ;;  %v10557_v32 = vld [vmem:[%s17752_s2 + $0x304] sm:$0xf] }
 0xc84   :  { %10092 = vmatmul.msk.bf16.gmra.mxu1 %vm2536_vm3, %v9920_v31 }
 0xc85   :  { %7233 = vmatmul.bf16.gmra.mxu2 %v9948_v4  ;;  %v9973_v4 = vld [vmem:[%s17752_s2 + $0x30c] sm:$0xf0] }
 0xc86   :  { %7446 = vmatmul.bf16.gmra.mxu0 %v9952_v6 }
 0xc87   :  { %8193 = vmatpush.bf16.msrb.mxu3 %v10628_v60 }
 0xc88   :  { %v7194_v57 = vpop.f32.mrf.mxu2 }
 0xc89   :  { %v7607_v41 = vpop.f32.mrf.mxu1  ;;  %v17075_v15 = vadd.f32 %v7407_v22, %v7194_v57  ;;  %v17117_v21 = vpop.f32.mrf.mxu3  ;;  %v10553_v57 = vld [vmem:[%s17752_s2 + $0x2e0] sm:$0xf0] }
 0xc8a   :  { %v17067_v0 = vadd.f32 %v7607_v41, %v16980_v3  ;;  %v9931_v3 = vld [vmem:[%s17752_s2 + $0x2a8] sm:$0xf]  ;;  %v9976_v41 = vor.u32 %v10557_v32, %v9973_v4  ;;  %v9956_v6 = vor.u32 %v10553_v57, %v9955_v26  ;;  %v10563_v32 = vld [vmem:[%s17752_s2 + $0x334] sm:$0xf]  ;;  %v9997_v4 = vld [vmem:[%s17752_s2 + $0x33c] sm:$0xf0] }
 0xc8b   :  { %8194 = vmatpush.bf16.msrb.mxu3 %v10627_v19  ;;  %v9932_v51 = vor.u32 %v10547_v27, %v9931_v3  ;;  %v17089_v61 = vpop.f32.mrf.mxu0  ;;  %v9979_v57 = vld [vmem:[%s17752_s2 + $0x308] sm:$0xf] }
 0xc90   :  { %v17091_v46 = vpop.f32.mrf.mxu2 }
 0xc91   :  { %v7610_v48 = vpop.f32.mrf.mxu1  ;;  %v17136_v50 = vpop.f32.mrf.mxu3 }
 0xc92   :  { %v17087_v42 = vadd.f32 %v7610_v48, %v16997_v38  ;;  %v10561_v48 = vld [vmem:[%s17752_s2 + $0x320] sm:$0xf0] }
 0xc93   :  { %v17103_v54 = vpop.f32.mrf.mxu0 }
 0xc94   :  { %10093 = vmatmul.msk.bf16.gmra.mxu1 %vm2536_vm3, %v9932_v51  ;;  %v9983_v51 = vld [vmem:[%s17752_s2 + $0x318] sm:$0xf] }
 0xc95   :  { %7238 = vmatmul.bf16.gmra.mxu2 %v9960_v9  ;;  %v9984_v17 = vor.u32 %v10561_v48, %v9983_v51 }
 0xc96   :  { %7451 = vmatmul.bf16.gmra.mxu0 %v9964_v14 }
 0xc98   :  { %v7199_v44 = vpop.f32.mrf.mxu2 }
 0xc99   :  { %v7612_v20 = vpop.f32.mrf.mxu1 }
 0xc9a   :  { %v17101_v38 = vadd.f32 %v7612_v20, %v17013_v24  ;;  %v10550_v24 = vld [vmem:[%s17752_s2 + $0x2c8] sm:$0xf0]  ;;  %v10560_v20 = vld [vmem:[%s17752_s2 + $0x31c] sm:$0xf] }
 0xc9b   :  { %v9944_v11 = vor.u32 %v10550_v24, %v9943_v16  ;;  %v17121_v25 = vpop.f32.mrf.mxu0  ;;  %v9988_v14 = vor.u32 %v10560_v20, %v9985_v18  ;;  %v9967_v16 = vld [vmem:[%s17752_s2 + $0x2f0] sm:$0xf]  ;;  %v10556_v24 = vld [vmem:[%s17752_s2 + $0x2f8] sm:$0xf0] }
 0xca0   :  { %v11211_v58 = vpop.permute.xlu2 %11210  ;;  %v17123_v56 = vpop.f32.mrf.mxu2 }
 0xca1   :  { %v7615_v36 = vpop.f32.mrf.mxu1  ;;  %v11213_v29 = vunpack.i.h.bf16 %v11211_v58  ;;  %v11212_v47 = vunpack.i.l.bf16 %v11211_v58  ;;  %v7410_v58 = vadd.f32 %v17089_v61, %v17091_v46  ;;  %v10564_v61 = vld [vmem:[%s17752_s2 + $0x338] sm:$0xf0] }
 0xca2   :  { %v17119_v49 = vadd.f32 %v7615_v36, %v7403_v53  ;;  %v10558_v53 = vld [vmem:[%s17752_s2 + $0x308] sm:$0xf0]  ;;  %v9968_v36 = vor.u32 %v10556_v24, %v9967_v16 }
 0xca3   :  { %v7869_v1 = vsel %vm2536_vm3, %v16758_v13, %v11212_v47  ;;  %v7870_v52 = vsel %vm2536_vm3, %v16768_v45, %v11213_v29  ;;  %v9972_v40 = vor.u32 %v10558_v53, %v9971_v7  ;;  %v17141_v2 = vpop.f32.mrf.mxu0 }
 0xca4   :  { %10094 = vmatmul.msk.bf16.gmra.mxu1 %vm2536_vm3, %v9944_v11  ;;  %v7900_v31 = vpack.c.bf16 %v7870_v52, %v7869_v1  ;;  %v7413_v11 = vadd.f32 %v17103_v54, %v7199_v44  ;;  %v9995_v54 = vld [vmem:[%s17752_s2 + $0x330] sm:$0xf] }
 0xca5   :  { %7243 = vmatmul.bf16.gmra.mxu2 %v9972_v40  ;;  %v9996_v46 = vor.u32 %v10564_v61, %v9995_v54  ;;  %v9991_v54 = vld [vmem:[%s17752_s2 + $0x320] sm:$0xf] }
 0xca6   :  { %7456 = vmatmul.bf16.gmra.mxu0 %v9976_v41 }
 0xca8   :  { %v11206_v62 = vpop.permute.xlu1 %11205  ;;  %v17149_v60 = vpop.f32.mrf.mxu2 }
 0xca9   :  { %v7617_v12 = vpop.f32.mrf.mxu1  ;;  %v11208_v10 = vunpack.i.h.bf16 %v11206_v62  ;;  %v11207_v13 = vunpack.i.l.bf16 %v11206_v62 }
 0xcaa   :  { %v17139_v45 = vadd.f32 %v7617_v12, %v17052_v23 }
 0xcab   :  { %v7868_v22 = vsel %vm2536_vm3, %v16743_v5, %v11208_v10  ;;  %v7867_v23 = vsel %vm2536_vm3, %v16730_v39, %v11207_v13  ;;  %v17166_v27 = vpop.f32.mrf.mxu0 }
 0xcac   :  { %v7895_v33 = vpack.c.bf16 %v7868_v22, %v7867_v23  ;;  %v10000_v22 = vor.u32 %v10563_v32, %v9997_v4 }
 0xcae   :  { %8195 = vmatmul.bf16.vlgmr.msrb.gmra.mxu3 %v7895_v33 }
 0xcb0   :  { %v17168_v39 = vpop.f32.mrf.mxu2 }
 0xcb1   :  { %v7620_v19 = vpop.f32.mrf.mxu1  ;;  %v17161_v3 = vpop.f32.mrf.mxu3 }
 0xcb2   :  { %v17164_v5 = vadd.f32 %v7620_v19, %v17075_v15  ;;  %v7418_v19 = vadd.f32 %v17141_v2, %v17149_v60 }
 0xcb3   :  { %v17179_v15 = vpop.f32.mrf.mxu0 }
 0xcb4   :  { %10095 = vmatmul.msk.bf16.gmra.mxu1 %vm2536_vm3, %v9956_v6  ;;  %v10559_v6 = vld [vmem:[%s17752_s2 + $0x310] sm:$0xf0] }
 0xcb5   :  { %7248 = vmatmul.bf16.gmra.mxu2 %v9984_v17  ;;  %v9980_v51 = vor.u32 %v10559_v6, %v9979_v57 }
 0xcb6   :  { %7461 = vmatmul.bf16.gmra.mxu0 %v9988_v14 }
 0xcb8   :  { %v17187_v63 = vpop.f32.mrf.mxu2 }
 0xcb9   :  { %v7622_v30 = vpop.f32.mrf.mxu1  ;;  %v17177_v9 = vpop.f32.mrf.mxu3 }
 0xcba   :  { %v7623_v1 = vadd.f32 %v7622_v30, %v7410_v58 }
 0xcbb   :  { %v17200_v7 = vpop.f32.mrf.mxu0 }
 0xcbe   :  { %8200 = vmatmul.bf16.gmra.mxu3 %v7900_v31 }
 0xcc0   :  { %v17202_v53 = vpop.f32.mrf.mxu2 }
 0xcc1   :  { %v7625_v29 = vpop.f32.mrf.mxu1  ;;  %v17198_v47 = vpop.f32.mrf.mxu3 }
 0xcc2   :  { %v7626_v52 = vadd.f32 %v7625_v29, %v7413_v11 }
 0xcc3   :  { %v17214_v13 = vpop.f32.mrf.mxu0 }
 0xcc4   :  { %v11224_v40 = vpack.i.bf16 %v7626_v52, %v7623_v1  ;;  %10096 = vmatmul.msk.bf16.gmra.mxu1 %vm2536_vm3, %v9968_v36  ;;  %v10007_v1 = vld [vmem:[%s17752_s2 + $0x348] sm:$0xf]  ;;  %v10567_v52 = vld [vmem:[%s17752_s2 + $0x350] sm:$0xf0] }
 0xcc5   :  { %7253 = vmatmul.bf16.gmra.mxu2 %v9996_v46  ;;  %v10008_v61 = vor.u32 %v10567_v52, %v10007_v1  ;;  %v7420_v46 = vadd.f32 %v17166_v27, %v17168_v39 }
 0xcc6   :  { %11225 = vrot.lane.b32.xlu0 %v11224_v40, %s11273_s3  ;;  %7466 = vmatmul.bf16.gmra.mxu0 %v10000_v22  ;;  %v10566_v22 = vld [vmem:[%s17752_s2 + $0x34c] sm:$0xf]  ;;  %v7776_v39 = vpop.permute.xlu2 %7775 }
 0xcc8   :  { %v11216_v44 = vpop.permute.xlu0 %11215  ;;  %v17222_v41 = vpop.f32.mrf.mxu2 }
 0xcc9   :  { %v7627_v31 = vpop.f32.mrf.mxu1  ;;  %v11218_v62 = vunpack.i.h.bf16 %v11216_v44  ;;  %v11217_v12 = vunpack.i.l.bf16 %v11216_v44  ;;  %v17212_v10 = vpop.f32.mrf.mxu3 }
 0xccb   :  { %v7871_v23 = vsel %vm2536_vm3, %v16782_v37, %v11217_v12  ;;  %v7872_v33 = vsel %vm2536_vm3, %v16799_v59, %v11218_v62  ;;  %v7415_v37 = vadd.f32 %v17121_v25, %v17123_v56  ;;  %v7429_v20 = vpop.f32.mrf.mxu0 }
 0xccc   :  { %v7905_v26 = vpack.c.bf16 %v7872_v33, %v7871_v23 }
 0xccd   :  { %v7628_v17 = vadd.f32 %v7627_v31, %v7415_v37 }
 0xcce   :  { %8205 = vmatmul.bf16.gmra.mxu3 %v7905_v26  ;;  %v7875_v26 = vsel %vm2536_vm3, %v16844_v43, %v7776_v39  ;;  %v7425_v43 = vadd.f32 %v17200_v7, %v17202_v53  ;;  %v10015_v7 = vld [vmem:[%s17752_s2 + $0x350] sm:$0xf]  ;;  %v10568_v53 = vld [vmem:[%s17752_s2 + $0x358] sm:$0xf0] }
 0xcd0   :  { %v7216_v18 = vpop.f32.mrf.mxu2 }
 0xcd1   :  { %v7630_v48 = vpop.f32.mrf.mxu1  ;;  %v17238_v59 = vpop.f32.mrf.mxu3 }
 0xcd2   :  { %v7631_v30 = vadd.f32 %v7630_v48, %v7418_v19  ;;  %v10003_v48 = vld [vmem:[%s17752_s2 + $0x338] sm:$0xf] }
 0xcd3   :  { %v7432_v25 = vpop.f32.mrf.mxu0 }
 0xcd4   :  { %v11229_v14 = vpack.i.bf16 %v7631_v30, %v7628_v17  ;;  %10097 = vmatmul.msk.bf16.gmra.mxu1 %vm2536_vm3, %v9980_v51  ;;  %v7915_v51 = vpack.c.bf16 %v7875_v26, %v7875_v26  ;;  %v10565_v17 = vld [vmem:[%s17752_s2 + $0x340] sm:$0xf0]  ;;  %v7428_v30 = vadd.f32 %v17214_v13, %v17222_v41 }
 0xcd5   :  { %7258 = vmatmul.bf16.gmra.mxu2 %v10008_v61 }
 0xcd6   :  { %11230 = vrot.lane.b32.xlu1 %v11229_v14, %s11273_s3  ;;  %v10004_v14 = vor.u32 %v10565_v17, %v10003_v48  ;;  %v10635_v17 = vld [vmem:[%s17753_s5 + $0x80] sm:$0xff] }
 0xcd8   :  { %v11221_v16 = vpop.permute.xlu1 %11220  ;;  %v7219_v56 = vpop.f32.mrf.mxu2 }
 0xcd9   :  { %v7632_v24 = vpop.f32.mrf.mxu1  ;;  %v11223_v2 = vunpack.i.h.bf16 %v11221_v16  ;;  %v11222_v60 = vunpack.i.l.bf16 %v11221_v16  ;;  %v17242_v11 = vpop.f32.mrf.mxu3  ;;  %v7433_v29 = vadd.f32 %v7432_v25, %v7219_v56 }
 0xcda   :  { %v7633_v12 = vadd.f32 %v7632_v24, %v7420_v46  ;;  %v10641_v46 = vld [vmem:[%s17753_s5 + $0xb0] sm:$0xff] }
 0xcdb   :  { %v7873_v58 = vsel %vm2536_vm3, %v16813_v34, %v11222_v60  ;;  %v7874_v36 = vsel %vm2536_vm3, %v16826_v8, %v11223_v2  ;;  %v10562_v34 = vld [vmem:[%s17752_s2 + $0x328] sm:$0xf0]  ;;  %v7423_v8 = vadd.f32 %v17179_v15, %v17187_v63  ;;  %v17266_v4 = vpop.f32.mrf.mxu0  ;;  %v10009_v15 = vld [vmem:[%s17752_s2 + $0x354] sm:$0xf0] }
 0xcdc   :  { %v7910_v40 = vpack.c.bf16 %v7874_v36, %v7873_v58  ;;  %v9992_v44 = vor.u32 %v10562_v34, %v9991_v54  ;;  %v10012_v23 = vor.u32 %v10566_v22, %v10009_v15  ;;  %v7430_v58 = vadd.f32 %v7429_v20, %v7216_v18  ;;  %v10642_v20 = vld [vmem:[%s17753_s5 + $0xb8] sm:$0xff]  ;;  %v10639_v22 = vld [vmem:[%s17753_s5 + $0xa0] sm:$0xff] }
 0xcdd   :  { %8220 = vmatpush.bf16.msra.mxu3 %v10642_v20  ;;  %v10638_v15 = vld [vmem:[%s17753_s5 + $0x98] sm:$0xff] }
 0xcde   :  { %8210 = vmatmul.bf16.gmra.mxu3 %v7910_v40  ;;  %7471 = vmatmul.bf16.gmra.mxu0 %v10012_v23  ;;  %v10016_v40 = vor.u32 %v10568_v53, %v10015_v7 }
 0xce0   :  { %v17274_v63 = vpop.f32.mrf.mxu2 }
 0xce1   :  { %v7635_v31 = vpop.f32.mrf.mxu1  ;;  %v17264_v62 = vpop.f32.mrf.mxu3  ;;  %8221 = vmatpush.bf16.msra.mxu3 %v10641_v46 }
 0xce2   :  { %v7636_v32 = vadd.f32 %v7635_v31, %v7423_v8 }
 0xce3   :  { %v7437_v6 = vpop.f32.mrf.mxu0 }
 0xce4   :  { %v11234_v27 = vpack.i.bf16 %v7636_v32, %v7633_v12  ;;  %10098 = vmatmul.msk.bf16.gmra.mxu1 %vm2536_vm3, %v9992_v44  ;;  %v10640_v44 = vld [vmem:[%s17753_s5 + $0xa8] sm:$0xff] }
 0xce5   :  { %8222 = vmatpush.bf16.msra.mxu3 %v10640_v44 }
 0xce6   :  { %11235 = vrot.lane.b32.xlu2 %v11234_v27, %s11273_s3 }
 0xce8   :  { %v7224_v19 = vpop.f32.mrf.mxu2 }
 0xce9   :  { %v7637_v33 = vpop.f32.mrf.mxu1  ;;  %v8185_v57 = vpop.f32.mrf.mxu3  ;;  %v7438_v37 = vadd.f32 %v7437_v6, %v7224_v19  ;;  %8223 = vmatpush.bf16.msra.mxu3 %v10639_v22  ;;  %v10636_v6 = vld [vmem:[%s17753_s5 + $0x88] sm:$0xff] }
 0xcea   :  { %v7638_v24 = vadd.f32 %v7637_v33, %v7425_v43  ;;  %v10637_v57 = vld [vmem:[%s17753_s5 + $0x90] sm:$0xff] }
 0xceb   :  { %v17290_v60 = vpop.f32.mrf.mxu0 }
 0xced   :  { %8224 = vmatpush.bf16.msra.mxu3 %v10638_v15 }
 0xcee   :  { %8215 = vmatmul.bf16.gmra.mxu3 %v7915_v51 }
 0xcf0   :  { %v17292_v25 = vpop.f32.mrf.mxu2 }
 0xcf1   :  { %v7640_v16 = vpop.f32.mrf.mxu1  ;;  %8225 = vmatpush.bf16.msra.mxu3 %v10637_v57 }
 0xcf2   :  { %v7641_v2 = vadd.f32 %v7640_v16, %v7428_v30 }
 0xcf3   :  { %v7442_v41 = vpop.f32.mrf.mxu0 }
 0xcf4   :  { %v11239_v56 = vpack.i.bf16 %v7641_v2, %v7638_v24  ;;  %10099 = vmatmul.msk.bf16.gmra.mxu1 %vm2536_vm3, %v10004_v14  ;;  %v17343_v24 = vld [vmem:[%s17754_s10] ss:$0 sm:$0xff] }
 0xcf5   :  { %8226 = vmatpush.bf16.msra.mxu3 %v10636_v6  ;;  %v8164_v2 = vadd.f32 %v17343_v24, %v17117_v21  ;;  %v8169_v44 = vadd.f32 %v17343_v24, %v17161_v3 }
 0xcf6   :  { %11240 = vrot.lane.b32.xlu0 %v11239_v56, %s11273_s3 }
 0xcf8   :  { %v7229_v1 = vpop.f32.mrf.mxu2 }
 0xcf9   :  { %v7642_v36 = vpop.f32.mrf.mxu1  ;;  %v7443_v52 = vadd.f32 %v7442_v41, %v7229_v1  ;;  %8227 = vmatpush.bf16.msra.mxu3 %v10635_v17 }
 0xcfa   :  { %v7643_v13 = vadd.f32 %v7642_v36, %v7430_v58 }
 0xcfb   :  { %v7444_v34 = vpop.f32.mrf.mxu0 }
 0xcfc   :  { %7811 = vrot.lane.b32.xlu1 %v7643_v13, %s11273_s3 }
 0xd00   :  { %v7231_v61 = vpop.f32.mrf.mxu2 }
 0xd01   :  { %v7645_v18 = vpop.f32.mrf.mxu1  ;;  %v7445_v8 = vadd.f32 %v7444_v34, %v7231_v61 }
 0xd02   :  { %v17306_v54 = vadd.f32 %v7645_v18, %v7433_v29 }
 0xd03   :  { %v7447_v12 = vpop.f32.mrf.mxu0 }
 0xd04   :  { %10100 = vmatmul.msk.bf16.gmra.mxu1 %vm2536_vm3, %v10016_v40 }
 0xd08   :  { %v7234_v29 = vpop.f32.mrf.mxu2 }
 0xd09   :  { %v17315_v31 = vpop.f32.mrf.mxu1  ;;  %v7448_v32 = vadd.f32 %v7447_v12, %v7234_v29 }
 0xd0b   :  { %v7449_v39 = vpop.f32.mrf.mxu0 }
 0xd10   :  { %v7236_v33 = vpop.f32.mrf.mxu2 }
 0xd11   :  { %v7650_v23 = vpop.f32.mrf.mxu1  ;;  %v7450_v26 = vadd.f32 %v7449_v39, %v7236_v33 }
 0xd12   :  { %v17323_v27 = vadd.f32 %v7650_v23, %v7438_v37 }
 0xd13   :  { %v7452_v48 = vpop.f32.mrf.mxu0 }
 0xd18   :  { %v7239_v51 = vpop.f32.mrf.mxu2 }
 0xd19   :  { %v17331_v19 = vpop.f32.mrf.mxu1  ;;  %v7453_v37 = vadd.f32 %v7452_v48, %v7239_v51 }
 0xd1b   :  { %v7454_v41 = vpop.f32.mrf.mxu0 }
 0xd20   :  { %v7241_v1 = vpop.f32.mrf.mxu2 }
 0xd21   :  { %v7655_v30 = vpop.f32.mrf.mxu1 }
 0xd22   :  { %v17336_v43 = vadd.f32 %v7655_v30, %v7443_v52 }
 0xd28   :  { %v7244_v46 = vpop.f32.mrf.mxu2 }
 0xd29   :  { %v7657_v14 = vpop.f32.mrf.mxu1 }
 0xd2a   :  { %v17338_v16 = vadd.f32 %v7657_v14, %v7445_v8  ;;  %v7457_v8 = vpop.f32.mrf.mxu0 }
 0xd30   :  { %v7246_v57 = vpop.f32.mrf.mxu2 }
 0xd31   :  { %v7660_v56 = vpop.f32.mrf.mxu1  ;;  %v8196_v58 = vpop.f32.mrf.mxu3 }
 0xd32   :  { %v17347_v36 = vadd.f32 %v7660_v56, %v7448_v32  ;;  %v17349_v13 = vadd.f32 %v8196_v58, %v8164_v2  ;;  %v7455_v2 = vadd.f32 %v7454_v41, %v7241_v1  ;;  %v10019_v41 = vld [vmem:[%s17752_s2 + $0x360] sm:$0xf] }
 0xd38   :  { %v11226_v52 = vpop.permute.xlu0 %11225 }
 0xd39   :  { %v7662_v7 = vpop.f32.mrf.mxu1  ;;  %v11228_v53 = vunpack.i.h.bf16 %v11226_v52  ;;  %v11227_v40 = vunpack.i.l.bf16 %v11226_v52  ;;  %v17351_v20 = vpop.f32.mrf.mxu3 }
 0xd3a   :  { %v17353_v18 = vadd.f32 %v7662_v7, %v7450_v26  ;;  %v7459_v26 = vpop.f32.mrf.mxu0 }
 0xd3b   :  { %v7877_v34 = vsel %vm2536_vm3, %v17028_v35, %v11228_v53  ;;  %v7876_v21 = vsel %vm2536_vm3, %v17010_v28, %v11227_v40  ;;  %v7249_v53 = vpop.f32.mrf.mxu2 }
 0xd3c   :  { %v7896_v61 = vpack.c.bf16 %v7877_v34, %v7876_v21 }
 0xd3e   :  { %8228 = vmatmul.bf16.vlgmr.msra.gmra.mxu3 %v7896_v61 }
 0xd40   :  { %v11236_v12 = vpop.permute.xlu2 %11235 }
 0xd41   :  { %v7665_v29 = vpop.f32.mrf.mxu1  ;;  %v11238_v32 = vunpack.i.h.bf16 %v11236_v12  ;;  %v11237_v22 = vunpack.i.l.bf16 %v11236_v12  ;;  %v8201_v15 = vpop.f32.mrf.mxu3  ;;  %v8179_v12 = vadd.f32 %v17343_v24, %v17238_v59 }
 0xd42   :  { %v17361_v23 = vadd.f32 %v7665_v29, %v7453_v37  ;;  %v17363_v39 = vadd.f32 %v8201_v15, %v8169_v44  ;;  %v7462_v40 = vpop.f32.mrf.mxu0  ;;  %v7460_v44 = vadd.f32 %v7459_v26, %v7246_v57  ;;  %v10571_v26 = vld [vmem:[%s17752_s2 + $0x370] sm:$0xf0] }
 0xd43   :  { %v7880_v35 = vsel %vm2536_vm3, %v17087_v42, %v11237_v22  ;;  %v7881_v28 = vsel %vm2536_vm3, %v17101_v38, %v11238_v32  ;;  %v7458_v42 = vadd.f32 %v7457_v8, %v7244_v46  ;;  %v8174_v38 = vadd.f32 %v17343_v24, %v17198_v47  ;;  %v10570_v47 = vld [vmem:[%s17752_s2 + $0x368] sm:$0xf0]  ;;  %v7251_v61 = vpop.f32.mrf.mxu2 }
 0xd44   :  { %v7906_v33 = vpack.c.bf16 %v7881_v28, %v7880_v35  ;;  %v10020_v1 = vor.u32 %v10570_v47, %v10019_v41  ;;  %v7463_v46 = vadd.f32 %v7462_v40, %v7249_v53  ;;  %v8184_v41 = vadd.f32 %v17343_v24, %v17264_v62  ;;  %v10572_v47 = vld [vmem:[%s17752_s2 + $0x37c] sm:$0xf]  ;;  %v10574_v62 = vld [vmem:[%s17752_s2 + $0x388] sm:$0xf0] }
 0xd46   :  { %7263 = vmatmul.bf16.gmra.mxu2 %v10020_v1  ;;  %v10033_v1 = vld [vmem:[%s17752_s2 + $0x384] sm:$0xf0] }
 0xd48   :  { %v11231_v6 = vpop.permute.xlu1 %11230 }
 0xd49   :  { %v7667_v3 = vpop.f32.mrf.mxu1  ;;  %v11233_v51 = vunpack.i.h.bf16 %v11231_v6  ;;  %v11232_v48 = vunpack.i.l.bf16 %v11231_v6  ;;  %v17369_v17 = vpop.f32.mrf.mxu3  ;;  %v10569_v6 = vld [vmem:[%s17752_s2 + $0x364] sm:$0xf] }
 0xd4a   :  { %v7668_v52 = vadd.f32 %v7667_v3, %v7455_v2  ;;  %v7464_v8 = vpop.f32.mrf.mxu0  ;;  %v10021_v3 = vld [vmem:[%s17752_s2 + $0x36c] sm:$0xf0] }
 0xd4b   :  { %v7878_v37 = vsel %vm2536_vm3, %v17049_v55, %v11232_v48  ;;  %v7879_v30 = vsel %vm2536_vm3, %v17067_v0, %v11233_v51  ;;  %v10024_v59 = vor.u32 %v10569_v6, %v10021_v3  ;;  %v7254_v57 = vpop.f32.mrf.mxu2  ;;  %v10648_v6 = vld [vmem:[%s17753_s5 + $0xe8] sm:$0xff] }
 0xd4c   :  { %v7901_v14 = vpack.c.bf16 %v7879_v30, %v7878_v37 }
 0xd4d   :  { %7476 = vmatmul.bf16.gmra.mxu0 %v10024_v59 }
 0xd4e   :  { %8233 = vmatmul.bf16.gmra.mxu3 %v7901_v14 }
 0xd51   :  { %v7670_v56 = vpop.f32.mrf.mxu1  ;;  %v8206_v58 = vpop.f32.mrf.mxu3 }
 0xd52   :  { %v7671_v7 = vadd.f32 %v7670_v56, %v7458_v42  ;;  %v17377_v34 = vadd.f32 %v8206_v58, %v8174_v38  ;;  %v7467_v51 = vpop.f32.mrf.mxu0  ;;  %v10031_v58 = vld [vmem:[%s17752_s2 + $0x378] sm:$0xf] }
 0xd53   :  { %v7468_v40 = vadd.f32 %v7467_v51, %v7254_v57  ;;  %v10576_v57 = vld [vmem:[%s17752_s2 + $0x398] sm:$0xf0]  ;;  %v10647_v51 = vld [vmem:[%s17753_s5 + $0xe0] sm:$0xff] }
 0xd54   :  { %v11244_v21 = vpack.i.bf16 %v7671_v7, %v7668_v52  ;;  %v10573_v52 = vld [vmem:[%s17752_s2 + $0x380] sm:$0xf0] }
 0xd55   :  { %v10032_v53 = vor.u32 %v10573_v52, %v10031_v58  ;;  %v10575_v52 = vld [vmem:[%s17752_s2 + $0x394] sm:$0xf] }
 0xd56   :  { %11245 = vrot.lane.b32.xlu2 %v11244_v21, %s11273_s3  ;;  %v10650_v21 = vld [vmem:[%s17753_s5 + $0xf8] sm:$0xff] }
 0xd57   :  { %7268 = vmatmul.bf16.gmra.mxu2 %v10032_v53  ;;  %8253 = vmatpush.bf16.msrb.mxu3 %v10650_v21  ;;  %v10577_v21 = vld [vmem:[%s17752_s2 + $0x3a0] sm:$0xf0] }
 0xd59   :  { %v7672_v55 = vpop.f32.mrf.mxu1  ;;  %v17380_v0 = vpop.f32.mrf.mxu3 }
 0xd5a   :  { %v7673_v22 = vadd.f32 %v7672_v55, %v7460_v44  ;;  %v7256_v55 = vpop.f32.mrf.mxu2 }
 0xd5e   :  { %8238 = vmatmul.bf16.gmra.mxu3 %v7906_v33  ;;  %v10027_v33 = vld [vmem:[%s17752_s2 + $0x368] sm:$0xf] }
 0xd5f   :  { %v10028_v48 = vor.u32 %v10571_v26, %v10027_v33  ;;  %v10043_v26 = vld [vmem:[%s17752_s2 + $0x390] sm:$0xf] }
 0xd61   :  { %v7675_v29 = vpop.f32.mrf.mxu1  ;;  %v8211_v32 = vpop.f32.mrf.mxu3  ;;  %10101 = vmatmul.msk.bf16.gmra.mxu1 %vm2536_vm3, %v10028_v48 }
 0xd62   :  { %v7676_v15 = vadd.f32 %v7675_v29, %v7463_v46  ;;  %v17390_v35 = vadd.f32 %v8211_v32, %v8179_v12  ;;  %v10649_v46 = vld [vmem:[%s17753_s5 + $0xf0] sm:$0xff]  ;;  %v7259_v33 = vpop.f32.mrf.mxu2 }
 0xd63   :  { %8254 = vmatpush.bf16.msrb.mxu3 %v10649_v46 }
 0xd64   :  { %v11249_v28 = vpack.i.bf16 %v7676_v15, %v7673_v22  ;;  %v10036_v22 = vor.u32 %v10572_v47, %v10033_v1 }
 0xd66   :  { %11250 = vrot.lane.b32.xlu0 %v11249_v28, %s11273_s3  ;;  %7481 = vmatmul.bf16.gmra.mxu0 %v10036_v22 }
 0xd67   :  { %8255 = vmatpush.bf16.msrb.mxu3 %v10648_v6  ;;  %v10063_v6 = vld [vmem:[%s17752_s2 + $0x3b0] sm:$0xf] }
 0xd68   :  { %v11241_v37 = vpop.permute.xlu0 %11240 }
 0xd69   :  { %v7677_v30 = vpop.f32.mrf.mxu1  ;;  %v11243_v14 = vunpack.i.h.bf16 %v11241_v37  ;;  %v11242_v42 = vunpack.i.l.bf16 %v11241_v37  ;;  %v17406_v2 = vpop.f32.mrf.mxu3 }
 0xd6b   :  { %v7882_v38 = vsel %vm2536_vm3, %v17119_v49, %v11242_v42  ;;  %v7883_v56 = vsel %vm2536_vm3, %v17139_v45, %v11243_v14  ;;  %v7465_v49 = vadd.f32 %v7464_v8, %v7251_v61  ;;  %v7469_v45 = vpop.f32.mrf.mxu0  ;;  %v10039_v61 = vld [vmem:[%s17752_s2 + $0x380] sm:$0xf]  ;;  %v10044_v14 = vor.u32 %v10576_v57, %v10043_v26  ;;  %8256 = vmatpush.bf16.msrb.mxu3 %v10647_v51 }
 0xd6c   :  { %v7911_v7 = vpack.c.bf16 %v7883_v56, %v7882_v38  ;;  %v10040_v28 = vor.u32 %v10574_v62, %v10039_v61  ;;  %v10646_v38 = vld [vmem:[%s17753_s5 + $0xd8] sm:$0xff]  ;;  %v7470_v58 = vadd.f32 %v7469_v45, %v7256_v55  ;;  %v7261_v45 = vpop.f32.mrf.mxu2  ;;  %v10055_v62 = vld [vmem:[%s17752_s2 + $0x3a8] sm:$0xf]  ;;  %v10643_v26 = vld [vmem:[%s17753_s5 + $0xc0] sm:$0xff] }
 0xd6d   :  { %v7678_v12 = vadd.f32 %v7677_v30, %v7465_v49  ;;  %7273 = vmatmul.bf16.gmra.mxu2 %v10044_v14  ;;  %v250_v57 = vld [vmem:[%s17752_s2 + $0x3c0] sm:$0xff] }
 0xd6e   :  { %8243 = vmatmul.bf16.gmra.mxu3 %v7911_v7  ;;  %v7812_v3 = vpop.permute.xlu1 %7811  ;;  %v10645_v7 = vld [vmem:[%s17753_s5 + $0xd0] sm:$0xff]  ;;  %v6744_v51 = vunpack.c.l.b16 %v250_v57 }
 0xd6f   :  { %v7884_v37 = vsel %vm2536_vm3, %v17164_v5, %v7812_v3  ;;  %v10045_v5 = vld [vmem:[%s17752_s2 + $0x39c] sm:$0xf0]  ;;  %8257 = vmatpush.bf16.msrb.mxu3 %v10646_v38  ;;  %v10580_v3 = vld [vmem:[%s17752_s2 + $0x3b8] sm:$0xf0] }
 0xd70   :  { %v7916_v42 = vpack.c.bf16 %v7884_v37, %v7884_v37  ;;  %v10048_v47 = vor.u32 %v10575_v52, %v10045_v5  ;;  %v7435_v37 = vadd.f32 %v17266_v4, %v17274_v63  ;;  %v6745_v5 = vunpack.c.h.b16 %v250_v57 }
 0xd71   :  { %v7680_v44 = vpop.f32.mrf.mxu1  ;;  %v8216_v8 = vpop.f32.mrf.mxu3  ;;  %10102 = vmatmul.msk.bf16.gmra.mxu1 %vm2536_vm3, %v10040_v28  ;;  %v10057_v28 = vld [vmem:[%s17752_s2 + $0x3b4] sm:$0xf0] }
 0xd72   :  { %v7681_v29 = vadd.f32 %v7680_v44, %v7468_v40  ;;  %v17438_v32 = vadd.f32 %v8216_v8, %v8184_v41  ;;  %v10051_v40 = vld [vmem:[%s17752_s2 + $0x398] sm:$0xf]  ;;  %v10644_v44 = vld [vmem:[%s17753_s5 + $0xc8] sm:$0xff]  ;;  %v10579_v8 = vld [vmem:[%s17752_s2 + $0x3b0] sm:$0xf0]  ;;  %v7648_v14 = vadd.f32 %v17315_v31, %v7435_v37 }
 0xd73   :  { %v7472_v59 = vpop.f32.mrf.mxu0  ;;  %v10052_v46 = vor.u32 %v10577_v21, %v10051_v40  ;;  %8258 = vmatpush.bf16.msrb.mxu3 %v10645_v7  ;;  %v10056_v22 = vor.u32 %v10579_v8, %v10055_v62  ;;  %v251_v7 = vld [vmem:[%s17752_s2 + $0x3c8] sm:$0xf]  ;;  %v6868_v40 = vpack.c.b16 %v6745_v5, %v6745_v5  ;;  %v10651_v37 = vld [vmem:[%s17753_s5 + $0x100] sm:$0xff] }
 0xd74   :  { %v11254_v15 = vpack.i.bf16 %v7681_v29, %v7678_v12  ;;  %v7473_v56 = vadd.f32 %v7472_v59, %v7259_v33  ;;  %v10064_v59 = vor.u32 %v10580_v3, %v10063_v6 }
 0xd76   :  { %11255 = vrot.lane.b32.xlu1 %v11254_v15, %s11273_s3  ;;  %7486 = vmatmul.bf16.gmra.mxu0 %v10048_v47  ;;  %v10578_v15 = vld [vmem:[%s17752_s2 + $0x3ac] sm:$0xf] }
 0xd77   :  { %8259 = vmatpush.bf16.msrb.mxu3 %v10644_v44  ;;  %v10060_v33 = vor.u32 %v10578_v15, %v10057_v28 }
 0xd79   :  { %v7682_v48 = vpop.f32.mrf.mxu1  ;;  %v8218_v30 = vpop.f32.mrf.mxu3 }
 0xd7a   :  { %v7683_v49 = vadd.f32 %v7682_v48, %v7470_v58  ;;  %v6867_v48 = vpack.c.b16 %v6744_v51, %v6744_v51 }
 0xd7b   :  { %v7474_v41 = vpop.f32.mrf.mxu0  ;;  %8260 = vmatpush.bf16.msrb.mxu3 %v10643_v26  ;;  %v10653_v26 = vld [vmem:[%s17753_s5 + $0x110] sm:$0xff] }
 0xd7c   :  { %v7475_v61 = vadd.f32 %v7474_v41, %v7261_v45 }
 0xd7d   :  { %7278 = vmatmul.bf16.gmra.mxu2 %v10056_v22 }
 0xd7e   :  { %8248 = vmatmul.bf16.gmra.mxu3 %v7916_v42 }
 0xd81   :  { %v7685_v53 = vpop.f32.mrf.mxu1  ;;  %10103 = vmatmul.msk.bf16.gmra.mxu1 %vm2536_vm3, %v10052_v46 }
 0xd82   :  { %v7686_v55 = vadd.f32 %v7685_v53, %v7473_v56  ;;  %v6746_v53 = vunpack.c.l.b16 %v251_v7 }
 0xd84   :  { %v11259_v1 = vpack.i.bf16 %v7686_v55, %v7683_v49  ;;  %v6869_v4 = vpack.c.b16 %v6746_v53, %v6746_v53  ;;  %v7440_v55 = vadd.f32 %v17290_v60, %v17292_v25 }
 0xd86   :  { %11260 = vrot.lane.b32.xlu2 %v11259_v1, %s11273_s3  ;;  %7491 = vmatmul.bf16.gmra.mxu0 %v10060_v33  ;;  %v7653_v41 = vadd.f32 %v17331_v19, %v7440_v55 }
 0xd89   :  { %v7687_v12 = vpop.f32.mrf.mxu1 }
 0xd8a   :  { %v7688_v29 = vadd.f32 %v7687_v12, %v7475_v61 }
 0xd8c   :  { %7847 = vrot.lane.b32.xlu0 %v7688_v29, %s11273_s3 }
 0xd8d   :  { %7283 = vmatmul.bf16.gmra.mxu2 %v6867_v48 }
 0xd91   :  { %10104 = vmatmul.msk.bf16.gmra.mxu1 %vm2536_vm3, %v10064_v59 }
 0xd96   :  { %7496 = vmatmul.bf16.gmra.mxu0 %v6868_v40 }
 0xda1   :  { %10105 = vmatmul.msk.bf16.gmra.mxu1 %vm2536_vm3, %v6869_v4 }
 0xdb0   :  { %v11246_v30 = vpop.permute.xlu2 %11245 }
 0xdb1   :  { %v11248_v42 = vunpack.i.h.bf16 %v11246_v30  ;;  %v11247_v38 = vunpack.i.l.bf16 %v11246_v30 }
 0xdb3   :  { %v7886_v56 = vsel %vm2536_vm3, %v7648_v14, %v11248_v42  ;;  %v7885_v58 = vsel %vm2536_vm3, %v17306_v54, %v11247_v38 }
 0xdb4   :  { %v7897_v52 = vpack.c.bf16 %v7886_v56, %v7885_v58 }
 0xdb6   :  { %8261 = vmatmul.bf16.vlgmr.msrb.gmra.mxu3 %v7897_v52 }
 0xdc1   :  { %v8229_v63 = vpop.f32.mrf.mxu3 }
 0xdc2   :  { %v17516_v31 = vadd.f32 %v8229_v63, %v17349_v13 }
 0xdc9   :  { %v17518_v21 = vpop.f32.mrf.mxu3  ;;  %v7264_v33 = vpop.f32.mrf.mxu2 }
 0xdca   :  { %v7477_v59 = vpop.f32.mrf.mxu0 }
 0xdcb   :  { %v7478_v55 = vadd.f32 %v7477_v59, %v7264_v33 }
 0xdd1   :  { %v8234_v54 = vpop.f32.mrf.mxu3  ;;  %v7266_v51 = vpop.f32.mrf.mxu2 }
 0xdd2   :  { %v17521_v49 = vadd.f32 %v8234_v54, %v17363_v39  ;;  %v7479_v48 = vpop.f32.mrf.mxu0 }
 0xdd8   :  { %v11251_v45 = vpop.permute.xlu0 %11250 }
 0xdd9   :  { %v11253_v47 = vunpack.i.h.bf16 %v11251_v45  ;;  %v11252_v1 = vunpack.i.l.bf16 %v11251_v45  ;;  %v17526_v46 = vpop.f32.mrf.mxu3  ;;  %v7480_v45 = vadd.f32 %v7479_v48, %v7266_v51 }
 0xdda   :  { %v7269_v42 = vpop.f32.mrf.mxu2 }
 0xddb   :  { %v7887_v13 = vsel %vm2536_vm3, %v17323_v27, %v11252_v1  ;;  %v7888_v44 = vsel %vm2536_vm3, %v7653_v41, %v11253_v47 }
 0xddc   :  { %v7902_v61 = vpack.c.bf16 %v7888_v44, %v7887_v13 }
 0xdde   :  { %8266 = vmatmul.bf16.gmra.mxu3 %v7902_v61 }
 0xde0   :  { %v11261_v62 = vpop.permute.xlu2 %11260 }
 0xde1   :  { %v11263_v39 = vunpack.i.h.bf16 %v11261_v62  ;;  %v11262_v8 = vunpack.i.l.bf16 %v11261_v62  ;;  %v8239_v12 = vpop.f32.mrf.mxu3 }
 0xde2   :  { %v17532_v60 = vadd.f32 %v8239_v12, %v17377_v34  ;;  %v7271_v5 = vpop.f32.mrf.mxu2 }
 0xde3   :  { %v7891_v25 = vsel %vm2536_vm3, %v17347_v36, %v11262_v8  ;;  %v7892_v19 = vsel %vm2536_vm3, %v17353_v18, %v11263_v39  ;;  %v10654_v36 = vld [vmem:[%s17753_s5 + $0x118] sm:$0xff]  ;;  %v7690_v18 = vpop.f32.mrf.mxu1 }
 0xde4   :  { %v7912_v29 = vpack.c.bf16 %v7892_v19, %v7891_v25  ;;  %8290 = vmatpush.bf16.msra.mxu3 %v10654_v36  ;;  %v7691_v13 = vadd.f32 %v7690_v18, %v7478_v55 }
 0xde8   :  { %v11256_v22 = vpop.permute.xlu1 %11255  ;;  %8291 = vmatpush.bf16.msra.mxu3 %v10653_v26 }
 0xde9   :  { %v11258_v27 = vunpack.i.h.bf16 %v11256_v22  ;;  %v11257_v15 = vunpack.i.l.bf16 %v11256_v22  ;;  %v17538_v28 = vpop.f32.mrf.mxu3 }
 0xdeb   :  { %v7889_v6 = vsel %vm2536_vm3, %v17336_v43, %v11257_v15  ;;  %v7890_v3 = vsel %vm2536_vm3, %v17338_v16, %v11258_v27  ;;  %v10652_v16 = vld [vmem:[%s17753_s5 + $0x108] sm:$0xff]  ;;  %v7692_v30 = vpop.f32.mrf.mxu1 }
 0xdec   :  { %v7907_v34 = vpack.c.bf16 %v7890_v3, %v7889_v6  ;;  %8292 = vmatpush.bf16.msra.mxu3 %v10652_v16  ;;  %v7693_v44 = vadd.f32 %v7692_v30, %v7480_v45 }
 0xdee   :  { %8271 = vmatmul.bf16.gmra.mxu3 %v7907_v34 }
 0xdf0   :  { %8293 = vmatpush.bf16.msra.mxu3 %v10651_v37  ;;  %v7274_v54 = vpop.f32.mrf.mxu2 }
 0xdf1   :  { %v8244_v57 = vpop.f32.mrf.mxu3 }
 0xdf2   :  { %v17551_v43 = vadd.f32 %v8244_v57, %v17390_v35  ;;  %v7482_v35 = vpop.f32.mrf.mxu0 }
 0xdf3   :  { %v7695_v38 = vpop.f32.mrf.mxu1 }
 0xdf8   :  { %v7276_v1 = vpop.f32.mrf.mxu2 }
 0xdf9   :  { %v17559_v14 = vpop.f32.mrf.mxu3 }
 0xdfa   :  { %v7484_v40 = vpop.f32.mrf.mxu0 }
 0xdfb   :  { %v7697_v4 = vpop.f32.mrf.mxu1  ;;  %v7485_v8 = vadd.f32 %v7484_v40, %v7271_v5 }
 0xdfd   :  { %v7698_v25 = vadd.f32 %v7697_v4, %v7485_v8 }
 0xdfe   :  { %8276 = vmatmul.bf16.gmra.mxu3 %v7912_v29  ;;  %v7848_v52 = vpop.permute.xlu0 %7847 }
 0xdff   :  { %v7893_v7 = vsel %vm2536_vm3, %v17361_v23, %v7848_v52  ;;  %v7483_v23 = vadd.f32 %v7482_v35, %v7269_v42 }
 0xe00   :  { %v7917_v63 = vpack.c.bf16 %v7893_v7, %v7893_v7  ;;  %v7279_v62 = vpop.f32.mrf.mxu2 }
 0xe01   :  { %v8249_v56 = vpop.f32.mrf.mxu3  ;;  %v7696_v12 = vadd.f32 %v7695_v38, %v7483_v23 }
 0xe02   :  { %v17562_v58 = vadd.f32 %v8249_v56, %v17438_v32  ;;  %v7487_v41 = vpop.f32.mrf.mxu0  ;;  %v7898_v32 = vpack.c.bf16 %v7693_v44, %v7691_v13 }
 0xe03   :  { %v7700_v47 = vpop.f32.mrf.mxu1  ;;  %v7903_v27 = vpack.c.bf16 %v7698_v25, %v7696_v12  ;;  %v7488_v6 = vadd.f32 %v7487_v41, %v7274_v54 }
 0xe05   :  { %v7701_v59 = vadd.f32 %v7700_v47, %v7488_v6  ;;  %v8176_v6 = vadd.f32 %v17343_v24, %v17212_v10  ;;  %v10660_v10 = vld [vmem:[%s17755_s6 + $0x28] sm:$0xff] }
 0xe08   :  { %v7281_v19 = vpop.f32.mrf.mxu2 }
 0xe09   :  { %v8251_v53 = vpop.f32.mrf.mxu3 }
 0xe0a   :  { %v7489_v61 = vpop.f32.mrf.mxu0 }
 0xe0b   :  { %v7702_v39 = vpop.f32.mrf.mxu1  ;;  %v7490_v3 = vadd.f32 %v7489_v61, %v7276_v1 }
 0xe0d   :  { %v7703_v36 = vadd.f32 %v7702_v39, %v7490_v3 }
 0xe0e   :  { %8281 = vmatmul.bf16.gmra.mxu3 %v7917_v63 }
 0xe0f   :  { %v7908_v57 = vpack.c.bf16 %v7703_v36, %v7701_v59 }
 0xe10   :  { %v7284_v15 = vpop.f32.mrf.mxu2 }
 0xe12   :  { %v7492_v29 = vpop.f32.mrf.mxu0 }
 0xe13   :  { %v7705_v22 = vpop.f32.mrf.mxu1  ;;  %v7493_v37 = vadd.f32 %v7492_v29, %v7279_v62  ;;  %v8166_v62 = vadd.f32 %v17343_v24, %v17136_v50 }
 0xe15   :  { %v7706_v38 = vadd.f32 %v7705_v22, %v7493_v37 }
 0xe18   :  { %v7286_v18 = vpop.f32.mrf.mxu2 }
 0xe1a   :  { %v7494_v34 = vpop.f32.mrf.mxu0 }
 0xe1b   :  { %v7707_v33 = vpop.f32.mrf.mxu1  ;;  %v7495_v30 = vadd.f32 %v7494_v34, %v7281_v19 }
 0xe1d   :  { %v7708_v56 = vadd.f32 %v7707_v33, %v7495_v30  ;;  %v10661_v33 = vld [vmem:[%s17755_s6 + $0x30] sm:$0xff] }
 0xe1e   :  { %10250 = vmatmul.msk.bf16.vlgmr.msra.gmra.mxu3 %vm2536_vm3, %v7898_v32  ;;  %v10657_v30 = vld [vmem:[%s17755_s6 + $0x10] sm:$0xff] }
 0xe1f   :  { %v7913_v52 = vpack.c.bf16 %v7708_v56, %v7706_v38  ;;  %v10670_v38 = vld [vmem:[%s17755_s6 + $0x78] sm:$0xff] }
 0xe22   :  { %v7497_v51 = vpop.f32.mrf.mxu0 }
 0xe23   :  { %v7710_v48 = vpop.f32.mrf.mxu1  ;;  %v7498_v5 = vadd.f32 %v7497_v51, %v7284_v15  ;;  %v10658_v51 = vld [vmem:[%s17755_s6 + $0x18] sm:$0xff] }
 0xe25   :  { %v7711_v7 = vadd.f32 %v7710_v48, %v7498_v5  ;;  %v10668_v5 = vld [vmem:[%s17755_s6 + $0x68] sm:$0xff] }
 0xe27   :  { %v7918_v40 = vpack.c.bf16 %v7711_v7, %v7711_v7 }
 0xe2a   :  { %v7499_v42 = vpop.f32.mrf.mxu0 }
 0xe2b   :  { %v7712_v35 = vpop.f32.mrf.mxu1 }
 0xe2e   :  { %10251 = vmatmul.msk.bf16.gmra.mxu3 %vm2536_vm3, %v7903_v27 }
 0xe39   :  { %v8262_v26 = vpop.f32.mrf.mxu3 }
 0xe3a   :  { %v8263_v16 = vadd.f32 %v8262_v26, %v17516_v31  ;;  %v8181_v26 = vadd.f32 %v17343_v24, %v17242_v11 }
 0xe3e   :  { %10252 = vmatmul.msk.bf16.gmra.mxu3 %vm2536_vm3, %v7908_v57 }
 0xe41   :  { %v8264_v53 = vpop.f32.mrf.mxu3 }
 0xe4e   :  { %10253 = vmatmul.msk.bf16.gmra.mxu3 %vm2536_vm3, %v7913_v52  ;;  %v10669_v52 = vld [vmem:[%s17755_s6 + $0x70] sm:$0xff] }
 0xe5e   :  { %10254 = vmatmul.msk.bf16.gmra.mxu3 %vm2536_vm3, %v7918_v40  ;;  %v10666_v40 = vld [vmem:[%s17755_s6 + $0x58] sm:$0xff] }
 0xe61   :  { %v8267_v31 = vpop.f32.mrf.mxu3 }
 0xe62   :  { %v8268_v4 = vadd.f32 %v8267_v31, %v17521_v49  ;;  %v8199_v49 = vadd.f32 %v17351_v20, %v8166_v62  ;;  %v10665_v31 = vld [vmem:[%s17755_s6 + $0x50] sm:$0xff] }
 0xe64   :  { %v8232_v23 = vadd.f32 %v17518_v21, %v8199_v49 }
 0xe69   :  { %v8269_v63 = vpop.f32.mrf.mxu3 }
 0xe71   :  { %v8272_v54 = vpop.f32.mrf.mxu3 }
 0xe72   :  { %v8273_v55 = vadd.f32 %v8272_v54, %v17532_v60  ;;  %v8265_v60 = vadd.f32 %v8264_v53, %v8232_v23  ;;  %v10667_v53 = vld [vmem:[%s17755_s6 + $0x60] sm:$0xff]  ;;  %v10673_v23 = vld [vmem:[%s17755_s6 + $0x90] sm:$0xff] }
 0xe79   :  { %v8274_v45 = vpop.f32.mrf.mxu3 }
 0xe81   :  { %v8277_v41 = vpop.f32.mrf.mxu3 }
 0xe82   :  { %v8278_v47 = vadd.f32 %v8277_v41, %v17551_v43  ;;  %v10678_v41 = vld [vmem:[%s17755_s6 + $0xb8] sm:$0xff] }
 0xe89   :  { %v8279_v1 = vpop.f32.mrf.mxu3 }
 0xe91   :  { %v8282_v13 = vpop.f32.mrf.mxu3 }
 0xe92   :  { %v8283_v44 = vadd.f32 %v8282_v13, %v17562_v58  ;;  %v8171_v58 = vadd.f32 %v17343_v24, %v17177_v9  ;;  %v8209_v9 = vadd.f32 %v17380_v0, %v8176_v6  ;;  %v10659_v0 = vld [vmem:[%s17755_s6 + $0x20] sm:$0xff]  ;;  %v10656_v24 = vld [vmem:[%s17755_s6 + $0x8] sm:$0xff] }
 0xe93   :  { %v10676_v13 = vld [vmem:[%s17755_s6 + $0xa8] sm:$0xff] }
 0xe94   :  { %v8204_v50 = vadd.f32 %v17369_v17, %v8171_v58  ;;  %v8242_v34 = vadd.f32 %v17538_v28, %v8209_v9  ;;  %v10662_v17 = vld [vmem:[%s17755_s6 + $0x38] sm:$0xff] }
 0xe95   :  { %8576 = vmatpush.bf16.msrb.mxu3 %v10662_v17  ;;  %v10690_v9 = vld [vmem:[%s17755_s6 + $0x118] sm:$0xff] }
 0xe96   :  { %v8237_v29 = vadd.f32 %v17526_v46, %v8204_v50  ;;  %v8275_v46 = vadd.f32 %v8274_v45, %v8242_v34  ;;  %v10685_v50 = vld [vmem:[%s17755_s6 + $0xf0] sm:$0xff] }
 0xe98   :  { %v8270_v22 = vadd.f32 %v8269_v63, %v8237_v29  ;;  %v10663_v63 = vld [vmem:[%s17755_s6 + $0x40] sm:$0xff]  ;;  %v10684_v29 = vld [vmem:[%s17755_s6 + $0xe8] sm:$0xff] }
 0xe99   :  { %v8284_v32 = vpop.f32.mrf.mxu3  ;;  %8577 = vmatpush.bf16.msrb.mxu3 %v10661_v33  ;;  %v10688_v33 = vld [vmem:[%s17755_s6 + $0x108] sm:$0xff] }
 0xe9d   :  { %8578 = vmatpush.bf16.msrb.mxu3 %v10660_v10 }
 0xea1   :  { %v8295_v61 = vpop.f32.mrf.mxu3  ;;  %8579 = vmatpush.bf16.msrb.mxu3 %v10659_v0 }
 0xea2   :  { %v17578_v39 = vadd.f32 %v8295_v61, %v8263_v16  ;;  %v8214_v16 = vadd.f32 %v17406_v2, %v8181_v26  ;;  %v10655_v2 = vld [vmem:[%s17755_s6] sm:$0xff] }
 0xea3   :  { %v10675_v61 = vld [vmem:[%s17755_s6 + $0xa0] sm:$0xff] }
 0xea4   :  { %v8247_v48 = vadd.f32 %v17559_v14, %v8214_v16  ;;  %v8319_v54 = vmax.f32 %v17578_v39, 0.0  ;;  %v10674_v39 = vld [vmem:[%s17755_s6 + $0x98] sm:$0xff] }
 0xea5   :  { %8580 = vmatpush.bf16.msrb.mxu3 %v10658_v51  ;;  %v10694_v16 = vld [vmem:[%s17758_s7 + $0x18] sm:$0xff]  ;;  %v10693_v51 = vld [vmem:[%s17758_s7 + $0x10] sm:$0xff] }
 0xea6   :  { %v8280_v37 = vadd.f32 %v8279_v1, %v8247_v48  ;;  %v10677_v1 = vld [vmem:[%s17755_s6 + $0xb0] sm:$0xff] }
 0xea9   :  { %v8297_v8 = vpop.f32.mrf.mxu3  ;;  %8581 = vmatpush.bf16.msrb.mxu3 %v10657_v30  ;;  %v10691_v30 = vld [vmem:[%s17758_s7] sm:$0xff] }
 0xeaa   :  { %v8298_v12 = vadd.f32 %v8297_v8, %v8265_v60  ;;  %v10672_v60 = vld [vmem:[%s17755_s6 + $0x88] sm:$0xff]  ;;  %v10671_v8 = vld [vmem:[%s17755_s6 + $0x80] sm:$0xff] }
 0xeac   :  { %v8320_v25 = vmax.f32 %v8298_v12, 0.0  ;;  %v10686_v12 = vld [vmem:[%s17755_s6 + $0xf8] sm:$0xff] }
 0xead   :  { %8582 = vmatpush.bf16.msrb.mxu3 %v10656_v24 }
 0xeae   :  { %8329 = vrot.lane.b32.xlu1 %v8320_v25, %s11273_s3 }
 0xeb1   :  { %v8300_v43 = vpop.f32.mrf.mxu3  ;;  %8583 = vmatpush.bf16.msrb.mxu3 %v10655_v2 }
 0xeb2   :  { %v17585_v19 = vadd.f32 %v8300_v43, %v8268_v4  ;;  %v10664_v4 = vld [vmem:[%s17755_s6 + $0x48] sm:$0xff] }
 0xeb4   :  { %v8321_v32 = vmax.f32 %v17585_v19, 0.0 }
 0xeb5   :  { %8589 = vmatpush.bf16.msra.mxu3 %v10670_v38 }
 0xeb9   :  { %v8302_v20 = vpop.f32.mrf.mxu3  ;;  %8590 = vmatpush.bf16.msra.mxu3 %v10669_v52 }
 0xeba   :  { %v8303_v27 = vadd.f32 %v8302_v20, %v8270_v22  ;;  %v10683_v22 = vld [vmem:[%s17755_s6 + $0xe0] sm:$0xff]  ;;  %v10682_v20 = vld [vmem:[%s17755_s6 + $0xd8] sm:$0xff] }
 0xebc   :  { %v8322_v21 = vmax.f32 %v8303_v27, 0.0  ;;  %v10681_v27 = vld [vmem:[%s17755_s6 + $0xd0] sm:$0xff] }
 0xebd   :  { %8591 = vmatpush.bf16.msra.mxu3 %v10668_v5 }
 0xebe   :  { %8333 = vrot.lane.b32.xlu2 %v8322_v21, %s11273_s3  ;;  %v10680_v21 = vld [vmem:[%s17755_s6 + $0xc8] sm:$0xff] }
 0xec1   :  { %v8305_v15 = vpop.f32.mrf.mxu3  ;;  %8592 = vmatpush.bf16.msra.mxu3 %v10667_v53 }
 0xec2   :  { %v17592_v3 = vadd.f32 %v8305_v15, %v8273_v55 }
 0xec4   :  { %v8323_v25 = vmax.f32 %v17592_v3, 0.0  ;;  %v10679_v3 = vld [vmem:[%s17755_s6 + $0xc0] sm:$0xff] }
 0xec5   :  { %8593 = vmatpush.bf16.msra.mxu3 %v10666_v40  ;;  %v11268_v40 = vld [vmem:[%s17757_s12] ss:$0 sm:$0xff] }
 0xec9   :  { %v8307_v59 = vpop.f32.mrf.mxu3  ;;  %8594 = vmatpush.bf16.msra.mxu3 %v10665_v31 }
 0xeca   :  { %v8308_v36 = vadd.f32 %v8307_v59, %v8275_v46  ;;  %v10689_v46 = vld [vmem:[%s17755_s6 + $0x110] sm:$0xff]  ;;  %v10687_v59 = vld [vmem:[%s17755_s6 + $0x100] sm:$0xff] }
 0xecc   :  { %v8324_v18 = vmax.f32 %v8308_v36, 0.0 }
 0xecd   :  { %8595 = vmatpush.bf16.msra.mxu3 %v10664_v4 }
 0xece   :  { %8337 = vrot.lane.b32.xlu0 %v8324_v18, %s11273_s3 }
 0xed1   :  { %v8310_v28 = vpop.f32.mrf.mxu3  ;;  %8596 = vmatpush.bf16.msra.mxu3 %v10663_v63 }
 0xed2   :  { %v17611_v57 = vadd.f32 %v8310_v28, %v8278_v47 }
 0xed4   :  { %v8325_v6 = vmax.f32 %v17611_v57, 0.0 }
 0xed9   :  { %v8312_v42 = vpop.f32.mrf.mxu3 }
 0xeda   :  { %v8313_v35 = vadd.f32 %v8312_v42, %v8280_v37  ;;  %v10692_v37 = vld [vmem:[%s17758_s7 + $0x8] sm:$0xff] }
 0xedc   :  { %v8326_v11 = vmax.f32 %v8313_v35, 0.0  ;;  %v11267_v35 = vld [vmem:[%s17756_s11] ss:$0 sm:$0xff] }
 0xede   :  { %8341 = vrot.lane.b32.xlu1 %v8326_v11, %s11273_s3 }
 0xee1   :  { %v8315_v14 = vpop.f32.mrf.mxu3 }
 0xee2   :  { %v17631_v56 = vadd.f32 %v8315_v14, %v8283_v44 }
 0xee4   :  { %v8327_v36 = vmax.f32 %v17631_v56, 0.0 }
 0xee6   :  { %v8352_v18 = vpack.c.bf16 %v8327_v36, %v8327_v36 }
 0xee9   :  { %v8317_v7 = vpop.f32.mrf.mxu3 }
 0xf18   :  { %v8334_v44 = vpop.permute.xlu2 %8333 }
 0xf19   :  { %v8345_v62 = vsel %vm2536_vm3, %v8321_v32, %v8334_v44 }
 0xf1a   :  { %v8349_v49 = vpack.c.bf16 %v8345_v62, %v8345_v62 }
 0xf20   :  { %v8330_v55 = vpop.permute.xlu1 %8329 }
 0xf21   :  { %v8344_v45 = vsel %vm2536_vm3, %v8319_v54, %v8330_v55 }
 0xf22   :  { %v8348_v47 = vpack.c.bf16 %v8344_v45, %v8344_v45 }
 0xf24   :  { %8584 = vmatmul.bf16.vlgmr.msrb.gmra.mxu3 %v8348_v47 }
 0xf25   :  { %8602 = vmatpush.bf16.msrb.mxu3 %v10678_v41 }
 0xf29   :  { %8603 = vmatpush.bf16.msrb.mxu3 %v10677_v1 }
 0xf2d   :  { %8604 = vmatpush.bf16.msrb.mxu3 %v10676_v13 }
 0xf31   :  { %8605 = vmatpush.bf16.msrb.mxu3 %v10675_v61 }
 0xf34   :  { %8597 = vmatmul.bf16.vlgmr.msra.gmra.mxu3 %v8349_v49 }
 0xf35   :  { %8606 = vmatpush.bf16.msrb.mxu3 %v10674_v39 }
 0xf39   :  { %8607 = vmatpush.bf16.msrb.mxu3 %v10673_v23 }
 0xf3d   :  { %8608 = vmatpush.bf16.msrb.mxu3 %v10672_v60 }
 0xf40   :  { %v8338_v43 = vpop.permute.xlu0 %8337 }
 0xf41   :  { %v8346_v58 = vsel %vm2536_vm3, %v8323_v25, %v8338_v43  ;;  %8609 = vmatpush.bf16.msrb.mxu3 %v10671_v8 }
 0xf42   :  { %v8350_v19 = vpack.c.bf16 %v8346_v58, %v8346_v58 }
 0xf44   :  { %8610 = vmatmul.bf16.vlgmr.msrb.gmra.mxu3 %v8350_v19 }
 0xf45   :  { %8615 = vmatpush.bf16.msra.mxu3 %v10686_v12 }
 0xf49   :  { %8616 = vmatpush.bf16.msra.mxu3 %v10685_v50 }
 0xf4d   :  { %8617 = vmatpush.bf16.msra.mxu3 %v10684_v29 }
 0xf50   :  { %v8342_v15 = vpop.permute.xlu1 %8341 }
 0xf51   :  { %8618 = vmatpush.bf16.msra.mxu3 %v10683_v22  ;;  %v8347_v34 = vsel %vm2536_vm3, %v8325_v6, %v8342_v15 }
 0xf52   :  { %v8351_v17 = vpack.c.bf16 %v8347_v34, %v8347_v34 }
 0xf55   :  { %8619 = vmatpush.bf16.msra.mxu3 %v10682_v20 }
 0xf59   :  { %8620 = vmatpush.bf16.msra.mxu3 %v10681_v27 }
 0xf5d   :  { %8621 = vmatpush.bf16.msra.mxu3 %v10680_v21 }
 0xf61   :  { %8622 = vmatpush.bf16.msra.mxu3 %v10679_v3 }
 0xf64   :  { %8623 = vmatmul.bf16.vlgmr.msra.gmra.mxu3 %v8351_v17 }
 0xf65   :  { %8632 = vmatpush.bf16.msrb.mxu3 %v10690_v9 }
 0xf69   :  { %8633 = vmatpush.bf16.msrb.mxu3 %v10689_v46 }
 0xf6d   :  { %8634 = vmatpush.bf16.msrb.mxu3 %v10688_v33 }
 0xf71   :  { %8635 = vmatpush.bf16.msrb.mxu3 %v10687_v59 }
 0xf74   :  { %10399 = vmatmul.msk.bf16.vlgmr.msrb.gmra.mxu3 %vm2536_vm3, %v8352_v18 }
 0xf75   :  { %8678 = vmatpush.bf16.msra.mxu3 %v10694_v16 }
 0xf79   :  { %8679 = vmatpush.bf16.msra.mxu3 %v10693_v51 }
 0xf7d   :  { %8680 = vmatpush.bf16.msra.mxu3 %v10692_v37 }
 0xf81   :  { %8681 = vmatpush.bf16.msra.mxu3 %v10691_v30 }
 0xfa7   :  { %v8585_v10 = vpop.f32.mrf.mxu3 }
 0xfa8   :  { %v8586_v24 = vadd.f32 %v11267_v35, %v8585_v10 }
 0xfaf   :  { %v8587_v0 = vpop.f32.mrf.mxu3 }
 0xfb7   :  { %v8598_v28 = vpop.f32.mrf.mxu3 }
 0xfb8   :  { %v8599_v2 = vadd.f32 %v8598_v28, %v8586_v24 }
 0xfbf   :  { %v8600_v26 = vpop.f32.mrf.mxu3 }
 0xfc7   :  { %v8611_v57 = vpop.f32.mrf.mxu3 }
 0xfc8   :  { %v8612_v14 = vadd.f32 %v8611_v57, %v8599_v2 }
 0xfcf   :  { %v8613_v48 = vpop.f32.mrf.mxu3 }
 0xfe7   :  { %v8624_v42 = vpop.f32.mrf.mxu3 }
 0xfe8   :  { %v8625_v38 = vadd.f32 %v8624_v42, %v8612_v14 }
 0xfef   :  { %v8626_v11 = vpop.f32.mrf.mxu3 }
 0xff7   :  { %v8637_v56 = vpop.f32.mrf.mxu3 }
 0xff8   :  { %v8638_v52 = vadd.f32 %v8637_v56, %v8625_v38 }
 0xffa   :  { %v8641_v5 = vmax.f32 %v8638_v52, 0.0 }
 0xffc   :  { %v8642_v7 = vpack.c.bf16 %v8641_v5, %v8641_v5 }
 0xffe   :  { %10416 = vmatmul.msk.bf16.vlgmr.msra.gmra.mxu3 %vm2536_vm3, %v8642_v7 }
 0xfff   :  { %v8639_v53 = vpop.f32.mrf.mxu3 }
0x1081   :  { %v8683_v31 = vpop.f32.mrf.mxu3 }
0x1082   :  { %v8684_v4 = vadd.f32 %v11268_v40, %v8683_v31 }
0x1084   :  { %8688 = vst.msk [vmem:[%s17759_s13] sm:$0xff] %vm8687_vm4, %v8684_v4 }
0x1089   :  { %v8685_v63 = vpop.f32.mrf.mxu3 }

</bundles_post_ra>
